<compile_context>
chip_gen: v7x
topology: tpu7x:2x2x1
jax: 0.10.0
libtpu: 0.0.40
codegen_flags: <defaults>
</compile_context>

<pallas_src>
import functools

import jax
import jax.numpy as jnp
from jax.experimental import pallas as pl
from jax.experimental.pallas import tpu as pltpu


# ----------------------------------------------------------------------------
# Kernel 1: stem conv + expand 1x1 (row-tiled matmuls)
# ----------------------------------------------------------------------------
def _stem_exp_kernel(p_ref, sw_ref, sb_ref, ew_ref, eb_ref, stem_ref, exp_ref):
    """Fused: stem 3x3 conv (matmul on im2col rows) + BN(fold) + SiLU,
    then MBConv expand 1x1 + BN(fold) + SiLU."""
    f32 = jnp.float32
    y = jnp.dot(p_ref[...], sw_ref[...], preferred_element_type=f32) + sb_ref[...]
    y = y * jax.nn.sigmoid(y)                                   # SiLU
    stem_ref[...] = y.astype(stem_ref.dtype)
    z = jnp.dot(y.astype(jnp.bfloat16), ew_ref[...],
                preferred_element_type=f32) + eb_ref[...]
    z = z * jax.nn.sigmoid(z)                                   # SiLU
    exp_ref[...] = z.astype(exp_ref.dtype)


def stem_expand_call(p, params, tm=256):
    """p: (M, Kpad) bf16 im2col rows -> (stem, exp), both (M, 128) bf16."""
    M, K = p.shape
    C = params["stem_w"].shape[1]
    Mp = pl.cdiv(M, tm) * tm
    if Mp != M:
        p = jnp.pad(p, ((0, Mp - M), (0, 0)))
    stem, exp = pl.pallas_call(
        _stem_exp_kernel,
        out_shape=(jax.ShapeDtypeStruct((Mp, C), jnp.bfloat16),
                   jax.ShapeDtypeStruct((Mp, C), jnp.bfloat16)),
        grid=(Mp // tm,),
        in_specs=[
            pl.BlockSpec((tm, K), lambda i: (i, 0)),
            pl.BlockSpec((K, C), lambda i: (0, 0)),
            pl.BlockSpec((1, C), lambda i: (0, 0)),
            pl.BlockSpec((C, C), lambda i: (0, 0)),
            pl.BlockSpec((1, C), lambda i: (0, 0)),
        ],
        out_specs=(pl.BlockSpec((tm, C), lambda i: (i, 0)),
                   pl.BlockSpec((tm, C), lambda i: (i, 0))),
        compiler_params=pltpu.CompilerParams(
            dimension_semantics=("parallel",)),
    )(p, params["stem_w"], params["stem_b"], params["exp_w"], params["exp_b"])
    if Mp != M:
        stem, exp = stem[:M], exp[:M]
    return stem, exp


# ----------------------------------------------------------------------------
# Kernel 2: per-image fused MBConv tail + head + classifier
# ----------------------------------------------------------------------------
def _mbconv_head_kernel(x_ref, stem_ref, dww_ref, dwb_ref,
                        se1w_ref, se1b_ref, se2w_ref, se2b_ref,
                        projw_ref, projb_ref, headw_ref, headb_ref,
                        clsw_ref, clsb_ref, out_ref, *, ho, wo, apply_sigmoid):
    """Per-image: 3x3 depthwise conv (9 unrolled VPU taps on the spatially
    pre-padded activation) + BN(fold) + SiLU, SE global pool + SE-MLP +
    channel gate, 1x1 project (+residual, no act), 1x1 head conv + SiLU,
    global average pool, classifier Linear (+ optional Sigmoid)."""
    f32 = jnp.float32
    c = dww_ref.shape[-1]

    # Depthwise 3x3, stride 1, on zero-padded (ho+2, wo+2, c) window.
    acc = jnp.zeros((ho, wo, c), f32)
    for kh in range(3):
        for kw in range(3):
            tap = x_ref[0, kh:kh + ho, kw:kw + wo, :].astype(f32)
            acc = acc + tap * dww_ref[kh * 3 + kw, :]
    y = acc + dwb_ref[...]
    y = y * jax.nn.sigmoid(y)                                   # SiLU
    dw = y.reshape(ho * wo, c)                                  # (HW, Cmid)

    # Squeeze-excite: global pool -> MLP -> sigmoid gates.
    pool = jnp.mean(dw, axis=0, keepdims=True)                  # (1, Cmid) f32
    h = jnp.dot(pool.astype(jnp.bfloat16), se1w_ref[...],
                preferred_element_type=f32) + se1b_ref[...]
    h = h * jax.nn.sigmoid(h)                                   # SiLU
    g = jnp.dot(h.astype(jnp.bfloat16), se2w_ref[...],
                preferred_element_type=f32) + se2b_ref[...]
    g = jax.nn.sigmoid(g)                                       # (1, Cmid) gates

    # Gate + project 1x1 (BN folded) + residual (no activation).
    gated = dw * g
    proj = jnp.dot(gated.astype(jnp.bfloat16), projw_ref[...],
                   preferred_element_type=f32) + projb_ref[...]
    proj = proj + stem_ref[0].astype(f32)

    # Head 1x1 conv + BN(fold) + SiLU.
    head = jnp.dot(proj.astype(jnp.bfloat16), headw_ref[...],
                   preferred_element_type=f32) + headb_ref[...]
    head = head * jax.nn.sigmoid(head)

    # Global average pool + classifier (nn.LazyLinear) + optional Sigmoid.
    pooled = jnp.sum(head, axis=0, keepdims=True) * (1.0 / float(ho * wo))
    logits = jnp.dot(pooled.astype(jnp.bfloat16), clsw_ref[...],
                     preferred_element_type=f32) + clsb_ref[...]
    if apply_sigmoid:
        logits = jax.nn.sigmoid(logits)
    out_ref[0] = logits.astype(out_ref.dtype)


def mbconv_head_call(exp_img, stem_rows, params, is_sigmoid):
    """exp_img: (N, Ho, Wo, C) bf16, stem_rows: (N, HW, C) bf16
    -> logits (N, Cpad) f32."""
    N, Ho, Wo, C = exp_img.shape
    HW = Ho * Wo
    Cout = params["cls_w"].shape[1]
    xpad = jnp.pad(exp_img, ((0, 0), (1, 1), (1, 1), (0, 0)))

    wspec = pl.BlockSpec((C, C), lambda n: (0, 0))
    bspec = pl.BlockSpec((1, C), lambda n: (0, 0))
    out = pl.pallas_call(
        functools.partial(_mbconv_head_kernel, ho=Ho, wo=Wo,
                          apply_sigmoid=is_sigmoid),
        out_shape=jax.ShapeDtypeStruct((N, 1, Cout), jnp.float32),
        grid=(N,),
        in_specs=[
            pl.BlockSpec((1, Ho + 2, Wo + 2, C), lambda n: (n, 0, 0, 0)),
            pl.BlockSpec((1, HW, C), lambda n: (n, 0, 0)),    # stem (residual)
            pl.BlockSpec((9, C), lambda n: (0, 0)),           # dw_w
            bspec,                                            # dw_b
            wspec, bspec,                                     # se1
            wspec, bspec,                                     # se2
            wspec, bspec,                                     # proj
            wspec, bspec,                                     # head
            pl.BlockSpec((C, Cout), lambda n: (0, 0)),        # cls_w
            pl.BlockSpec((1, Cout), lambda n: (0, 0)),        # cls_b
        ],
        out_specs=pl.BlockSpec((1, 1, Cout), lambda n: (n, 0, 0)),
        compiler_params=pltpu.CompilerParams(
            dimension_semantics=("parallel",)),
    )(xpad, stem_rows,
      params["dw_w"], params["dw_b"],
      params["se1_w"], params["se1_b"], params["se2_w"], params["se2_b"],
      params["proj_w"], params["proj_b"], params["head_w"], params["head_b"],
      params["cls_w"], params["cls_b"])
    return out[:, 0, :]


# ----------------------------------------------------------------------------
# Glue: im2col patch extraction for the stem conv only (plain JAX)
# ----------------------------------------------------------------------------
def extract_patches(x, ksize, stride, pad):
    N, H, W, C = x.shape
    xp = jnp.pad(x, ((0, 0), (pad, pad), (pad, pad), (0, 0)))
    Ho = (H + 2 * pad - ksize) // stride + 1
    Wo = (W + 2 * pad - ksize) // stride + 1
    pieces = []
    for kh in range(ksize):
        for kw in range(ksize):
            pieces.append(
                xp[:, kh:kh + stride * Ho:stride, kw:kw + stride * Wo:stride, :]
            )
    return jnp.stack(pieces, axis=3), Ho, Wo


# ----------------------------------------------------------------------------
# EffNet forward
# ----------------------------------------------------------------------------
def effnet_forward(x_nchw, params, n_out=5, is_sigmoid=True):
    x = jnp.transpose(x_nchw, (0, 2, 3, 1)).astype(jnp.float32)   # NCHW -> NHWC
    N, _, _, cin = x.shape

    # Stem: 3x3 stride-2 conv via im2col rows (only 9*Cin-wide, cheap).
    p, Ho, Wo = extract_patches(x, 3, 2, 1)
    M = N * Ho * Wo
    p = p.reshape(M, 9 * cin)
    kin_pad = params["stem_w"].shape[0]
    if p.shape[1] != kin_pad:
        p = jnp.pad(p, ((0, 0), (0, kin_pad - p.shape[1])))
    p = p.astype(jnp.bfloat16)

    # Kernel 1: stem conv+BN+SiLU fused with expand 1x1+BN+SiLU.
    stem, exp = stem_expand_call(p, params)                      # (M, 128) bf16
    C = stem.shape[1]

    # Kernel 2: DW conv + SE + gate + project(+res) + head + pool + classifier.
    logits = mbconv_head_call(exp.reshape(N, Ho, Wo, C),
                              stem.reshape(N, Ho * Wo, C),
                              params, is_sigmoid)
    return logits[:, :n_out]


# ----------------------------------------------------------------------------
# Deterministic synthetic parameters (BN scale folded, channels padded to 128)
# ----------------------------------------------------------------------------
def _ceil_to(a, b):
    return -(-a // b) * b


def _pad2(a, rows, cols):
    r, c = a.shape
    return jnp.pad(a, ((0, rows - r), (0, cols - c)))


def make_params(key, c_in=3, c_stem=16, expand=4, c_se=8, c_head=64,
                n_out=5, cpad=128):
    c_mid = c_stem * expand
    ks = jax.random.split(key, 8)

    def init(k, shape, fan_in):
        return jax.random.normal(k, shape, jnp.float32) / jnp.sqrt(float(fan_in))

    kin = 9 * c_in
    kin_pad = _ceil_to(kin, 8)

    # Unpadded weights; BN scale (ones here) is folded into the weight matrix.
    bn_scale = lambda c: jnp.ones((c,), jnp.float32)
    stem_w = init(ks[0], (kin, c_stem), kin) * bn_scale(c_stem)[None, :]
    exp_w = init(ks[1], (c_stem, c_mid), c_stem) * bn_scale(c_mid)[None, :]
    dw_w = init(ks[2], (9, c_mid), 9) * bn_scale(c_mid)[None, :]
    se1_w = init(ks[3], (c_mid, c_se), c_mid)
    se2_w = init(ks[4], (c_se, c_mid), c_se)
    proj_w = init(ks[5], (c_mid, c_stem), c_mid) * bn_scale(c_stem)[None, :]
    head_w = init(ks[6], (c_stem, c_head), c_stem) * bn_scale(c_head)[None, :]
    cls_w = init(ks[7], (c_head, n_out), c_head)

    zbias = jnp.zeros((1, cpad), jnp.float32)
    bf16 = jnp.bfloat16
    return {
        "stem_w": _pad2(stem_w, kin_pad, cpad).astype(bf16), "stem_b": zbias,
        "exp_w": _pad2(exp_w, cpad, cpad).astype(bf16), "exp_b": zbias,
        "dw_w": _pad2(dw_w, 9, cpad), "dw_b": zbias,            # f32 VPU taps
        "se1_w": _pad2(se1_w, cpad, cpad).astype(bf16), "se1_b": zbias,
        "se2_w": _pad2(se2_w, cpad, cpad).astype(bf16), "se2_b": zbias,
        "proj_w": _pad2(proj_w, cpad, cpad).astype(bf16), "proj_b": zbias,
        "head_w": _pad2(head_w, cpad, cpad).astype(bf16), "head_b": zbias,
        "cls_w": _pad2(cls_w, cpad, cpad).astype(bf16), "cls_b": zbias,
    }


if __name__ == "__main__":
    key = jax.random.PRNGKey(0)
    k_x, k_p = jax.random.split(key)

    # PyTorch-style NCHW input: batch=2, 3 channels, 32x32 image.
    x = jax.random.normal(k_x, (2, 3, 32, 32), jnp.float32)
    params = make_params(k_p, n_out=5)

    fwd = jax.jit(functools.partial(effnet_forward, n_out=5, is_sigmoid=True))
    out = fwd(x, params)
    out = jax.block_until_ready(out)

    assert out.shape == (2, 5)
    assert bool(jnp.all(jnp.isfinite(out)))
    assert bool(jnp.all((out >= 0.0) & (out <= 1.0)))  # sigmoid output
    print("KERNEL_OK")
</pallas_src>

<mosaic_0001>
module attributes {stable_mosaic.version = 11 : i64} {
  func.func @_stem_exp_kernel(%arg0: i32, %arg1: memref<256x32xbf16, #tpu.memory_space<vmem>>, %arg2: memref<32x128xbf16, #tpu.memory_space<vmem>>, %arg3: memref<1x128xf32, #tpu.memory_space<vmem>>, %arg4: memref<128x128xbf16, #tpu.memory_space<vmem>>, %arg5: memref<1x128xf32, #tpu.memory_space<vmem>>, %arg6: memref<256x128xbf16, #tpu.memory_space<vmem>>, %arg7: memref<256x128xbf16, #tpu.memory_space<vmem>>) attributes {dimension_semantics = [#tpu.dimension_semantics<parallel>], iteration_bounds = array<i64: 2>, scalar_prefetch = 0 : i64, scratch_operands = 0 : i64, tpu.core_type = #tpu.core_type<tc>, window_params = [{transform_indices = @transform_0, window_bounds = array<i64: 256, 32>}, {pipeline_mode = #tpu.pipeline_mode<synchronous>, transform_indices = @transform_1, window_bounds = array<i64: 32, 128>}, {pipeline_mode = #tpu.pipeline_mode<synchronous>, transform_indices = @transform_2, window_bounds = array<i64: 1, 128>}, {pipeline_mode = #tpu.pipeline_mode<synchronous>, transform_indices = @transform_3, window_bounds = array<i64: 128, 128>}, {pipeline_mode = #tpu.pipeline_mode<synchronous>, transform_indices = @transform_4, window_bounds = array<i64: 1, 128>}, {transform_indices = @transform_5, window_bounds = array<i64: 256, 128>}, {transform_indices = @transform_6, window_bounds = array<i64: 256, 128>}]} {
    %c0 = arith.constant 0 : index
    %c0_0 = arith.constant 0 : index
    %0 = vector.load %arg1[%c0, %c0_0] : memref<256x32xbf16, #tpu.memory_space<vmem>>, vector<256x32xbf16>
    %c0_1 = arith.constant 0 : index
    %c0_2 = arith.constant 0 : index
    %1 = vector.load %arg2[%c0_1, %c0_2] : memref<32x128xbf16, #tpu.memory_space<vmem>>, vector<32x128xbf16>
    %cst = arith.constant dense<0.000000e+00> : vector<256x128xf32>
    %2 = tpu.matmul %0, %1, %cst {dimension_numbers = #tpu.dot_dimension_numbers<[1], [0], [0], [1], [0, 0, 1, 1], [], []>} : vector<256x32xbf16>, vector<32x128xbf16>, vector<256x128xf32> -> vector<256x128xf32>
    %c0_3 = arith.constant 0 : index
    %c0_4 = arith.constant 0 : index
    %3 = vector.load %arg3[%c0_3, %c0_4] : memref<1x128xf32, #tpu.memory_space<vmem>>, vector<1x128xf32>
    %4 = vector.broadcast %3 : vector<1x128xf32> to vector<256x128xf32>
    %5 = arith.addf %2, %4 : vector<256x128xf32>
    %6 = arith.negf %5 : vector<256x128xf32>
    %7 = math.exp %6 : vector<256x128xf32>
    %cst_5 = arith.constant 1.000000e+00 : f32
    %8 = vector.broadcast %cst_5 : f32 to vector<256x128xf32>
    %9 = arith.addf %8, %7 : vector<256x128xf32>
    %10 = arith.divf %8, %9 : vector<256x128xf32>
    %11 = arith.mulf %5, %10 : vector<256x128xf32>
    %12 = arith.truncf %11 : vector<256x128xf32> to vector<256x128xbf16>
    %c0_6 = arith.constant 0 : index
    %c0_7 = arith.constant 0 : index
    %13 = vector.load %arg6[%c0_6, %c0_7] : memref<256x128xbf16, #tpu.memory_space<vmem>>, vector<256x128xbf16>
    tpu.vector_store %arg6[%c0_6, %c0_7], %12 {strides = array<i32>} : memref<256x128xbf16, #tpu.memory_space<vmem>>, vector<256x128xbf16>,
    %14 = arith.truncf %11 : vector<256x128xf32> to vector<256x128xbf16>
    %c0_8 = arith.constant 0 : index
    %c0_9 = arith.constant 0 : index
    %15 = vector.load %arg4[%c0_8, %c0_9] : memref<128x128xbf16, #tpu.memory_space<vmem>>, vector<128x128xbf16>
    %cst_10 = arith.constant dense<0.000000e+00> : vector<256x128xf32>
    %16 = tpu.matmul %14, %15, %cst_10 {dimension_numbers = #tpu.dot_dimension_numbers<[1], [0], [0], [1], [0, 0, 1, 1], [], []>} : vector<256x128xbf16>, vector<128x128xbf16>, vector<256x128xf32> -> vector<256x128xf32>
    %c0_11 = arith.constant 0 : index
    %c0_12 = arith.constant 0 : index
    %17 = vector.load %arg5[%c0_11, %c0_12] : memref<1x128xf32, #tpu.memory_space<vmem>>, vector<1x128xf32>
    %18 = vector.broadcast %17 : vector<1x128xf32> to vector<256x128xf32>
    %19 = arith.addf %16, %18 : vector<256x128xf32>
    %20 = arith.negf %19 : vector<256x128xf32>
    %21 = math.exp %20 : vector<256x128xf32>
    %cst_13 = arith.constant 1.000000e+00 : f32
    %22 = vector.broadcast %cst_13 : f32 to vector<256x128xf32>
    %23 = arith.addf %22, %21 : vector<256x128xf32>
    %24 = arith.divf %22, %23 : vector<256x128xf32>
    %25 = arith.mulf %19, %24 : vector<256x128xf32>
    %26 = arith.truncf %25 : vector<256x128xf32> to vector<256x128xbf16>
    %c0_14 = arith.constant 0 : index
    %c0_15 = arith.constant 0 : index
    %27 = vector.load %arg7[%c0_14, %c0_15] : memref<256x128xbf16, #tpu.memory_space<vmem>>, vector<256x128xbf16>
    tpu.vector_store %arg7[%c0_14, %c0_15], %26 {strides = array<i32>} : memref<256x128xbf16, #tpu.memory_space<vmem>>, vector<256x128xbf16>,
    return
  }
  func.func @transform_0(%arg0: i32) -> (i32, i32) {
    %c0_i32 = arith.constant 0 : i32
    %c0_i32_0 = arith.constant 0 : i32
    return %arg0, %c0_i32 : i32, i32
  }
  func.func @transform_1(%arg0: i32) -> (i32, i32) {
    %c0_i32 = arith.constant 0 : i32
    %c0_i32_0 = arith.constant 0 : i32
    %c0_i32_1 = arith.constant 0 : i32
    return %c0_i32, %c0_i32_0 : i32, i32
  }
  func.func @transform_2(%arg0: i32) -> (i32, i32) {
    %c0_i32 = arith.constant 0 : i32
    %c0_i32_0 = arith.constant 0 : i32
    %c0_i32_1 = arith.constant 0 : i32
    return %c0_i32, %c0_i32_0 : i32, i32
  }
  func.func @transform_3(%arg0: i32) -> (i32, i32) {
    %c0_i32 = arith.constant 0 : i32
    %c0_i32_0 = arith.constant 0 : i32
    %c0_i32_1 = arith.constant 0 : i32
    return %c0_i32, %c0_i32_0 : i32, i32
  }
  func.func @transform_4(%arg0: i32) -> (i32, i32) {
    %c0_i32 = arith.constant 0 : i32
    %c0_i32_0 = arith.constant 0 : i32
    %c0_i32_1 = arith.constant 0 : i32
    return %c0_i32, %c0_i32_0 : i32, i32
  }
  func.func @transform_5(%arg0: i32) -> (i32, i32) {
    %c0_i32 = arith.constant 0 : i32
    %c0_i32_0 = arith.constant 0 : i32
    return %arg0, %c0_i32 : i32, i32
  }
  func.func @transform_6(%arg0: i32) -> (i32, i32) {
    %c0_i32 = arith.constant 0 : i32
    %c0_i32_0 = arith.constant 0 : i32
    return %arg0, %c0_i32 : i32, i32
  }
}

module attributes {stable_mosaic.version = 11 : i64} {
  func.func @_mbconv_head_kernel(%arg0: i32, %arg1: memref<1x18x18x128xbf16, #tpu.memory_space<vmem>>, %arg2: memref<1x256x128xbf16, #tpu.memory_space<vmem>>, %arg3: memref<9x128xf32, #tpu.memory_space<vmem>>, %arg4: memref<1x128xf32, #tpu.memory_space<vmem>>, %arg5: memref<128x128xbf16, #tpu.memory_space<vmem>>, %arg6: memref<1x128xf32, #tpu.memory_space<vmem>>, %arg7: memref<128x128xbf16, #tpu.memory_space<vmem>>, %arg8: memref<1x128xf32, #tpu.memory_space<vmem>>, %arg9: memref<128x128xbf16, #tpu.memory_space<vmem>>, %arg10: memref<1x128xf32, #tpu.memory_space<vmem>>, %arg11: memref<128x128xbf16, #tpu.memory_space<vmem>>, %arg12: memref<1x128xf32, #tpu.memory_space<vmem>>, %arg13: memref<128x128xbf16, #tpu.memory_space<vmem>>, %arg14: memref<1x128xf32, #tpu.memory_space<vmem>>, %arg15: memref<1x1x128xf32, #tpu.memory_space<vmem>>) attributes {dimension_semantics = [#tpu.dimension_semantics<parallel>], iteration_bounds = array<i64: 2>, scalar_prefetch = 0 : i64, scratch_operands = 0 : i64, tpu.core_type = #tpu.core_type<tc>, window_params = [{transform_indices = @transform_0, window_bounds = array<i64: 1, 18, 18, 128>}, {transform_indices = @transform_1, window_bounds = array<i64: 1, 256, 128>}, {pipeline_mode = #tpu.pipeline_mode<synchronous>, transform_indices = @transform_2, window_bounds = array<i64: 9, 128>}, {pipeline_mode = #tpu.pipeline_mode<synchronous>, transform_indices = @transform_3, window_bounds = array<i64: 1, 128>}, {pipeline_mode = #tpu.pipeline_mode<synchronous>, transform_indices = @transform_4, window_bounds = array<i64: 128, 128>}, {pipeline_mode = #tpu.pipeline_mode<synchronous>, transform_indices = @transform_5, window_bounds = array<i64: 1, 128>}, {pipeline_mode = #tpu.pipeline_mode<synchronous>, transform_indices = @transform_6, window_bounds = array<i64: 128, 128>}, {pipeline_mode = #tpu.pipeline_mode<synchronous>, transform_indices = @transform_7, window_bounds = array<i64: 1, 128>}, {pipeline_mode = #tpu.pipeline_mode<synchronous>, transform_indices = @transform_8, window_bounds = array<i64: 128, 128>}, {pipeline_mode = #tpu.pipeline_mode<synchronous>, transform_indices = @transform_9, window_bounds = array<i64: 1, 128>}, {pipeline_mode = #tpu.pipeline_mode<synchronous>, transform_indices = @transform_10, window_bounds = array<i64: 128, 128>}, {pipeline_mode = #tpu.pipeline_mode<synchronous>, transform_indices = @transform_11, window_bounds = array<i64: 1, 128>}, {pipeline_mode = #tpu.pipeline_mode<synchronous>, transform_indices = @transform_12, window_bounds = array<i64: 128, 128>}, {pipeline_mode = #tpu.pipeline_mode<synchronous>, transform_indices = @transform_13, window_bounds = array<i64: 1, 128>}, {transform_indices = @transform_14, window_bounds = array<i64: 1, 1, 128>}]} {
    %cst = arith.constant 0.000000e+00 : f32
    %0 = vector.broadcast %cst : f32 to vector<16x16x128xf32>
    %c0 = arith.constant 0 : index
    %c0_0 = arith.constant 0 : index
    %c0_1 = arith.constant 0 : index
    %c0_2 = arith.constant 0 : index
    %1 = vector.load %arg1[%c0, %c0_0, %c0_1, %c0_2] : memref<1x18x18x128xbf16, #tpu.memory_space<vmem>>, vector<1x16x16x128xbf16>
    %2 = vector.shape_cast %1 : vector<1x16x16x128xbf16> to vector<16x16x128xbf16>
    %3 = arith.extf %2 : vector<16x16x128xbf16> to vector<16x16x128xf32>
    %c0_3 = arith.constant 0 : index
    %c0_4 = arith.constant 0 : index
    %4 = vector.load %arg3[%c0_3, %c0_4] : memref<9x128xf32, #tpu.memory_space<vmem>>, vector<1x128xf32>
    %5 = vector.shape_cast %4 : vector<1x128xf32> to vector<128xf32>
    %6 = vector.shape_cast %5 : vector<128xf32> to vector<1x1x128xf32>
    %7 = vector.broadcast %6 : vector<1x1x128xf32> to vector<16x16x128xf32>
    %8 = arith.mulf %3, %7 : vector<16x16x128xf32>
    %9 = arith.addf %0, %8 : vector<16x16x128xf32>
    %c0_5 = arith.constant 0 : index
    %c0_6 = arith.constant 0 : index
    %c1 = arith.constant 1 : index
    %c0_7 = arith.constant 0 : index
    %10 = vector.load %arg1[%c0_5, %c0_6, %c1, %c0_7] : memref<1x18x18x128xbf16, #tpu.memory_space<vmem>>, vector<1x16x16x128xbf16>
    %11 = vector.shape_cast %10 : vector<1x16x16x128xbf16> to vector<16x16x128xbf16>
    %12 = arith.extf %11 : vector<16x16x128xbf16> to vector<16x16x128xf32>
    %c1_8 = arith.constant 1 : index
    %c0_9 = arith.constant 0 : index
    %13 = vector.load %arg3[%c1_8, %c0_9] : memref<9x128xf32, #tpu.memory_space<vmem>>, vector<1x128xf32>
    %14 = vector.shape_cast %13 : vector<1x128xf32> to vector<128xf32>
    %15 = vector.shape_cast %14 : vector<128xf32> to vector<1x1x128xf32>
    %16 = vector.broadcast %15 : vector<1x1x128xf32> to vector<16x16x128xf32>
    %17 = arith.mulf %12, %16 : vector<16x16x128xf32>
    %18 = arith.addf %9, %17 : vector<16x16x128xf32>
    %c0_10 = arith.constant 0 : index
    %c0_11 = arith.constant 0 : index
    %c2 = arith.constant 2 : index
    %c0_12 = arith.constant 0 : index
    %19 = vector.load %arg1[%c0_10, %c0_11, %c2, %c0_12] : memref<1x18x18x128xbf16, #tpu.memory_space<vmem>>, vector<1x16x16x128xbf16>
    %20 = vector.shape_cast %19 : vector<1x16x16x128xbf16> to vector<16x16x128xbf16>
    %21 = arith.extf %20 : vector<16x16x128xbf16> to vector<16x16x128xf32>
    %c2_13 = arith.constant 2 : index
    %c0_14 = arith.constant 0 : index
    %22 = vector.load %arg3[%c2_13, %c0_14] : memref<9x128xf32, #tpu.memory_space<vmem>>, vector<1x128xf32>
    %23 = vector.shape_cast %22 : vector<1x128xf32> to vector<128xf32>
    %24 = vector.shape_cast %23 : vector<128xf32> to vector<1x1x128xf32>
    %25 = vector.broadcast %24 : vector<1x1x128xf32> to vector<16x16x128xf32>
    %26 = arith.mulf %21, %25 : vector<16x16x128xf32>
    %27 = arith.addf %18, %26 : vector<16x16x128xf32>
    %c0_15 = arith.constant 0 : index
    %c1_16 = arith.constant 1 : index
    %c0_17 = arith.constant 0 : index
    %c0_18 = arith.constant 0 : index
    %28 = vector.load %arg1[%c0_15, %c1_16, %c0_17, %c0_18] : memref<1x18x18x128xbf16, #tpu.memory_space<vmem>>, vector<1x16x16x128xbf16>
    %29 = vector.shape_cast %28 : vector<1x16x16x128xbf16> to vector<16x16x128xbf16>
    %30 = arith.extf %29 : vector<16x16x128xbf16> to vector<16x16x128xf32>
    %c3 = arith.constant 3 : index
    %c0_19 = arith.constant 0 : index
    %31 = vector.load %arg3[%c3, %c0_19] : memref<9x128xf32, #tpu.memory_space<vmem>>, vector<1x128xf32>
    %32 = vector.shape_cast %31 : vector<1x128xf32> to vector<128xf32>
    %33 = vector.shape_cast %32 : vector<128xf32> to vector<1x1x128xf32>
    %34 = vector.broadcast %33 : vector<1x1x128xf32> to vector<16x16x128xf32>
    %35 = arith.mulf %30, %34 : vector<16x16x128xf32>
    %36 = arith.addf %27, %35 : vector<16x16x128xf32>
    %c0_20 = arith.constant 0 : index
    %c1_21 = arith.constant 1 : index
    %c1_22 = arith.constant 1 : index
    %c0_23 = arith.constant 0 : index
    %37 = vector.load %arg1[%c0_20, %c1_21, %c1_22, %c0_23] : memref<1x18x18x128xbf16, #tpu.memory_space<vmem>>, vector<1x16x16x128xbf16>
    %38 = vector.shape_cast %37 : vector<1x16x16x128xbf16> to vector<16x16x128xbf16>
    %39 = arith.extf %38 : vector<16x16x128xbf16> to vector<16x16x128xf32>
    %c4 = arith.constant 4 : index
    %c0_24 = arith.constant 0 : index
    %40 = vector.load %arg3[%c4, %c0_24] : memref<9x128xf32, #tpu.memory_space<vmem>>, vector<1x128xf32>
    %41 = vector.shape_cast %40 : vector<1x128xf32> to vector<128xf32>
    %42 = vector.shape_cast %41 : vector<128xf32> to vector<1x1x128xf32>
    %43 = vector.broadcast %42 : vector<1x1x128xf32> to vector<16x16x128xf32>
    %44 = arith.mulf %39, %43 : vector<16x16x128xf32>
    %45 = arith.addf %36, %44 : vector<16x16x128xf32>
    %c0_25 = arith.constant 0 : index
    %c1_26 = arith.constant 1 : index
    %c2_27 = arith.constant 2 : index
    %c0_28 = arith.constant 0 : index
    %46 = vector.load %arg1[%c0_25, %c1_26, %c2_27, %c0_28] : memref<1x18x18x128xbf16, #tpu.memory_space<vmem>>, vector<1x16x16x128xbf16>
    %47 = vector.shape_cast %46 : vector<1x16x16x128xbf16> to vector<16x16x128xbf16>
    %48 = arith.extf %47 : vector<16x16x128xbf16> to vector<16x16x128xf32>
    %c5 = arith.constant 5 : index
    %c0_29 = arith.constant 0 : index
    %49 = vector.load %arg3[%c5, %c0_29] : memref<9x128xf32, #tpu.memory_space<vmem>>, vector<1x128xf32>
    %50 = vector.shape_cast %49 : vector<1x128xf32> to vector<128xf32>
    %51 = vector.shape_cast %50 : vector<128xf32> to vector<1x1x128xf32>
    %52 = vector.broadcast %51 : vector<1x1x128xf32> to vector<16x16x128xf32>
    %53 = arith.mulf %48, %52 : vector<16x16x128xf32>
    %54 = arith.addf %45, %53 : vector<16x16x128xf32>
    %c0_30 = arith.constant 0 : index
    %c2_31 = arith.constant 2 : index
    %c0_32 = arith.constant 0 : index
    %c0_33 = arith.constant 0 : index
    %55 = vector.load %arg1[%c0_30, %c2_31, %c0_32, %c0_33] : memref<1x18x18x128xbf16, #tpu.memory_space<vmem>>, vector<1x16x16x128xbf16>
    %56 = vector.shape_cast %55 : vector<1x16x16x128xbf16> to vector<16x16x128xbf16>
    %57 = arith.extf %56 : vector<16x16x128xbf16> to vector<16x16x128xf32>
    %c6 = arith.constant 6 : index
    %c0_34 = arith.constant 0 : index
    %58 = vector.load %arg3[%c6, %c0_34] : memref<9x128xf32, #tpu.memory_space<vmem>>, vector<1x128xf32>
    %59 = vector.shape_cast %58 : vector<1x128xf32> to vector<128xf32>
    %60 = vector.shape_cast %59 : vector<128xf32> to vector<1x1x128xf32>
    %61 = vector.broadcast %60 : vector<1x1x128xf32> to vector<16x16x128xf32>
    %62 = arith.mulf %57, %61 : vector<16x16x128xf32>
    %63 = arith.addf %54, %62 : vector<16x16x128xf32>
    %c0_35 = arith.constant 0 : index
    %c2_36 = arith.constant 2 : index
    %c1_37 = arith.constant 1 : index
    %c0_38 = arith.constant 0 : index
    %64 = vector.load %arg1[%c0_35, %c2_36, %c1_37, %c0_38] : memref<1x18x18x128xbf16, #tpu.memory_space<vmem>>, vector<1x16x16x128xbf16>
    %65 = vector.shape_cast %64 : vector<1x16x16x128xbf16> to vector<16x16x128xbf16>
    %66 = arith.extf %65 : vector<16x16x128xbf16> to vector<16x16x128xf32>
    %c7 = arith.constant 7 : index
    %c0_39 = arith.constant 0 : index
    %67 = vector.load %arg3[%c7, %c0_39] : memref<9x128xf32, #tpu.memory_space<vmem>>, vector<1x128xf32>
    %68 = vector.shape_cast %67 : vector<1x128xf32> to vector<128xf32>
    %69 = vector.shape_cast %68 : vector<128xf32> to vector<1x1x128xf32>
    %70 = vector.broadcast %69 : vector<1x1x128xf32> to vector<16x16x128xf32>
    %71 = arith.mulf %66, %70 : vector<16x16x128xf32>
    %72 = arith.addf %63, %71 : vector<16x16x128xf32>
    %c0_40 = arith.constant 0 : index
    %c2_41 = arith.constant 2 : index
    %c2_42 = arith.constant 2 : index
    %c0_43 = arith.constant 0 : index
    %73 = vector.load %arg1[%c0_40, %c2_41, %c2_42, %c0_43] : memref<1x18x18x128xbf16, #tpu.memory_space<vmem>>, vector<1x16x16x128xbf16>
    %74 = vector.shape_cast %73 : vector<1x16x16x128xbf16> to vector<16x16x128xbf16>
    %75 = arith.extf %74 : vector<16x16x128xbf16> to vector<16x16x128xf32>
    %c8 = arith.constant 8 : index
    %c0_44 = arith.constant 0 : index
    %76 = vector.load %arg3[%c8, %c0_44] : memref<9x128xf32, #tpu.memory_space<vmem>>, vector<1x128xf32>
    %77 = vector.shape_cast %76 : vector<1x128xf32> to vector<128xf32>
    %78 = vector.shape_cast %77 : vector<128xf32> to vector<1x1x128xf32>
    %79 = vector.broadcast %78 : vector<1x1x128xf32> to vector<16x16x128xf32>
    %80 = arith.mulf %75, %79 : vector<16x16x128xf32>
    %81 = arith.addf %72, %80 : vector<16x16x128xf32>
    %c0_45 = arith.constant 0 : index
    %c0_46 = arith.constant 0 : index
    %82 = vector.load %arg4[%c0_45, %c0_46] : memref<1x128xf32, #tpu.memory_space<vmem>>, vector<1x128xf32>
    %83 = vector.shape_cast %82 : vector<1x128xf32> to vector<1x1x128xf32>
    %84 = vector.broadcast %83 : vector<1x1x128xf32> to vector<16x16x128xf32>
    %85 = arith.addf %81, %84 : vector<16x16x128xf32>
    %86 = arith.negf %85 : vector<16x16x128xf32>
    %87 = math.exp %86 : vector<16x16x128xf32>
    %cst_47 = arith.constant 1.000000e+00 : f32
    %88 = vector.broadcast %cst_47 : f32 to vector<16x16x128xf32>
    %89 = arith.addf %88, %87 : vector<16x16x128xf32>
    %90 = arith.divf %88, %89 : vector<16x16x128xf32>
    %91 = arith.mulf %85, %90 : vector<16x16x128xf32>
    %92 = vector.shape_cast %91 : vector<16x16x128xf32> to vector<256x128xf32>
    %cst_48 = arith.constant dense<0.000000e+00> : vector<128xf32>
    %93 = vector.multi_reduction <add>, %92, %cst_48 [0] : vector<256x128xf32> to vector<128xf32>
    %94 = vector.shape_cast %93 : vector<128xf32> to vector<1x128xf32>
    %cst_49 = arith.constant 2.560000e+02 : f32
    %95 = vector.broadcast %cst_49 : f32 to vector<1x128xf32>
    %96 = arith.divf %94, %95 : vector<1x128xf32>
    %97 = arith.truncf %96 : vector<1x128xf32> to vector<1x128xbf16>
    %c0_50 = arith.constant 0 : index
    %c0_51 = arith.constant 0 : index
    %98 = vector.load %arg5[%c0_50, %c0_51] : memref<128x128xbf16, #tpu.memory_space<vmem>>, vector<128x128xbf16>
    %cst_52 = arith.constant dense<0.000000e+00> : vector<1x128xf32>
    %99 = tpu.matmul %97, %98, %cst_52 {dimension_numbers = #tpu.dot_dimension_numbers<[1], [0], [0], [1], [0, 0, 1, 1], [], []>} : vector<1x128xbf16>, vector<128x128xbf16>, vector<1x128xf32> -> vector<1x128xf32>
    %c0_53 = arith.constant 0 : index
    %c0_54 = arith.constant 0 : index
    %100 = vector.load %arg6[%c0_53, %c0_54] : memref<1x128xf32, #tpu.memory_space<vmem>>, vector<1x128xf32>
    %101 = arith.addf %99, %100 : vector<1x128xf32>
    %102 = arith.negf %101 : vector<1x128xf32>
    %103 = math.exp %102 : vector<1x128xf32>
    %cst_55 = arith.constant 1.000000e+00 : f32
    %104 = vector.broadcast %cst_55 : f32 to vector<1x128xf32>
    %105 = arith.addf %104, %103 : vector<1x128xf32>
    %106 = arith.divf %104, %105 : vector<1x128xf32>
    %107 = arith.mulf %101, %106 : vector<1x128xf32>
    %108 = arith.truncf %107 : vector<1x128xf32> to vector<1x128xbf16>
    %c0_56 = arith.constant 0 : index
    %c0_57 = arith.constant 0 : index
    %109 = vector.load %arg7[%c0_56, %c0_57] : memref<128x128xbf16, #tpu.memory_space<vmem>>, vector<128x128xbf16>
    %cst_58 = arith.constant dense<0.000000e+00> : vector<1x128xf32>
    %110 = tpu.matmul %108, %109, %cst_58 {dimension_numbers = #tpu.dot_dimension_numbers<[1], [0], [0], [1], [0, 0, 1, 1], [], []>} : vector<1x128xbf16>, vector<128x128xbf16>, vector<1x128xf32> -> vector<1x128xf32>
    %c0_59 = arith.constant 0 : index
    %c0_60 = arith.constant 0 : index
    %111 = vector.load %arg8[%c0_59, %c0_60] : memref<1x128xf32, #tpu.memory_space<vmem>>, vector<1x128xf32>
    %112 = arith.addf %110, %111 : vector<1x128xf32>
    %113 = arith.negf %112 : vector<1x128xf32>
    %114 = math.exp %113 : vector<1x128xf32>
    %cst_61 = arith.constant 1.000000e+00 : f32
    %115 = vector.broadcast %cst_61 : f32 to vector<1x128xf32>
    %116 = arith.addf %115, %114 : vector<1x128xf32>
    %117 = arith.divf %115, %116 : vector<1x128xf32>
    %118 = vector.broadcast %117 : vector<1x128xf32> to vector<256x128xf32>
    %119 = arith.mulf %92, %118 : vector<256x128xf32>
    %120 = arith.truncf %119 : vector<256x128xf32> to vector<256x128xbf16>
    %c0_62 = arith.constant 0 : index
    %c0_63 = arith.constant 0 : index
    %121 = vector.load %arg9[%c0_62, %c0_63] : memref<128x128xbf16, #tpu.memory_space<vmem>>, vector<128x128xbf16>
    %cst_64 = arith.constant dense<0.000000e+00> : vector<256x128xf32>
    %122 = tpu.matmul %120, %121, %cst_64 {dimension_numbers = #tpu.dot_dimension_numbers<[1], [0], [0], [1], [0, 0, 1, 1], [], []>} : vector<256x128xbf16>, vector<128x128xbf16>, vector<256x128xf32> -> vector<256x128xf32>
    %c0_65 = arith.constant 0 : index
    %c0_66 = arith.constant 0 : index
    %123 = vector.load %arg10[%c0_65, %c0_66] : memref<1x128xf32, #tpu.memory_space<vmem>>, vector<1x128xf32>
    %124 = vector.broadcast %123 : vector<1x128xf32> to vector<256x128xf32>
    %125 = arith.addf %122, %124 : vector<256x128xf32>
    %c0_67 = arith.constant 0 : index
    %c0_68 = arith.constant 0 : index
    %c0_69 = arith.constant 0 : index
    %126 = vector.load %arg2[%c0_67, %c0_68, %c0_69] : memref<1x256x128xbf16, #tpu.memory_space<vmem>>, vector<1x256x128xbf16>
    %127 = vector.shape_cast %126 : vector<1x256x128xbf16> to vector<256x128xbf16>
    %128 = arith.extf %127 : vector<256x128xbf16> to vector<256x128xf32>
    %129 = arith.addf %125, %128 : vector<256x128xf32>
    %130 = arith.truncf %129 : vector<256x128xf32> to vector<256x128xbf16>
    %c0_70 = arith.constant 0 : index
    %c0_71 = arith.constant 0 : index
    %131 = vector.load %arg11[%c0_70, %c0_71] : memref<128x128xbf16, #tpu.memory_space<vmem>>, vector<128x128xbf16>
    %cst_72 = arith.constant dense<0.000000e+00> : vector<256x128xf32>
    %132 = tpu.matmul %130, %131, %cst_72 {dimension_numbers = #tpu.dot_dimension_numbers<[1], [0], [0], [1], [0, 0, 1, 1], [], []>} : vector<256x128xbf16>, vector<128x128xbf16>, vector<256x128xf32> -> vector<256x128xf32>
    %c0_73 = arith.constant 0 : index
    %c0_74 = arith.constant 0 : index
    %133 = vector.load %arg12[%c0_73, %c0_74] : memref<1x128xf32, #tpu.memory_space<vmem>>, vector<1x128xf32>
    %134 = vector.broadcast %133 : vector<1x128xf32> to vector<256x128xf32>
    %135 = arith.addf %132, %134 : vector<256x128xf32>
    %136 = arith.negf %135 : vector<256x128xf32>
    %137 = math.exp %136 : vector<256x128xf32>
    %cst_75 = arith.constant 1.000000e+00 : f32
    %138 = vector.broadcast %cst_75 : f32 to vector<256x128xf32>
    %139 = arith.addf %138, %137 : vector<256x128xf32>
    %140 = arith.divf %138, %139 : vector<256x128xf32>
    %141 = arith.mulf %135, %140 : vector<256x128xf32>
    %cst_76 = arith.constant dense<0.000000e+00> : vector<128xf32>
    %142 = vector.multi_reduction <add>, %141, %cst_76 [0] : vector<256x128xf32> to vector<128xf32>
    %143 = vector.shape_cast %142 : vector<128xf32> to vector<1x128xf32>
    %cst_77 = arith.constant 3.906250e-03 : f32
    %144 = vector.broadcast %cst_77 : f32 to vector<1x128xf32>
    %145 = arith.mulf %143, %144 : vector<1x128xf32>
    %146 = arith.truncf %145 : vector<1x128xf32> to vector<1x128xbf16>
    %c0_78 = arith.constant 0 : index
    %c0_79 = arith.constant 0 : index
    %147 = vector.load %arg13[%c0_78, %c0_79] : memref<128x128xbf16, #tpu.memory_space<vmem>>, vector<128x128xbf16>
    %cst_80 = arith.constant dense<0.000000e+00> : vector<1x128xf32>
    %148 = tpu.matmul %146, %147, %cst_80 {dimension_numbers = #tpu.dot_dimension_numbers<[1], [0], [0], [1], [0, 0, 1, 1], [], []>} : vector<1x128xbf16>, vector<128x128xbf16>, vector<1x128xf32> -> vector<1x128xf32>
    %c0_81 = arith.constant 0 : index
    %c0_82 = arith.constant 0 : index
    %149 = vector.load %arg14[%c0_81, %c0_82] : memref<1x128xf32, #tpu.memory_space<vmem>>, vector<1x128xf32>
    %150 = arith.addf %148, %149 : vector<1x128xf32>
    %151 = arith.negf %150 : vector<1x128xf32>
    %152 = math.exp %151 : vector<1x128xf32>
    %cst_83 = arith.constant 1.000000e+00 : f32
    %153 = vector.broadcast %cst_83 : f32 to vector<1x128xf32>
    %154 = arith.addf %153, %152 : vector<1x128xf32>
    %155 = arith.divf %153, %154 : vector<1x128xf32>
    %c0_84 = arith.constant 0 : index
    %c0_85 = arith.constant 0 : index
    %c0_86 = arith.constant 0 : index
    %156 = vector.load %arg15[%c0_84, %c0_85, %c0_86] : memref<1x1x128xf32, #tpu.memory_space<vmem>>, vector<1x1x128xf32>
    %157 = vector.shape_cast %156 : vector<1x1x128xf32> to vector<1x128xf32>
    %158 = vector.shape_cast %155 : vector<1x128xf32> to vector<1x1x128xf32>
    tpu.vector_store %arg15[%c0_84, %c0_85, %c0_86], %158 {strides = array<i32>} : memref<1x1x128xf32, #tpu.memory_space<vmem>>, vector<1x1x128xf32>,
    return
  }
  func.func @transform_0(%arg0: i32) -> (i32, i32, i32, i32) {
    %c0_i32 = arith.constant 0 : i32
    %c0_i32_0 = arith.constant 0 : i32
    %c0_i32_1 = arith.constant 0 : i32
    %c0_i32_2 = arith.constant 0 : i32
    return %arg0, %c0_i32, %c0_i32_0, %c0_i32_1 : i32, i32, i32, i32
  }
  func.func @transform_1(%arg0: i32) -> (i32, i32, i32) {
    %c0_i32 = arith.constant 0 : i32
    %c0_i32_0 = arith.constant 0 : i32
    %c0_i32_1 = arith.constant 0 : i32
    return %arg0, %c0_i32, %c0_i32_0 : i32, i32, i32
  }
  func.func @transform_2(%arg0: i32) -> (i32, i32) {
    %c0_i32 = arith.constant 0 : i32
    %c0_i32_0 = arith.constant 0 : i32
    %c0_i32_1 = arith.constant 0 : i32
    return %c0_i32, %c0_i32_0 : i32, i32
  }
  func.func @transform_3(%arg0: i32) -> (i32, i32) {
    %c0_i32 = arith.constant 0 : i32
    %c0_i32_0 = arith.constant 0 : i32
    %c0_i32_1 = arith.constant 0 : i32
    return %c0_i32, %c0_i32_0 : i32, i32
  }
  func.func @transform_4(%arg0: i32) -> (i32, i32) {
    %c0_i32 = arith.constant 0 : i32
    %c0_i32_0 = arith.constant 0 : i32
    %c0_i32_1 = arith.constant 0 : i32
    return %c0_i32, %c0_i32_0 : i32, i32
  }
  func.func @transform_5(%arg0: i32) -> (i32, i32) {
    %c0_i32 = arith.constant 0 : i32
    %c0_i32_0 = arith.constant 0 : i32
    %c0_i32_1 = arith.constant 0 : i32
    return %c0_i32, %c0_i32_0 : i32, i32
  }
  func.func @transform_6(%arg0: i32) -> (i32, i32) {
    %c0_i32 = arith.constant 0 : i32
    %c0_i32_0 = arith.constant 0 : i32
    %c0_i32_1 = arith.constant 0 : i32
    return %c0_i32, %c0_i32_0 : i32, i32
  }
  func.func @transform_7(%arg0: i32) -> (i32, i32) {
    %c0_i32 = arith.constant 0 : i32
    %c0_i32_0 = arith.constant 0 : i32
    %c0_i32_1 = arith.constant 0 : i32
    return %c0_i32, %c0_i32_0 : i32, i32
  }
  func.func @transform_8(%arg0: i32) -> (i32, i32) {
    %c0_i32 = arith.constant 0 : i32
    %c0_i32_0 = arith.constant 0 : i32
    %c0_i32_1 = arith.constant 0 : i32
    return %c0_i32, %c0_i32_0 : i32, i32
  }
  func.func @transform_9(%arg0: i32) -> (i32, i32) {
    %c0_i32 = arith.constant 0 : i32
    %c0_i32_0 = arith.constant 0 : i32
    %c0_i32_1 = arith.constant 0 : i32
    return %c0_i32, %c0_i32_0 : i32, i32
  }
  func.func @transform_10(%arg0: i32) -> (i32, i32) {
    %c0_i32 = arith.constant 0 : i32
    %c0_i32_0 = arith.constant 0 : i32
    %c0_i32_1 = arith.constant 0 : i32
    return %c0_i32, %c0_i32_0 : i32, i32
  }
  func.func @transform_11(%arg0: i32) -> (i32, i32) {
    %c0_i32 = arith.constant 0 : i32
    %c0_i32_0 = arith.constant 0 : i32
    %c0_i32_1 = arith.constant 0 : i32
    return %c0_i32, %c0_i32_0 : i32, i32
  }
  func.func @transform_12(%arg0: i32) -> (i32, i32) {
    %c0_i32 = arith.constant 0 : i32
    %c0_i32_0 = arith.constant 0 : i32
    %c0_i32_1 = arith.constant 0 : i32
    return %c0_i32, %c0_i32_0 : i32, i32
  }
  func.func @transform_13(%arg0: i32) -> (i32, i32) {
    %c0_i32 = arith.constant 0 : i32
    %c0_i32_0 = arith.constant 0 : i32
    %c0_i32_1 = arith.constant 0 : i32
    return %c0_i32, %c0_i32_0 : i32, i32
  }
  func.func @transform_14(%arg0: i32) -> (i32, i32, i32) {
    %c0_i32 = arith.constant 0 : i32
    %c0_i32_0 = arith.constant 0 : i32
    %c0_i32_1 = arith.constant 0 : i32
    return %arg0, %c0_i32, %c0_i32_0 : i32, i32, i32
  }
}

</mosaic_0001>

<bundles_post_ra>
// kernel: effnet_forward.2
= control target key start
LH: loop header
LB: loop body
LE: loop exit
PB: predicated region body
PF: predicated region fallthrough
CT: control target
= control target key end

     0   :  { %s2619_s21 = smov 0   ;;  %s3074_s0 = inlined_call_operand.vmem [shape: bf16[512,32], index: 0, kind: input, shape index: {}]   ;;  %s3075_s1 = inlined_call_operand.vmem [shape: bf16[32,128], index: 1, kind: input, shape index: {}]   ;;  %s3076_s2 = inlined_call_operand.vmem [shape: f32[1,128], index: 2, kind: input, shape index: {}]   ;;  %s3077_s3 = inlined_call_operand.vmem [shape: bf16[128,128], index: 3, kind: input, shape index: {}]   ;;  %s3078_s4 = inlined_call_operand.vmem [shape: f32[1,128], index: 4, kind: input, shape index: {}]   ;;  %s3079_s5 = inlined_call_operand.vmem [shape: bf16[512,128], index: 5, kind: output, shape index: {0}]   ;;  %s3080_s6 = inlined_call_operand.vmem [shape: bf16[512,128], index: 6, kind: output, shape index: {1}]  }
   0x1 LB: > { %s1705_s22 = sadd.s32 4294967295, %s2582_s21   ;;  %p1709_p0 = scmp.ge.s32.totalorder %s2582_s21, 1  ;;  %s2582_s21 = sphi %s2619_s21, %s17_s21  }
   0x2   : > { %p216_p1 = scmp.lt.s32.totalorder %s2582_s21, 3 }
   0x4   : > { %p217_p2 = pnand %p1709_p0, %p216_p1 }
   0x5   : > { %v2294_v0 = vld [vmem:[%s3075_s1] sm:$0xff] (!%p217_p2)   ;;  %s1710_s25 = sshll.u32 (!%p217_p2), %s1705_s22, 5  ;;  %v2295_v1 = vld [vmem:[%s3075_s1 + $0x8] sm:$0xff] (!%p217_p2)   ;;  %vm405_vm0 = vcmask (!%p217_p2), 261120   ;;  %v2314_v20 = vld [vmem:[%s3077_s3 + $0x10] sm:$0xff] (!%p217_p2)  }
   0x6   : > { %220 = sbr.rel (%p217_p2) target bundleno = 574 (0x23e), region = 40  ;;  %p252_p3 = scmp.lt.s32.totalorder (!%p217_p2), %s1710_s25, 63  ;;  %2186 = vmatprep.subr.bf16.mxu0 (!%p217_p2), %v2294_v0  ;;  %v2312_v18 = vld [vmem:[%s3077_s3] sm:$0xff] (!%p217_p2)   ;;  %v2313_v19 = vld [vmem:[%s3077_s3 + $0x8] sm:$0xff] (!%p217_p2)   ;;  %v2315_v21 = vld [vmem:[%s3077_s3 + $0x18] sm:$0xff] (!%p217_p2)  }
   0x7   : > { %2187 = vmatpush3.bf16.msra.mxu0 (!%p217_p2), %v2294_v0  ;;  %2270 = vmatprep.subr.bf16.mxu1 (!%p217_p2), %v2312_v18  ;;  %v2316_v22 = vld [vmem:[%s3077_s3 + $0x20] sm:$0xff] (!%p217_p2)   ;;  %v2317_v23 = vld [vmem:[%s3077_s3 + $0x28] sm:$0xff] (!%p217_p2)   ;;  %v2318_v24 = vld [vmem:[%s3077_s3 + $0x30] sm:$0xff] (!%p217_p2)  }
   0x8   : > { %2188 = vmatprep.subr.bf16.mxu0 (!%p217_p2), %v2295_v1  ;;  %2278 = vmatpush3.bf16.msra.mxu1 (!%p217_p2), %v2312_v18  ;;  %v2319_v25 = vld [vmem:[%s3077_s3 + $0x38] sm:$0xff] (!%p217_p2)   ;;  %v2700_v26 = vld [vmem:[%s3076_s2] ss:$0 sm:$0xff] (!%p217_p2) }
   0x9   : > { %2271 = vmatprep.subr.bf16.mxu1 (!%p217_p2), %v2313_v19 }
   0xb   : > { %2189 = vmatpush3.bf16.msra.mxu0 (!%p217_p2), %v2295_v1 }
   0xc   : > { %2222 = vmatprep.subr.bf16.mxu0 (!%p217_p2), %v2312_v18  ;;  %2279 = vmatpush3.bf16.msra.mxu1 (!%p217_p2), %v2313_v19 }
   0xd   : > { %s3082_s25 = smov (!%p252_p3, %s1710_s25), 63  ;;  %2272 = vmatprep.subr.bf16.mxu1 %v2314_v20 }
   0xe   : > { %s2633_s28 = sshll.u32 %s3082_s25, 2 }
   0xf   : > { %s2639_s7 = scalar_lea.vmem %s3074_s0, %s2633_s28  ;;  %s2773_s30 = scalar_lea.vmem %s3079_s5, %s2633_s28 }
  0x10   : > { %v2296_v2 = vld [vmem:[%s2639_s7] sm:$0xff]   ;;  %v2297_v3 = vld [vmem:[%s2639_s7 + $0x8] sm:$0xff]   ;;  %v2298_v4 = vld [vmem:[%s2639_s7 + $0x10] sm:$0xff]   ;;  %2280 = vmatpush3.bf16.msra.mxu1 %v2314_v20  ;;  %s2958_s11 = scalar_lea.vmem %s3080_s6, %s2633_s28 }
  0x11   : > { %2190 = vmatprep.mubr.msk.bf16.mxu0 %vm405_vm0, %v2296_v2  ;;  %v2299_v5 = vld [vmem:[%s2639_s7 + $0x18] sm:$0xff]   ;;  %v2300_v6 = vld [vmem:[%s2639_s7 + $0x20] sm:$0xff]   ;;  %v2301_v7 = vld [vmem:[%s2639_s7 + $0x28] sm:$0xff]   ;;  %2273 = vmatprep.subr.bf16.mxu1 %v2315_v21 }
  0x12   : > { %2191 = vmatmul.mubr.msk.bf16.vlgmr.msra.gmra.mrb[0].mxu0 %vm405_vm0, %v2297_v3  ;;  %v2302_v8 = vld [vmem:[%s2639_s7 + $0x30] sm:$0xff]   ;;  %v2303_v9 = vld [vmem:[%s2639_s7 + $0x38] sm:$0xff]   ;;  %v2304_v10 = vld [vmem:[%s2639_s7 + $0x40] sm:$0xff]  }
  0x13   : > { %2194 = vmatprep.mubr.msk.bf16.mxu0 %vm405_vm0, %v2298_v4  ;;  %v2305_v11 = vld [vmem:[%s2639_s7 + $0x48] sm:$0xff]   ;;  %v2306_v12 = vld [vmem:[%s2639_s7 + $0x50] sm:$0xff]   ;;  %v2307_v13 = vld [vmem:[%s2639_s7 + $0x58] sm:$0xff]   ;;  %2223 = vmatpush3.bf16.msra.mxu0 %v2312_v18 }
  0x14   : > { %v2308_v14 = vld [vmem:[%s2639_s7 + $0x60] sm:$0xff]   ;;  %v2309_v15 = vld [vmem:[%s2639_s7 + $0x68] sm:$0xff]   ;;  %v2310_v16 = vld [vmem:[%s2639_s7 + $0x70] sm:$0xff]   ;;  %2224 = vmatprep.subr.bf16.mxu0 %v2313_v19  ;;  %2281 = vmatpush3.bf16.msra.mxu1 %v2315_v21 }
  0x15   : > { %v2311_v17 = vld [vmem:[%s2639_s7 + $0x78] sm:$0xff]   ;;  %2274 = vmatprep.subr.bf16.mxu1 %v2316_v22 }
  0x17   : > { %2225 = vmatpush3.bf16.msra.mxu0 %v2313_v19 }
  0x18   : > { %2226 = vmatprep.subr.bf16.mxu0 %v2314_v20  ;;  %2282 = vmatpush3.bf16.msra.mxu1 %v2316_v22 }
  0x19   : > { %2275 = vmatprep.subr.bf16.mxu1 %v2317_v23 }
  0x1a   : > { %2195 = vmatmul.mubr.msk.bf16.gmra.mrb[4].mxu0 %vm405_vm0, %v2299_v5 }
  0x1b   : > { %2198 = vmatprep.mubr.msk.bf16.mxu0 %vm405_vm0, %v2300_v6  ;;  %2227 = vmatpush3.bf16.msra.mxu0 %v2314_v20 }
  0x1c   : > { %2228 = vmatprep.subr.bf16.mxu0 %v2315_v21  ;;  %2283 = vmatpush3.bf16.msra.mxu1 %v2317_v23 }
  0x1d   : > { %2276 = vmatprep.subr.bf16.mxu1 %v2318_v24 }
  0x1f   : > { %2229 = vmatpush3.bf16.msra.mxu0 %v2315_v21 }
  0x20   : > { %2230 = vmatprep.subr.bf16.mxu0 %v2316_v22  ;;  %2284 = vmatpush3.bf16.msra.mxu1 %v2318_v24 }
  0x21   : > { %2277 = vmatprep.subr.bf16.mxu1 %v2319_v25 }
  0x22   : > { %2199 = vmatmul.mubr.msk.bf16.gmra.mrb[8].mxu0 %vm405_vm0, %v2301_v7 }
  0x23   : > { %2202 = vmatprep.mubr.msk.bf16.mxu0 %vm405_vm0, %v2302_v8  ;;  %2231 = vmatpush3.bf16.msra.mxu0 %v2316_v22 }
  0x24   : > { %2232 = vmatprep.subr.bf16.mxu0 %v2317_v23  ;;  %2285 = vmatpush3.bf16.msra.mxu1 %v2319_v25 }
  0x27   : > { %2233 = vmatpush3.bf16.msra.mxu0 %v2317_v23 }
  0x28   : > { %2234 = vmatprep.subr.bf16.mxu0 %v2318_v24 }
  0x2a   : > { %2203 = vmatmul.mubr.msk.bf16.gmra.mrb[12].mxu0 %vm405_vm0, %v2303_v9 }
  0x2b   : > { %2206 = vmatprep.mubr.msk.bf16.mxu0 %vm405_vm0, %v2304_v10  ;;  %2235 = vmatpush3.bf16.msra.mxu0 %v2318_v24 }
  0x2c   : > { %2236 = vmatprep.subr.bf16.mxu0 %v2319_v25 }
  0x2f   : > { %2237 = vmatpush3.bf16.msra.mxu0 %v2319_v25 }
  0x32   : > { %2207 = vmatmul.mubr.msk.bf16.gmra.mrb[16].mxu0 %vm405_vm0, %v2305_v11 }
  0x33   : > { %2210 = vmatprep.mubr.msk.bf16.mxu0 %vm405_vm0, %v2306_v12 }
  0x3a   : > { %2211 = vmatmul.mubr.msk.bf16.gmra.mrb[20].mxu0 %vm405_vm0, %v2307_v13 }
  0x3b   : > { %2214 = vmatprep.mubr.msk.bf16.mxu0 %vm405_vm0, %v2308_v14 }
  0x42   : > { %2215 = vmatmul.mubr.msk.bf16.gmra.mrb[24].mxu0 %vm405_vm0, %v2309_v15 }
  0x43   : > { %2218 = vmatprep.mubr.msk.bf16.mxu0 %vm405_vm0, %v2310_v16 }
  0x4a   : > { %2219 = vmatmul.mubr.msk.bf16.gmra.mrb[28].mxu0 %vm405_vm0, %v2311_v17 }
  0xe5   : > { %v2192_v27 = vpop.f32.mrb[0].mxu0 }
  0xe6   : > { %v2703_v28 = vadd.f32 %v2192_v27, %v2700_v26  ;;  %v488_v29 = vpop.f32.mrb[1].mxu0 }
  0xe7   : > { %v2706_v30 = vadd.f32 %v2700_v26, %v488_v29  ;;  %v2193_v31 = vpop.f32.mrb[2].mxu0 }
  0xe8   : > { %v1753_v32 = vmul.f32 -1.442695, %v2703_v28  ;;  %v2710_v33 = vadd.f32 %v2193_v31, %v2700_v26  ;;  %v491_v34 = vpop.f32.mrb[3].mxu0 }
  0xe9   : > { %v1751_v35 = vmul.f32 -1.442695, %v2706_v30  ;;  %v2714_v36 = vadd.f32 %v2700_v26, %v491_v34 }
  0xea   : > { %2320 = vpow2.f32 %v1753_v32  ;;  %v1754_v37 = vmul.f32 -1.442695, %v2710_v33 }
  0xeb   : > { %2322 = vpow2.f32 %v1751_v35  ;;  %v1752_v38 = vmul.f32 -1.442695, %v2714_v36 }
  0xec   : > { %2324 = vpow2.f32 %v1754_v37 }
  0xed   : > { %2326 = vpow2.f32 %v1752_v38  ;;  %v2196_v39 = vpop.f32.mrb[4].mxu0 }
  0xee   : > { %v2719_v40 = vadd.f32 %v2196_v39, %v2700_v26  ;;  %v504_v41 = vpop.f32.mrb[5].mxu0 }
  0xef   : > { %v2722_v42 = vadd.f32 %v2700_v26, %v504_v41  ;;  %v2197_v43 = vpop.f32.mrb[6].mxu0 }
  0xf0   : > { %v1757_v44 = vmul.f32 -1.442695, %v2719_v40  ;;  %v2726_v45 = vadd.f32 %v2197_v43, %v2700_v26  ;;  %v507_v46 = vpop.f32.mrb[7].mxu0 }
  0xf1   : > { %v1755_v47 = vmul.f32 -1.442695, %v2722_v42  ;;  %v2730_v48 = vadd.f32 %v2700_v26, %v507_v46 }
  0xf2   : > { %2328 = vpow2.f32 %v1757_v44  ;;  %v1758_v49 = vmul.f32 -1.442695, %v2726_v45 }
  0xf3   : > { %2330 = vpow2.f32 %v1755_v47  ;;  %v1756_v50 = vmul.f32 -1.442695, %v2730_v48 }
  0xf4   : > { %v2321_v51 = vpop.eup %2320  ;;  %2332 = vpow2.f32 %v1758_v49 }
  0xf5   : > { %v2323_v52 = vpop.eup %2322  ;;  %v713_v53 = vadd.f32 1.0, %v2321_v51  ;;  %2334 = vpow2.f32 %v1756_v50  ;;  %v2200_v54 = vpop.f32.mrb[8].mxu0 }
  0xf6   : > { %v2325_v55 = vpop.eup %2324  ;;  %v711_v56 = vadd.f32 1.0, %v2323_v52  ;;  %v2735_v57 = vadd.f32 %v2200_v54, %v2700_v26  ;;  %v520_v58 = vpop.f32.mrb[9].mxu0 }
  0xf7   : > { %v2327_v59 = vpop.eup %2326  ;;  %2336 = vrcp.f32 %v713_v53  ;;  %v714_v60 = vadd.f32 1.0, %v2325_v55  ;;  %v2738_v61 = vadd.f32 %v2700_v26, %v520_v58  ;;  %v2201_v62 = vpop.f32.mrb[10].mxu0 }
  0xf8   : > { %2338 = vrcp.f32 %v711_v56  ;;  %v712_v63 = vadd.f32 1.0, %v2327_v59  ;;  %v1761_v0 = vmul.f32 -1.442695, %v2735_v57  ;;  %v2742_v1 = vadd.f32 %v2201_v62, %v2700_v26  ;;  %v523_v2 = vpop.f32.mrb[11].mxu0 }
  0xf9   : > { %2340 = vrcp.f32 %v714_v60  ;;  %v1759_v3 = vmul.f32 -1.442695, %v2738_v61  ;;  %v2746_v4 = vadd.f32 %v2700_v26, %v523_v2 }
  0xfa   : > { %2342 = vrcp.f32 %v712_v63  ;;  %v1762_v5 = vmul.f32 -1.442695, %v2742_v1 }
  0xfb   : > { %2344 = vpow2.f32 %v1761_v0  ;;  %v1760_v6 = vmul.f32 -1.442695, %v2746_v4 }
  0xfc   : > { %v2329_v7 = vpop.eup %2328  ;;  %2346 = vpow2.f32 %v1759_v3 }
  0xfd   : > { %v2331_v8 = vpop.eup %2330  ;;  %v717_v9 = vadd.f32 1.0, %v2329_v7  ;;  %2348 = vpow2.f32 %v1762_v5  ;;  %v2204_v10 = vpop.f32.mrb[12].mxu0 }
  0xfe   : > { %v2333_v11 = vpop.eup %2332  ;;  %v715_v12 = vadd.f32 1.0, %v2331_v8  ;;  %2350 = vpow2.f32 %v1760_v6  ;;  %v2751_v13 = vadd.f32 %v2204_v10, %v2700_v26  ;;  %v536_v14 = vpop.f32.mrb[13].mxu0 }
  0xff   : > { %v2335_v15 = vpop.eup %2334  ;;  %2352 = vrcp.f32 %v717_v9  ;;  %v718_v16 = vadd.f32 1.0, %v2333_v11  ;;  %v2754_v17 = vadd.f32 %v2700_v26, %v536_v14  ;;  %v2205_v18 = vpop.f32.mrb[14].mxu0 }
 0x100   : > { %2354 = vrcp.f32 %v715_v12  ;;  %v716_v19 = vadd.f32 1.0, %v2335_v15  ;;  %v1765_v20 = vmul.f32 -1.442695, %v2751_v13  ;;  %v2758_v21 = vadd.f32 %v2205_v18, %v2700_v26  ;;  %v539_v22 = vpop.f32.mrb[15].mxu0 }
 0x101   : > { %v2337_v23 = vpop.eup %2336  ;;  %2356 = vrcp.f32 %v718_v16  ;;  %v1763_v24 = vmul.f32 -1.442695, %v2754_v17  ;;  %v2762_v25 = vadd.f32 %v2700_v26, %v539_v22 }
 0x102   : > { %v2339_v27 = vpop.eup %2338  ;;  %2358 = vrcp.f32 %v716_v19  ;;  %v1766_v29 = vmul.f32 -1.442695, %v2758_v21  ;;  %v809_v35 = vmul.f32 %v2337_v23, %v2703_v28 }
 0x103   : > { %v2341_v31 = vpop.eup %2340  ;;  %2360 = vpow2.f32 %v1765_v20  ;;  %v1764_v32 = vmul.f32 -1.442695, %v2762_v25  ;;  %v807_v39 = vmul.f32 %v2339_v27, %v2706_v30 }
 0x104   : > { %v2343_v34 = vpop.eup %2342  ;;  %v810_v37 = vmul.f32 %v2341_v31, %v2710_v33  ;;  %2362 = vpow2.f32 %v1763_v24 }
 0x105   : > { %v2345_v38 = vpop.eup %2344  ;;  %v808_v41 = vmul.f32 %v2343_v34, %v2714_v36  ;;  %2364 = vpow2.f32 %v1766_v29  ;;  %v2208_v43 = vpop.f32.mrb[16].mxu0 }
 0x106   : > { %v2347_v44 = vpop.eup %2346  ;;  %v840_v46 = vpack.c.bf16 %v810_v37, %v809_v35  ;;  %v721_v47 = vadd.f32 1.0, %v2345_v38  ;;  %2366 = vpow2.f32 %v1764_v32  ;;  %v2777_v28 = vadd.f32 %v2208_v43, %v2700_v26  ;;  %v552_v33 = vpop.f32.mrb[17].mxu0 }
 0x107   : > { %v2349_v49 = vpop.eup %2348  ;;  %v719_v30 = vadd.f32 1.0, %v2347_v44  ;;  %v2780_v50 = vadd.f32 %v2700_v26, %v552_v33  ;;  %v2209_v51 = vpop.f32.mrb[18].mxu0  ;;  %v839_v52 = vpack.c.bf16 %v808_v41, %v807_v39 }
 0x108   : > { %v2351_v53 = vpop.eup %2350  ;;  %2114 = vst [vmem:[%s2773_s30 + $0x8] sm:$0xff] %v840_v46   ;;  %2368 = vrcp.f32 %v721_v47  ;;  %v722_v36 = vadd.f32 1.0, %v2349_v49  ;;  %v1769_v54 = vmul.f32 -1.442695, %v2777_v28  ;;  %v2785_v55 = vadd.f32 %v2209_v51, %v2700_v26  ;;  %v555_v56 = vpop.f32.mrb[19].mxu0 }
 0x109   : > { %v2353_v58 = vpop.eup %2352  ;;  %2370 = vrcp.f32 %v719_v30  ;;  %v720_v59 = vadd.f32 1.0, %v2351_v53  ;;  %v1767_v60 = vmul.f32 -1.442695, %v2780_v50  ;;  %v2789_v62 = vadd.f32 %v2700_v26, %v555_v56  ;;  %1958 = vst [vmem:[%s2773_s30] sm:$0xff] %v839_v52   ;;  %2238 = vmatprep.mubr.bf16.mxu0 %v839_v52 }
 0x10a   : > { %v2355_v63 = vpop.eup %2354  ;;  %2372 = vrcp.f32 %v722_v36  ;;  %v1770_v0 = vmul.f32 -1.442695, %v2785_v55  ;;  %2239 = vmatmul.mubr.bf16.vlgmr.msra.gmra.mrb[32].mxu0 %v840_v46  ;;  %v813_v6 = vmul.f32 %v2353_v58, %v2719_v40 }
 0x10b   : > { %v2357_v2 = vpop.eup %2356  ;;  %2374 = vrcp.f32 %v720_v59  ;;  %v1768_v3 = vmul.f32 -1.442695, %v2789_v62  ;;  %v811_v9 = vmul.f32 %v2355_v63, %v2722_v42 }
 0x10c   : > { %v2359_v5 = vpop.eup %2358  ;;  %v814_v7 = vmul.f32 %v2357_v2, %v2726_v45  ;;  %2376 = vpow2.f32 %v1769_v54 }
 0x10d   : > { %v2361_v8 = vpop.eup %2360  ;;  %v812_v10 = vmul.f32 %v2359_v5, %v2730_v48  ;;  %2378 = vpow2.f32 %v1767_v60  ;;  %v2212_v11 = vpop.f32.mrb[20].mxu0 }
 0x10e   : > { %v2363_v12 = vpop.eup %2362  ;;  %v725_v14 = vadd.f32 1.0, %v2361_v8  ;;  %2380 = vpow2.f32 %v1770_v0  ;;  %v2799_v15 = vadd.f32 %v2212_v11, %v2700_v26  ;;  %v568_v16 = vpop.f32.mrb[21].mxu0  ;;  %v842_v18 = vpack.c.bf16 %v814_v7, %v813_v6 }
 0x10f   : > { %v2365_v40 = vpop.eup %2364  ;;  %v723_v19 = vadd.f32 1.0, %v2363_v12  ;;  %2382 = vpow2.f32 %v1768_v3  ;;  %v2802_v45 = vadd.f32 %v2700_v26, %v568_v16  ;;  %v2213_v42 = vpop.f32.mrb[22].mxu0  ;;  %v841_v48 = vpack.c.bf16 %v812_v10, %v811_v9 }
 0x110   : > { %v2367_v20 = vpop.eup %2366  ;;  %2384 = vrcp.f32 %v725_v14  ;;  %v726_v22 = vadd.f32 1.0, %v2365_v40  ;;  %v1773_v23 = vmul.f32 -1.442695, %v2799_v15  ;;  %v2806_v24 = vadd.f32 %v2213_v42, %v2700_v26  ;;  %v571_v27 = vpop.f32.mrb[23].mxu0  ;;  %2116 = vst [vmem:[%s2773_s30 + $0x18] sm:$0xff] %v842_v18  }
 0x111   : > { %2386 = vrcp.f32 %v723_v19  ;;  %v724_v29 = vadd.f32 1.0, %v2367_v20  ;;  %v1771_v31 = vmul.f32 -1.442695, %v2802_v45  ;;  %v2811_v32 = vadd.f32 %v2700_v26, %v571_v27  ;;  %2115 = vst [vmem:[%s2773_s30 + $0x10] sm:$0xff] %v841_v48   ;;  %2242 = vmatprep.mubr.bf16.mxu1 %v841_v48 }
 0x112   : > { %v2369_v34 = vpop.eup %2368  ;;  %2388 = vrcp.f32 %v726_v22  ;;  %v1774_v35 = vmul.f32 -1.442695, %v2806_v24  ;;  %2243 = vmatmul.mubr.bf16.vlgmr.msra.gmra.mrb[0].mxu1 %v842_v18 }
 0x113   : > { %v2371_v37 = vpop.eup %2370  ;;  %2390 = vrcp.f32 %v724_v29  ;;  %v1772_v38 = vmul.f32 -1.442695, %v2811_v32  ;;  %v817_v43 = vmul.f32 %v2369_v34, %v2735_v57 }
 0x114   : > { %v2373_v39 = vpop.eup %2372  ;;  %2392 = vpow2.f32 %v1773_v23  ;;  %v815_v33 = vmul.f32 %v2371_v37, %v2738_v61 }
 0x115   : > { %v2375_v41 = vpop.eup %2374  ;;  %v818_v44 = vmul.f32 %v2373_v39, %v2742_v1  ;;  %2394 = vpow2.f32 %v1771_v31  ;;  %v2216_v46 = vpop.f32.mrb[24].mxu0 }
 0x116   : > { %v2377_v47 = vpop.eup %2376  ;;  %v816_v49 = vmul.f32 %v2375_v41, %v2746_v4  ;;  %2396 = vpow2.f32 %v1774_v35  ;;  %v2821_v30 = vadd.f32 %v2216_v46, %v2700_v26  ;;  %v584_v51 = vpop.f32.mrb[25].mxu0 }
 0x117   : > { %v2379_v52 = vpop.eup %2378  ;;  %v729_v53 = vadd.f32 1.0, %v2377_v47  ;;  %2398 = vpow2.f32 %v1772_v38  ;;  %v2824_v57 = vadd.f32 %v2700_v26, %v584_v51  ;;  %v2217_v1 = vpop.f32.mrb[26].mxu0  ;;  %v844_v36 = vpack.c.bf16 %v818_v44, %v817_v43 }
 0x118   : > { %v2381_v54 = vpop.eup %2380  ;;  %v727_v56 = vadd.f32 1.0, %v2379_v52  ;;  %v2827_v61 = vadd.f32 %v2217_v1, %v2700_v26  ;;  %v587_v4 = vpop.f32.mrb[27].mxu0  ;;  %v843_v58 = vpack.c.bf16 %v816_v49, %v815_v33  ;;  %v1777_v63 = vmul.f32 -1.442695, %v2821_v30 }
 0x119   : > { %v2383_v59 = vpop.eup %2382  ;;  %2400 = vrcp.f32 %v729_v53  ;;  %v730_v60 = vadd.f32 1.0, %v2381_v54  ;;  %v2831_v0 = vadd.f32 %v2700_v26, %v587_v4  ;;  %2118 = vst [vmem:[%s2773_s30 + $0x28] sm:$0xff] %v844_v36   ;;  %v1775_v5 = vmul.f32 -1.442695, %v2824_v57 }
 0x11a   : > { %v2385_v2 = vpop.eup %2384  ;;  %2402 = vrcp.f32 %v727_v56  ;;  %v728_v3 = vadd.f32 1.0, %v2383_v59  ;;  %2117 = vst [vmem:[%s2773_s30 + $0x20] sm:$0xff] %v843_v58   ;;  %2246 = vmatprep.mubr.bf16.mxu1 %v843_v58  ;;  %v1778_v7 = vmul.f32 -1.442695, %v2827_v61 }
 0x11b   : > { %v2387_v6 = vpop.eup %2386  ;;  %2404 = vrcp.f32 %v730_v60  ;;  %2247 = vmatmul.mubr.bf16.gmra.mrb[4].mxu1 %v844_v36  ;;  %v1776_v9 = vmul.f32 -1.442695, %v2831_v0  ;;  %v821_v11 = vmul.f32 %v2385_v2, %v2751_v13 }
 0x11c   : > { %v2389_v8 = vpop.eup %2388  ;;  %2406 = vrcp.f32 %v728_v3  ;;  %v819_v23 = vmul.f32 %v2387_v6, %v2754_v17 }
 0x11d   : > { %v2391_v10 = vpop.eup %2390  ;;  %v822_v12 = vmul.f32 %v2389_v8, %v2758_v21  ;;  %2408 = vpow2.f32 %v1777_v63  ;;  %v2220_v14 = vpop.f32.mrb[28].mxu0 }
 0x11e   : > { %v2393_v16 = vpop.eup %2392  ;;  %v820_v18 = vmul.f32 %v2391_v10, %v2762_v25  ;;  %2410 = vpow2.f32 %v1775_v5  ;;  %v2842_v40 = vadd.f32 %v2220_v14, %v2700_v26  ;;  %v600_v19 = vpop.f32.mrb[29].mxu0 }
 0x11f   : > { %v2395_v42 = vpop.eup %2394  ;;  %v733_v48 = vadd.f32 1.0, %v2393_v16  ;;  %2412 = vpow2.f32 %v1778_v7  ;;  %v2845_v20 = vadd.f32 %v2700_v26, %v600_v19  ;;  %v2221_v13 = vpop.f32.mrb[30].mxu0  ;;  %v846_v22 = vpack.c.bf16 %v822_v12, %v821_v11 }
 0x120   : > { %v2397_v21 = vpop.eup %2396  ;;  %v731_v27 = vadd.f32 1.0, %v2395_v42  ;;  %2414 = vpow2.f32 %v1776_v9  ;;  %v2849_v25 = vadd.f32 %v2221_v13, %v2700_v26  ;;  %v603_v29 = vpop.f32.mrb[31].mxu0  ;;  %v1781_v35 = vmul.f32 -1.442695, %v2842_v40 }
 0x121   : > { %v2399_v31 = vpop.eup %2398  ;;  %2416 = vrcp.f32 %v733_v48  ;;  %v734_v34 = vadd.f32 1.0, %v2397_v21  ;;  %v2853_v37 = vadd.f32 %v2700_v26, %v603_v29  ;;  %2120 = vst [vmem:[%s2773_s30 + $0x38] sm:$0xff] %v846_v22   ;;  %v1779_v17 = vmul.f32 -1.442695, %v2845_v20 }
 0x122   : > { %2418 = vrcp.f32 %v731_v27  ;;  %v732_v38 = vadd.f32 1.0, %v2399_v31  ;;  %v845_v39 = vpack.c.bf16 %v820_v18, %v819_v23  ;;  %v1782_v43 = vmul.f32 -1.442695, %v2849_v25 }
 0x123   : > { %v2401_v41 = vpop.eup %2400  ;;  %2420 = vrcp.f32 %v734_v34  ;;  %v1780_v46 = vmul.f32 -1.442695, %v2853_v37 }
 0x124   : > { %v2403_v44 = vpop.eup %2402  ;;  %2422 = vrcp.f32 %v732_v38  ;;  %2119 = vst [vmem:[%s2773_s30 + $0x30] sm:$0xff] %v845_v39   ;;  %2250 = vmatprep.mubr.bf16.mxu1 %v845_v39  ;;  %v825_v33 = vmul.f32 %v2401_v41, %v2777_v28 }
 0x125   : > { %v2405_v47 = vpop.eup %2404  ;;  %2424 = vpow2.f32 %v1781_v35  ;;  %2251 = vmatmul.mubr.bf16.gmra.mrb[8].mxu1 %v846_v22  ;;  %v823_v52 = vmul.f32 %v2403_v44, %v2780_v50 }
 0x126   : > { %v2407_v26 = vpop.eup %2406  ;;  %v826_v49 = vmul.f32 %v2405_v47, %v2785_v55  ;;  %2426 = vpow2.f32 %v1779_v17  ;;  %v2887_v17 = vld [vmem:[%s3078_s4] ss:$0 sm:$0xff] }
 0x127   : > { %v2409_v51 = vpop.eup %2408  ;;  %v824_v53 = vmul.f32 %v2407_v26, %v2789_v62  ;;  %2428 = vpow2.f32 %v1782_v43 }
 0x128   : > { %v2411_v1 = vpop.eup %2410  ;;  %v737_v36 = vadd.f32 1.0, %v2409_v51  ;;  %2430 = vpow2.f32 %v1780_v46  ;;  %v848_v54 = vpack.c.bf16 %v826_v49, %v825_v33 }
 0x129   : > { %v2413_v56 = vpop.eup %2412  ;;  %v735_v4 = vadd.f32 1.0, %v2411_v1  ;;  %v847_v58 = vpack.c.bf16 %v824_v53, %v823_v52 }
 0x12a   : > { %v2415_v59 = vpop.eup %2414  ;;  %2432 = vrcp.f32 %v737_v36  ;;  %v738_v28 = vadd.f32 1.0, %v2413_v56  ;;  %2122 = vst [vmem:[%s2773_s30 + $0x48] sm:$0xff] %v848_v54  }
 0x12b   : > { %v2417_v55 = vpop.eup %2416  ;;  %2434 = vrcp.f32 %v735_v4  ;;  %v736_v60 = vadd.f32 1.0, %v2415_v59  ;;  %2121 = vst [vmem:[%s2773_s30 + $0x40] sm:$0xff] %v847_v58   ;;  %2254 = vmatprep.mubr.bf16.mxu1 %v847_v58 }
 0x12c   : > { %v2419_v50 = vpop.eup %2418  ;;  %2436 = vrcp.f32 %v738_v28  ;;  %v829_v2 = vmul.f32 %v2417_v55, %v2799_v15 }
 0x12d   : > { %v2421_v62 = vpop.eup %2420  ;;  %2438 = vrcp.f32 %v736_v60  ;;  %2255 = vmatmul.mubr.bf16.gmra.mrb[12].mxu1 %v848_v54  ;;  %v827_v6 = vmul.f32 %v2419_v50, %v2802_v45 }
 0x12e   : > { %v2423_v63 = vpop.eup %2422  ;;  %v830_v3 = vmul.f32 %v2421_v62, %v2806_v24 }
 0x12f   : > { %v2425_v5 = vpop.eup %2424  ;;  %v828_v7 = vmul.f32 %v2423_v63, %v2811_v32 }
 0x130   : > { %v2427_v8 = vpop.eup %2426  ;;  %v741_v9 = vadd.f32 1.0, %v2425_v5  ;;  %v850_v10 = vpack.c.bf16 %v830_v3, %v829_v2 }
 0x131   : > { %v2429_v11 = vpop.eup %2428  ;;  %v739_v12 = vadd.f32 1.0, %v2427_v8  ;;  %v849_v14 = vpack.c.bf16 %v828_v7, %v827_v6 }
 0x132   : > { %v2431_v16 = vpop.eup %2430  ;;  %2440 = vrcp.f32 %v741_v9  ;;  %v742_v18 = vadd.f32 1.0, %v2429_v11  ;;  %2124 = vst [vmem:[%s2773_s30 + $0x58] sm:$0xff] %v850_v10  }
 0x133   : > { %2442 = vrcp.f32 %v739_v12  ;;  %v740_v15 = vadd.f32 1.0, %v2431_v16  ;;  %2123 = vst [vmem:[%s2773_s30 + $0x50] sm:$0xff] %v849_v14   ;;  %2258 = vmatprep.mubr.bf16.mxu1 %v849_v14 }
 0x134   : > { %v2433_v24 = vpop.eup %2432  ;;  %2444 = vrcp.f32 %v742_v18 }
 0x135   : > { %v2435_v45 = vpop.eup %2434  ;;  %2446 = vrcp.f32 %v740_v15  ;;  %2259 = vmatmul.mubr.bf16.gmra.mrb[16].mxu1 %v850_v10  ;;  %v833_v42 = vmul.f32 %v2433_v24, %v2821_v30 }
 0x136   : > { %v2437_v32 = vpop.eup %2436  ;;  %v831_v13 = vmul.f32 %v2435_v45, %v2824_v57 }
 0x137   : > { %v2439_v19 = vpop.eup %2438  ;;  %v834_v48 = vmul.f32 %v2437_v32, %v2827_v61 }
 0x138   : > { %v832_v22 = vmul.f32 %v2439_v19, %v2831_v0 }
 0x139   : > { %v852_v21 = vpack.c.bf16 %v834_v48, %v833_v42 }
 0x13a   : > { %v851_v23 = vpack.c.bf16 %v832_v22, %v831_v13 }
 0x13b   : > { %2126 = vst [vmem:[%s2773_s30 + $0x68] sm:$0xff] %v852_v21  }
 0x13c   : > { %v2441_v27 = vpop.eup %2440  ;;  %2125 = vst [vmem:[%s2773_s30 + $0x60] sm:$0xff] %v851_v23   ;;  %2262 = vmatprep.mubr.bf16.mxu1 %v851_v23 }
 0x13d   : > { %v2443_v29 = vpop.eup %2442  ;;  %2263 = vmatmul.mubr.bf16.gmra.mrb[20].mxu1 %v852_v21  ;;  %v837_v30 = vmul.f32 %v2441_v27, %v2842_v40 }
 0x13e   : > { %v2445_v31 = vpop.eup %2444  ;;  %v835_v57 = vmul.f32 %v2443_v29, %v2845_v20 }
 0x13f   : > { %v2447_v34 = vpop.eup %2446  ;;  %v838_v61 = vmul.f32 %v2445_v31, %v2849_v25 }
 0x140   : > { %v836_v0 = vmul.f32 %v2447_v34, %v2853_v37 }
 0x141   : > { %v854_v35 = vpack.c.bf16 %v838_v61, %v837_v30 }
 0x142   : > { %v853_v38 = vpack.c.bf16 %v836_v0, %v835_v57 }
 0x143   : > { %2128 = vst [vmem:[%s2773_s30 + $0x78] sm:$0xff] %v854_v35  }
 0x144   : > { %2127 = vst [vmem:[%s2773_s30 + $0x70] sm:$0xff] %v853_v38   ;;  %2266 = vmatprep.mubr.bf16.mxu1 %v853_v38 }
 0x145   : > { %2267 = vmatmul.mubr.bf16.gmra.mrb[24].mxu1 %v854_v35 }
 0x1dd   : > { %v2240_v39 = vpop.f32.mrb[32].mxu0 }
 0x1de   : > { %v2890_v40 = vadd.f32 %v2240_v39, %v2887_v17  ;;  %v1104_v25 = vpop.f32.mrb[33].mxu0 }
 0x1df   : > { %v2893_v20 = vadd.f32 %v2887_v17, %v1104_v25  ;;  %v2241_v37 = vpop.f32.mrb[34].mxu0 }
 0x1e0   : > { %v1826_v41 = vmul.f32 -1.442695, %v2890_v40  ;;  %v2897_v43 = vadd.f32 %v2241_v37, %v2887_v17  ;;  %v1107_v44 = vpop.f32.mrb[35].mxu0 }
 0x1e1   : > { %v1824_v46 = vmul.f32 -1.442695, %v2893_v20  ;;  %v2901_v47 = vadd.f32 %v2887_v17, %v1107_v44 }
 0x1e2   : > { %2448 = vpow2.f32 %v1826_v41  ;;  %v1827_v26 = vmul.f32 -1.442695, %v2897_v43 }
 0x1e3   : > { %2450 = vpow2.f32 %v1824_v46  ;;  %v1825_v33 = vmul.f32 -1.442695, %v2901_v47 }
 0x1e4   : > { %2452 = vpow2.f32 %v1827_v26 }
 0x1e5   : > { %2454 = vpow2.f32 %v1825_v33  ;;  %v2244_v49 = vpop.f32.mrb[0].mxu1 }
 0x1e6   : > { %v2906_v51 = vadd.f32 %v2244_v49, %v2887_v17  ;;  %v1120_v52 = vpop.f32.mrb[1].mxu1 }
 0x1e7   : > { %v2909_v53 = vadd.f32 %v2887_v17, %v1120_v52  ;;  %v2245_v1 = vpop.f32.mrb[2].mxu1 }
 0x1e8   : > { %v1830_v36 = vmul.f32 -1.442695, %v2906_v51  ;;  %v2913_v54 = vadd.f32 %v2245_v1, %v2887_v17  ;;  %v1123_v56 = vpop.f32.mrb[3].mxu1 }
 0x1e9   : > { %v1828_v4 = vmul.f32 -1.442695, %v2909_v53  ;;  %v2917_v58 = vadd.f32 %v2887_v17, %v1123_v56 }
 0x1ea   : > { %2456 = vpow2.f32 %v1830_v36  ;;  %v1831_v59 = vmul.f32 -1.442695, %v2913_v54 }
 0x1eb   : > { %2458 = vpow2.f32 %v1828_v4  ;;  %v1829_v28 = vmul.f32 -1.442695, %v2917_v58 }
 0x1ec   : > { %v2449_v55 = vpop.eup %2448  ;;  %2460 = vpow2.f32 %v1831_v59 }
 0x1ed   : > { %v2451_v60 = vpop.eup %2450  ;;  %v1329_v50 = vadd.f32 1.0, %v2449_v55  ;;  %2462 = vpow2.f32 %v1829_v28 }
 0x1ee   : > { %v2453_v62 = vpop.eup %2452  ;;  %v1327_v63 = vadd.f32 1.0, %v2451_v60  ;;  %v2248_v2 = vpop.f32.mrb[4].mxu1 }
 0x1ef   : > { %v2455_v3 = vpop.eup %2454  ;;  %2464 = vrcp.f32 %v1329_v50  ;;  %v1330_v5 = vadd.f32 1.0, %v2453_v62  ;;  %v2922_v6 = vadd.f32 %v2248_v2, %v2887_v17  ;;  %v1136_v7 = vpop.f32.mrb[5].mxu1 }
 0x1f0   : > { %2466 = vrcp.f32 %v1327_v63  ;;  %v1328_v8 = vadd.f32 1.0, %v2455_v3  ;;  %v2925_v9 = vadd.f32 %v2887_v17, %v1136_v7  ;;  %v2249_v10 = vpop.f32.mrb[6].mxu1 }
 0x1f1   : > { %2468 = vrcp.f32 %v1330_v5  ;;  %v1834_v11 = vmul.f32 -1.442695, %v2922_v6  ;;  %v2929_v12 = vadd.f32 %v2249_v10, %v2887_v17  ;;  %v1139_v14 = vpop.f32.mrb[7].mxu1 }
 0x1f2   : > { %2470 = vrcp.f32 %v1328_v8  ;;  %v1832_v16 = vmul.f32 -1.442695, %v2925_v9  ;;  %v2933_v18 = vadd.f32 %v2887_v17, %v1139_v14 }
 0x1f3   : > { %2472 = vpow2.f32 %v1834_v11  ;;  %v1835_v15 = vmul.f32 -1.442695, %v2929_v12 }
 0x1f4   : > { %v2457_v24 = vpop.eup %2456  ;;  %2474 = vpow2.f32 %v1832_v16  ;;  %v1833_v45 = vmul.f32 -1.442695, %v2933_v18 }
 0x1f5   : > { %v2459_v32 = vpop.eup %2458  ;;  %v1333_v19 = vadd.f32 1.0, %v2457_v24  ;;  %2476 = vpow2.f32 %v1835_v15 }
 0x1f6   : > { %v2461_v42 = vpop.eup %2460  ;;  %v1331_v48 = vadd.f32 1.0, %v2459_v32  ;;  %2478 = vpow2.f32 %v1833_v45 }
 0x1f7   : > { %v2463_v13 = vpop.eup %2462  ;;  %2480 = vrcp.f32 %v1333_v19  ;;  %v1334_v22 = vadd.f32 1.0, %v2461_v42 }
 0x1f8   : > { %2482 = vrcp.f32 %v1331_v48  ;;  %v1332_v21 = vadd.f32 1.0, %v2463_v13  ;;  %v2252_v23 = vpop.f32.mrb[8].mxu1 }
 0x1f9   : > { %v2465_v27 = vpop.eup %2464  ;;  %2484 = vrcp.f32 %v1334_v22  ;;  %v2938_v29 = vadd.f32 %v2252_v23, %v2887_v17  ;;  %v1152_v31 = vpop.f32.mrb[9].mxu1 }
 0x1fa   : > { %v2467_v34 = vpop.eup %2466  ;;  %2486 = vrcp.f32 %v1332_v21  ;;  %v2941_v30 = vadd.f32 %v2887_v17, %v1152_v31  ;;  %v2253_v61 = vpop.f32.mrb[10].mxu1  ;;  %v1425_v25 = vmul.f32 %v2465_v27, %v2890_v40 }
 0x1fb   : > { %v2469_v57 = vpop.eup %2468  ;;  %v1838_v0 = vmul.f32 -1.442695, %v2938_v29  ;;  %v2945_v35 = vadd.f32 %v2253_v61, %v2887_v17  ;;  %v1155_v38 = vpop.f32.mrb[11].mxu1  ;;  %v1423_v26 = vmul.f32 %v2467_v34, %v2893_v20 }
 0x1fc   : > { %v2471_v39 = vpop.eup %2470  ;;  %v1426_v37 = vmul.f32 %v2469_v57, %v2897_v43  ;;  %v1836_v41 = vmul.f32 -1.442695, %v2941_v30  ;;  %v2951_v44 = vadd.f32 %v2887_v17, %v1155_v38 }
 0x1fd   : > { %v2473_v46 = vpop.eup %2472  ;;  %v1424_v33 = vmul.f32 %v2471_v39, %v2901_v47  ;;  %2488 = vpow2.f32 %v1838_v0  ;;  %v1839_v40 = vmul.f32 -1.442695, %v2945_v35 }
 0x1fe   : > { %v2475_v43 = vpop.eup %2474  ;;  %v2042_v49 = vpack.c.bf16 %v1426_v37, %v1425_v25  ;;  %v1337_v52 = vadd.f32 1.0, %v2473_v46  ;;  %2490 = vpow2.f32 %v1836_v41  ;;  %v1837_v59 = vmul.f32 -1.442695, %v2951_v44 }
 0x1ff   : > { %v2477_v1 = vpop.eup %2476  ;;  %v2037_v36 = vpack.c.bf16 %v1424_v33, %v1423_v26  ;;  %v1335_v56 = vadd.f32 1.0, %v2475_v43  ;;  %2492 = vpow2.f32 %v1839_v40 }
 0x200   : > { %v2479_v20 = vpop.eup %2478  ;;  %2129 = vst [vmem:[%s2958_s11 + $0x8] sm:$0xff] %v2042_v49   ;;  %2494 = vrcp.f32 %v1337_v52  ;;  %v1338_v4 = vadd.f32 1.0, %v2477_v1  ;;  %v2256_v28 = vpop.f32.mrb[12].mxu1 }
 0x201   : > { %v2481_v47 = vpop.eup %2480  ;;  %2038 = vst [vmem:[%s2958_s11] sm:$0xff] %v2037_v36   ;;  %2496 = vrcp.f32 %v1335_v56  ;;  %v1336_v55 = vadd.f32 1.0, %v2479_v20  ;;  %v2966_v60 = vadd.f32 %v2256_v28, %v2887_v17  ;;  %v1168_v50 = vpop.f32.mrb[13].mxu1 }
 0x202   : > { %v2483_v62 = vpop.eup %2482  ;;  %2498 = vrcp.f32 %v1338_v4  ;;  %v2969_v63 = vadd.f32 %v2887_v17, %v1168_v50  ;;  %v2257_v2 = vpop.f32.mrb[14].mxu1  ;;  %v1429_v5 = vmul.f32 %v2481_v47, %v2906_v51 }
 0x203   : > { %v2485_v3 = vpop.eup %2484  ;;  %2500 = vrcp.f32 %v1336_v55  ;;  %v1842_v7 = vmul.f32 -1.442695, %v2966_v60  ;;  %v2974_v8 = vadd.f32 %v2257_v2, %v2887_v17  ;;  %v1171_v10 = vpop.f32.mrb[15].mxu1  ;;  %v1427_v24 = vmul.f32 %v2483_v62, %v2909_v53 }
 0x204   : > { %v2487_v11 = vpop.eup %2486  ;;  %v1430_v14 = vmul.f32 %v2485_v3, %v2913_v54  ;;  %2502 = vpow2.f32 %v1837_v59  ;;  %v1840_v16 = vmul.f32 -1.442695, %v2969_v63  ;;  %v2979_v15 = vadd.f32 %v2887_v17, %v1171_v10 }
 0x205   : > { %v1428_v51 = vmul.f32 %v2487_v11, %v2917_v58  ;;  %2504 = vpow2.f32 %v1842_v7  ;;  %v1843_v45 = vmul.f32 -1.442695, %v2974_v8 }
 0x206   : > { %v2052_v32 = vpack.c.bf16 %v1430_v14, %v1429_v5  ;;  %2506 = vpow2.f32 %v1840_v16  ;;  %v1841_v19 = vmul.f32 -1.442695, %v2979_v15 }
 0x207   : > { %v2489_v42 = vpop.eup %2488  ;;  %v2047_v54 = vpack.c.bf16 %v1428_v51, %v1427_v24  ;;  %2508 = vpow2.f32 %v1843_v45 }
 0x208   : > { %v2491_v48 = vpop.eup %2490  ;;  %2131 = vst [vmem:[%s2958_s11 + $0x18] sm:$0xff] %v2052_v32   ;;  %v1341_v13 = vadd.f32 1.0, %v2489_v42  ;;  %2510 = vpow2.f32 %v1841_v19  ;;  %v2260_v22 = vpop.f32.mrb[16].mxu1 }
 0x209   : > { %v2493_v21 = vpop.eup %2492  ;;  %2130 = vst [vmem:[%s2958_s11 + $0x10] sm:$0xff] %v2047_v54   ;;  %v1339_v53 = vadd.f32 1.0, %v2491_v48  ;;  %v2988_v58 = vadd.f32 %v2260_v22, %v2887_v17  ;;  %v1184_v23 = vpop.f32.mrb[17].mxu1 }
 0x20a   : > { %v2495_v27 = vpop.eup %2494  ;;  %2512 = vrcp.f32 %v1341_v13  ;;  %v1342_v31 = vadd.f32 1.0, %v2493_v21  ;;  %v2991_v34 = vadd.f32 %v2887_v17, %v1184_v23  ;;  %v2261_v61 = vpop.f32.mrb[18].mxu1 }
 0x20b   : > { %v2497_v57 = vpop.eup %2496  ;;  %2514 = vrcp.f32 %v1339_v53  ;;  %v1846_v0 = vmul.f32 -1.442695, %v2988_v58  ;;  %v2995_v38 = vadd.f32 %v2261_v61, %v2887_v17  ;;  %v1187_v39 = vpop.f32.mrb[19].mxu1  ;;  %v1433_v26 = vmul.f32 %v2495_v27, %v2922_v6 }
 0x20c   : > { %v2499_v25 = vpop.eup %2498  ;;  %2516 = vrcp.f32 %v1342_v31  ;;  %v1844_v37 = vmul.f32 -1.442695, %v2991_v34  ;;  %v2999_v41 = vadd.f32 %v2887_v17, %v1187_v39  ;;  %v1431_v49 = vmul.f32 %v2497_v57, %v2925_v9 }
 0x20d   : > { %v2501_v46 = vpop.eup %2500  ;;  %v1434_v33 = vmul.f32 %v2499_v25, %v2929_v12  ;;  %2518 = vpow2.f32 %v1846_v0  ;;  %v1847_v40 = vmul.f32 -1.442695, %v2995_v38 }
 0x20e   : > { %v2503_v43 = vpop.eup %2502  ;;  %v1432_v52 = vmul.f32 %v2501_v46, %v2933_v18  ;;  %2520 = vpow2.f32 %v1844_v37  ;;  %v1845_v1 = vmul.f32 -1.442695, %v2999_v41 }
 0x20f   : > { %v2505_v36 = vpop.eup %2504  ;;  %v2062_v56 = vpack.c.bf16 %v1434_v33, %v1433_v26  ;;  %v1340_v20 = vadd.f32 1.0, %v2503_v43  ;;  %2522 = vpow2.f32 %v1847_v40 }
 0x210   : > { %v2507_v6 = vpop.eup %2506  ;;  %v2057_v4 = vpack.c.bf16 %v1432_v52, %v1431_v49  ;;  %v1345_v12 = vadd.f32 1.0, %v2505_v36  ;;  %2524 = vpow2.f32 %v1845_v1  ;;  %v2264_v59 = vpop.f32.mrb[20].mxu1 }
 0x211   : > { %v2509_v28 = vpop.eup %2508  ;;  %2133 = vst [vmem:[%s2958_s11 + $0x28] sm:$0xff] %v2062_v56   ;;  %2526 = vrcp.f32 %v1340_v20  ;;  %v1343_v47 = vadd.f32 1.0, %v2507_v6  ;;  %v3009_v9 = vadd.f32 %v2264_v59, %v2887_v17  ;;  %v1200_v18 = vpop.f32.mrb[21].mxu1 }
 0x212   : > { %v2511_v55 = vpop.eup %2510  ;;  %2132 = vst [vmem:[%s2958_s11 + $0x20] sm:$0xff] %v2057_v4   ;;  %2528 = vrcp.f32 %v1345_v12  ;;  %v1346_v50 = vadd.f32 1.0, %v2509_v28  ;;  %v3013_v62 = vadd.f32 %v2887_v17, %v1200_v18  ;;  %v2265_v2 = vpop.f32.mrb[22].mxu1 }
 0x213   : > { %2530 = vrcp.f32 %v1343_v47  ;;  %v1344_v3 = vadd.f32 1.0, %v2511_v55  ;;  %v1850_v5 = vmul.f32 -1.442695, %v3009_v9  ;;  %v3017_v7 = vadd.f32 %v2265_v2, %v2887_v17  ;;  %v1203_v10 = vpop.f32.mrb[23].mxu1 }
 0x214   : > { %v2513_v11 = vpop.eup %2512  ;;  %2532 = vrcp.f32 %v1346_v50  ;;  %v1848_v14 = vmul.f32 -1.442695, %v3013_v62  ;;  %v3021_v16 = vadd.f32 %v2887_v17, %v1203_v10 }
 0x215   : > { %v2515_v24 = vpop.eup %2514  ;;  %2534 = vrcp.f32 %v1344_v3  ;;  %v1851_v51 = vmul.f32 -1.442695, %v3017_v7  ;;  %v1437_v42 = vmul.f32 %v2513_v11, %v2938_v29 }
 0x216   : > { %v2517_v45 = vpop.eup %2516  ;;  %2536 = vpow2.f32 %v1850_v5  ;;  %v1849_v32 = vmul.f32 -1.442695, %v3021_v16  ;;  %v1435_v57 = vmul.f32 %v2515_v24, %v2941_v30 }
 0x217   : > { %v2519_v19 = vpop.eup %2518  ;;  %v1438_v54 = vmul.f32 %v2517_v45, %v2945_v35  ;;  %2538 = vpow2.f32 %v1848_v14 }
 0x218   : > { %v2521_v48 = vpop.eup %2520  ;;  %v1349_v13 = vadd.f32 1.0, %v2519_v19  ;;  %2540 = vpow2.f32 %v1851_v51  ;;  %v2268_v22 = vpop.f32.mrb[24].mxu1 }
 0x219   : > { %v2523_v21 = vpop.eup %2522  ;;  %v2072_v53 = vpack.c.bf16 %v1438_v54, %v1437_v42  ;;  %v1347_v23 = vadd.f32 1.0, %v2521_v48  ;;  %2542 = vpow2.f32 %v1849_v32  ;;  %v3028_v27 = vadd.f32 %v2268_v22, %v2887_v17  ;;  %v1216_v31 = vpop.f32.mrb[25].mxu1 }
 0x21a   : > { %v2525_v61 = vpop.eup %2524  ;;  %2544 = vrcp.f32 %v1349_v13  ;;  %v1350_v29 = vadd.f32 1.0, %v2523_v21  ;;  %v3032_v35 = vadd.f32 %v2887_v17, %v1216_v31  ;;  %v2269_v0 = vpop.f32.mrb[26].mxu1 }
 0x21b   : > { %v2527_v39 = vpop.eup %2526  ;;  %2135 = vst [vmem:[%s2958_s11 + $0x38] sm:$0xff] %v2072_v53   ;;  %2546 = vrcp.f32 %v1347_v23  ;;  %v1348_v25 = vadd.f32 1.0, %v2525_v61  ;;  %v1854_v37 = vmul.f32 -1.442695, %v3028_v27  ;;  %v3037_v46 = vadd.f32 %v2269_v0, %v2887_v17  ;;  %v1219_v26 = vpop.f32.mrb[27].mxu1 }
 0x21c   : > { %v2529_v33 = vpop.eup %2528  ;;  %v1436_v40 = vmul.f32 %v2527_v39, %v2951_v44  ;;  %2548 = vrcp.f32 %v1350_v29  ;;  %v1852_v30 = vmul.f32 -1.442695, %v3032_v35  ;;  %v3042_v43 = vadd.f32 %v2887_v17, %v1219_v26 }
 0x21d   : > { %v2531_v49 = vpop.eup %2530  ;;  %2550 = vrcp.f32 %v1348_v25  ;;  %v1855_v52 = vmul.f32 -1.442695, %v3037_v46  ;;  %v1441_v6 = vmul.f32 %v2529_v33, %v2966_v60 }
 0x21e   : > { %v2533_v1 = vpop.eup %2532  ;;  %v2067_v36 = vpack.c.bf16 %v1436_v40, %v1435_v57  ;;  %2552 = vpow2.f32 %v1854_v37  ;;  %v1853_v56 = vmul.f32 -1.442695, %v3042_v43  ;;  %v1439_v17 = vmul.f32 %v2531_v49, %v2969_v63 }
 0x21f   : > { %v2535_v20 = vpop.eup %2534  ;;  %v1442_v44 = vmul.f32 %v2533_v1, %v2974_v8  ;;  %2554 = vpow2.f32 %v1852_v30 }
 0x220   : > { %v2537_v4 = vpop.eup %2536  ;;  %2134 = vst [vmem:[%s2958_s11 + $0x30] sm:$0xff] %v2067_v36   ;;  %v1440_v12 = vmul.f32 %v2535_v20, %v2979_v15  ;;  %2556 = vpow2.f32 %v1855_v52 }
 0x221   : > { %v2539_v59 = vpop.eup %2538  ;;  %v2082_v28 = vpack.c.bf16 %v1442_v44, %v1441_v6  ;;  %v1353_v47 = vadd.f32 1.0, %v2537_v4  ;;  %2558 = vpow2.f32 %v1853_v56 }
 0x222   : > { %v2541_v18 = vpop.eup %2540  ;;  %v2077_v55 = vpack.c.bf16 %v1440_v12, %v1439_v17  ;;  %v1351_v50 = vadd.f32 1.0, %v2539_v59 }
 0x223   : > { %v2543_v60 = vpop.eup %2542  ;;  %2137 = vst [vmem:[%s2958_s11 + $0x48] sm:$0xff] %v2082_v28   ;;  %2560 = vrcp.f32 %v1353_v47  ;;  %v1354_v8 = vadd.f32 1.0, %v2541_v18 }
 0x224   : > { %v2545_v2 = vpop.eup %2544  ;;  %2136 = vst [vmem:[%s2958_s11 + $0x40] sm:$0xff] %v2077_v55   ;;  %2562 = vrcp.f32 %v1351_v50  ;;  %v1352_v3 = vadd.f32 1.0, %v2543_v60 }
 0x225   : > { %v2547_v5 = vpop.eup %2546  ;;  %2564 = vrcp.f32 %v1354_v8  ;;  %v1445_v10 = vmul.f32 %v2545_v2, %v2988_v58 }
 0x226   : > { %v2549_v63 = vpop.eup %2548  ;;  %2566 = vrcp.f32 %v1352_v3  ;;  %v1443_v24 = vmul.f32 %v2547_v5, %v2991_v34 }
 0x227   : > { %v2551_v15 = vpop.eup %2550  ;;  %v1446_v11 = vmul.f32 %v2549_v63, %v2995_v38 }
 0x228   : > { %v2553_v14 = vpop.eup %2552  ;;  %v1444_v51 = vmul.f32 %v2551_v15, %v2999_v41 }
 0x229   : > { %v2555_v45 = vpop.eup %2554  ;;  %v2092_v32 = vpack.c.bf16 %v1446_v11, %v1445_v10  ;;  %v1357_v19 = vadd.f32 1.0, %v2553_v14 }
 0x22a   : > { %v2557_v42 = vpop.eup %2556  ;;  %v2087_v54 = vpack.c.bf16 %v1444_v51, %v1443_v24  ;;  %v1355_v48 = vadd.f32 1.0, %v2555_v45 }
 0x22b   : > { %v2559_v13 = vpop.eup %2558  ;;  %2139 = vst [vmem:[%s2958_s11 + $0x58] sm:$0xff] %v2092_v32   ;;  %2568 = vrcp.f32 %v1357_v19  ;;  %v1358_v22 = vadd.f32 1.0, %v2557_v42 }
 0x22c   : > { %2138 = vst [vmem:[%s2958_s11 + $0x50] sm:$0xff] %v2087_v54   ;;  %2570 = vrcp.f32 %v1355_v48  ;;  %v1356_v58 = vadd.f32 1.0, %v2559_v13 }
 0x22d   : > { %v2561_v38 = vpop.eup %2560  ;;  %2572 = vrcp.f32 %v1358_v22 }
 0x22e   : > { %v2563_v34 = vpop.eup %2562  ;;  %2574 = vrcp.f32 %v1356_v58  ;;  %v1449_v53 = vmul.f32 %v2561_v38, %v3009_v9 }
 0x22f   : > { %v2565_v41 = vpop.eup %2564  ;;  %v1447_v31 = vmul.f32 %v2563_v34, %v3013_v62 }
 0x230   : > { %v2567_v21 = vpop.eup %2566  ;;  %v1450_v23 = vmul.f32 %v2565_v41, %v3017_v7 }
 0x231   : > { %v1448_v61 = vmul.f32 %v2567_v21, %v3021_v16 }
 0x232   : > { %v2102_v57 = vpack.c.bf16 %v1450_v23, %v1449_v53 }
 0x233   : > { %v2097_v29 = vpack.c.bf16 %v1448_v61, %v1447_v31 }
 0x234   : > { %2141 = vst [vmem:[%s2958_s11 + $0x68] sm:$0xff] %v2102_v57  }
 0x235   : > { %v2569_v0 = vpop.eup %2568  ;;  %2140 = vst [vmem:[%s2958_s11 + $0x60] sm:$0xff] %v2097_v29  }
 0x236   : > { %v2571_v39 = vpop.eup %2570  ;;  %v1453_v26 = vmul.f32 %v2569_v0, %v3028_v27 }
 0x237   : > { %v2573_v25 = vpop.eup %2572  ;;  %v1451_v7 = vmul.f32 %v2571_v39, %v3032_v35 }
 0x238   : > { %v2575_v37 = vpop.eup %2574  ;;  %v1454_v9 = vmul.f32 %v2573_v25, %v3037_v46 }
 0x239   : > { %v1452_v62 = vmul.f32 %v2575_v37, %v3042_v43 }
 0x23a   : > { %v2112_v33 = vpack.c.bf16 %v1454_v9, %v1453_v26 }
 0x23b   : > { %v2107_v40 = vpack.c.bf16 %v1452_v62, %v1451_v7 }
 0x23c   : > { %2143 = vst [vmem:[%s2958_s11 + $0x78] sm:$0xff] %v2112_v33  }
 0x23d   : > { %2142 = vst [vmem:[%s2958_s11 + $0x70] sm:$0xff] %v2107_v40  }
 0x23e PF: > { %s17_s21 = sadd.s32 1, %s2582_s21  }
 0x23f   : > { %p14_p4 = scmp.ge.s32.totalorder %s17_s21, 4  }
 0x241   :  { %16 = sbr.rel (!%p14_p4) target bundleno = 1 (0x1), region = 82 }

// kernel: effnet_forward.3
= control target key start
LH: loop header
LB: loop body
LE: loop exit
PB: predicated region body
PF: predicated region fallthrough
CT: control target
= control target key end

     0   :  { %s9246_s0 = inlined_call_operand.vmem [shape: bf16[2,18,18,128], index: 0, kind: input, shape index: {}]   ;;  %s9247_s1 = inlined_call_operand.vmem [shape: bf16[2,256,128], index: 1, kind: input, shape index: {}]   ;;  %s9248_s2 = inlined_call_operand.vmem [shape: f32[9,128], index: 2, kind: input, shape index: {}]   ;;  %s9249_s3 = inlined_call_operand.vmem [shape: f32[1,128], index: 3, kind: input, shape index: {}]   ;;  %s9250_s4 = inlined_call_operand.vmem [shape: bf16[128,128], index: 4, kind: input, shape index: {}]   ;;  %s9251_s5 = inlined_call_operand.vmem [shape: f32[1,128], index: 5, kind: input, shape index: {}]   ;;  %s9252_s6 = inlined_call_operand.vmem [shape: bf16[128,128], index: 6, kind: input, shape index: {}]   ;;  %s9253_s7 = inlined_call_operand.vmem [shape: f32[1,128], index: 7, kind: input, shape index: {}]   ;;  %s9254_s8 = inlined_call_operand.vmem [shape: bf16[128,128], index: 8, kind: input, shape index: {}]   ;;  %s9255_s9 = inlined_call_operand.vmem [shape: f32[1,128], index: 9, kind: input, shape index: {}]   ;;  %s9256_s10 = inlined_call_operand.vmem [shape: bf16[128,128], index: 10, kind: input, shape index: {}]   ;;  %s9257_s11 = inlined_call_operand.vmem [shape: f32[1,128], index: 11, kind: input, shape index: {}]   ;;  %s9258_s12 = inlined_call_operand.vmem [shape: bf16[128,128], index: 12, kind: input, shape index: {}]   ;;  %s9259_s13 = inlined_call_operand.vmem [shape: f32[1,128], index: 13, kind: input, shape index: {}]   ;;  %s9260_s14 = inlined_call_operand.hbm [shape: f32[2,1,128], index: 14, kind: output, shape index: {}]  }
   0x1   :  { %9416 = sst [smem:[#allocation77_spill]] %s9246_s0 }
   0x2   :  { %9417 = sst [smem:[#allocation78_spill]] %s9248_s2 }
   0x3   :  { %9418 = sst [smem:[#allocation79_spill]] %s9249_s3 }
   0x4   :  { %19 = vsyncpa [#allocation3], 0 }
   0x5   :  { %21 = vsyncpa [#allocation3 + $0x1], 0  ;;  %s5340_s29 = smov 0   ;;  %s5342_s30 = smov 0  }
   0x6   :  { %s5344_s15 = smov 0   ;;  %s5346_s16 = smov 0  }
   0x7 LB: > { %s5361_s17 = sadd.s32 4294967295, %s5260_s16   ;;  %s4161_s18 = sadd.s32 4294967294, %s5260_s16   ;;  %s5260_s16 = sphi %s5346_s16, %s10221_s16   ;;  %s5256_s15 = sphi %s5344_s15, %s10220_s15   ;;  %s5252_s30 = sphi %s5342_s30, %s10219_s30   ;;  %s5248_s29 = sphi %s5340_s29, %s10218_s29  }
   0x8   : > { %s5365_s19 = sadd.s32 1, %s5260_s16   ;;  %s338_s20 = sadd.s32 1, %s5256_s15 }
   0x9   : > { %s335_s21 = ssub.s32 %s5260_s16, %s5365_s19  ;;  %p348_p0 = scmp.ne.s32.totalorder %s5256_s15, %s5252_s30 }
   0xa   : > { %p336_p1 = scmp.eq.s32.totalorder %s335_s21, 0  ;;  %p349_p2 = scmp.eq.s32.totalorder %s5361_s17, 1 }
   0xb   : > { %p354_p3 = scmp.ne.s32.totalorder %s5252_s30, %s5248_s29  ;;  %p355_p4 = scmp.eq.s32.totalorder %s4161_s18, 1 }
   0xc   : > { %s5376_s22 = scalar_select %p336_p1, %s5256_s15, %s338_s20  }
   0xd   : > { %p5378_p5 = por %p349_p2, %p348_p0  ;;  %p5382_p6 = por %p355_p4, %p354_p3 }
   0xe   : > { %9419 = sst [smem:[#allocation5_spill]] %s5376_s22  ;;  %p4164_p7 = scmp.ge.s32.totalorder %s5260_s16, 1 }
   0xf   : > { %p425_p8 = scmp.lt.s32.totalorder %s5260_s16, 3 }
  0x11   : > { %p426_p9 = pnand %p4164_p7, %p425_p8 }
  0x13   : > { %429 = sbr.rel (%p426_p9) target bundleno = 1816 (0x718), region = 76 }
  0x1a   : > { %v4890_v0 = vld [vmem:[%s9250_s4] sm:$0xff]   ;;  %v9261_v1 = vmov 0.0   ;;  %v4891_v2 = vld [vmem:[%s9250_s4 + $0x8] sm:$0xff]   ;;  %vm5263_vm0 = vmmov 0   ;;  %v4892_v3 = vld [vmem:[%s9250_s4 + $0x10] sm:$0xff]   ;;  %p475_p10 = scmp.lt.s32.totalorder %s5361_s17, 1 }
  0x1b   : > { %4692 = vmatprep.subr.bf16.mxu0 %v9261_v1  ;;  %4712 = vmatprep.subr.bf16.mxu1 %v9261_v1  ;;  %v4893_v4 = vld [vmem:[%s9250_s4 + $0x18] sm:$0xff]   ;;  %v4894_v5 = vld [vmem:[%s9250_s4 + $0x20] sm:$0xff]   ;;  %v4895_v6 = vld [vmem:[%s9250_s4 + $0x28] sm:$0xff]   ;;  %s9422_s0 = sld [smem:[#allocation77_spill]]  ;;  %s9441_s2 = sld [smem:[#allocation78_spill]]  ;;  %vm752_vm1 = vcmask 1046528  }
  0x1c   : > { %4693 = vmatpush3.bf16.msra.mxu0 %v4890_v0  ;;  %4708 = vmatprep.mubr.msk.bf16.mxu0 %vm5263_vm0, %v9261_v1  ;;  %v4896_v7 = vld [vmem:[%s9250_s4 + $0x30] sm:$0xff]   ;;  %v4897_v8 = vld [vmem:[%s9250_s4 + $0x38] sm:$0xff]   ;;  %s5427_s27 = scalar_select %p475_p10, %s5361_s17, 1  ;;  %vm1030_vm2 = vcmask 1045504  }
  0x1d   : > { %4694 = vmatprep.subr.bf16.mxu0 %v9261_v1  ;;  %4728 = vmatprep.mubr.msk.bf16.mxu1 %vm5263_vm0, %v9261_v1  ;;  %s10187_s3 = sld [smem:[#allocation79_spill]]  ;;  %s473_s22 = sand.u32 1, %s5252_s30  }
  0x1e   : > { %s4848_s28 = smul.u32 216, %s5427_s27 }
  0x20   : > { %4695 = vmatpush3.bf16.msra.mxu0 %v4891_v2 }
  0x21   : > { %4696 = vmatprep.subr.bf16.mxu0 %v9261_v1  ;;  %s5433_s20 = scalar_lea.vmem %s9422_s0, %s4848_s28  ;;  %v4168_v48 = vld [vmem:[%s9441_s2] ss:$0 sm:$0xff]  ;;  %s4418_s0 = sshll.u32 %s5427_s27, 7 }
  0x22   : > { %v5436_v9 = vld [vmem:[%s5433_s20] sm:$0xff]   ;;  %v5439_v10 = vld [vmem:[%s5433_s20 + $0xc] sm:$0xff]   ;;  %v4579_v11 = vld [vmem:[%s5433_s20 + $0x18] sm:$0xff]   ;;  %s8945_s21 = scalar_lea.vmem %s9247_s1, %s4418_s0  ;;  %s4082_s28 = scalar_lea.sflag [#allocation3], %s473_s22 }
  0x23   : > { %v4580_v12 = vld [vmem:[%s5433_s20 + $0x30] sm:$0xff]   ;;  %v5444_v13 = vld [vmem:[%s5433_s20 + $0x24] sm:$0xff]   ;;  %v9267_v16 = vunpack.c.l.bf16 %v5436_v9  ;;  %v5450_v17 = vunpack.c.h.bf16 %v5436_v9  ;;  %v5452_v18 = vunpack.c.l.bf16 %v4579_v11  ;;  %v5455_v19 = vld [vmem:[%s5433_s20 + $0x3c] sm:$0xff]   ;;  %v5461_v22 = vunpack.c.h.bf16 %v4579_v11 }
  0x24   : > { %4697 = vmatpush3.bf16.msra.mxu0 %v4892_v3  ;;  %v4581_v14 = vld [vmem:[%s5433_s20 + $0x48] sm:$0xff]   ;;  %v4582_v15 = vld [vmem:[%s5433_s20 + $0x60] sm:$0xff]   ;;  %v5458_v20 = vld [vmem:[%s5433_s20 + $0x54] sm:$0xff]   ;;  %v5463_v23 = vunpack.c.l.bf16 %v4580_v12  ;;  %v5465_v24 = vunpack.c.h.bf16 %v4580_v12  ;;  %v9266_v27 = vunpack.c.l.bf16 %v5439_v10  ;;  %v5480_v32 = vunpack.c.h.bf16 %v5439_v10 }
  0x25   : > { %4698 = vmatprep.subr.bf16.mxu0 %v9261_v1  ;;  %9423 = vst [vmem:[#allocation6_spill] sm:$0xff] %v5450_v17  ;;  %9424 = vst [vmem:[#allocation7_spill] sm:$0xff] %v5452_v18  ;;  %v4583_v21 = vld [vmem:[%s5433_s20 + $0x78] sm:$0xff]   ;;  %v4584_v25 = vld [vmem:[%s5433_s20 + $0x90] sm:$0xff]   ;;  %v5470_v28 = vunpack.c.l.bf16 %v4581_v14  ;;  %v5472_v29 = vunpack.c.h.bf16 %v4581_v14  ;;  %v5474_v30 = vunpack.c.l.bf16 %v4582_v15  ;;  %v5482_v33 = vunpack.c.h.bf16 %v4582_v15 }
  0x26   : > { %9425 = vst [vmem:[#allocation8_spill] sm:$0xff] %v5461_v22  ;;  %9426 = vst [vmem:[#allocation9_spill] sm:$0xff] %v5463_v23  ;;  %v4585_v26 = vld [vmem:[%s5433_s20 + $0xa8] sm:$0xff]   ;;  %v5484_v34 = vunpack.c.l.bf16 %v4583_v21  ;;  %v5486_v35 = vunpack.c.h.bf16 %v4583_v21  ;;  %v9265_v37 = vunpack.c.l.bf16 %v5444_v13  ;;  %v5492_v38 = vunpack.c.l.bf16 %v4584_v25  ;;  %v5497_v40 = vld [vmem:[%s5433_s20 + $0x9c] sm:$0xff]  }
  0x27   : > { %9427 = vst [vmem:[#allocation10_spill] sm:$0xff] %v5465_v24  ;;  %9428 = vst [vmem:[#allocation11_spill] sm:$0xff] %v5470_v28  ;;  %v5477_v31 = vld [vmem:[%s5433_s20 + $0x6c] sm:$0xff]   ;;  %v5489_v36 = vld [vmem:[%s5433_s20 + $0x84] sm:$0xff]   ;;  %v5494_v39 = vunpack.c.h.bf16 %v4584_v25  ;;  %v5499_v41 = vunpack.c.l.bf16 %v4585_v26  ;;  %v5505_v43 = vunpack.c.h.bf16 %v5444_v13  ;;  %v5507_v44 = vunpack.c.h.bf16 %v4585_v26 }
  0x28   : > { %4699 = vmatpush3.bf16.msra.mxu0 %v4893_v4  ;;  %9429 = vst [vmem:[#allocation12_spill] sm:$0xff] %v5472_v29  ;;  %9430 = vst [vmem:[#allocation13_spill] sm:$0xff] %v5474_v30  ;;  %v5502_v42 = vld [vmem:[%s5433_s20 + $0xb4] sm:$0xff]   ;;  %v9264_v45 = vunpack.c.l.bf16 %v5455_v19  ;;  %v5511_v46 = vunpack.c.h.bf16 %v5455_v19  ;;  %v9263_v47 = vunpack.c.l.bf16 %v5458_v20  ;;  %v5518_v49 = vunpack.c.h.bf16 %v5458_v20  ;;  %v5587_v12 = vld [vmem:[%s5433_s20 + $0x8] sm:$0x1] }
  0x29   : > { %4700 = vmatprep.subr.bf16.mxu0 %v9261_v1  ;;  %9431 = vst [vmem:[#allocation14_spill] sm:$0xff] %v5480_v32  ;;  %9432 = vst [vmem:[#allocation15_spill] sm:$0xff] %v5482_v33  ;;  %v9268_v50 = vunpack.c.l.bf16 %v5477_v31  ;;  %v5522_v51 = vunpack.c.h.bf16 %v5477_v31  ;;  %v9269_v52 = vunpack.c.l.bf16 %v5489_v36  ;;  %v5526_v53 = vunpack.c.h.bf16 %v5489_v36  ;;  %v5590_v14 = vld [vmem:[%s5433_s20 + $0x14] sm:$0x1]  ;;  %v5593_v15 = vld [vmem:[%s5433_s20 + $0x20] sm:$0x1] }
  0x2a   : > { %9433 = vst [vmem:[#allocation16_spill] sm:$0xff] %v5484_v34  ;;  %9434 = vst [vmem:[#allocation17_spill] sm:$0xff] %v5486_v35  ;;  %v5530_v55 = vunpack.c.h.bf16 %v5497_v40  ;;  %v5534_v57 = vunpack.c.h.bf16 %v5502_v42  ;;  %v5538_v58 = vmul.f32 %v9267_v16, %v4168_v48  ;;  %v5541_v59 = vmul.f32 %v5450_v17, %v4168_v48 }
  0x2b   : > { %9435 = vst [vmem:[#allocation18_spill] sm:$0xff] %v5492_v38  ;;  %9436 = vst [vmem:[#allocation19_spill] sm:$0xff] %v5494_v39  ;;  %v5545_v60 = vmul.f32 %v4168_v48, %v9266_v27  ;;  %v5548_v61 = vmul.f32 %v4168_v48, %v5480_v32  ;;  %v5551_v62 = vmul.f32 %v5452_v18, %v4168_v48  ;;  %v5618_v27 = vld [vmem:[%s5433_s20 + $0x50] sm:$0x1] }
  0x2c   : > { %4701 = vmatpush3.bf16.msra.mxu0 %v4894_v5  ;;  %9437 = vst [vmem:[#allocation20_spill] sm:$0xff] %v5499_v41  ;;  %9438 = vst [vmem:[#allocation21_spill] sm:$0xff] %v5505_v43  ;;  %v5554_v63 = vmul.f32 %v5461_v22, %v4168_v48  ;;  %v5558_v0 = vmul.f32 %v4168_v48, %v9265_v37  ;;  %v5561_v2 = vmul.f32 %v4168_v48, %v5505_v43  ;;  %v5615_v37 = vld [vmem:[%s5433_s20 + $0x44] sm:$0x1] }
  0x2d   : > { %4702 = vmatprep.subr.bf16.mxu0 %v9261_v1  ;;  %9439 = vst [vmem:[#allocation22_spill] sm:$0xff] %v5507_v44  ;;  %9440 = vst [vmem:[#allocation23_spill] sm:$0xff] %v5511_v46  ;;  %v5564_v3 = vmul.f32 %v5463_v23, %v4168_v48  ;;  %v5567_v4 = vmul.f32 %v5465_v24, %v4168_v48  ;;  %v5571_v5 = vmul.f32 %v4168_v48, %v9264_v45  ;;  %v5612_v45 = vld [vmem:[%s5433_s20 + $0x38] sm:$0x1] }
  0x2e   : > { %9442 = vst [vmem:[#allocation24_spill] sm:$0xff] %v5518_v49  ;;  %9443 = vst [vmem:[#allocation25_spill] sm:$0xff] %v5522_v51  ;;  %v5584_v11 = vmul.f32 %v4168_v48, %v9263_v47  ;;  %v5596_v21 = vmul.f32 %v4168_v48, %v5518_v49  ;;  %v5599_v25 = vmul.f32 %v5474_v30, %v4168_v48  ;;  %v5609_v47 = vld [vmem:[%s5433_s20 + $0x2c] sm:$0x1] }
  0x2f   : > { %9444 = vst [vmem:[#allocation26_spill] sm:$0xff] %v5526_v53  ;;  %9445 = vst [vmem:[#allocation27_spill] sm:$0xff] %v5534_v57  ;;  %v5602_v26 = vmul.f32 %v5482_v33, %v4168_v48  ;;  %v5621_v16 = vmul.f32 %v4168_v48, %v5522_v51  ;;  %v5624_v56 = vmul.f32 %v5484_v34, %v4168_v48 }
  0x30   : > { %4703 = vmatpush3.bf16.msra.mxu0 %v4895_v6  ;;  %9446 = vst [vmem:[#allocation28_spill] sm:$0xff] %v5551_v62  ;;  %9447 = vst [vmem:[#allocation29_spill] sm:$0xff] %v5554_v63  ;;  %v5574_v6 = vmul.f32 %v4168_v48, %v5511_v46  ;;  %v5631_v54 = vmul.f32 %v4168_v48, %v9269_v52  ;;  %v9479_v52 = vunpack.c.l.bf16 %v5497_v40 }
  0x31   : > { %4704 = vmatprep.subr.bf16.mxu0 %v9261_v1  ;;  %9448 = vst [vmem:[#allocation30_spill] sm:$0xff] %v5558_v0  ;;  %9449 = vst [vmem:[#allocation31_spill] sm:$0xff] %v5561_v2  ;;  %v9490_v0 = vunpack.c.l.bf16 %v5436_v9  ;;  %v9495_v2 = vunpack.c.l.bf16 %v5444_v13  ;;  %v9497_v13 = vunpack.c.l.bf16 %v5612_v45 }
  0x32   : > { %9450 = vst [vmem:[#allocation32_spill] sm:$0xff] %v5564_v3  ;;  %9451 = vst [vmem:[#allocation33_spill] sm:$0xff] %v5567_v4  ;;  %v5689_v4 = vld [vmem:[%s9441_s2 + $0x1] ss:$0 sm:$0xff]  ;;  %v5692_v3 = vmul.f32 %v4168_v48, %v5534_v57 }
  0x33   : > { %9452 = vst [vmem:[#allocation34_spill] sm:$0xff] %v5571_v5  ;;  %9453 = vst [vmem:[#allocation35_spill] sm:$0xff] %v5574_v6  ;;  %v5668_v6 = vld [vmem:[%s5433_s20 + $0xb0] sm:$0x1]  ;;  %v5684_v5 = vld [vmem:[%s5433_s20 + $0xbc] sm:$0x1]  ;;  %v656_v63 = vmul.f32 %v9490_v0, %v5689_v4  ;;  %v657_v62 = vmul.f32 %v5450_v17, %v5689_v4  ;;  %v5732_v0 = vmul.f32 %v5452_v18, %v5689_v4  ;;  %v9496_v18 = vunpack.c.l.bf16 %v5609_v47 }
  0x34   : > { %4705 = vmatpush3.bf16.msra.mxu0 %v4896_v7  ;;  %v5577_v7 = vmul.f32 %v5470_v28, %v4168_v48  ;;  %9456 = vst [vmem:[#allocation38_spill] sm:$0xff] %v5584_v11  ;;  %9457 = vst [vmem:[#allocation39_spill] sm:$0xff] %v5587_v12  ;;  %v5659_v11 = vld [vmem:[%s5433_s20 + $0x8c] sm:$0x1] }
  0x35   : > { %4706 = vmatprep.subr.bf16.mxu0 %v9261_v1  ;;  %9458 = vst [vmem:[#allocation40_spill] sm:$0xff] %v5590_v14  ;;  %9459 = vst [vmem:[#allocation41_spill] sm:$0xff] %v5593_v15  ;;  %v5606_v1 = vmul.f32 %v4168_v48, %v9268_v50  ;;  %v5627_v50 = vmul.f32 %v5486_v35, %v4168_v48 }
  0x36   : > { %9454 = vst [vmem:[#allocation36_spill] sm:$0xff] %v5577_v7  ;;  %9460 = vst [vmem:[#allocation42_spill] sm:$0xff] %v5596_v21  ;;  %v5643_v21 = vld [vmem:[%s5433_s20 + $0x80] sm:$0x1]  ;;  %v5665_v7 = vld [vmem:[%s5433_s20 + $0xa4] sm:$0x1] }
  0x37   : > { %9461 = vst [vmem:[#allocation43_spill] sm:$0xff] %v5599_v25  ;;  %9462 = vst [vmem:[#allocation44_spill] sm:$0xff] %v5602_v26  ;;  %v5637_v26 = vld [vmem:[%s5433_s20 + $0x68] sm:$0x1]  ;;  %v5640_v25 = vld [vmem:[%s5433_s20 + $0x74] sm:$0x1] }
  0x38   : > { %4707 = vmatpush3.bf16.msra.mxu0 %v4897_v8  ;;  %v5580_v8 = vmul.f32 %v5472_v29, %v4168_v48  ;;  %9463 = vst [vmem:[#allocation45_spill] sm:$0xff] %v5606_v1  ;;  %9464 = vst [vmem:[#allocation46_spill] sm:$0xff] %v5609_v47  ;;  %v5634_v1 = vld [vmem:[%s5433_s20 + $0x5c] sm:$0x1] }
  0x39   : > { %9465 = vst [vmem:[#allocation47_spill] sm:$0xff] %v5612_v45  ;;  %9466 = vst [vmem:[#allocation48_spill] sm:$0xff] %v5615_v37  ;;  %v5786_v45 = vmul.f32 %v5470_v28, %v5689_v4  ;;  %v9502_v28 = vunpack.c.l.bf16 %v5634_v1 }
  0x3a   : > { %9455 = vst [vmem:[#allocation37_spill] sm:$0xff] %v5580_v8  ;;  %9467 = vst [vmem:[#allocation49_spill] sm:$0xff] %v5618_v27  ;;  %v5662_v8 = vld [vmem:[%s5433_s20 + $0x98] sm:$0x1] }
  0x3b   : > { %9468 = vst [vmem:[#allocation50_spill] sm:$0xff] %v5621_v16  ;;  %9469 = vst [vmem:[#allocation51_spill] sm:$0xff] %v5624_v56  ;;  %v5646_v16 = vmul.f32 %v4168_v48, %v5526_v53  ;;  %v5649_v56 = vmul.f32 %v5492_v38, %v4168_v48 }
  0x3c   : > { %9470 = vst [vmem:[#allocation52_spill] sm:$0xff] %v5627_v50  ;;  %9471 = vst [vmem:[#allocation53_spill] sm:$0xff] %v5631_v54  ;;  %v5652_v50 = vmul.f32 %v5494_v39, %v4168_v48  ;;  %v5656_v54 = vmul.f32 %v4168_v48, %v9479_v52  ;;  %v9488_v52 = vunpack.c.l.bf16 %v5502_v42 }
  0x3d   : > { %9472 = vst [vmem:[#allocation54_spill] sm:$0xff] %v5634_v1  ;;  %9473 = vst [vmem:[#allocation55_spill] sm:$0xff] %v5637_v26 }
  0x3e   : > { %9474 = vst [vmem:[#allocation56_spill] sm:$0xff] %v5640_v25  ;;  %9475 = vst [vmem:[#allocation57_spill] sm:$0xff] %v5643_v21 }
  0x3f   : > { %9476 = vst [vmem:[#allocation58_spill] sm:$0xff] %v5646_v16  ;;  %9477 = vst [vmem:[#allocation59_spill] sm:$0xff] %v5649_v56  ;;  %v5671_v16 = vmul.f32 %v4168_v48, %v5530_v55  ;;  %v5674_v56 = vmul.f32 %v5499_v41, %v4168_v48 }
  0x40   : > { %9478 = vst [vmem:[#allocation60_spill] sm:$0xff] %v5652_v50  ;;  %9480 = vst [vmem:[#allocation61_spill] sm:$0xff] %v5656_v54  ;;  %v5677_v50 = vmul.f32 %v5507_v44, %v4168_v48  ;;  %v5681_v54 = vmul.f32 %v4168_v48, %v9488_v52  ;;  %v9491_v48 = vunpack.c.l.bf16 %v5587_v12  ;;  %v5723_v52 = vmul.f32 %v5689_v4, %v5480_v32 }
  0x41   : > { %9481 = vst [vmem:[#allocation62_spill] sm:$0xff] %v5659_v11  ;;  %9482 = vst [vmem:[#allocation63_spill] sm:$0xff] %v5662_v8  ;;  %v5755_v32 = vmul.f32 %v5689_v4, %v9496_v18  ;;  %v5777_v18 = vmul.f32 %v5689_v4, %v5511_v46  ;;  %v9501_v46 = vunpack.c.l.bf16 %v5458_v20  ;;  %v9503_v20 = vunpack.c.l.bf16 %v5637_v26 }
  0x42   : > { %9483 = vst [vmem:[#allocation64_spill] sm:$0xff] %v5665_v7  ;;  %9484 = vst [vmem:[#allocation65_spill] sm:$0xff] %v5668_v6  ;;  %v5840_v26 = vmul.f32 %v5484_v34, %v5689_v4  ;;  %v9508_v34 = vunpack.c.l.bf16 %v5659_v11 }
  0x43   : > { %9485 = vst [vmem:[#allocation66_spill] sm:$0xff] %v5671_v16  ;;  %9486 = vst [vmem:[#allocation67_spill] sm:$0xff] %v5674_v56  ;;  %v658_v16 = vmul.f32 %v5689_v4, %v9491_v48  ;;  %v9492_v56 = vunpack.c.l.bf16 %v5439_v10  ;;  %v5736_v48 = vmul.f32 %v5461_v22, %v5689_v4  ;;  %v9494_v10 = vunpack.c.l.bf16 %v5593_v15 }
  0x44   : > { %9487 = vst [vmem:[#allocation68_spill] sm:$0xff] %v5677_v50  ;;  %9489 = vst [vmem:[#allocation69_spill] sm:$0xff] %v5681_v54  ;;  %v9493_v54 = vunpack.c.l.bf16 %v5590_v14  ;;  %v5746_v14 = vmul.f32 %v5689_v4, %v9495_v2  ;;  %v5759_v15 = vmul.f32 %v5463_v23, %v5689_v4  ;;  %v5768_v2 = vmul.f32 %v5689_v4, %v9497_v13 }
  0x45   : > { %v659_v50 = vmul.f32 %v5689_v4, %v9492_v56  ;;  %v5741_v56 = vmul.f32 %v5689_v4, %v9494_v10  ;;  %v5763_v10 = vmul.f32 %v5465_v24, %v5689_v4  ;;  %v9499_v23 = vunpack.c.l.bf16 %v5615_v37 }
  0x46   : > { %v5728_v9 = vmul.f32 %v5689_v4, %v9493_v54  ;;  %v5750_v54 = vmul.f32 %v5689_v4, %v5505_v43  ;;  %v9498_v43 = vunpack.c.l.bf16 %v5455_v19  ;;  %v5790_v13 = vmul.f32 %v5472_v29, %v5689_v4 }
  0x47   : > { %v5782_v24 = vmul.f32 %v5689_v4, %v9499_v23  ;;  %v9500_v19 = vunpack.c.l.bf16 %v5618_v27  ;;  %v5800_v37 = vmul.f32 %v5689_v4, %v9501_v46  ;;  %v5804_v23 = vmul.f32 %v5689_v4, %v5518_v49 }
  0x48   : > { %v5773_v47 = vmul.f32 %v5689_v4, %v9498_v43  ;;  %v5809_v22 = vmul.f32 %v5689_v4, %v9502_v28  ;;  %v5813_v27 = vmul.f32 %v5474_v30, %v5689_v4  ;;  %v5822_v46 = vmul.f32 %v5689_v4, %v9503_v20 }
  0x49   : > { %v5795_v43 = vmul.f32 %v5689_v4, %v9500_v19  ;;  %v5817_v19 = vmul.f32 %v5482_v33, %v5689_v4  ;;  %v9504_v49 = vunpack.c.l.bf16 %v5477_v31  ;;  %v5831_v28 = vmul.f32 %v5689_v4, %v5522_v51 }
  0x4a   : > { %v9505_v30 = vunpack.c.l.bf16 %v5640_v25  ;;  %v5844_v20 = vmul.f32 %v5486_v35, %v5689_v4  ;;  %v9506_v31 = vunpack.c.l.bf16 %v5643_v21  ;;  %v9507_v51 = vunpack.c.l.bf16 %v5489_v36 }
  0x4b   : > { %v5827_v1 = vmul.f32 %v5689_v4, %v9504_v49  ;;  %v5863_v33 = vmul.f32 %v5689_v4, %v9508_v34  ;;  %v5867_v21 = vmul.f32 %v5492_v38, %v5689_v4  ;;  %v9509_v36 = vunpack.c.l.bf16 %v5662_v8 }
  0x4c   : > { %v5836_v29 = vmul.f32 %v5689_v4, %v9505_v30  ;;  %v5849_v49 = vmul.f32 %v5689_v4, %v9506_v31  ;;  %v5854_v25 = vmul.f32 %v5689_v4, %v9507_v51  ;;  %v5858_v30 = vmul.f32 %v5689_v4, %v5526_v53 }
  0x4d   : > { %v5871_v31 = vmul.f32 %v5494_v39, %v5689_v4  ;;  %v5876_v51 = vmul.f32 %v5689_v4, %v9509_v36  ;;  %v9510_v53 = vunpack.c.l.bf16 %v5497_v40  ;;  %v753_v34 = vrot.slane %v656_v63, 1 }
  0x4e   : > { %v754_v35 = vrot.slane %v657_v62, 1  ;;  %v756_v12 = vrot.slane %v658_v16, 1  ;;  %v5885_v38 = vmul.f32 %v5689_v4, %v5530_v55  ;;  %v9511_v39 = vunpack.c.l.bf16 %v5665_v7 }
  0x4f   : > { %v5881_v11 = vmul.f32 %v5689_v4, %v9510_v53  ;;  %v758_v8 = vrot.slane %v659_v50, 1  ;;  %v759_v36 = vrot.slane %v5723_v52, 1  ;;  %v5895_v40 = vmul.f32 %v5499_v41, %v5689_v4 }
  0x50   : > { %v5890_v17 = vmul.f32 %v5689_v4, %v9511_v39  ;;  %v5899_v53 = vmul.f32 %v5507_v44, %v5689_v4  ;;  %v9512_v16 = vunpack.c.l.bf16 %v5668_v6  ;;  %v9513_v63 = vunpack.c.l.bf16 %v5502_v42 }
  0x51   : > { %v5913_v50 = vmul.f32 %v5689_v4, %v5534_v57  ;;  %v9514_v52 = vunpack.c.l.bf16 %v5684_v5  ;;  %v761_v44 = vrot.slane %v5728_v9, 1  ;;  %v763_v6 = vrot.slane %v5732_v0, 1 }
  0x52   : > { %v5904_v62 = vmul.f32 %v5689_v4, %v9512_v16  ;;  %v5909_v39 = vmul.f32 %v5689_v4, %v9513_v63  ;;  %v5923_v16 = vsel %vm752_vm1, %v753_v34, %v754_v35  ;;  %v5926_v42 = vsel %vm752_vm1, %v754_v35, %v756_v12 }
  0x53   : > { %v5918_v41 = vmul.f32 %v5689_v4, %v9514_v52  ;;  %v764_v63 = vrot.slane %v5736_v48, 1  ;;  %v766_v57 = vrot.slane %v5741_v56, 1  ;;  %v5931_v7 = vsel %vm752_vm1, %v758_v8, %v759_v36 }
  0x54   : > { %v768_v4 = vrot.slane %v5746_v14, 1  ;;  %v769_v52 = vrot.slane %v5750_v54, 1  ;;  %v771_v9 = vrot.slane %v5755_v32, 1  ;;  %v773_v0 = vrot.slane %v5759_v15, 1 }
  0x55   : > { %v774_v34 = vrot.slane %v5763_v10, 1  ;;  %v776_v35 = vrot.slane %v5768_v2, 1  ;;  %v778_v12 = vrot.slane %v5773_v47, 1  ;;  %v779_v48 = vrot.slane %v5777_v18, 1 }
  0x56   : > { %v781_v56 = vrot.slane %v5782_v24, 1  ;;  %v783_v8 = vrot.slane %v5786_v45, 1  ;;  %v784_v14 = vrot.slane %v5790_v13, 1  ;;  %v786_v54 = vrot.slane %v5795_v43, 1 }
  0x57   : > { %v788_v32 = vrot.slane %v5800_v37, 1  ;;  %v789_v15 = vrot.slane %v5804_v23, 1  ;;  %v791_v10 = vrot.slane %v5809_v22, 1  ;;  %v762_v2 = vsel %vm752_vm1, %v759_v36, %v761_v44 }
  0x58   : > { %v765_v47 = vsel %vm752_vm1, %v763_v6, %v764_v63  ;;  %v793_v18 = vrot.slane %v5813_v27, 1  ;;  %v794_v24 = vrot.slane %v5817_v19, 1  ;;  %v767_v45 = vsel %vm752_vm1, %v764_v63, %v766_v57 }
  0x59   : > { %v770_v13 = vsel %vm752_vm1, %v768_v4, %v769_v52  ;;  %v772_v43 = vsel %vm752_vm1, %v769_v52, %v771_v9  ;;  %v796_v37 = vrot.slane %v5822_v46, 1  ;;  %v775_v23 = vsel %vm752_vm1, %v773_v0, %v774_v34 }
  0x5a   : > { %v777_v22 = vsel %vm752_vm1, %v774_v34, %v776_v35  ;;  %v780_v44 = vsel %vm752_vm1, %v778_v12, %v779_v48  ;;  %v782_v6 = vsel %vm752_vm1, %v779_v48, %v781_v56  ;;  %v785_v27 = vsel %vm752_vm1, %v783_v8, %v784_v14 }
  0x5b   : > { %v787_v19 = vsel %vm752_vm1, %v784_v14, %v786_v54  ;;  %v790_v57 = vsel %vm752_vm1, %v788_v32, %v789_v15  ;;  %v792_v36 = vsel %vm752_vm1, %v789_v15, %v791_v10  ;;  %v795_v63 = vsel %vm752_vm1, %v793_v18, %v794_v24 }
  0x5c   : > { %v798_v46 = vrot.slane %v5827_v1, 1  ;;  %v799_v4 = vrot.slane %v5831_v28, 1  ;;  %v801_v52 = vrot.slane %v5836_v29, 1  ;;  %v797_v9 = vsel %vm752_vm1, %v794_v24, %v796_v37 }
  0x5d   : > { %v803_v0 = vrot.slane %v5840_v26, 1  ;;  %v804_v34 = vrot.slane %v5844_v20, 1  ;;  %v806_v35 = vrot.slane %v5849_v49, 1  ;;  %v808_v12 = vrot.slane %v5854_v25, 1 }
  0x5e   : > { %v809_v48 = vrot.slane %v5858_v30, 1  ;;  %v811_v56 = vrot.slane %v5863_v33, 1  ;;  %v813_v1 = vrot.slane %v5867_v21, 1  ;;  %v814_v28 = vrot.slane %v5871_v31, 1 }
  0x5f   : > { %v816_v29 = vrot.slane %v5876_v51, 1  ;;  %v818_v8 = vrot.slane %v5881_v11, 1  ;;  %v819_v26 = vrot.slane %v5885_v38, 1  ;;  %v821_v20 = vrot.slane %v5890_v17, 1 }
  0x60   : > { %v823_v49 = vrot.slane %v5895_v40, 1  ;;  %v824_v25 = vrot.slane %v5899_v53, 1  ;;  %v826_v30 = vrot.slane %v5904_v62, 1  ;;  %v800_v33 = vsel %vm752_vm1, %v798_v46, %v799_v4  ;;  %v9515_v46 = vld [vmem:[#allocation28_spill] sm:$0xff] }
  0x61   : > { %v828_v21 = vrot.slane %v5909_v39, 1  ;;  %v829_v31 = vrot.slane %v5913_v50, 1  ;;  %v831_v51 = vrot.slane %v5918_v41, 1  ;;  %v802_v11 = vsel %vm752_vm1, %v799_v4, %v801_v52  ;;  %v9517_v52 = vld [vmem:[#allocation30_spill] sm:$0xff] }
  0x62   : > { %v805_v38 = vsel %vm752_vm1, %v803_v0, %v804_v34  ;;  %v807_v17 = vsel %vm752_vm1, %v804_v34, %v806_v35  ;;  %v810_v40 = vsel %vm752_vm1, %v808_v12, %v809_v48  ;;  %v812_v53 = vsel %vm752_vm1, %v809_v48, %v811_v56  ;;  %v9525_v34 = vld [vmem:[#allocation34_spill] sm:$0xff]  ;;  %v9527_v35 = vld [vmem:[#allocation35_spill] sm:$0xff]  ;;  %v9529_v12 = vld [vmem:[#allocation36_spill] sm:$0xff] }
  0x63   : > { %v815_v62 = vsel %vm752_vm1, %v813_v1, %v814_v28  ;;  %v817_v14 = vsel %vm752_vm1, %v814_v28, %v816_v29  ;;  %v820_v39 = vsel %vm752_vm1, %v818_v8, %v819_v26  ;;  %v822_v50 = vsel %vm752_vm1, %v819_v26, %v821_v20  ;;  %v9531_v48 = vld [vmem:[#allocation37_spill] sm:$0xff]  ;;  %v9539_v29 = vld [vmem:[#allocation44_spill] sm:$0xff] }
  0x64   : > { %v825_v41 = vsel %vm752_vm1, %v823_v49, %v824_v25  ;;  %v827_v54 = vsel %vm752_vm1, %v824_v25, %v826_v30  ;;  %v6001_v32 = vadd.f32 %v5923_v16, %v5538_v58  ;;  %v830_v15 = vsel %vm752_vm1, %v828_v21, %v829_v31  ;;  %v9516_v58 = vld [vmem:[#allocation29_spill] sm:$0xff] }
  0x65   : > { %v832_v10 = vsel %vm752_vm1, %v829_v31, %v831_v51  ;;  %v6007_v18 = vadd.f32 %v5926_v42, %v5541_v59  ;;  %v6011_v24 = vadd.f32 %v5931_v7, %v5545_v60  ;;  %v6014_v37 = vadd.f32 %v762_v2, %v5548_v61  ;;  %v9519_v59 = vld [vmem:[#allocation31_spill] sm:$0xff]  ;;  %v9521_v60 = vld [vmem:[#allocation32_spill] sm:$0xff]  ;;  %v9523_v61 = vld [vmem:[#allocation33_spill] sm:$0xff] }
  0x66   : > { %v6017_v4 = vadd.f32 %v765_v47, %v9515_v46  ;;  %v6020_v16 = vadd.f32 %v767_v45, %v9516_v58  ;;  %v6023_v0 = vadd.f32 %v770_v13, %v9517_v52  ;;  %v6026_v42 = vadd.f32 %v772_v43, %v9519_v59  ;;  %v9541_v8 = vld [vmem:[#allocation45_spill] sm:$0xff]  ;;  %v901_v31 = vld [vmem:[%s5433_s20 + $0x30] sm:$0xe]  ;;  %v9551_v46 = vld [vmem:[#allocation58_spill] sm:$0xff] }
  0x67   : > { %v6029_v7 = vadd.f32 %v775_v23, %v9521_v60  ;;  %v6032_v2 = vadd.f32 %v777_v22, %v9523_v61  ;;  %v6035_v47 = vadd.f32 %v780_v44, %v9525_v34  ;;  %v6038_v45 = vadd.f32 %v782_v6, %v9527_v35  ;;  %v9533_v23 = vld [vmem:[#allocation38_spill] sm:$0xff]  ;;  %v9537_v44 = vld [vmem:[#allocation43_spill] sm:$0xff]  ;;  %v899_v20 = vld [vmem:[%s5433_s20 + $0x18] sm:$0xe] }
  0x68   : > { %9518 = vst [vmem:[#allocation28_spill] sm:$0xff] %v6023_v0  ;;  %9520 = vst [vmem:[#allocation29_spill] sm:$0xff] %v6026_v42  ;;  %v6041_v13 = vadd.f32 %v785_v27, %v9529_v12  ;;  %v6044_v43 = vadd.f32 %v787_v19, %v9531_v48  ;;  %v6047_v56 = vadd.f32 %v790_v57, %v9533_v23  ;;  %v9535_v22 = vld [vmem:[#allocation42_spill] sm:$0xff]  ;;  %v898_v19 = vld [vmem:[%s5433_s20 + $0xc] sm:$0xe] }
  0x69   : > { %9522 = vst [vmem:[#allocation30_spill] sm:$0xff] %v6029_v7  ;;  %9524 = vst [vmem:[#allocation31_spill] sm:$0xff] %v6032_v2  ;;  %v6050_v1 = vadd.f32 %v792_v36, %v9535_v22  ;;  %v6053_v28 = vadd.f32 %v795_v63, %v9537_v44  ;;  %v6056_v6 = vadd.f32 %v797_v9, %v9539_v29  ;;  %v897_v26 = vld [vmem:[%s5433_s20] sm:$0xe]  ;;  %v9545_v36 = vld [vmem:[#allocation51_spill] sm:$0xff] }
  0x6a   : > { %9526 = vst [vmem:[#allocation32_spill] sm:$0xff] %v6035_v47  ;;  %9528 = vst [vmem:[#allocation33_spill] sm:$0xff] %v6038_v45  ;;  %v6059_v27 = vadd.f32 %v800_v33, %v9541_v8  ;;  %v9543_v57 = vld [vmem:[#allocation50_spill] sm:$0xff]  ;;  %v6068_v25 = vadd.f32 %v805_v38, %v9545_v36  ;;  %v9547_v63 = vld [vmem:[#allocation52_spill] sm:$0xff]  ;;  %v6080_v58 = vadd.f32 %v812_v53, %v9551_v46 }
  0x6b   : > { %9530 = vst [vmem:[#allocation34_spill] sm:$0xff] %v6041_v13  ;;  %9532 = vst [vmem:[#allocation35_spill] sm:$0xff] %v6044_v43  ;;  %v6065_v49 = vadd.f32 %v802_v11, %v9543_v57  ;;  %v6071_v30 = vadd.f32 %v807_v17, %v9547_v63  ;;  %v9549_v9 = vld [vmem:[#allocation53_spill] sm:$0xff]  ;;  %v900_v33 = vld [vmem:[%s5433_s20 + $0x24] sm:$0xe]  ;;  %v6110_v8 = vadd.f32 %v832_v10, %v5692_v3 }
  0x6c   : > { %9534 = vst [vmem:[#allocation36_spill] sm:$0xff] %v6047_v56  ;;  %9536 = vst [vmem:[#allocation37_spill] sm:$0xff] %v6050_v1  ;;  %v6074_v21 = vadd.f32 %v810_v40, %v9549_v9  ;;  %v902_v51 = vld [vmem:[%s5433_s20 + $0x3c] sm:$0xe]  ;;  %v9553_v11 = vld [vmem:[#allocation59_spill] sm:$0xff]  ;;  %v914_v9 = vunpack.c.l.bf16 %v898_v19 }
  0x6d   : > { %9538 = vst [vmem:[#allocation38_spill] sm:$0xff] %v6053_v28  ;;  %9540 = vst [vmem:[#allocation42_spill] sm:$0xff] %v6056_v6  ;;  %v6083_v38 = vadd.f32 %v815_v62, %v9553_v11  ;;  %v9555_v52 = vld [vmem:[#allocation60_spill] sm:$0xff]  ;;  %v9557_v59 = vld [vmem:[#allocation61_spill] sm:$0xff]  ;;  %v917_v11 = vunpack.c.l.bf16 %v901_v31 }
  0x6e   : > { %9542 = vst [vmem:[#allocation43_spill] sm:$0xff] %v6059_v27  ;;  %9544 = vst [vmem:[#allocation44_spill] sm:$0xff] %v6065_v49  ;;  %v6086_v17 = vadd.f32 %v817_v14, %v9555_v52  ;;  %v6089_v40 = vadd.f32 %v820_v39, %v9557_v59  ;;  %v903_v60 = vld [vmem:[%s5433_s20 + $0x48] sm:$0xe]  ;;  %v904_v61 = vld [vmem:[%s5433_s20 + $0x54] sm:$0xe]  ;;  %v918_v52 = vunpack.c.l.bf16 %v902_v51 }
  0x6f   : > { %9546 = vst [vmem:[#allocation45_spill] sm:$0xff] %v6068_v25  ;;  %9548 = vst [vmem:[#allocation50_spill] sm:$0xff] %v6071_v30  ;;  %v905_v34 = vld [vmem:[%s5433_s20 + $0x60] sm:$0xe]  ;;  %v9561_v53 = vld [vmem:[#allocation67_spill] sm:$0xff]  ;;  %v920_v3 = vunpack.c.l.bf16 %v904_v61 }
  0x70   : > { %9550 = vst [vmem:[#allocation51_spill] sm:$0xff] %v6074_v21  ;;  %9552 = vst [vmem:[#allocation52_spill] sm:$0xff] %v6080_v58  ;;  %v9559_v35 = vld [vmem:[#allocation66_spill] sm:$0xff]  ;;  %v6098_v48 = vadd.f32 %v825_v41, %v9561_v53  ;;  %v9563_v23 = vld [vmem:[#allocation68_spill] sm:$0xff]  ;;  %v915_v41 = vunpack.c.l.bf16 %v899_v20  ;;  %v921_v10 = vunpack.c.l.bf16 %v905_v34 }
  0x71   : > { %9554 = vst [vmem:[#allocation53_spill] sm:$0xff] %v6083_v38  ;;  %9556 = vst [vmem:[#allocation58_spill] sm:$0xff] %v6086_v17  ;;  %v6095_v12 = vadd.f32 %v822_v50, %v9559_v35  ;;  %v6101_v62 = vadd.f32 %v827_v54, %v9563_v23  ;;  %v9565_v22 = vld [vmem:[#allocation69_spill] sm:$0xff]  ;;  %v906_v14 = vld [vmem:[%s5433_s20 + $0x6c] sm:$0xe]  ;;  %v913_v50 = vunpack.c.l.bf16 %v897_v26  ;;  %v916_v54 = vunpack.c.l.bf16 %v900_v33 }
  0x72   : > { %9558 = vst [vmem:[#allocation59_spill] sm:$0xff] %v6089_v40  ;;  %9562 = vst [vmem:[#allocation61_spill] sm:$0xff] %v6098_v48  ;;  %v6104_v44 = vadd.f32 %v830_v15, %v9565_v22  ;;  %v907_v29 = vld [vmem:[%s5433_s20 + $0x78] sm:$0xe]  ;;  %v908_v39 = vld [vmem:[%s5433_s20 + $0x84] sm:$0xe]  ;;  %v919_v15 = vunpack.c.l.bf16 %v903_v60  ;;  %v922_v35 = vunpack.c.l.bf16 %v906_v14 }
  0x73   : > { %9560 = vst [vmem:[#allocation60_spill] sm:$0xff] %v6095_v12  ;;  %9564 = vst [vmem:[#allocation66_spill] sm:$0xff] %v6101_v62  ;;  %v909_v57 = vld [vmem:[%s5433_s20 + $0x90] sm:$0xe]  ;;  %v910_v36 = vld [vmem:[%s5433_s20 + $0x9c] sm:$0xe]  ;;  %v923_v53 = vunpack.c.l.bf16 %v907_v29  ;;  %v924_v23 = vunpack.c.l.bf16 %v908_v39 }
  0x74   : > { %9566 = vst [vmem:[#allocation67_spill] sm:$0xff] %v6104_v44  ;;  %9567 = vst [vmem:[#allocation68_spill] sm:$0xff] %v6110_v8  ;;  %v6115_v63 = vld [vmem:[%s5433_s20 + $0xa8] sm:$0xe]  ;;  %v6118_v46 = vld [vmem:[%s5433_s20 + $0xb4] sm:$0xe]  ;;  %v925_v22 = vunpack.c.l.bf16 %v909_v57  ;;  %v926_v26 = vunpack.c.l.bf16 %v910_v36 }
  0x75   : > { %v6123_v59 = vld [vmem:[%s9441_s2 + $0x2] ss:$0 sm:$0xff]  ;;  %v927_v19 = vunpack.c.l.bf16 %v6115_v63  ;;  %v928_v20 = vunpack.c.l.bf16 %v6118_v46  ;;  %v9569_v60 = vld [vmem:[#allocation39_spill] sm:$0xff]  ;;  %v9572_v29 = vld [vmem:[#allocation40_spill] sm:$0xff] }
  0x76   : > { %v934_v33 = vmul.f32 %v6123_v59, %v913_v50  ;;  %v9568_v31 = vld [vmem:[#allocation6_spill] sm:$0xff]  ;;  %v9570_v8 = vunpack.c.l.bf16 %v9569_v60  ;;  %v937_v61 = vmul.f32 %v6123_v59, %v914_v9  ;;  %v9573_v39 = vunpack.c.l.bf16 %v9572_v29  ;;  %v9574_v63 = vld [vmem:[#allocation8_spill] sm:$0xff]  ;;  %v9575_v46 = vld [vmem:[#allocation41_spill] sm:$0xff] }
  0x77   : > { %v935_v51 = vmul.f32 %v9568_v31, %v6123_v59  ;;  %v9571_v34 = vld [vmem:[#allocation14_spill] sm:$0xff]  ;;  %v6144_v36 = vmul.f32 %v6123_v59, %v915_v41  ;;  %v6148_v50 = vmul.f32 %v9574_v63, %v6123_v59  ;;  %v6156_v31 = vmul.f32 %v6123_v59, %v916_v54  ;;  %v9577_v60 = vld [vmem:[#allocation21_spill] sm:$0xff]  ;;  %v9584_v12 = vld [vmem:[#allocation48_spill] sm:$0xff] }
  0x78   : > { %v936_v44 = vmul.f32 %v6123_v59, %v9570_v8  ;;  %v6136_v14 = vmul.f32 %v6123_v59, %v9571_v34  ;;  %v6141_v57 = vmul.f32 %v6123_v59, %v9573_v39  ;;  %v9576_v8 = vunpack.c.l.bf16 %v9575_v46  ;;  %v9578_v29 = vld [vmem:[#allocation46_spill] sm:$0xff]  ;;  %v9587_v17 = vld [vmem:[#allocation49_spill] sm:$0xff]  ;;  %v9589_v58 = vld [vmem:[#allocation24_spill] sm:$0xff] }
  0x79   : > { %v6160_v34 = vmul.f32 %v6123_v59, %v9577_v60  ;;  %v9579_v39 = vunpack.c.l.bf16 %v9578_v29  ;;  %v6168_v63 = vmul.f32 %v6123_v59, %v917_v11  ;;  %v9580_v46 = vld [vmem:[#allocation10_spill] sm:$0xff]  ;;  %v6180_v60 = vmul.f32 %v6123_v59, %v918_v52  ;;  %v9583_v29 = vld [vmem:[#allocation23_spill] sm:$0xff]  ;;  %v9595_v49 = vld [vmem:[#allocation25_spill] sm:$0xff] }
  0x7a   : > { %v6153_v9 = vmul.f32 %v6123_v59, %v9576_v8  ;;  %v6172_v62 = vmul.f32 %v9580_v46, %v6123_v59  ;;  %v9581_v8 = vld [vmem:[#allocation47_spill] sm:$0xff]  ;;  %v9585_v11 = vunpack.c.l.bf16 %v9584_v12  ;;  %v6192_v46 = vmul.f32 %v6123_v59, %v919_v15  ;;  %v9601_v1 = vld [vmem:[#allocation26_spill] sm:$0xff] }
  0x7b   : > { %v6165_v41 = vmul.f32 %v6123_v59, %v9579_v39  ;;  %v9582_v48 = vunpack.c.l.bf16 %v9581_v8  ;;  %v6184_v39 = vmul.f32 %v6123_v59, %v9583_v29  ;;  %v9586_v8 = vld [vmem:[#allocation12_spill] sm:$0xff]  ;;  %v9588_v38 = vunpack.c.l.bf16 %v9587_v17  ;;  %v9592_v17 = vld [vmem:[#allocation15_spill] sm:$0xff] }
  0x7c   : > { %v6189_v40 = vmul.f32 %v6123_v59, %v9585_v11  ;;  %v6204_v29 = vmul.f32 %v6123_v59, %v920_v3  ;;  %v6208_v12 = vmul.f32 %v6123_v59, %v9589_v58  ;;  %v9590_v11 = vld [vmem:[#allocation54_spill] sm:$0xff]  ;;  %v6220_v30 = vmul.f32 %v9592_v17, %v6123_v59 }
  0x7d   : > { %v6177_v54 = vmul.f32 %v6123_v59, %v9582_v48  ;;  %v6196_v48 = vmul.f32 %v9586_v8, %v6123_v59  ;;  %v6201_v52 = vmul.f32 %v6123_v59, %v9588_v38  ;;  %v9591_v21 = vunpack.c.l.bf16 %v9590_v11  ;;  %v9593_v38 = vld [vmem:[#allocation55_spill] sm:$0xff] }
  0x7e   : > { %v6216_v8 = vmul.f32 %v6123_v59, %v921_v10  ;;  %v9594_v25 = vunpack.c.l.bf16 %v9593_v38  ;;  %v6228_v58 = vmul.f32 %v6123_v59, %v922_v35  ;;  %v6232_v11 = vmul.f32 %v6123_v59, %v9595_v49  ;;  %v9598_v38 = vld [vmem:[#allocation17_spill] sm:$0xff] }
  0x7f   : > { %v6213_v15 = vmul.f32 %v6123_v59, %v9591_v21  ;;  %v9596_v21 = vld [vmem:[#allocation56_spill] sm:$0xff]  ;;  %v6240_v17 = vmul.f32 %v6123_v59, %v923_v53  ;;  %v6244_v6 = vmul.f32 %v9598_v38, %v6123_v59  ;;  %v6252_v49 = vmul.f32 %v6123_v59, %v924_v23 }
  0x80   : > { %v6225_v3 = vmul.f32 %v6123_v59, %v9594_v25  ;;  %v9597_v27 = vunpack.c.l.bf16 %v9596_v21  ;;  %v9599_v25 = vld [vmem:[#allocation57_spill] sm:$0xff]  ;;  %v6256_v21 = vmul.f32 %v6123_v59, %v9601_v1  ;;  %v6264_v38 = vmul.f32 %v6123_v59, %v925_v22  ;;  %v9607_v22 = vld [vmem:[#allocation64_spill] sm:$0xff] }
  0x81   : > { %v9600_v28 = vunpack.c.l.bf16 %v9599_v25  ;;  %v9604_v25 = vld [vmem:[#allocation19_spill] sm:$0xff]  ;;  %v6276_v1 = vmul.f32 %v6123_v59, %v926_v26  ;;  %v1031_v45 = vrot.slane %v934_v33, 2  ;;  %v1034_v47 = vrot.slane %v936_v44, 2  ;;  %v9609_v26 = vld [vmem:[#allocation22_spill] sm:$0xff]  ;;  %v9610_v44 = vld [vmem:[#allocation65_spill] sm:$0xff] }
  0x82   : > { %v6237_v10 = vmul.f32 %v6123_v59, %v9597_v27  ;;  %v9602_v27 = vld [vmem:[#allocation62_spill] sm:$0xff]  ;;  %v6268_v43 = vmul.f32 %v9604_v25, %v6123_v59  ;;  %v9608_v2 = vunpack.c.l.bf16 %v9607_v22  ;;  %v1036_v7 = vrot.slane %v937_v61, 2 }
  0x83   : > { %v6249_v35 = vmul.f32 %v6123_v59, %v9600_v28  ;;  %v9603_v56 = vunpack.c.l.bf16 %v9602_v27  ;;  %v9605_v28 = vld [vmem:[#allocation63_spill] sm:$0xff]  ;;  %v1032_v27 = vrot.slane %v935_v51, 2  ;;  %v6293_v33 = vmul.f32 %v9609_v26, %v6123_v59 }
  0x84   : > { %v9606_v13 = vunpack.c.l.bf16 %v9605_v28  ;;  %v6285_v25 = vmul.f32 %v6123_v59, %v9608_v2  ;;  %v1037_v28 = vrot.slane %v6136_v14, 2  ;;  %v9611_v51 = vunpack.c.l.bf16 %v9610_v44  ;;  %v9612_v2 = vld [vmem:[#allocation27_spill] sm:$0xff] }
  0x85   : > { %v6261_v53 = vmul.f32 %v6123_v59, %v9603_v56  ;;  %v6280_v56 = vmul.f32 %v6123_v59, %v5530_v55  ;;  %v6301_v22 = vmul.f32 %v6123_v59, %v928_v20  ;;  %v6305_v61 = vmul.f32 %v6123_v59, %v9612_v2 }
  0x86   : > { %v6273_v23 = vmul.f32 %v6123_v59, %v9606_v13  ;;  %v6289_v13 = vmul.f32 %v6123_v59, %v927_v19  ;;  %v6298_v55 = vmul.f32 %v6123_v59, %v9611_v51  ;;  %v9613_v14 = vunpack.c.l.bf16 %v5684_v5 }
  0x87   : > { %v1039_v26 = vrot.slane %v6141_v57, 2  ;;  %v1041_v42 = vrot.slane %v6144_v36, 2  ;;  %v6315_v44 = vsel %vm1030_vm2, %v1031_v45, %v1032_v27  ;;  %v6318_v51 = vsel %vm1030_vm2, %v1032_v27, %v1034_v47 }
  0x88   : > { %v6310_v19 = vmul.f32 %v6123_v59, %v9613_v14  ;;  %v1042_v20 = vrot.slane %v6148_v50, 2  ;;  %v1044_v2 = vrot.slane %v6153_v9, 2  ;;  %v6323_v0 = vsel %vm1030_vm2, %v1036_v7, %v1037_v28 }
  0x89   : > { %v1046_v5 = vrot.slane %v6156_v31, 2  ;;  %v1047_v59 = vrot.slane %v6160_v34, 2  ;;  %v1049_v57 = vrot.slane %v6165_v41, 2  ;;  %v1051_v36 = vrot.slane %v6168_v63, 2 }
  0x8a   : > { %v1052_v45 = vrot.slane %v6172_v62, 2  ;;  %v1054_v47 = vrot.slane %v6177_v54, 2  ;;  %v1056_v27 = vrot.slane %v6180_v60, 2  ;;  %v1057_v50 = vrot.slane %v6184_v39, 2 }
  0x8b   : > { %v1059_v9 = vrot.slane %v6189_v40, 2  ;;  %v1061_v7 = vrot.slane %v6192_v46, 2  ;;  %v1062_v31 = vrot.slane %v6196_v48, 2  ;;  %v1064_v34 = vrot.slane %v6201_v52, 2 }
  0x8c   : > { %v1066_v41 = vrot.slane %v6204_v29, 2  ;;  %v1067_v63 = vrot.slane %v6208_v12, 2  ;;  %v1069_v62 = vrot.slane %v6213_v15, 2  ;;  %v1040_v54 = vsel %vm1030_vm2, %v1037_v28, %v1039_v26 }
  0x8d   : > { %v1043_v60 = vsel %vm1030_vm2, %v1041_v42, %v1042_v20  ;;  %v1071_v39 = vrot.slane %v6216_v8, 2  ;;  %v1072_v40 = vrot.slane %v6220_v30, 2  ;;  %v1045_v46 = vsel %vm1030_vm2, %v1042_v20, %v1044_v2 }
  0x8e   : > { %v1048_v48 = vsel %vm1030_vm2, %v1046_v5, %v1047_v59  ;;  %v1050_v52 = vsel %vm1030_vm2, %v1047_v59, %v1049_v57  ;;  %v1074_v29 = vrot.slane %v6225_v3, 2  ;;  %v1053_v12 = vsel %vm1030_vm2, %v1051_v36, %v1052_v45 }
  0x8f   : > { %v1055_v15 = vsel %vm1030_vm2, %v1052_v45, %v1054_v47  ;;  %v1058_v28 = vsel %vm1030_vm2, %v1056_v27, %v1057_v50  ;;  %v1060_v42 = vsel %vm1030_vm2, %v1057_v50, %v1059_v9  ;;  %v1063_v8 = vsel %vm1030_vm2, %v1061_v7, %v1062_v31 }
  0x90   : > { %v1065_v30 = vsel %vm1030_vm2, %v1062_v31, %v1064_v34  ;;  %v1068_v26 = vsel %vm1030_vm2, %v1066_v41, %v1067_v63  ;;  %v1070_v14 = vsel %vm1030_vm2, %v1067_v63, %v1069_v62  ;;  %v1073_v20 = vsel %vm1030_vm2, %v1071_v39, %v1072_v40 }
  0x91   : > { %v1076_v3 = vrot.slane %v6228_v58, 2  ;;  %v1077_v2 = vrot.slane %v6232_v11, 2  ;;  %v1079_v5 = vrot.slane %v6237_v10, 2  ;;  %v1075_v59 = vsel %vm1030_vm2, %v1072_v40, %v1074_v29 }
  0x92   : > { %v1081_v57 = vrot.slane %v6240_v17, 2  ;;  %v1082_v36 = vrot.slane %v6244_v6, 2  ;;  %v1084_v45 = vrot.slane %v6249_v35, 2  ;;  %v1086_v47 = vrot.slane %v6252_v49, 2 }
  0x93   : > { %v1087_v27 = vrot.slane %v6256_v21, 2  ;;  %v1089_v50 = vrot.slane %v6261_v53, 2  ;;  %v1091_v58 = vrot.slane %v6264_v38, 2  ;;  %v1092_v11 = vrot.slane %v6268_v43, 2 }
  0x94   : > { %v1094_v10 = vrot.slane %v6273_v23, 2  ;;  %v1096_v9 = vrot.slane %v6276_v1, 2  ;;  %v1097_v17 = vrot.slane %v6280_v56, 2  ;;  %v1099_v6 = vrot.slane %v6285_v25, 2 }
  0x95   : > { %v1101_v35 = vrot.slane %v6289_v13, 2  ;;  %v1102_v49 = vrot.slane %v6293_v33, 2  ;;  %v1104_v21 = vrot.slane %v6298_v55, 2  ;;  %v1078_v53 = vsel %vm1030_vm2, %v1076_v3, %v1077_v2 }
  0x96   : > { %v1106_v38 = vrot.slane %v6301_v22, 2  ;;  %v1107_v43 = vrot.slane %v6305_v61, 2  ;;  %v1109_v23 = vrot.slane %v6310_v19, 2  ;;  %v1080_v1 = vsel %vm1030_vm2, %v1077_v2, %v1079_v5  ;;  %v9615_v2 = vld [vmem:[#allocation29_spill] sm:$0xff] }
  0x97   : > { %v1083_v56 = vsel %vm1030_vm2, %v1081_v57, %v1082_v36  ;;  %v1085_v25 = vsel %vm1030_vm2, %v1082_v36, %v1084_v45  ;;  %v1088_v13 = vsel %vm1030_vm2, %v1086_v47, %v1087_v27  ;;  %v1090_v33 = vsel %vm1030_vm2, %v1087_v27, %v1089_v50  ;;  %v9622_v57 = vld [vmem:[#allocation36_spill] sm:$0xff]  ;;  %v9623_v36 = vld [vmem:[#allocation37_spill] sm:$0xff]  ;;  %v9624_v45 = vld [vmem:[#allocation38_spill] sm:$0xff] }
  0x98   : > { %v1093_v55 = vsel %vm1030_vm2, %v1091_v58, %v1092_v11  ;;  %v1095_v7 = vsel %vm1030_vm2, %v1092_v11, %v1094_v10  ;;  %v1098_v22 = vsel %vm1030_vm2, %v1096_v9, %v1097_v17  ;;  %v1100_v61 = vsel %vm1030_vm2, %v1097_v17, %v1099_v6  ;;  %v9625_v47 = vld [vmem:[#allocation42_spill] sm:$0xff]  ;;  %v9626_v27 = vld [vmem:[#allocation43_spill] sm:$0xff]  ;;  %v9627_v50 = vld [vmem:[#allocation44_spill] sm:$0xff] }
  0x99   : > { %v1103_v19 = vsel %vm1030_vm2, %v1101_v35, %v1102_v49  ;;  %v1105_v31 = vsel %vm1030_vm2, %v1102_v49, %v1104_v21  ;;  %v6393_v34 = vadd.f32 %v6315_v44, %v6001_v32  ;;  %v1108_v41 = vsel %vm1030_vm2, %v1106_v38, %v1107_v43  ;;  %v9614_v44 = vld [vmem:[#allocation28_spill] sm:$0xff]  ;;  %v9629_v58 = vld [vmem:[#allocation45_spill] sm:$0xff]  ;;  %v9631_v11 = vld [vmem:[#allocation50_spill] sm:$0xff] }
  0x9a   : > { %v1110_v63 = vsel %vm1030_vm2, %v1107_v43, %v1109_v23  ;;  %v6399_v62 = vadd.f32 %v6318_v51, %v6007_v18  ;;  %v6403_v39 = vadd.f32 %v6323_v0, %v6011_v24  ;;  %v6406_v40 = vadd.f32 %v1040_v54, %v6014_v37  ;;  %v9616_v18 = vld [vmem:[#allocation30_spill] sm:$0xff]  ;;  %v9617_v24 = vld [vmem:[#allocation31_spill] sm:$0xff]  ;;  %v9618_v0 = vld [vmem:[#allocation32_spill] sm:$0xff] }
  0x9b   : > { %v6409_v29 = vadd.f32 %v1043_v60, %v6017_v4  ;;  %v6412_v32 = vadd.f32 %v1045_v46, %v6020_v16  ;;  %v6415_v3 = vadd.f32 %v1048_v48, %v9614_v44  ;;  %v6418_v5 = vadd.f32 %v1050_v52, %v9615_v2  ;;  %v9619_v54 = vld [vmem:[#allocation33_spill] sm:$0xff]  ;;  %v9620_v60 = vld [vmem:[#allocation34_spill] sm:$0xff]  ;;  %v9621_v48 = vld [vmem:[#allocation35_spill] sm:$0xff] }
  0x9c   : > { %v6421_v51 = vadd.f32 %v1053_v12, %v9616_v18  ;;  %v6424_v37 = vadd.f32 %v1055_v15, %v9617_v24  ;;  %v6427_v4 = vadd.f32 %v1058_v28, %v9618_v0  ;;  %v6430_v16 = vadd.f32 %v1060_v42, %v9619_v54  ;;  %v9633_v10 = vld [vmem:[#allocation51_spill] sm:$0xff]  ;;  %v4593_v9 = vld [vmem:[%s5433_s20 + $0xc0] sm:$0xff]   ;;  %v9636_v17 = vld [vmem:[#allocation52_spill] sm:$0xff] }
  0x9d   : > { %v6433_v46 = vadd.f32 %v1063_v8, %v9620_v60  ;;  %v6436_v52 = vadd.f32 %v1065_v30, %v9621_v48  ;;  %v6439_v12 = vadd.f32 %v1068_v26, %v9622_v57  ;;  %v6442_v15 = vadd.f32 %v1070_v14, %v9623_v36  ;;  %v9638_v35 = vld [vmem:[#allocation53_spill] sm:$0xff]  ;;  %v9640_v21 = vld [vmem:[#allocation58_spill] sm:$0xff]  ;;  %v9642_v38 = vld [vmem:[#allocation59_spill] sm:$0xff] }
  0x9e   : > { %v6445_v28 = vadd.f32 %v1073_v20, %v9624_v45  ;;  %v6448_v42 = vadd.f32 %v1075_v59, %v9625_v47  ;;  %v6451_v8 = vadd.f32 %v1078_v53, %v9626_v27  ;;  %v6454_v30 = vadd.f32 %v1080_v1, %v9627_v50  ;;  %v6466_v59 = vld [vmem:[%s5433_s20 + $0xc] sm:$0xff]   ;;  %v6482_v23 = vld [vmem:[%s5433_s20 + $0x24] sm:$0xff]   ;;  %v6485_v1 = vld [vmem:[%s5433_s20 + $0x3c] sm:$0xff]  }
  0x9f   : > { %v6457_v26 = vadd.f32 %v1083_v56, %v9629_v58  ;;  %v6460_v14 = vadd.f32 %v1085_v25, %v9631_v11  ;;  %v6463_v20 = vadd.f32 %v1088_v13, %v9633_v10  ;;  %9635 = vst [vmem:[#allocation40_spill] sm:$0xff] %v6466_v59  ;;  %v6470_v6 = vadd.f32 %v1090_v33, %v9636_v17  ;;  %v9646_v56 = vld [vmem:[#allocation60_spill] sm:$0xff]  ;;  %v9648_v13 = vld [vmem:[#allocation61_spill] sm:$0xff]  ;;  %v9650_v44 = vld [vmem:[#allocation66_spill] sm:$0xff] }
  0xa0   : > { %9628 = vst [vmem:[#allocation69_spill] sm:$0xff] %v6454_v30  ;;  %v6473_v49 = vadd.f32 %v1093_v55, %v9638_v35  ;;  %v6476_v53 = vadd.f32 %v1095_v7, %v9640_v21  ;;  %v6479_v43 = vadd.f32 %v1098_v22, %v9642_v38  ;;  %9644 = vst [vmem:[#allocation23_spill] sm:$0xff] %v6482_v23  ;;  %v9652_v2 = vld [vmem:[#allocation67_spill] sm:$0xff]  ;;  %v6500_v18 = vld [vmem:[%s5433_s20 + $0x54] sm:$0xff]   ;;  %v6514_v60 = vunpack.c.l.bf16 %v4593_v9 }
  0xa1   : > { %9630 = vst [vmem:[#allocation6_spill] sm:$0xff] %v6457_v26  ;;  %9632 = vst [vmem:[#allocation39_spill] sm:$0xff] %v6460_v14  ;;  %v6488_v25 = vadd.f32 %v1100_v61, %v9646_v56  ;;  %v6491_v33 = vadd.f32 %v1103_v19, %v9648_v13  ;;  %v6494_v55 = vadd.f32 %v1105_v31, %v9650_v44  ;;  %v6503_v22 = vld [vmem:[%s5433_s20 + $0x6c] sm:$0xff]   ;;  %v6509_v54 = vld [vmem:[%s5433_s20 + $0x84] sm:$0xff]   ;;  %v6516_v19 = vunpack.c.h.bf16 %v4593_v9 }
  0xa2   : > { %9634 = vst [vmem:[#allocation14_spill] sm:$0xff] %v6463_v20  ;;  %9637 = vst [vmem:[#allocation41_spill] sm:$0xff] %v6470_v6  ;;  %v6497_v7 = vadd.f32 %v1108_v41, %v9652_v2  ;;  %v9656_v24 = vld [vmem:[#allocation68_spill] sm:$0xff]  ;;  %v6512_v61 = vld [vmem:[%s5433_s20 + $0x9c] sm:$0xff]   ;;  %v9321_v31 = vunpack.c.l.bf16 %v6466_v59  ;;  %v6523_v41 = vunpack.c.h.bf16 %v6466_v59  ;;  %v9325_v57 = vunpack.c.l.bf16 %v6482_v23 }
  0xa3   : > { %9639 = vst [vmem:[#allocation21_spill] sm:$0xff] %v6473_v49  ;;  %9641 = vst [vmem:[#allocation46_spill] sm:$0xff] %v6476_v53  ;;  %v6506_v0 = vadd.f32 %v1110_v63, %v9656_v24  ;;  %v6520_v48 = vld [vmem:[%s5433_s20 + $0xb4] sm:$0xff]   ;;  %v6527_v63 = vunpack.c.h.bf16 %v6482_v23  ;;  %v4203_v45 = vld [vmem:[%s9441_s2 + $0x3] ss:$0 sm:$0xff]  ;;  %v6534_v47 = vunpack.c.h.bf16 %v6485_v1  ;;  %v6538_v50 = vunpack.c.h.bf16 %v6500_v18 }
  0xa4   : > { %9643 = vst [vmem:[#allocation47_spill] sm:$0xff] %v6479_v43  ;;  %9645 = vst [vmem:[#allocation48_spill] sm:$0xff] %v6485_v1  ;;  %v6542_v11 = vunpack.c.h.bf16 %v6503_v22  ;;  %v6546_v9 = vunpack.c.h.bf16 %v6509_v54  ;;  %v6550_v35 = vunpack.c.h.bf16 %v6512_v61  ;;  %v6554_v38 = vunpack.c.h.bf16 %v6520_v48  ;;  %v9669_v44 = vld [vmem:[#allocation7_spill] sm:$0xff]  ;;  %v9670_v24 = vld [vmem:[#allocation8_spill] sm:$0xff] }
  0xa5   : > { %9647 = vst [vmem:[#allocation49_spill] sm:$0xff] %v6488_v25  ;;  %9649 = vst [vmem:[#allocation24_spill] sm:$0xff] %v6491_v33  ;;  %v1245_v56 = vmul.f32 %v4203_v45, %v9321_v31  ;;  %v1246_v13 = vmul.f32 %v4203_v45, %v6523_v41  ;;  %v1247_v2 = vmul.f32 %v9669_v44, %v4203_v45  ;;  %v9671_v27 = vld [vmem:[#allocation9_spill] sm:$0xff]  ;;  %v9672_v21 = vld [vmem:[#allocation10_spill] sm:$0xff] }
  0xa6   : > { %9651 = vst [vmem:[#allocation54_spill] sm:$0xff] %v6494_v55  ;;  %9653 = vst [vmem:[#allocation55_spill] sm:$0xff] %v6497_v7  ;;  %v1248_v10 = vmul.f32 %v9670_v24, %v4203_v45  ;;  %v1249_v17 = vmul.f32 %v4203_v45, %v9325_v57  ;;  %v1250_v58 = vmul.f32 %v4203_v45, %v6527_v63  ;;  %v9673_v7 = vunpack.c.l.bf16 %v6485_v1  ;;  %v9674_v59 = vld [vmem:[#allocation11_spill] sm:$0xff]  ;;  %v9675_v33 = vld [vmem:[#allocation12_spill] sm:$0xff] }
  0xa7   : > { %9654 = vst [vmem:[#allocation25_spill] sm:$0xff] %v6500_v18  ;;  %9655 = vst [vmem:[#allocation56_spill] sm:$0xff] %v6503_v22  ;;  %v1251_v36 = vmul.f32 %v9671_v27, %v4203_v45  ;;  %v1254_v31 = vmul.f32 %v4203_v45, %v6534_v47  ;;  %v1256_v44 = vmul.f32 %v9675_v33, %v4203_v45  ;;  %v9676_v24 = vunpack.c.l.bf16 %v6500_v18  ;;  %v9677_v23 = vld [vmem:[#allocation13_spill] sm:$0xff]  ;;  %v9678_v43 = vld [vmem:[#allocation15_spill] sm:$0xff] }
  0xa8   : > { %9657 = vst [vmem:[#allocation57_spill] sm:$0xff] %v6506_v0  ;;  %9658 = vst [vmem:[#allocation26_spill] sm:$0xff] %v6514_v60  ;;  %v1252_v0 = vmul.f32 %v9672_v21, %v4203_v45  ;;  %v1253_v55 = vmul.f32 %v4203_v45, %v9673_v7  ;;  %v1258_v57 = vmul.f32 %v4203_v45, %v6538_v50  ;;  %v9679_v21 = vunpack.c.l.bf16 %v6503_v22  ;;  %v9680_v1 = vld [vmem:[#allocation16_spill] sm:$0xff]  ;;  %v9681_v49 = vld [vmem:[#allocation17_spill] sm:$0xff] }
  0xa9   : > { %9659 = vst [vmem:[#allocation62_spill] sm:$0xff] %v6516_v19  ;;  %9660 = vst [vmem:[#allocation63_spill] sm:$0xff] %v6520_v48  ;;  %v1257_v25 = vmul.f32 %v4203_v45, %v9676_v24  ;;  %v1260_v27 = vmul.f32 %v9678_v43, %v4203_v45  ;;  %v1262_v7 = vmul.f32 %v4203_v45, %v6542_v11  ;;  %v9682_v33 = vunpack.c.l.bf16 %v6509_v54  ;;  %v9683_v18 = vld [vmem:[#allocation18_spill] sm:$0xff]  ;;  %v9684_v20 = vld [vmem:[#allocation19_spill] sm:$0xff] }
  0xaa   : > { %9661 = vst [vmem:[#allocation64_spill] sm:$0xff] %v6523_v41  ;;  %9662 = vst [vmem:[#allocation65_spill] sm:$0xff] %v6527_v63  ;;  %v1255_v41 = vmul.f32 %v9674_v59, %v4203_v45  ;;  %v1259_v63 = vmul.f32 %v9677_v23, %v4203_v45  ;;  %v1261_v53 = vmul.f32 %v4203_v45, %v9679_v21  ;;  %v9685_v43 = vunpack.c.l.bf16 %v6512_v61  ;;  %v9686_v22 = vld [vmem:[#allocation20_spill] sm:$0xff]  ;;  %v9687_v26 = vld [vmem:[#allocation22_spill] sm:$0xff] }
  0xab   : > { %9663 = vst [vmem:[#allocation27_spill] sm:$0xff] %v6534_v47  ;;  %9664 = vst [vmem:[#allocation28_spill] sm:$0xff] %v6538_v50  ;;  %v1263_v47 = vmul.f32 %v9680_v1, %v4203_v45  ;;  %v1264_v59 = vmul.f32 %v9681_v49, %v4203_v45  ;;  %v1265_v6 = vmul.f32 %v4203_v45, %v9682_v33  ;;  %v9688_v49 = vunpack.c.l.bf16 %v6520_v48 }
  0xac   : > { %9665 = vst [vmem:[#allocation29_spill] sm:$0xff] %v6542_v11  ;;  %9666 = vst [vmem:[#allocation30_spill] sm:$0xff] %v6546_v9  ;;  %v1266_v24 = vmul.f32 %v4203_v45, %v6546_v9  ;;  %v1267_v50 = vmul.f32 %v9683_v18, %v4203_v45  ;;  %v1268_v23 = vmul.f32 %v9684_v20, %v4203_v45 }
  0xad   : > { %9667 = vst [vmem:[#allocation31_spill] sm:$0xff] %v6550_v35  ;;  %9668 = vst [vmem:[#allocation32_spill] sm:$0xff] %v6554_v38  ;;  %v1269_v14 = vmul.f32 %v4203_v45, %v9685_v43  ;;  %v1270_v21 = vmul.f32 %v4203_v45, %v6550_v35  ;;  %v1271_v11 = vmul.f32 %v9686_v22, %v4203_v45 }
  0xae   : > { %v1272_v1 = vmul.f32 %v9687_v26, %v4203_v45  ;;  %v1273_v30 = vmul.f32 %v4203_v45, %v9688_v49  ;;  %v1274_v33 = vmul.f32 %v4203_v45, %v6554_v38  ;;  %v1275_v9 = vmul.f32 %v6514_v60, %v4203_v45 }
  0xaf   : > { %v1276_v18 = vmul.f32 %v6516_v19, %v4203_v45  ;;  %v6597_v20 = vadd.f32 %v1245_v56, %v6393_v34  ;;  %v6600_v43 = vadd.f32 %v1246_v13, %v6399_v62  ;;  %v6603_v22 = vadd.f32 %v1247_v2, %v6403_v39  ;;  %v6687_v45 = vld [vmem:[%s5433_s20 + $0x50] sm:$0x1]  ;;  %v6711_v2 = vld [vmem:[%s5433_s20 + $0x80] sm:$0x1] }
  0xb0   : > { %v6606_v48 = vadd.f32 %v1248_v10, %v6406_v40  ;;  %v6609_v49 = vadd.f32 %v1249_v17, %v6409_v29  ;;  %v6612_v60 = vadd.f32 %v1250_v58, %v6412_v32  ;;  %v6615_v34 = vadd.f32 %v1251_v36, %v6415_v3  ;;  %v9722_v58 = vld [vmem:[#allocation46_spill] sm:$0xff]  ;;  %v9724_v10 = vld [vmem:[#allocation47_spill] sm:$0xff]  ;;  %9731 = vst [vmem:[#allocation70_spill] sm:$0xff] %v6711_v2 }
  0xb1   : > { %v6618_v62 = vadd.f32 %v1252_v0, %v6418_v5  ;;  %v6621_v39 = vadd.f32 %v1253_v55, %v6421_v51  ;;  %v6624_v40 = vadd.f32 %v1254_v31, %v6424_v37  ;;  %v6627_v29 = vadd.f32 %v1255_v41, %v6427_v4  ;;  %v6651_v55 = vld [vmem:[%s5433_s20 + $0x20] sm:$0x1]  ;;  %v6672_v31 = vld [vmem:[%s5433_s20 + $0x44] sm:$0x1] }
  0xb2   : > { %9689 = vst [vmem:[#allocation33_spill] sm:$0xff] %v6615_v34  ;;  %v6630_v32 = vadd.f32 %v1256_v44, %v6430_v16  ;;  %v6633_v3 = vadd.f32 %v1257_v25, %v6433_v46  ;;  %v6636_v5 = vadd.f32 %v1258_v57, %v6436_v52  ;;  %v6639_v51 = vadd.f32 %v1259_v63, %v6439_v12  ;;  %v6648_v16 = vld [vmem:[%s5433_s20 + $0x14] sm:$0x1]  ;;  %v9704_v12 = vld [vmem:[#allocation69_spill] sm:$0xff] }
  0xb3   : > { %9690 = vst [vmem:[#allocation34_spill] sm:$0xff] %v6618_v62  ;;  %9691 = vst [vmem:[#allocation35_spill] sm:$0xff] %v6621_v39  ;;  %v6642_v37 = vadd.f32 %v1260_v27, %v6442_v15  ;;  %v6645_v4 = vadd.f32 %v1261_v53, %v6445_v28  ;;  %v6654_v46 = vadd.f32 %v1262_v7, %v6448_v42  ;;  %v9706_v15 = vld [vmem:[#allocation6_spill] sm:$0xff]  ;;  %v6666_v28 = vld [vmem:[%s5433_s20 + $0x2c] sm:$0x1] }
  0xb4   : > { %9692 = vst [vmem:[#allocation36_spill] sm:$0xff] %v6624_v40  ;;  %9693 = vst [vmem:[#allocation37_spill] sm:$0xff] %v6627_v29  ;;  %v6657_v52 = vadd.f32 %v1263_v47, %v6451_v8  ;;  %v6660_v25 = vadd.f32 %v1264_v59, %v9704_v12  ;;  %v6663_v0 = vadd.f32 %v1265_v6, %v9706_v15  ;;  %v6669_v53 = vld [vmem:[%s5433_s20 + $0x38] sm:$0x1]  ;;  %v9711_v42 = vld [vmem:[#allocation39_spill] sm:$0xff] }
  0xb5   : > { %9694 = vst [vmem:[#allocation38_spill] sm:$0xff] %v6630_v32  ;;  %9695 = vst [vmem:[#allocation42_spill] sm:$0xff] %v6633_v3  ;;  %v6675_v41 = vadd.f32 %v1266_v24, %v9711_v42  ;;  %v9713_v8 = vld [vmem:[#allocation14_spill] sm:$0xff]  ;;  %v9715_v59 = vld [vmem:[#allocation41_spill] sm:$0xff]  ;;  %v6699_v17 = vadd.f32 %v1271_v11, %v9724_v10 }
  0xb6   : > { %9696 = vst [vmem:[#allocation43_spill] sm:$0xff] %v6636_v5  ;;  %9697 = vst [vmem:[#allocation44_spill] sm:$0xff] %v6639_v51  ;;  %v6678_v57 = vadd.f32 %v1267_v50, %v9713_v8  ;;  %v6681_v63 = vadd.f32 %v1268_v23, %v9715_v59  ;;  %v9717_v6 = vld [vmem:[#allocation21_spill] sm:$0xff]  ;;  %v6693_v27 = vld [vmem:[%s5433_s20 + $0x68] sm:$0x1]  ;;  %v6696_v50 = vadd.f32 %v1270_v21, %v9722_v58 }
  0xb7   : > { %9698 = vst [vmem:[#allocation45_spill] sm:$0xff] %v6642_v37  ;;  %9699 = vst [vmem:[#allocation50_spill] sm:$0xff] %v6645_v4  ;;  %v6684_v36 = vadd.f32 %v1269_v14, %v9717_v6  ;;  %v6690_v47 = vld [vmem:[%s5433_s20 + $0x5c] sm:$0x1]  ;;  %v9728_v14 = vld [vmem:[#allocation24_spill] sm:$0xff] }
  0xb8   : > { %9700 = vst [vmem:[#allocation51_spill] sm:$0xff] %v6648_v16  ;;  %9701 = vst [vmem:[#allocation52_spill] sm:$0xff] %v6651_v55  ;;  %v9726_v23 = vld [vmem:[#allocation49_spill] sm:$0xff]  ;;  %v6705_v13 = vadd.f32 %v1273_v30, %v9728_v14  ;;  %v6708_v44 = vld [vmem:[%s5433_s20 + $0x74] sm:$0x1] }
  0xb9   : > { %9702 = vst [vmem:[#allocation53_spill] sm:$0xff] %v6654_v46  ;;  %9703 = vst [vmem:[#allocation58_spill] sm:$0xff] %v6657_v52  ;;  %v6702_v56 = vadd.f32 %v1272_v1, %v9726_v23  ;;  %v6714_v7 = vld [vmem:[%s5433_s20 + $0x8c] sm:$0x1]  ;;  %v9733_v24 = vld [vmem:[#allocation54_spill] sm:$0xff] }
  0xba   : > { %9705 = vst [vmem:[#allocation59_spill] sm:$0xff] %v6660_v25  ;;  %9707 = vst [vmem:[#allocation60_spill] sm:$0xff] %v6663_v0  ;;  %v6717_v12 = vadd.f32 %v1274_v33, %v9733_v24  ;;  %v9735_v21 = vld [vmem:[#allocation55_spill] sm:$0xff]  ;;  %v9737_v11 = vld [vmem:[#allocation57_spill] sm:$0xff]  ;;  %v9747_v33 = vunpack.c.l.bf16 %v6648_v16 }
  0xbb   : > { %9708 = vst [vmem:[#allocation61_spill] sm:$0xff] %v6666_v28  ;;  %9709 = vst [vmem:[#allocation66_spill] sm:$0xff] %v6669_v53  ;;  %v6720_v15 = vadd.f32 %v1275_v9, %v9735_v21  ;;  %v6723_v42 = vadd.f32 %v1276_v18, %v9737_v11  ;;  %v6726_v1 = vld [vmem:[%s5433_s20 + $0x98] sm:$0x1]  ;;  %v6729_v8 = vld [vmem:[%s5433_s20 + $0xa4] sm:$0x1] }
  0xbc   : > { %9710 = vst [vmem:[#allocation67_spill] sm:$0xff] %v6672_v31  ;;  %9712 = vst [vmem:[#allocation68_spill] sm:$0xff] %v6675_v41  ;;  %v6732_v30 = vld [vmem:[%s5433_s20 + $0xb0] sm:$0x1]  ;;  %v6736_v6 = vld [vmem:[%s5433_s20 + $0xbc] sm:$0x1] }
  0xbd   : > { %9714 = vst [vmem:[#allocation22_spill] sm:$0xff] %v6678_v57  ;;  %9716 = vst [vmem:[#allocation69_spill] sm:$0xff] %v6681_v63  ;;  %v6739_v58 = vld [vmem:[%s5433_s20 + $0xc8] sm:$0x1]  ;;  %v6748_v23 = vld [vmem:[%s9441_s2 + $0x4] ss:$0 sm:$0xff] }
  0xbe   : > { %9718 = vst [vmem:[#allocation6_spill] sm:$0xff] %v6684_v36  ;;  %9719 = vst [vmem:[#allocation39_spill] sm:$0xff] %v6687_v45  ;;  %v1348_v9 = vmul.f32 %v6748_v23, %v9747_v33  ;;  %v9748_v10 = vld [vmem:[#allocation7_spill] sm:$0xff]  ;;  %v9749_v59 = vld [vmem:[#allocation8_spill] sm:$0xff]  ;;  %v9754_v33 = vunpack.c.l.bf16 %v6666_v28 }
  0xbf   : > { %9720 = vst [vmem:[#allocation14_spill] sm:$0xff] %v6690_v47  ;;  %9721 = vst [vmem:[#allocation41_spill] sm:$0xff] %v6693_v27  ;;  %v1349_v18 = vmul.f32 %v9748_v10, %v6748_v23 }
  0xc0   : > { %9723 = vst [vmem:[#allocation21_spill] sm:$0xff] %v6696_v50  ;;  %9725 = vst [vmem:[#allocation46_spill] sm:$0xff] %v6699_v17  ;;  %v6788_v10 = vmul.f32 %v6748_v23, %v9754_v33  ;;  %v9760_v33 = vld [vmem:[#allocation27_spill] sm:$0xff] }
  0xc1   : > { %9727 = vst [vmem:[#allocation47_spill] sm:$0xff] %v6702_v56  ;;  %9729 = vst [vmem:[#allocation49_spill] sm:$0xff] %v6705_v13  ;;  %v1350_v13 = vmul.f32 %v9749_v59, %v6748_v23  ;;  %v9755_v59 = vld [vmem:[#allocation9_spill] sm:$0xff]  ;;  %v6810_v36 = vmul.f32 %v6748_v23, %v9760_v33  ;;  %v1447_v39 = vrot.slane %v1349_v18, 1  ;;  %v9791_v18 = vunpack.c.l.bf16 %v6736_v6 }
  0xc2   : > { %9730 = vst [vmem:[#allocation24_spill] sm:$0xff] %v6708_v44  ;;  %9732 = vst [vmem:[#allocation71_spill] sm:$0xff] %v6714_v7  ;;  %v6792_v17 = vmul.f32 %v9755_v59, %v6748_v23  ;;  %v9761_v59 = vunpack.c.l.bf16 %v6672_v31  ;;  %v9765_v33 = vld [vmem:[#allocation25_spill] sm:$0xff] }
  0xc3   : > { %9734 = vst [vmem:[#allocation54_spill] sm:$0xff] %v6717_v12  ;;  %9736 = vst [vmem:[#allocation55_spill] sm:$0xff] %v6720_v15  ;;  %v9744_v15 = vld [vmem:[#allocation40_spill] sm:$0xff]  ;;  %v9766_v41 = vunpack.c.l.bf16 %v9765_v33 }
  0xc4   : > { %9738 = vst [vmem:[#allocation57_spill] sm:$0xff] %v6723_v42  ;;  %9739 = vst [vmem:[#allocation72_spill] sm:$0xff] %v6726_v1  ;;  %v9745_v24 = vunpack.c.l.bf16 %v9744_v15  ;;  %v9746_v12 = vld [vmem:[#allocation64_spill] sm:$0xff]  ;;  %v9750_v42 = vunpack.c.l.bf16 %v6651_v55  ;;  %v9751_v15 = vld [vmem:[#allocation23_spill] sm:$0xff]  ;;  %v6815_v63 = vmul.f32 %v6748_v23, %v9761_v59 }
  0xc5   : > { %9740 = vst [vmem:[#allocation73_spill] sm:$0xff] %v6729_v8  ;;  %9741 = vst [vmem:[#allocation74_spill] sm:$0xff] %v6732_v30  ;;  %v1347_v11 = vmul.f32 %v6748_v23, %v9746_v12  ;;  %v9752_v56 = vunpack.c.l.bf16 %v9751_v15  ;;  %v9753_v12 = vld [vmem:[#allocation65_spill] sm:$0xff]  ;;  %v6833_v31 = vmul.f32 %v6748_v23, %v9766_v41  ;;  %v9767_v59 = vld [vmem:[#allocation28_spill] sm:$0xff]  ;;  %v9771_v41 = vunpack.c.l.bf16 %v6693_v27 }
  0xc6   : > { %9742 = vst [vmem:[#allocation75_spill] sm:$0xff] %v6736_v6  ;;  %9743 = vst [vmem:[#allocation76_spill] sm:$0xff] %v6739_v58  ;;  %v1346_v21 = vmul.f32 %v6748_v23, %v9745_v24  ;;  %v1351_v14 = vmul.f32 %v6748_v23, %v9750_v42  ;;  %v6783_v16 = vmul.f32 %v6748_v23, %v9753_v12  ;;  %v9756_v42 = vld [vmem:[#allocation10_spill] sm:$0xff]  ;;  %v9758_v12 = vld [vmem:[#allocation48_spill] sm:$0xff] }
  0xc7   : > { %v6779_v24 = vmul.f32 %v6748_v23, %v9752_v56  ;;  %v6796_v55 = vmul.f32 %v9756_v42, %v6748_v23  ;;  %v9757_v56 = vunpack.c.l.bf16 %v6669_v53  ;;  %v9759_v50 = vunpack.c.l.bf16 %v9758_v12  ;;  %v9762_v42 = vld [vmem:[#allocation11_spill] sm:$0xff] }
  0xc8   : > { %v6819_v53 = vmul.f32 %v9762_v42, %v6748_v23  ;;  %v6837_v0 = vmul.f32 %v6748_v23, %v9767_v59  ;;  %v9768_v42 = vunpack.c.l.bf16 %v6690_v47  ;;  %v6855_v33 = vmul.f32 %v6748_v23, %v9771_v41  ;;  %v9772_v59 = vld [vmem:[#allocation56_spill] sm:$0xff]  ;;  %v9777_v41 = vld [vmem:[#allocation17_spill] sm:$0xff] }
  0xc9   : > { %v6801_v15 = vmul.f32 %v6748_v23, %v9757_v56  ;;  %v6806_v28 = vmul.f32 %v6748_v23, %v9759_v50  ;;  %v9763_v56 = vld [vmem:[#allocation12_spill] sm:$0xff]  ;;  %v9764_v50 = vunpack.c.l.bf16 %v6687_v45  ;;  %v9773_v46 = vunpack.c.l.bf16 %v9772_v59 }
  0xca   : > { %v6823_v57 = vmul.f32 %v9763_v56, %v6748_v23  ;;  %v6842_v25 = vmul.f32 %v6748_v23, %v9768_v42  ;;  %v9769_v56 = vld [vmem:[#allocation13_spill] sm:$0xff]  ;;  %v6877_v51 = vmul.f32 %v9777_v41, %v6748_v23  ;;  %v9782_v41 = vld [vmem:[#allocation18_spill] sm:$0xff]  ;;  %v1443_v40 = vrot.slane %v1347_v11, 1 }
  0xcb   : > { %v6828_v12 = vmul.f32 %v6748_v23, %v9764_v50  ;;  %v6846_v45 = vmul.f32 %v9769_v56, %v6748_v23  ;;  %v9770_v50 = vld [vmem:[#allocation15_spill] sm:$0xff]  ;;  %v6860_v47 = vmul.f32 %v6748_v23, %v9773_v46  ;;  %v9774_v42 = vld [vmem:[#allocation29_spill] sm:$0xff]  ;;  %v9775_v56 = vunpack.c.l.bf16 %v6708_v44  ;;  %v9792_v11 = vld [vmem:[#allocation26_spill] sm:$0xff] }
  0xcc   : > { %v6850_v52 = vmul.f32 %v9770_v50, %v6748_v23  ;;  %v6864_v4 = vmul.f32 %v6748_v23, %v9774_v42  ;;  %v9776_v50 = vld [vmem:[#allocation16_spill] sm:$0xff]  ;;  %v9778_v46 = vunpack.c.l.bf16 %v6711_v2  ;;  %v9779_v42 = vunpack.c.l.bf16 %v6509_v54 }
  0xcd   : > { %v6869_v37 = vmul.f32 %v6748_v23, %v9775_v56  ;;  %v6873_v27 = vmul.f32 %v9776_v50, %v6748_v23  ;;  %v9780_v56 = vld [vmem:[#allocation30_spill] sm:$0xff]  ;;  %v9781_v50 = vunpack.c.l.bf16 %v6714_v7  ;;  %v6900_v2 = vmul.f32 %v9782_v41, %v6748_v23 }
  0xce   : > { %v6882_v59 = vmul.f32 %v6748_v23, %v9778_v46  ;;  %v6887_v44 = vmul.f32 %v6748_v23, %v9779_v42  ;;  %v6891_v5 = vmul.f32 %v6748_v23, %v9780_v56  ;;  %v9783_v46 = vld [vmem:[#allocation19_spill] sm:$0xff]  ;;  %v9784_v54 = vunpack.c.l.bf16 %v6726_v1 }
  0xcf   : > { %v6896_v3 = vmul.f32 %v6748_v23, %v9781_v50  ;;  %v6904_v32 = vmul.f32 %v9783_v46, %v6748_v23  ;;  %v9785_v56 = vunpack.c.l.bf16 %v6512_v61  ;;  %v6918_v50 = vmul.f32 %v6748_v23, %v6550_v35  ;;  %v9787_v61 = vld [vmem:[#allocation20_spill] sm:$0xff] }
  0xd0   : > { %v6909_v42 = vmul.f32 %v6748_v23, %v9784_v54  ;;  %v9786_v41 = vunpack.c.l.bf16 %v6729_v8  ;;  %v1442_v46 = vrot.slane %v1346_v21, 1  ;;  %v1445_v1 = vrot.slane %v1348_v9, 1 }
  0xd1   : > { %v6914_v7 = vmul.f32 %v6748_v23, %v9785_v56  ;;  %v1448_v54 = vrot.slane %v1350_v13, 1  ;;  %v1450_v62 = vrot.slane %v1351_v14, 1  ;;  %v6927_v34 = vmul.f32 %v9787_v61, %v6748_v23 }
  0xd2   : > { %v6923_v29 = vmul.f32 %v6748_v23, %v9786_v41  ;;  %v6931_v56 = vmul.f32 %v9687_v26, %v6748_v23  ;;  %v9788_v35 = vunpack.c.l.bf16 %v6732_v30  ;;  %v9789_v41 = vld [vmem:[#allocation63_spill] sm:$0xff]  ;;  %v6945_v13 = vmul.f32 %v6748_v23, %v6554_v38 }
  0xd3   : > { %v9790_v21 = vunpack.c.l.bf16 %v9789_v41  ;;  %v6950_v14 = vmul.f32 %v6748_v23, %v9791_v18  ;;  %v6954_v61 = vmul.f32 %v9792_v11, %v6748_v23  ;;  %v9793_v41 = vunpack.c.l.bf16 %v6739_v58 }
  0xd4   : > { %v6936_v8 = vmul.f32 %v6748_v23, %v9788_v35  ;;  %v6958_v35 = vmul.f32 %v6516_v19, %v6748_v23  ;;  %v6966_v38 = vsel %vm752_vm1, %v1442_v46, %v1443_v40  ;;  %v1452_v6 = vrot.slane %v6779_v24, 1 }
  0xd5   : > { %v6941_v9 = vmul.f32 %v6748_v23, %v9790_v21  ;;  %v6963_v21 = vmul.f32 %v6748_v23, %v9793_v41  ;;  %v1453_v18 = vrot.slane %v6783_v16, 1  ;;  %v6971_v30 = vsel %vm752_vm1, %v1443_v40, %v1445_v1 }
  0xd6   : > { %v6974_v11 = vsel %vm752_vm1, %v1447_v39, %v1448_v54  ;;  %v6977_v19 = vsel %vm752_vm1, %v1448_v54, %v1450_v62  ;;  %v1455_v58 = vrot.slane %v6788_v10, 1  ;;  %v1457_v23 = vrot.slane %v6792_v17, 1 }
  0xd7   : > { %v1458_v46 = vrot.slane %v6796_v55, 1  ;;  %v1460_v41 = vrot.slane %v6801_v15, 1  ;;  %v1462_v24 = vrot.slane %v6806_v28, 1  ;;  %v1463_v16 = vrot.slane %v6810_v36, 1 }
  0xd8   : > { %v1465_v40 = vrot.slane %v6815_v63, 1  ;;  %v1467_v39 = vrot.slane %v6819_v53, 1  ;;  %v1468_v1 = vrot.slane %v6823_v57, 1  ;;  %v1470_v62 = vrot.slane %v6828_v12, 1 }
  0xd9   : > { %v1472_v10 = vrot.slane %v6833_v31, 1  ;;  %v1473_v17 = vrot.slane %v6837_v0, 1  ;;  %v1475_v55 = vrot.slane %v6842_v25, 1  ;;  %v1454_v15 = vsel %vm752_vm1, %v1452_v6, %v1453_v18 }
  0xda   : > { %v1477_v28 = vrot.slane %v6846_v45, 1  ;;  %v1478_v36 = vrot.slane %v6850_v52, 1  ;;  %v1480_v63 = vrot.slane %v6855_v33, 1  ;;  %v1456_v53 = vsel %vm752_vm1, %v1453_v18, %v1455_v58 }
  0xdb   : > { %v1459_v57 = vsel %vm752_vm1, %v1457_v23, %v1458_v46  ;;  %v1482_v12 = vrot.slane %v6860_v47, 1  ;;  %v1483_v31 = vrot.slane %v6864_v4, 1  ;;  %v1461_v0 = vsel %vm752_vm1, %v1458_v46, %v1460_v41 }
  0xdc   : > { %v1464_v25 = vsel %vm752_vm1, %v1462_v24, %v1463_v16  ;;  %v1466_v6 = vsel %vm752_vm1, %v1463_v16, %v1465_v40  ;;  %v1469_v45 = vsel %vm752_vm1, %v1467_v39, %v1468_v1  ;;  %v1471_v52 = vsel %vm752_vm1, %v1468_v1, %v1470_v62 }
  0xdd   : > { %v1474_v33 = vsel %vm752_vm1, %v1472_v10, %v1473_v17  ;;  %v1476_v58 = vsel %vm752_vm1, %v1473_v17, %v1475_v55  ;;  %v1485_v54 = vrot.slane %v6869_v37, 1  ;;  %v1479_v47 = vsel %vm752_vm1, %v1477_v28, %v1478_v36 }
  0xde   : > { %v1481_v4 = vsel %vm752_vm1, %v1478_v36, %v1480_v63  ;;  %v1487_v18 = vrot.slane %v6873_v27, 1  ;;  %v1488_v23 = vrot.slane %v6877_v51, 1  ;;  %v1484_v46 = vsel %vm752_vm1, %v1482_v12, %v1483_v31 }
  0xdf   : > { %v1490_v41 = vrot.slane %v6882_v59, 1  ;;  %v1492_v24 = vrot.slane %v6887_v44, 1  ;;  %v1493_v16 = vrot.slane %v6891_v5, 1  ;;  %v1495_v40 = vrot.slane %v6896_v3, 1 }
  0xe0   : > { %v1497_v37 = vrot.slane %v6900_v2, 1  ;;  %v1498_v39 = vrot.slane %v6904_v32, 1  ;;  %v1500_v1 = vrot.slane %v6909_v42, 1  ;;  %v1502_v27 = vrot.slane %v6914_v7, 1 }
  0xe1   : > { %v1503_v51 = vrot.slane %v6918_v50, 1  ;;  %v1505_v62 = vrot.slane %v6923_v29, 1  ;;  %v1507_v59 = vrot.slane %v6927_v34, 1  ;;  %v1508_v44 = vrot.slane %v6931_v56, 1 }
  0xe2   : > { %v1510_v5 = vrot.slane %v6936_v8, 1  ;;  %v1512_v3 = vrot.slane %v6941_v9, 1  ;;  %v1513_v2 = vrot.slane %v6945_v13, 1  ;;  %v1486_v32 = vsel %vm752_vm1, %v1483_v31, %v1485_v54 }
  0xe3   : > { %v1489_v42 = vsel %vm752_vm1, %v1487_v18, %v1488_v23  ;;  %v1491_v7 = vsel %vm752_vm1, %v1488_v23, %v1490_v41  ;;  %v1515_v50 = vrot.slane %v6950_v14, 1  ;;  %v1494_v29 = vsel %vm752_vm1, %v1492_v24, %v1493_v16  ;;  %v9797_v18 = vld [vmem:[#allocation35_spill] sm:$0xff]  ;;  %v9799_v41 = vld [vmem:[#allocation36_spill] sm:$0xff] }
  0xe4   : > { %v1517_v34 = vrot.slane %v6954_v61, 1  ;;  %v1518_v56 = vrot.slane %v6958_v35, 1  ;;  %v1520_v8 = vrot.slane %v6963_v21, 1  ;;  %v1496_v9 = vsel %vm752_vm1, %v1493_v16, %v1495_v40  ;;  %v9809_v16 = vld [vmem:[#allocation44_spill] sm:$0xff]  ;;  %v9811_v40 = vld [vmem:[#allocation45_spill] sm:$0xff] }
  0xe5   : > { %v1499_v13 = vsel %vm752_vm1, %v1497_v37, %v1498_v39  ;;  %v1501_v10 = vsel %vm752_vm1, %v1498_v39, %v1500_v1  ;;  %v1504_v17 = vsel %vm752_vm1, %v1502_v27, %v1503_v51  ;;  %v1506_v55 = vsel %vm752_vm1, %v1503_v51, %v1505_v62  ;;  %v9813_v37 = vld [vmem:[#allocation50_spill] sm:$0xff]  ;;  %v4222_v39 = vld [vmem:[%s5433_s20 + $0x18] sm:$0xe]  ;;  %v9819_v51 = vld [vmem:[#allocation59_spill] sm:$0xff] }
  0xe6   : > { %v1509_v14 = vsel %vm752_vm1, %v1507_v59, %v1508_v44  ;;  %v1511_v28 = vsel %vm752_vm1, %v1508_v44, %v1510_v5  ;;  %v1514_v61 = vsel %vm752_vm1, %v1512_v3, %v1513_v2  ;;  %v1516_v35 = vsel %vm752_vm1, %v1513_v2, %v1515_v50  ;;  %v9815_v1 = vld [vmem:[#allocation53_spill] sm:$0xff]  ;;  %v9817_v27 = vld [vmem:[#allocation58_spill] sm:$0xff]  ;;  %v9821_v62 = vld [vmem:[#allocation60_spill] sm:$0xff] }
  0xe7   : > { %v7047_v21 = vadd.f32 %v6966_v38, %v6597_v20  ;;  %v7051_v36 = vadd.f32 %v6971_v30, %v6600_v43  ;;  %v7055_v63 = vadd.f32 %v6974_v11, %v6603_v22  ;;  %v1519_v12 = vsel %vm752_vm1, %v1517_v34, %v1518_v56  ;;  %v9794_v43 = vld [vmem:[#allocation33_spill] sm:$0xff]  ;;  %v9795_v22 = vld [vmem:[#allocation34_spill] sm:$0xff]  ;;  %v9823_v5 = vld [vmem:[#allocation68_spill] sm:$0xff] }
  0xe8   : > { %v1521_v31 = vsel %vm752_vm1, %v1518_v56, %v1520_v8  ;;  %v7061_v54 = vadd.f32 %v6977_v19, %v6606_v48  ;;  %v7064_v20 = vadd.f32 %v1454_v15, %v6609_v49  ;;  %v7067_v38 = vadd.f32 %v1456_v53, %v6612_v60  ;;  %v9801_v48 = vld [vmem:[#allocation37_spill] sm:$0xff]  ;;  %v9803_v60 = vld [vmem:[#allocation38_spill] sm:$0xff]  ;;  %v4227_v56 = vld [vmem:[%s5433_s20 + $0x54] sm:$0xe] }
  0xe9   : > { %v7070_v30 = vadd.f32 %v1459_v57, %v9794_v43  ;;  %v7073_v11 = vadd.f32 %v1461_v0, %v9795_v22  ;;  %v7076_v23 = vadd.f32 %v1464_v25, %v9797_v18  ;;  %v7079_v19 = vadd.f32 %v1466_v6, %v9799_v41  ;;  %v9805_v53 = vld [vmem:[#allocation42_spill] sm:$0xff]  ;;  %v9807_v0 = vld [vmem:[#allocation43_spill] sm:$0xff]  ;;  %v4225_v44 = vld [vmem:[%s5433_s20 + $0x3c] sm:$0xe] }
  0xea   : > { %v7082_v49 = vadd.f32 %v1469_v45, %v9801_v48  ;;  %v7085_v15 = vadd.f32 %v1471_v52, %v9803_v60  ;;  %v7088_v57 = vadd.f32 %v1474_v33, %v9805_v53  ;;  %v7091_v24 = vadd.f32 %v1476_v58, %v9807_v0  ;;  %v4221_v52 = vld [vmem:[%s5433_s20 + $0xc] sm:$0xe]  ;;  %v4223_v59 = vld [vmem:[%s5433_s20 + $0x24] sm:$0xe]  ;;  %v4228_v8 = vld [vmem:[%s5433_s20 + $0x60] sm:$0xe] }
  0xeb   : > { %9796 = vst [vmem:[#allocation40_spill] sm:$0xff] %v7073_v11  ;;  %9798 = vst [vmem:[#allocation7_spill] sm:$0xff] %v7076_v23  ;;  %v7094_v25 = vadd.f32 %v1479_v47, %v9809_v16  ;;  %v7097_v6 = vadd.f32 %v1481_v4, %v9811_v40  ;;  %v7100_v45 = vadd.f32 %v1484_v46, %v9813_v37  ;;  %v4224_v46 = vld [vmem:[%s5433_s20 + $0x30] sm:$0xe]  ;;  %v9825_v2 = vld [vmem:[#allocation22_spill] sm:$0xff] }
  0xec   : > { %9800 = vst [vmem:[#allocation23_spill] sm:$0xff] %v7079_v19  ;;  %9802 = vst [vmem:[#allocation9_spill] sm:$0xff] %v7082_v49  ;;  %v7105_v33 = vadd.f32 %v1486_v32, %v9815_v1  ;;  %v7108_v58 = vadd.f32 %v1489_v42, %v9817_v27  ;;  %v7111_v47 = vadd.f32 %v1491_v7, %v9819_v51  ;;  %v9827_v42 = vld [vmem:[#allocation69_spill] sm:$0xff]  ;;  %v9829_v7 = vld [vmem:[#allocation6_spill] sm:$0xff] }
  0xed   : > { %9804 = vst [vmem:[#allocation48_spill] sm:$0xff] %v7085_v15  ;;  %9806 = vst [vmem:[#allocation11_spill] sm:$0xff] %v7088_v57  ;;  %v7114_v4 = vadd.f32 %v1494_v29, %v9821_v62  ;;  %v7120_v3 = vadd.f32 %v1496_v9, %v9823_v5  ;;  %v7123_v32 = vadd.f32 %v1499_v13, %v9825_v2  ;;  %v4226_v29 = vld [vmem:[%s5433_s20 + $0x48] sm:$0xe]  ;;  %v9831_v43 = vld [vmem:[#allocation21_spill] sm:$0xff]  ;;  %v1603_v5 = vunpack.c.l.bf16 %v4222_v39 }
  0xee   : > { %9808 = vst [vmem:[#allocation25_spill] sm:$0xff] %v7091_v24  ;;  %9810 = vst [vmem:[#allocation13_spill] sm:$0xff] %v7094_v25  ;;  %v7126_v50 = vadd.f32 %v1501_v10, %v9827_v42  ;;  %v7129_v34 = vadd.f32 %v1504_v17, %v9829_v7  ;;  %v7135_v9 = vadd.f32 %v1506_v55, %v9831_v43  ;;  %v9833_v22 = vld [vmem:[#allocation46_spill] sm:$0xff]  ;;  %v9835_v18 = vld [vmem:[#allocation47_spill] sm:$0xff]  ;;  %v1604_v2 = vunpack.c.l.bf16 %v4223_v59 }
  0xef   : > { %9812 = vst [vmem:[#allocation56_spill] sm:$0xff] %v7097_v6  ;;  %9814 = vst [vmem:[#allocation16_spill] sm:$0xff] %v7100_v45  ;;  %v7138_v13 = vadd.f32 %v1509_v14, %v9833_v22  ;;  %v7141_v41 = vadd.f32 %v1511_v28, %v9835_v18  ;;  %v9837_v10 = vld [vmem:[#allocation49_spill] sm:$0xff]  ;;  %v4229_v17 = vld [vmem:[%s5433_s20 + $0x6c] sm:$0xe]  ;;  %v1602_v28 = vunpack.c.l.bf16 %v4221_v52  ;;  %v1605_v42 = vunpack.c.l.bf16 %v4224_v46 }
  0xf0   : > { %9816 = vst [vmem:[#allocation18_spill] sm:$0xff] %v7105_v33  ;;  %9818 = vst [vmem:[#allocation20_spill] sm:$0xff] %v7108_v58  ;;  %v7144_v48 = vadd.f32 %v1514_v61, %v9837_v10  ;;  %v4230_v60 = vld [vmem:[%s5433_s20 + $0x78] sm:$0xe]  ;;  %v4231_v53 = vld [vmem:[%s5433_s20 + $0x84] sm:$0xe]  ;;  %v1608_v7 = vunpack.c.l.bf16 %v4227_v56  ;;  %v1609_v43 = vunpack.c.l.bf16 %v4228_v8  ;;  %v1610_v22 = vunpack.c.l.bf16 %v4229_v17 }
  0xf1   : > { %9820 = vst [vmem:[#allocation63_spill] sm:$0xff] %v7111_v47  ;;  %9822 = vst [vmem:[#allocation33_spill] sm:$0xff] %v7114_v4  ;;  %v9839_v0 = vld [vmem:[#allocation54_spill] sm:$0xff]  ;;  %v9841_v40 = vld [vmem:[#allocation55_spill] sm:$0xff]  ;;  %v1611_v18 = vunpack.c.l.bf16 %v4230_v60  ;;  %v1612_v10 = vunpack.c.l.bf16 %v4231_v53 }
  0xf2   : > { %9824 = vst [vmem:[#allocation34_spill] sm:$0xff] %v7120_v3  ;;  %9826 = vst [vmem:[#allocation35_spill] sm:$0xff] %v7123_v32  ;;  %v7150_v16 = vadd.f32 %v1516_v35, %v9839_v0  ;;  %v7153_v37 = vadd.f32 %v1519_v12, %v9841_v40  ;;  %v9843_v55 = vld [vmem:[#allocation57_spill] sm:$0xff]  ;;  %v4232_v14 = vld [vmem:[%s5433_s20 + $0x90] sm:$0xe]  ;;  %v1606_v35 = vunpack.c.l.bf16 %v4225_v44 }
  0xf3   : > { %9828 = vst [vmem:[#allocation36_spill] sm:$0xff] %v7126_v50  ;;  %9830 = vst [vmem:[#allocation37_spill] sm:$0xff] %v7129_v34  ;;  %v7156_v1 = vadd.f32 %v1521_v31, %v9843_v55  ;;  %v4233_v27 = vld [vmem:[%s5433_s20 + $0x9c] sm:$0xe]  ;;  %v7161_v51 = vld [vmem:[%s5433_s20 + $0xa8] sm:$0xe]  ;;  %v1607_v31 = vunpack.c.l.bf16 %v4226_v29  ;;  %v1613_v52 = vunpack.c.l.bf16 %v4232_v14 }
  0xf4   : > { %9832 = vst [vmem:[#allocation38_spill] sm:$0xff] %v7135_v9  ;;  %9834 = vst [vmem:[#allocation42_spill] sm:$0xff] %v7138_v13  ;;  %v7164_v62 = vld [vmem:[%s5433_s20 + $0xb4] sm:$0xe]  ;;  %v7167_v61 = vld [vmem:[%s5433_s20 + $0xc0] sm:$0xe]  ;;  %v1614_v0 = vunpack.c.l.bf16 %v4233_v27  ;;  %v1615_v40 = vunpack.c.l.bf16 %v7161_v51 }
  0xf5   : > { %9836 = vst [vmem:[#allocation43_spill] sm:$0xff] %v7141_v41  ;;  %9838 = vst [vmem:[#allocation44_spill] sm:$0xff] %v7144_v48  ;;  %v7172_v12 = vld [vmem:[%s9441_s2 + $0x5] ss:$0 sm:$0xff]  ;;  %v1616_v39 = vunpack.c.l.bf16 %v7164_v62  ;;  %v1617_v59 = vunpack.c.l.bf16 %v7167_v61  ;;  %v9845_v44 = vld [vmem:[#allocation64_spill] sm:$0xff] }
  0xf6   : > { %9840 = vst [vmem:[#allocation45_spill] sm:$0xff] %v7150_v16  ;;  %9842 = vst [vmem:[#allocation50_spill] sm:$0xff] %v7153_v37  ;;  %v1623_v46 = vmul.f32 %v7172_v12, %v1602_v28  ;;  %v1624_v55 = vmul.f32 %v7172_v12, %v9845_v44  ;;  %v1626_v8 = vmul.f32 %v7172_v12, %v1603_v5  ;;  %v9848_v17 = vld [vmem:[#allocation8_spill] sm:$0xff]  ;;  %v9851_v28 = vld [vmem:[#allocation65_spill] sm:$0xff] }
  0xf7   : > { %9844 = vst [vmem:[#allocation53_spill] sm:$0xff] %v7156_v1  ;;  %v9846_v1 = vld [vmem:[#allocation51_spill] sm:$0xff]  ;;  %v1627_v60 = vmul.f32 %v9848_v17, %v7172_v12  ;;  %v9849_v53 = vld [vmem:[#allocation52_spill] sm:$0xff]  ;;  %v7190_v51 = vmul.f32 %v7172_v12, %v1604_v2  ;;  %v7194_v62 = vmul.f32 %v7172_v12, %v9851_v28  ;;  %v9852_v61 = vld [vmem:[#allocation61_spill] sm:$0xff]  ;;  %v7202_v5 = vmul.f32 %v7172_v12, %v1605_v42 }
  0xf8   : > { %v9847_v29 = vunpack.c.l.bf16 %v9846_v1  ;;  %v9850_v14 = vunpack.c.l.bf16 %v9849_v53  ;;  %v9853_v1 = vunpack.c.l.bf16 %v9852_v61  ;;  %v9855_v53 = vld [vmem:[#allocation66_spill] sm:$0xff]  ;;  %v7214_v28 = vmul.f32 %v7172_v12, %v1606_v35  ;;  %v9857_v37 = vld [vmem:[#allocation27_spill] sm:$0xff]  ;;  %v9863_v13 = vld [vmem:[#allocation28_spill] sm:$0xff] }
  0xf9   : > { %v7218_v61 = vmul.f32 %v7172_v12, %v9857_v37  ;;  %v7238_v37 = vmul.f32 %v7172_v12, %v1608_v7  ;;  %v9869_v32 = vld [vmem:[#allocation29_spill] sm:$0xff]  ;;  %v9875_v58 = vld [vmem:[#allocation30_spill] sm:$0xff]  ;;  %v9881_v25 = vld [vmem:[#allocation31_spill] sm:$0xff]  ;;  %v1719_v57 = vrot.slane %v1623_v46, 2  ;;  %v1724_v49 = vrot.slane %v1626_v8, 2 }
  0xfa   : > { %v1625_v56 = vmul.f32 %v7172_v12, %v9847_v29  ;;  %v1628_v27 = vmul.f32 %v7172_v12, %v9850_v14  ;;  %v7199_v44 = vmul.f32 %v7172_v12, %v9853_v1  ;;  %v9854_v29 = vld [vmem:[#allocation10_spill] sm:$0xff]  ;;  %v9856_v14 = vunpack.c.l.bf16 %v9855_v53  ;;  %v9858_v1 = vld [vmem:[#allocation67_spill] sm:$0xff]  ;;  %v9860_v53 = vld [vmem:[#allocation12_spill] sm:$0xff] }
  0xfb   : > { %v7206_v17 = vmul.f32 %v9854_v29, %v7172_v12  ;;  %v9859_v16 = vunpack.c.l.bf16 %v9858_v1  ;;  %v7226_v29 = vmul.f32 %v7172_v12, %v1607_v31  ;;  %v7230_v48 = vmul.f32 %v9860_v53, %v7172_v12  ;;  %v9886_v46 = vld [vmem:[#allocation32_spill] sm:$0xff] }
  0xfc   : > { %v7211_v2 = vmul.f32 %v7172_v12, %v9856_v14  ;;  %v9861_v14 = vld [vmem:[#allocation39_spill] sm:$0xff]  ;;  %v7242_v1 = vmul.f32 %v7172_v12, %v9863_v13  ;;  %v7250_v53 = vmul.f32 %v7172_v12, %v1609_v43  ;;  %v7262_v13 = vmul.f32 %v7172_v12, %v1610_v22 }
  0xfd   : > { %v7223_v42 = vmul.f32 %v7172_v12, %v9859_v16  ;;  %v9862_v41 = vunpack.c.l.bf16 %v9861_v14  ;;  %v9864_v16 = vld [vmem:[#allocation14_spill] sm:$0xff]  ;;  %v9866_v14 = vld [vmem:[#allocation15_spill] sm:$0xff]  ;;  %v1722_v15 = vrot.slane %v1625_v56, 2  ;;  %v1727_v19 = vrot.slane %v1628_v27, 2 }
  0xfe   : > { %v9865_v9 = vunpack.c.l.bf16 %v9864_v16  ;;  %v7254_v34 = vmul.f32 %v9866_v14, %v7172_v12  ;;  %v7266_v16 = vmul.f32 %v7172_v12, %v9869_v32  ;;  %v7274_v14 = vmul.f32 %v7172_v12, %v1611_v18  ;;  %v9887_v56 = vld [vmem:[#allocation75_spill] sm:$0xff] }
  0xff   : > { %v7235_v35 = vmul.f32 %v7172_v12, %v9862_v41  ;;  %v9867_v41 = vld [vmem:[#allocation41_spill] sm:$0xff]  ;;  %v7286_v32 = vmul.f32 %v7172_v12, %v1612_v10  ;;  %v9888_v8 = vunpack.c.l.bf16 %v9887_v56  ;;  %v1729_v56 = vrot.slane %v7190_v51, 2 }
 0x100   : > { %v7247_v31 = vmul.f32 %v7172_v12, %v9865_v9  ;;  %v9868_v50 = vunpack.c.l.bf16 %v9867_v41  ;;  %v9870_v9 = vld [vmem:[#allocation24_spill] sm:$0xff]  ;;  %v9872_v41 = vld [vmem:[#allocation17_spill] sm:$0xff]  ;;  %v1739_v51 = vrot.slane %v7214_v28, 2  ;;  %v1754_v28 = vrot.slane %v7250_v53, 2 }
 0x101   : > { %v9871_v3 = vunpack.c.l.bf16 %v9870_v9  ;;  %v7278_v4 = vmul.f32 %v9872_v41, %v7172_v12  ;;  %v7290_v9 = vmul.f32 %v7172_v12, %v9875_v58  ;;  %v7298_v41 = vmul.f32 %v7172_v12, %v1613_v52 }
 0x102   : > { %v7259_v7 = vmul.f32 %v7172_v12, %v9868_v50  ;;  %v9873_v50 = vld [vmem:[#allocation70_spill] sm:$0xff]  ;;  %v7310_v58 = vmul.f32 %v7172_v12, %v1614_v0  ;;  %v7326_v0 = vmul.f32 %v9687_v26, %v7172_v12  ;;  %v7346_v26 = vmul.f32 %v7172_v12, %v1617_v59 }
 0x103   : > { %v7271_v43 = vmul.f32 %v7172_v12, %v9871_v3  ;;  %v9874_v47 = vunpack.c.l.bf16 %v9873_v50  ;;  %v9876_v3 = vld [vmem:[#allocation71_spill] sm:$0xff] }
 0x104   : > { %v9877_v33 = vunpack.c.l.bf16 %v9876_v3  ;;  %v9878_v50 = vld [vmem:[#allocation19_spill] sm:$0xff]  ;;  %v7314_v3 = vmul.f32 %v7172_v12, %v9881_v25  ;;  %v9884_v25 = vld [vmem:[#allocation74_spill] sm:$0xff] }
 0x105   : > { %v7283_v22 = vmul.f32 %v7172_v12, %v9874_v47  ;;  %v7302_v45 = vmul.f32 %v9878_v50, %v7172_v12  ;;  %v9879_v47 = vld [vmem:[#allocation72_spill] sm:$0xff]  ;;  %v1720_v50 = vrot.slane %v1624_v55, 2  ;;  %v9885_v23 = vunpack.c.l.bf16 %v9884_v25 }
 0x106   : > { %v7295_v18 = vmul.f32 %v7172_v12, %v9877_v33  ;;  %v9880_v6 = vunpack.c.l.bf16 %v9879_v47  ;;  %v9882_v33 = vld [vmem:[#allocation73_spill] sm:$0xff]  ;;  %v1725_v47 = vrot.slane %v1627_v60, 2  ;;  %v7338_v55 = vmul.f32 %v7172_v12, %v9886_v46  ;;  %v9889_v60 = vld [vmem:[#allocation62_spill] sm:$0xff] }
 0x107   : > { %v9883_v24 = vunpack.c.l.bf16 %v9882_v33  ;;  %v7331_v33 = vmul.f32 %v7172_v12, %v9885_v23  ;;  %v7350_v27 = vmul.f32 %v9889_v60, %v7172_v12  ;;  %v9890_v23 = vld [vmem:[#allocation76_spill] sm:$0xff]  ;;  %v7358_v46 = vsel %vm1030_vm2, %v1719_v57, %v1720_v50 }
 0x108   : > { %v7307_v10 = vmul.f32 %v7172_v12, %v9880_v6  ;;  %v7322_v6 = vmul.f32 %v7172_v12, %v1615_v40  ;;  %v7343_v40 = vmul.f32 %v7172_v12, %v9888_v8  ;;  %v9891_v25 = vunpack.c.l.bf16 %v9890_v23 }
 0x109   : > { %v7319_v52 = vmul.f32 %v7172_v12, %v9883_v24  ;;  %v7334_v24 = vmul.f32 %v7172_v12, %v1616_v39  ;;  %v1730_v8 = vrot.slane %v7194_v62, 2  ;;  %v7363_v11 = vsel %vm1030_vm2, %v1720_v50, %v1722_v15 }
 0x10a   : > { %v7355_v39 = vmul.f32 %v7172_v12, %v9891_v25  ;;  %v7366_v59 = vsel %vm1030_vm2, %v1724_v49, %v1725_v47  ;;  %v7369_v60 = vsel %vm1030_vm2, %v1725_v47, %v1727_v19  ;;  %v1732_v23 = vrot.slane %v7199_v44, 2 }
 0x10b   : > { %v1734_v12 = vrot.slane %v7202_v5, 2  ;;  %v1735_v57 = vrot.slane %v7206_v17, 2  ;;  %v1737_v25 = vrot.slane %v7211_v2, 2  ;;  %v1740_v62 = vrot.slane %v7218_v61, 2 }
 0x10c   : > { %v1742_v15 = vrot.slane %v7223_v42, 2  ;;  %v1744_v49 = vrot.slane %v7226_v29, 2  ;;  %v1745_v50 = vrot.slane %v7230_v48, 2  ;;  %v1747_v19 = vrot.slane %v7235_v35, 2 }
 0x10d   : > { %v1749_v44 = vrot.slane %v7238_v37, 2  ;;  %v1750_v5 = vrot.slane %v7242_v1, 2  ;;  %v1752_v17 = vrot.slane %v7247_v31, 2  ;;  %v1731_v2 = vsel %vm1030_vm2, %v1729_v56, %v1730_v8 }
 0x10e   : > { %v1755_v61 = vrot.slane %v7254_v34, 2  ;;  %v1757_v42 = vrot.slane %v7259_v7, 2  ;;  %v1733_v29 = vsel %vm1030_vm2, %v1730_v8, %v1732_v23  ;;  %v1736_v48 = vsel %vm1030_vm2, %v1734_v12, %v1735_v57 }
 0x10f   : > { %v1759_v35 = vrot.slane %v7262_v13, 2  ;;  %v1760_v37 = vrot.slane %v7266_v16, 2  ;;  %v1738_v1 = vsel %vm1030_vm2, %v1735_v57, %v1737_v25  ;;  %v1741_v31 = vsel %vm1030_vm2, %v1739_v51, %v1740_v62 }
 0x110   : > { %v1743_v47 = vsel %vm1030_vm2, %v1740_v62, %v1742_v15  ;;  %v1746_v53 = vsel %vm1030_vm2, %v1744_v49, %v1745_v50  ;;  %v1748_v34 = vsel %vm1030_vm2, %v1745_v50, %v1747_v19  ;;  %v1751_v7 = vsel %vm1030_vm2, %v1749_v44, %v1750_v5 }
 0x111   : > { %v1753_v56 = vsel %vm1030_vm2, %v1750_v5, %v1752_v17  ;;  %v1762_v8 = vrot.slane %v7271_v43, 2  ;;  %v1756_v13 = vsel %vm1030_vm2, %v1754_v28, %v1755_v61  ;;  %v1758_v16 = vsel %vm1030_vm2, %v1755_v61, %v1757_v42 }
 0x112   : > { %v1764_v23 = vrot.slane %v7274_v14, 2  ;;  %v1765_v12 = vrot.slane %v7278_v4, 2  ;;  %v1761_v57 = vsel %vm1030_vm2, %v1759_v35, %v1760_v37  ;;  %v1767_v25 = vrot.slane %v7283_v22, 2 }
 0x113   : > { %v1769_v51 = vrot.slane %v7286_v32, 2  ;;  %v1770_v62 = vrot.slane %v7290_v9, 2  ;;  %v1772_v15 = vrot.slane %v7295_v18, 2  ;;  %v1774_v43 = vrot.slane %v7298_v41, 2 }
 0x114   : > { %v1775_v49 = vrot.slane %v7302_v45, 2  ;;  %v1777_v50 = vrot.slane %v7307_v10, 2  ;;  %v1779_v14 = vrot.slane %v7310_v58, 2  ;;  %v1780_v4 = vrot.slane %v7314_v3, 2 }
 0x115   : > { %v1782_v19 = vrot.slane %v7319_v52, 2  ;;  %v1784_v22 = vrot.slane %v7322_v6, 2  ;;  %v1785_v32 = vrot.slane %v7326_v0, 2  ;;  %v1787_v9 = vrot.slane %v7331_v33, 2 }
 0x116   : > { %v1789_v18 = vrot.slane %v7334_v24, 2  ;;  %v1790_v41 = vrot.slane %v7338_v55, 2  ;;  %v1763_v45 = vsel %vm1030_vm2, %v1760_v37, %v1762_v8  ;;  %v1766_v10 = vsel %vm1030_vm2, %v1764_v23, %v1765_v12 }
 0x117   : > { %v1768_v58 = vsel %vm1030_vm2, %v1765_v12, %v1767_v25  ;;  %v1792_v3 = vrot.slane %v7343_v40, 2  ;;  %v1771_v52 = vsel %vm1030_vm2, %v1769_v51, %v1770_v62  ;;  %v1794_v6 = vrot.slane %v7346_v26, 2  ;;  %v9894_v12 = vld [vmem:[#allocation23_spill] sm:$0xff]  ;;  %v9900_v51 = vld [vmem:[#allocation56_spill] sm:$0xff] }
 0x118   : > { %v1795_v0 = vrot.slane %v7350_v27, 2  ;;  %v1797_v33 = vrot.slane %v7355_v39, 2  ;;  %v1773_v24 = vsel %vm1030_vm2, %v1770_v62, %v1772_v15  ;;  %v1776_v55 = vsel %vm1030_vm2, %v1774_v43, %v1775_v49  ;;  %v9901_v62 = vld [vmem:[#allocation16_spill] sm:$0xff]  ;;  %v9902_v15 = vld [vmem:[#allocation18_spill] sm:$0xff] }
 0x119   : > { %v1778_v44 = vsel %vm1030_vm2, %v1775_v49, %v1777_v50  ;;  %v1781_v5 = vsel %vm1030_vm2, %v1779_v14, %v1780_v4  ;;  %v1783_v17 = vsel %vm1030_vm2, %v1780_v4, %v1782_v19  ;;  %v1786_v40 = vsel %vm1030_vm2, %v1784_v22, %v1785_v32  ;;  %v9903_v43 = vld [vmem:[#allocation20_spill] sm:$0xff]  ;;  %v9904_v49 = vld [vmem:[#allocation63_spill] sm:$0xff]  ;;  %v9906_v50 = vld [vmem:[#allocation33_spill] sm:$0xff] }
 0x11a   : > { %v1788_v28 = vsel %vm1030_vm2, %v1785_v32, %v1787_v9  ;;  %v1791_v26 = vsel %vm1030_vm2, %v1789_v18, %v1790_v41  ;;  %v1793_v27 = vsel %vm1030_vm2, %v1790_v41, %v1792_v3  ;;  %v7439_v39 = vadd.f32 %v7358_v46, %v7047_v21  ;;  %v9893_v46 = vld [vmem:[#allocation7_spill] sm:$0xff]  ;;  %v7507_v14 = vld [vmem:[%s5433_s20 + $0x18] sm:$0xff]   ;;  %v9921_v3 = vld [vmem:[#allocation42_spill] sm:$0xff] }
 0x11b   : > { %v7443_v61 = vadd.f32 %v7363_v11, %v7051_v36  ;;  %v7447_v42 = vadd.f32 %v7366_v59, %v7055_v63  ;;  %v1796_v35 = vsel %vm1030_vm2, %v1794_v6, %v1795_v0  ;;  %v1798_v37 = vsel %vm1030_vm2, %v1795_v0, %v1797_v33  ;;  %v9892_v63 = vld [vmem:[#allocation40_spill] sm:$0xff]  ;;  %9908 = vst [vmem:[#allocation60_spill] sm:$0xff] %v7507_v14  ;;  %v9915_v9 = vld [vmem:[#allocation37_spill] sm:$0xff]  ;;  %v9923_v6 = vld [vmem:[#allocation43_spill] sm:$0xff] }
 0x11c   : > { %v7453_v8 = vadd.f32 %v7369_v60, %v7061_v54  ;;  %v7456_v23 = vadd.f32 %v1731_v2, %v7064_v20  ;;  %v7459_v21 = vadd.f32 %v1733_v29, %v7067_v38  ;;  %v7462_v36 = vadd.f32 %v1736_v48, %v7070_v30  ;;  %v9895_v54 = vld [vmem:[#allocation9_spill] sm:$0xff]  ;;  %v9896_v20 = vld [vmem:[#allocation48_spill] sm:$0xff]  ;;  %v9897_v2 = vld [vmem:[#allocation11_spill] sm:$0xff] }
 0x11d   : > { %v7465_v11 = vadd.f32 %v1738_v1, %v9892_v63  ;;  %v7468_v59 = vadd.f32 %v1741_v31, %v9893_v46  ;;  %v7471_v25 = vadd.f32 %v1743_v47, %v9894_v12  ;;  %v7474_v60 = vadd.f32 %v1746_v53, %v9895_v54  ;;  %v9898_v29 = vld [vmem:[#allocation25_spill] sm:$0xff]  ;;  %v9913_v22 = vld [vmem:[#allocation36_spill] sm:$0xff]  ;;  %v7559_v54 = vld [vmem:[%s5433_s20 + $0xa8] sm:$0xff]  }
 0x11e   : > { %v7477_v38 = vadd.f32 %v1748_v34, %v9896_v20  ;;  %v7480_v30 = vadd.f32 %v1751_v7, %v9897_v2  ;;  %v7483_v48 = vadd.f32 %v1753_v56, %v9898_v29  ;;  %v9899_v1 = vld [vmem:[#allocation13_spill] sm:$0xff]  ;;  %v7489_v47 = vadd.f32 %v1758_v16, %v9900_v51  ;;  %v9909_v16 = vld [vmem:[#allocation34_spill] sm:$0xff]  ;;  %v7522_v41 = vld [vmem:[%s5433_s20 + $0x30] sm:$0xff]  }
 0x11f   : > { %v7486_v31 = vadd.f32 %v1756_v13, %v9899_v1  ;;  %v7492_v53 = vadd.f32 %v1761_v57, %v9901_v62  ;;  %v7495_v34 = vadd.f32 %v1763_v45, %v9902_v15  ;;  %v7498_v7 = vadd.f32 %v1766_v10, %v9903_v43  ;;  %v9911_v57 = vld [vmem:[#allocation35_spill] sm:$0xff]  ;;  %9917 = vst [vmem:[#allocation21_spill] sm:$0xff] %v7522_v41  ;;  %v9919_v10 = vld [vmem:[#allocation38_spill] sm:$0xff]  ;;  %v9925_v33 = vld [vmem:[#allocation44_spill] sm:$0xff] }
 0x120   : > { %v7501_v56 = vadd.f32 %v1768_v58, %v9904_v49  ;;  %v7504_v13 = vadd.f32 %v1771_v52, %v9906_v50  ;;  %v7510_v4 = vadd.f32 %v1773_v24, %v9909_v16  ;;  %v7513_v19 = vadd.f32 %v1776_v55, %v9911_v57  ;;  %v7525_v45 = vld [vmem:[%s5433_s20 + $0x48] sm:$0xff]   ;;  %v7540_v55 = vld [vmem:[%s5433_s20 + $0x60] sm:$0xff]   ;;  %v7579_v51 = vld [vmem:[%s5433_s20 + $0x54] sm:$0xff]  }
 0x121   : > { %v7516_v32 = vadd.f32 %v1778_v44, %v9913_v22  ;;  %v7519_v18 = vadd.f32 %v1781_v5, %v9915_v9  ;;  %9918 = vst [vmem:[#allocation46_spill] sm:$0xff] %v7525_v45  ;;  %v7528_v58 = vadd.f32 %v1783_v17, %v9919_v10  ;;  %v7531_v52 = vadd.f32 %v1786_v40, %v9921_v3  ;;  %v7543_v44 = vld [vmem:[%s5433_s20 + $0x78] sm:$0xff]   ;;  %v9931_v17 = vld [vmem:[#allocation50_spill] sm:$0xff]  ;;  %v7586_v43 = vld [vmem:[%s5433_s20 + $0x6c] sm:$0xff]  }
 0x122   : > { %9905 = vst [vmem:[#allocation58_spill] sm:$0xff] %v7501_v56  ;;  %9907 = vst [vmem:[#allocation59_spill] sm:$0xff] %v7504_v13  ;;  %v7534_v0 = vadd.f32 %v1788_v28, %v9923_v6  ;;  %v7537_v24 = vadd.f32 %v1791_v26, %v9925_v33  ;;  %v9929_v5 = vld [vmem:[#allocation45_spill] sm:$0xff]  ;;  %v7549_v46 = vadd.f32 %v1796_v35, %v9931_v17  ;;  %v7556_v26 = vld [vmem:[%s5433_s20 + $0x90] sm:$0xff]   ;;  %v7562_v20 = vunpack.c.h.bf16 %v7507_v14 }
 0x123   : > { %9910 = vst [vmem:[#allocation68_spill] sm:$0xff] %v7510_v4  ;;  %9912 = vst [vmem:[#allocation22_spill] sm:$0xff] %v7513_v19  ;;  %v7546_v63 = vadd.f32 %v1793_v27, %v9929_v5  ;;  %v9933_v40 = vld [vmem:[#allocation53_spill] sm:$0xff]  ;;  %v7565_v27 = vld [vmem:[%s5433_s20 + $0x24] sm:$0xff]   ;;  %v7569_v35 = vunpack.c.h.bf16 %v7522_v41  ;;  %v7576_v1 = vunpack.c.h.bf16 %v7525_v45  ;;  %v7583_v15 = vunpack.c.h.bf16 %v7540_v55 }
 0x124   : > { %9914 = vst [vmem:[#allocation69_spill] sm:$0xff] %v7516_v32  ;;  %9916 = vst [vmem:[#allocation6_spill] sm:$0xff] %v7519_v18  ;;  %v7552_v12 = vadd.f32 %v1798_v37, %v9933_v40  ;;  %v7572_v37 = vld [vmem:[%s5433_s20 + $0x3c] sm:$0xff]   ;;  %v7590_v50 = vunpack.c.h.bf16 %v7543_v44  ;;  %v7593_v16 = vld [vmem:[%s5433_s20 + $0x84] sm:$0xff]   ;;  %v7597_v22 = vunpack.c.h.bf16 %v7556_v26  ;;  %v7604_v3 = vunpack.c.h.bf16 %v7559_v54 }
 0x125   : > { %9920 = vst [vmem:[#allocation47_spill] sm:$0xff] %v7528_v58  ;;  %9922 = vst [vmem:[#allocation49_spill] sm:$0xff] %v7531_v52  ;;  %v7600_v9 = vld [vmem:[%s5433_s20 + $0x9c] sm:$0xff]   ;;  %v7607_v6 = vld [vmem:[%s5433_s20 + $0xb4] sm:$0xff]   ;;  %v7614_v17 = vunpack.c.h.bf16 %v7565_v27  ;;  %v7618_v57 = vunpack.c.h.bf16 %v7572_v37  ;;  %v7622_v10 = vunpack.c.h.bf16 %v7579_v51  ;;  %v7629_v2 = vunpack.c.h.bf16 %v7586_v43 }
 0x126   : > { %9924 = vst [vmem:[#allocation54_spill] sm:$0xff] %v7534_v0  ;;  %9926 = vst [vmem:[#allocation55_spill] sm:$0xff] %v7537_v24  ;;  %v7610_v33 = vld [vmem:[%s5433_s20 + $0xcc] sm:$0xff]   ;;  %v4270_v29 = vld [vmem:[%s9441_s2 + $0x6] ss:$0 sm:$0xff]  ;;  %v7633_v40 = vunpack.c.h.bf16 %v7593_v16  ;;  %v7637_v49 = vunpack.c.h.bf16 %v7600_v9  ;;  %v7641_v62 = vunpack.c.h.bf16 %v7607_v6  ;;  %v9957_v5 = vunpack.c.l.bf16 %v7507_v14 }
 0x127   : > { %9927 = vst [vmem:[#allocation57_spill] sm:$0xff] %v7540_v55  ;;  %9928 = vst [vmem:[#allocation64_spill] sm:$0xff] %v7543_v44  ;;  %v1934_v0 = vmul.f32 %v7562_v20, %v4270_v29  ;;  %v9958_v28 = vunpack.c.l.bf16 %v7565_v27  ;;  %v1936_v58 = vmul.f32 %v4270_v29, %v7614_v17  ;;  %v1938_v32 = vmul.f32 %v7569_v35, %v4270_v29  ;;  %v9971_v13 = vld [vmem:[#allocation26_spill] sm:$0xff] }
 0x128   : > { %9930 = vst [vmem:[#allocation51_spill] sm:$0xff] %v7546_v63  ;;  %9932 = vst [vmem:[#allocation8_spill] sm:$0xff] %v7549_v46  ;;  %v7645_v63 = vunpack.c.h.bf16 %v7610_v33  ;;  %v1933_v24 = vmul.f32 %v9957_v5, %v4270_v29  ;;  %v9960_v46 = vunpack.c.l.bf16 %v7572_v37  ;;  %v1940_v4 = vmul.f32 %v4270_v29, %v7618_v57 }
 0x129   : > { %9934 = vst [vmem:[#allocation52_spill] sm:$0xff] %v7552_v12  ;;  %9935 = vst [vmem:[#allocation65_spill] sm:$0xff] %v7556_v26  ;;  %v1935_v52 = vmul.f32 %v4270_v29, %v9958_v28  ;;  %v9959_v12 = vunpack.c.l.bf16 %v7522_v41  ;;  %v9961_v14 = vunpack.c.l.bf16 %v7525_v45  ;;  %v9963_v41 = vunpack.c.l.bf16 %v7540_v55 }
 0x12a   : > { %9936 = vst [vmem:[#allocation61_spill] sm:$0xff] %v7562_v20  ;;  %9937 = vst [vmem:[#allocation10_spill] sm:$0xff] %v7565_v27  ;;  %v1939_v19 = vmul.f32 %v4270_v29, %v9960_v46  ;;  %v1942_v20 = vmul.f32 %v7576_v1, %v4270_v29  ;;  %v9962_v27 = vunpack.c.l.bf16 %v7579_v51  ;;  %v9965_v45 = vunpack.c.l.bf16 %v7543_v44 }
 0x12b   : > { %9938 = vst [vmem:[#allocation66_spill] sm:$0xff] %v7569_v35  ;;  %9939 = vst [vmem:[#allocation27_spill] sm:$0xff] %v7572_v37  ;;  %v1937_v18 = vmul.f32 %v9959_v12, %v4270_v29  ;;  %v1941_v5 = vmul.f32 %v9961_v14, %v4270_v29  ;;  %v1945_v12 = vmul.f32 %v9963_v41, %v4270_v29  ;;  %v9964_v37 = vunpack.c.l.bf16 %v7586_v43 }
 0x12c   : > { %9940 = vst [vmem:[#allocation67_spill] sm:$0xff] %v7576_v1  ;;  %9941 = vst [vmem:[#allocation12_spill] sm:$0xff] %v7579_v51  ;;  %v1943_v28 = vmul.f32 %v4270_v29, %v9962_v27  ;;  %v1946_v35 = vmul.f32 %v7583_v15, %v4270_v29  ;;  %v1949_v14 = vmul.f32 %v9965_v45, %v4270_v29  ;;  %v9966_v51 = vunpack.c.l.bf16 %v7593_v16 }
 0x12d   : > { %9942 = vst [vmem:[#allocation39_spill] sm:$0xff] %v7583_v15  ;;  %9943 = vst [vmem:[#allocation28_spill] sm:$0xff] %v7586_v43  ;;  %v1947_v46 = vmul.f32 %v4270_v29, %v9964_v37  ;;  %v1950_v1 = vmul.f32 %v7590_v50, %v4270_v29  ;;  %v9967_v55 = vunpack.c.l.bf16 %v7556_v26  ;;  %v1954_v15 = vmul.f32 %v7597_v22, %v4270_v29 }
 0x12e   : > { %9944 = vst [vmem:[#allocation14_spill] sm:$0xff] %v7590_v50  ;;  %9945 = vst [vmem:[#allocation15_spill] sm:$0xff] %v7593_v16  ;;  %v1951_v27 = vmul.f32 %v4270_v29, %v9966_v51  ;;  %v9968_v43 = vunpack.c.l.bf16 %v7600_v9  ;;  %v9969_v44 = vunpack.c.l.bf16 %v7559_v54  ;;  %v1958_v50 = vmul.f32 %v7604_v3, %v4270_v29 }
 0x12f   : > { %9946 = vst [vmem:[#allocation41_spill] sm:$0xff] %v7597_v22  ;;  %9947 = vst [vmem:[#allocation29_spill] sm:$0xff] %v7600_v9  ;;  %v1953_v41 = vmul.f32 %v9967_v55, %v4270_v29  ;;  %v9970_v16 = vunpack.c.l.bf16 %v7607_v6  ;;  %v1961_v26 = vmul.f32 %v9971_v13, %v4270_v29  ;;  %v9972_v55 = vld [vmem:[#allocation62_spill] sm:$0xff]  ;;  %v9973_v22 = vunpack.c.l.bf16 %v7610_v33 }
 0x130   : > { %9948 = vst [vmem:[#allocation24_spill] sm:$0xff] %v7604_v3  ;;  %9949 = vst [vmem:[#allocation17_spill] sm:$0xff] %v7607_v6  ;;  %v1955_v37 = vmul.f32 %v4270_v29, %v9968_v43  ;;  %v1957_v45 = vmul.f32 %v9969_v44, %v4270_v29  ;;  %v1962_v56 = vmul.f32 %v9972_v55, %v4270_v29 }
 0x131   : > { %9950 = vst [vmem:[#allocation70_spill] sm:$0xff] %v7614_v17  ;;  %9951 = vst [vmem:[#allocation30_spill] sm:$0xff] %v7618_v57  ;;  %v1944_v17 = vmul.f32 %v4270_v29, %v7622_v10  ;;  %v1948_v57 = vmul.f32 %v4270_v29, %v7629_v2  ;;  %v1959_v51 = vmul.f32 %v4270_v29, %v9970_v16 }
 0x132   : > { %9952 = vst [vmem:[#allocation71_spill] sm:$0xff] %v7622_v10  ;;  %9953 = vst [vmem:[#allocation19_spill] sm:$0xff] %v7629_v2  ;;  %v1952_v10 = vmul.f32 %v4270_v29, %v7633_v40  ;;  %v1956_v2 = vmul.f32 %v4270_v29, %v7637_v49  ;;  %v1963_v9 = vmul.f32 %v4270_v29, %v9973_v22 }
 0x133   : > { %9954 = vst [vmem:[#allocation72_spill] sm:$0xff] %v7633_v40  ;;  %9955 = vst [vmem:[#allocation31_spill] sm:$0xff] %v7637_v49  ;;  %v1960_v40 = vmul.f32 %v4270_v29, %v7641_v62  ;;  %v1964_v43 = vmul.f32 %v4270_v29, %v7645_v63  ;;  %v7695_v49 = vadd.f32 %v1933_v24, %v7439_v39  ;;  %v7779_v24 = vld [vmem:[%s5433_s20 + $0x5c] sm:$0x1]  ;;  %v10005_v29 = vld [vmem:[#allocation6_spill] sm:$0xff] }
 0x134   : > { %9956 = vst [vmem:[#allocation73_spill] sm:$0xff] %v7645_v63  ;;  %v7698_v44 = vadd.f32 %v1934_v0, %v7443_v61  ;;  %v7701_v6 = vadd.f32 %v1935_v52, %v7447_v42  ;;  %v7704_v16 = vadd.f32 %v1936_v58, %v7453_v8  ;;  %v7707_v55 = vadd.f32 %v1937_v18, %v7456_v23  ;;  %v9998_v58 = vld [vmem:[#allocation22_spill] sm:$0xff]  ;;  %v7776_v0 = vld [vmem:[%s5433_s20 + $0x50] sm:$0x1] }
 0x135   : > { %v7710_v22 = vadd.f32 %v1938_v32, %v7459_v21  ;;  %v7713_v39 = vadd.f32 %v1939_v19, %v7462_v36  ;;  %v7716_v61 = vadd.f32 %v1940_v4, %v7465_v11  ;;  %v7719_v42 = vadd.f32 %v1941_v5, %v7468_v59  ;;  %v7752_v4 = vld [vmem:[%s5433_s20 + $0x20] sm:$0x1]  ;;  %v7773_v52 = vld [vmem:[%s5433_s20 + $0x44] sm:$0x1]  ;;  %10001 = vst [vmem:[#allocation42_spill] sm:$0xff] %v7776_v0 }
 0x136   : > { %9974 = vst [vmem:[#allocation74_spill] sm:$0xff] %v7707_v55  ;;  %v7722_v8 = vadd.f32 %v1942_v20, %v7471_v25  ;;  %v7725_v23 = vadd.f32 %v1943_v28, %v7474_v60  ;;  %v7728_v21 = vadd.f32 %v1944_v17, %v7477_v38  ;;  %v7731_v36 = vadd.f32 %v1945_v12, %v7480_v30  ;;  %v10003_v20 = vld [vmem:[#allocation69_spill] sm:$0xff]  ;;  %v7794_v5 = vld [vmem:[%s5433_s20 + $0x68] sm:$0x1]  ;;  %v7797_v28 = vld [vmem:[%s5433_s20 + $0x74] sm:$0x1] }
 0x137   : > { %9975 = vst [vmem:[#allocation32_spill] sm:$0xff] %v7710_v22  ;;  %9976 = vst [vmem:[#allocation75_spill] sm:$0xff] %v7713_v39  ;;  %v7734_v11 = vadd.f32 %v1946_v35, %v7483_v48  ;;  %v7737_v59 = vadd.f32 %v1947_v46, %v7486_v31  ;;  %v7740_v25 = vadd.f32 %v1948_v57, %v7489_v47  ;;  %v7755_v48 = vld [vmem:[%s5433_s20 + $0x2c] sm:$0x1]  ;;  %v7758_v31 = vld [vmem:[%s5433_s20 + $0x38] sm:$0x1] }
 0x138   : > { %9977 = vst [vmem:[#allocation76_spill] sm:$0xff] %v7716_v61  ;;  %9978 = vst [vmem:[#allocation40_spill] sm:$0xff] %v7719_v42  ;;  %v7743_v60 = vadd.f32 %v1949_v14, %v7492_v53  ;;  %v7746_v38 = vadd.f32 %v1950_v1, %v7495_v34  ;;  %v7749_v30 = vadd.f32 %v1951_v27, %v7498_v7  ;;  %v9992_v47 = vld [vmem:[#allocation58_spill] sm:$0xff]  ;;  %v9994_v53 = vld [vmem:[#allocation59_spill] sm:$0xff] }
 0x139   : > { %9979 = vst [vmem:[#allocation7_spill] sm:$0xff] %v7722_v8  ;;  %9980 = vst [vmem:[#allocation23_spill] sm:$0xff] %v7725_v23  ;;  %v7761_v19 = vadd.f32 %v1952_v10, %v9992_v47  ;;  %v7764_v32 = vadd.f32 %v1953_v41, %v9994_v53  ;;  %v9996_v34 = vld [vmem:[#allocation68_spill] sm:$0xff]  ;;  %v7770_v7 = vadd.f32 %v1955_v37, %v9998_v58  ;;  %v10009_v10 = vld [vmem:[#allocation49_spill] sm:$0xff] }
 0x13a   : > { %9981 = vst [vmem:[#allocation9_spill] sm:$0xff] %v7728_v21  ;;  %9982 = vst [vmem:[#allocation48_spill] sm:$0xff] %v7731_v36  ;;  %v7767_v18 = vadd.f32 %v1954_v15, %v9996_v34  ;;  %v7782_v35 = vadd.f32 %v1956_v2, %v10003_v20  ;;  %v7785_v1 = vadd.f32 %v1957_v45, %v10005_v29  ;;  %v10007_v15 = vld [vmem:[#allocation47_spill] sm:$0xff]  ;;  %v7800_v12 = vld [vmem:[%s5433_s20 + $0x80] sm:$0x1] }
 0x13b   : > { %9983 = vst [vmem:[#allocation11_spill] sm:$0xff] %v7734_v11  ;;  %9984 = vst [vmem:[#allocation25_spill] sm:$0xff] %v7737_v59  ;;  %v7788_v57 = vadd.f32 %v1958_v50, %v10007_v15  ;;  %v7791_v17 = vadd.f32 %v1959_v51, %v10009_v10  ;;  %v10014_v2 = vld [vmem:[#allocation54_spill] sm:$0xff]  ;;  %v10016_v14 = vld [vmem:[#allocation55_spill] sm:$0xff] }
 0x13c   : > { %9985 = vst [vmem:[#allocation13_spill] sm:$0xff] %v7740_v25  ;;  %9986 = vst [vmem:[#allocation56_spill] sm:$0xff] %v7743_v60  ;;  %v7803_v46 = vadd.f32 %v1960_v40, %v10014_v2  ;;  %v7806_v27 = vadd.f32 %v1961_v26, %v10016_v14  ;;  %v10018_v41 = vld [vmem:[#allocation51_spill] sm:$0xff]  ;;  %v10020_v50 = vld [vmem:[#allocation8_spill] sm:$0xff] }
 0x13d   : > { %9987 = vst [vmem:[#allocation16_spill] sm:$0xff] %v7746_v38  ;;  %9988 = vst [vmem:[#allocation18_spill] sm:$0xff] %v7749_v30  ;;  %v7809_v37 = vadd.f32 %v1962_v56, %v10018_v41  ;;  %v7812_v45 = vadd.f32 %v1963_v9, %v10020_v50  ;;  %v7815_v51 = vld [vmem:[%s5433_s20 + $0x8c] sm:$0x1]  ;;  %v7818_v47 = vld [vmem:[%s5433_s20 + $0x98] sm:$0x1] }
 0x13e   : > { %9989 = vst [vmem:[#allocation20_spill] sm:$0xff] %v7752_v4  ;;  %9990 = vst [vmem:[#allocation63_spill] sm:$0xff] %v7755_v48  ;;  %v7821_v53 = vld [vmem:[%s5433_s20 + $0xa4] sm:$0x1]  ;;  %v10025_v34 = vld [vmem:[#allocation52_spill] sm:$0xff] }
 0x13f   : > { %9991 = vst [vmem:[#allocation33_spill] sm:$0xff] %v7758_v31  ;;  %9993 = vst [vmem:[#allocation34_spill] sm:$0xff] %v7761_v19  ;;  %v7824_v58 = vadd.f32 %v1964_v43, %v10025_v34  ;;  %v7827_v40 = vld [vmem:[%s5433_s20 + $0xb0] sm:$0x1]  ;;  %v7830_v20 = vld [vmem:[%s5433_s20 + $0xbc] sm:$0x1]  ;;  %v10032_v34 = vunpack.c.l.bf16 %v7752_v4  ;;  %v10036_v43 = vunpack.c.l.bf16 %v7755_v48  ;;  %v10040_v4 = vunpack.c.l.bf16 %v7758_v31 }
 0x140   : > { %9995 = vst [vmem:[#allocation35_spill] sm:$0xff] %v7764_v32  ;;  %9997 = vst [vmem:[#allocation36_spill] sm:$0xff] %v7767_v18  ;;  %v7833_v26 = vld [vmem:[%s5433_s20 + $0xc8] sm:$0x1]  ;;  %v7839_v15 = vld [vmem:[%s5433_s20 + $0xd4] sm:$0x1] }
 0x141   : > { %9999 = vst [vmem:[#allocation37_spill] sm:$0xff] %v7770_v7  ;;  %10000 = vst [vmem:[#allocation38_spill] sm:$0xff] %v7773_v52  ;;  %v4287_v41 = vld [vmem:[%s9441_s2 + $0x7] ss:$0 sm:$0xff]  ;;  %v10031_v50 = vld [vmem:[#allocation61_spill] sm:$0xff] }
 0x142   : > { %10002 = vst [vmem:[#allocation43_spill] sm:$0xff] %v7779_v24  ;;  %10004 = vst [vmem:[#allocation44_spill] sm:$0xff] %v7782_v35  ;;  %v2036_v29 = vmul.f32 %v4287_v41, %v10032_v34  ;;  %v10035_v10 = vld [vmem:[#allocation70_spill] sm:$0xff]  ;;  %v7869_v2 = vmul.f32 %v4287_v41, %v10036_v43  ;;  %v10037_v14 = vld [vmem:[#allocation21_spill] sm:$0xff]  ;;  %v7880_v34 = vmul.f32 %v4287_v41, %v10040_v4  ;;  %v10044_v43 = vunpack.c.l.bf16 %v7773_v52 }
 0x143   : > { %10006 = vst [vmem:[#allocation45_spill] sm:$0xff] %v7785_v1  ;;  %10008 = vst [vmem:[#allocation50_spill] sm:$0xff] %v7788_v57  ;;  %v7865_v57 = vmul.f32 %v4287_v41, %v10035_v10  ;;  %v10038_v56 = vunpack.c.l.bf16 %v10037_v14  ;;  %v10043_v10 = vld [vmem:[#allocation30_spill] sm:$0xff]  ;;  %v10048_v4 = vunpack.c.l.bf16 %v7776_v0 }
 0x144   : > { %10010 = vst [vmem:[#allocation53_spill] sm:$0xff] %v7791_v17  ;;  %10011 = vst [vmem:[#allocation26_spill] sm:$0xff] %v7794_v5  ;;  %v7887_v35 = vmul.f32 %v4287_v41, %v10043_v10  ;;  %v7891_v48 = vmul.f32 %v4287_v41, %v10044_v43  ;;  %v10051_v10 = vld [vmem:[#allocation71_spill] sm:$0xff]  ;;  %v10052_v43 = vunpack.c.l.bf16 %v7779_v24 }
 0x145   : > { %10012 = vst [vmem:[#allocation58_spill] sm:$0xff] %v7797_v28  ;;  %10013 = vst [vmem:[#allocation59_spill] sm:$0xff] %v7800_v12  ;;  %v7873_v1 = vmul.f32 %v10038_v56, %v4287_v41  ;;  %v10045_v56 = vld [vmem:[#allocation46_spill] sm:$0xff]  ;;  %v7902_v31 = vmul.f32 %v4287_v41, %v10048_v4  ;;  %v7909_v19 = vmul.f32 %v4287_v41, %v10051_v10  ;;  %v10056_v4 = vunpack.c.l.bf16 %v7794_v5  ;;  %v10059_v10 = vld [vmem:[#allocation19_spill] sm:$0xff] }
 0x146   : > { %10015 = vst [vmem:[#allocation68_spill] sm:$0xff] %v7803_v46  ;;  %10017 = vst [vmem:[#allocation22_spill] sm:$0xff] %v7806_v27  ;;  %v2035_v27 = vmul.f32 %v10031_v50, %v4287_v41  ;;  %v10033_v46 = vld [vmem:[#allocation10_spill] sm:$0xff]  ;;  %v10046_v14 = vunpack.c.l.bf16 %v10045_v56  ;;  %v7913_v52 = vmul.f32 %v4287_v41, %v10052_v43  ;;  %v10053_v56 = vld [vmem:[#allocation57_spill] sm:$0xff]  ;;  %v7931_v25 = vmul.f32 %v4287_v41, %v10059_v10 }
 0x147   : > { %10019 = vst [vmem:[#allocation69_spill] sm:$0xff] %v7809_v37  ;;  %10021 = vst [vmem:[#allocation6_spill] sm:$0xff] %v7812_v45  ;;  %v10034_v9 = vunpack.c.l.bf16 %v10033_v46  ;;  %v10041_v46 = vld [vmem:[#allocation27_spill] sm:$0xff]  ;;  %v7924_v0 = vmul.f32 %v4287_v41, %v10056_v4  ;;  %v10060_v43 = vunpack.c.l.bf16 %v7797_v28  ;;  %v10064_v4 = vunpack.c.l.bf16 %v7800_v12  ;;  %v10067_v10 = vld [vmem:[#allocation72_spill] sm:$0xff] }
 0x148   : > { %10022 = vst [vmem:[#allocation47_spill] sm:$0xff] %v7815_v51  ;;  %10023 = vst [vmem:[#allocation49_spill] sm:$0xff] %v7818_v47  ;;  %v7895_v7 = vmul.f32 %v10046_v14, %v4287_v41  ;;  %v10054_v14 = vunpack.c.l.bf16 %v10053_v56  ;;  %v10061_v56 = vld [vmem:[#allocation64_spill] sm:$0xff]  ;;  %v7953_v21 = vmul.f32 %v4287_v41, %v10067_v10  ;;  %v10075_v10 = vld [vmem:[#allocation31_spill] sm:$0xff]  ;;  %v2131_v22 = vrot.slane %v2035_v27, 1 }
 0x149   : > { %10024 = vst [vmem:[#allocation54_spill] sm:$0xff] %v7821_v53  ;;  %10026 = vst [vmem:[#allocation55_spill] sm:$0xff] %v7824_v58  ;;  %v10029_v58 = vld [vmem:[#allocation60_spill] sm:$0xff]  ;;  %v2037_v17 = vmul.f32 %v4287_v41, %v10034_v9  ;;  %v10042_v9 = vunpack.c.l.bf16 %v10041_v46  ;;  %v7935_v24 = vmul.f32 %v4287_v41, %v10060_v43  ;;  %v7946_v5 = vmul.f32 %v4287_v41, %v10064_v4 }
 0x14a   : > { %10027 = vst [vmem:[#allocation51_spill] sm:$0xff] %v7827_v40  ;;  %10028 = vst [vmem:[#allocation8_spill] sm:$0xff] %v7830_v20  ;;  %v10030_v45 = vunpack.c.l.bf16 %v10029_v58  ;;  %v10049_v46 = vld [vmem:[#allocation12_spill] sm:$0xff]  ;;  %v7917_v30 = vmul.f32 %v10054_v14, %v4287_v41  ;;  %v10062_v14 = vunpack.c.l.bf16 %v10061_v56  ;;  %v10068_v43 = vunpack.c.l.bf16 %v7815_v51  ;;  %v10069_v56 = vld [vmem:[#allocation65_spill] sm:$0xff] }
 0x14b   : > { %v7884_v50 = vmul.f32 %v4287_v41, %v10042_v9  ;;  %v10050_v9 = vunpack.c.l.bf16 %v10049_v46  ;;  %v10057_v46 = vld [vmem:[#allocation28_spill] sm:$0xff]  ;;  %v10072_v4 = vunpack.c.l.bf16 %v7818_v47  ;;  %v7975_v61 = vmul.f32 %v4287_v41, %v10075_v10 }
 0x14c   : > { %v2034_v37 = vmul.f32 %v10030_v45, %v4287_v41  ;;  %v10039_v45 = vld [vmem:[#allocation66_spill] sm:$0xff]  ;;  %v7939_v59 = vmul.f32 %v10062_v14, %v4287_v41  ;;  %v7957_v28 = vmul.f32 %v4287_v41, %v10068_v43  ;;  %v10070_v14 = vunpack.c.l.bf16 %v10069_v56 }
 0x14d   : > { %v7876_v58 = vmul.f32 %v10039_v45, %v4287_v41  ;;  %v10047_v45 = vld [vmem:[#allocation67_spill] sm:$0xff]  ;;  %v7906_v32 = vmul.f32 %v4287_v41, %v10050_v9  ;;  %v10058_v9 = vunpack.c.l.bf16 %v10057_v46  ;;  %v7968_v12 = vmul.f32 %v4287_v41, %v10072_v4 }
 0x14e   : > { %v7898_v18 = vmul.f32 %v10047_v45, %v4287_v41  ;;  %v10055_v45 = vld [vmem:[#allocation39_spill] sm:$0xff]  ;;  %v7961_v23 = vmul.f32 %v10070_v14, %v4287_v41  ;;  %v10076_v43 = vunpack.c.l.bf16 %v7821_v53  ;;  %v10077_v56 = vunpack.c.l.bf16 %v7559_v54 }
 0x14f   : > { %v7920_v38 = vmul.f32 %v10055_v45, %v4287_v41  ;;  %v7928_v60 = vmul.f32 %v4287_v41, %v10058_v9  ;;  %v10063_v45 = vld [vmem:[#allocation14_spill] sm:$0xff]  ;;  %v10065_v46 = vld [vmem:[#allocation15_spill] sm:$0xff]  ;;  %v10078_v4 = vunpack.c.l.bf16 %v7827_v40  ;;  %v2130_v10 = vrot.slane %v2034_v37, 1 }
 0x150   : > { %v7942_v11 = vmul.f32 %v10063_v45, %v4287_v41  ;;  %v10066_v9 = vunpack.c.l.bf16 %v10065_v46  ;;  %v10071_v45 = vld [vmem:[#allocation41_spill] sm:$0xff]  ;;  %v7979_v51 = vmul.f32 %v4287_v41, %v10076_v43  ;;  %v7983_v14 = vmul.f32 %v10077_v56, %v4287_v41  ;;  %v10082_v40 = vld [vmem:[#allocation62_spill] sm:$0xff] }
 0x151   : > { %v7964_v8 = vmul.f32 %v10071_v45, %v4287_v41  ;;  %v10073_v46 = vld [vmem:[#allocation29_spill] sm:$0xff]  ;;  %v7986_v45 = vmul.f32 %v7604_v3, %v4287_v41  ;;  %v7990_v47 = vmul.f32 %v4287_v41, %v10078_v4  ;;  %v2133_v53 = vrot.slane %v2036_v29, 1 }
 0x152   : > { %v7950_v36 = vmul.f32 %v4287_v41, %v10066_v9  ;;  %v10074_v9 = vunpack.c.l.bf16 %v10073_v46  ;;  %v10079_v46 = vld [vmem:[#allocation17_spill] sm:$0xff]  ;;  %v7997_v43 = vmul.f32 %v4287_v41, %v7641_v62  ;;  %v10081_v54 = vunpack.c.l.bf16 %v7830_v20 }
 0x153   : > { %v2135_v3 = vrot.slane %v2037_v17, 1  ;;  %v2136_v55 = vrot.slane %v7865_v57, 1  ;;  %v8005_v4 = vmul.f32 %v9971_v13, %v4287_v41  ;;  %v10083_v37 = vunpack.c.l.bf16 %v7833_v26 }
 0x154   : > { %v7972_v42 = vmul.f32 %v4287_v41, %v10074_v9  ;;  %v10080_v9 = vunpack.c.l.bf16 %v10079_v46  ;;  %v8001_v56 = vmul.f32 %v4287_v41, %v10081_v54  ;;  %v8008_v46 = vmul.f32 %v10082_v40, %v4287_v41 }
 0x155   : > { %v8012_v27 = vmul.f32 %v4287_v41, %v10083_v37  ;;  %v10084_v29 = vunpack.c.l.bf16 %v7610_v33  ;;  %v8019_v54 = vmul.f32 %v4287_v41, %v7645_v63  ;;  %v10085_v17 = vunpack.c.l.bf16 %v7839_v15 }
 0x156   : > { %v7994_v39 = vmul.f32 %v4287_v41, %v10080_v9  ;;  %v2138_v13 = vrot.slane %v7869_v2, 1  ;;  %v2140_v40 = vrot.slane %v7873_v1, 1  ;;  %v8028_v20 = vsel %vm752_vm1, %v2130_v10, %v2131_v22 }
 0x157   : > { %v8016_v9 = vmul.f32 %v4287_v41, %v10084_v29  ;;  %v8023_v57 = vmul.f32 %v4287_v41, %v10085_v17  ;;  %v8031_v37 = vsel %vm752_vm1, %v2131_v22, %v2133_v53  ;;  %v2141_v33 = vrot.slane %v7876_v58, 1 }
 0x158   : > { %v2143_v29 = vrot.slane %v7880_v34, 1  ;;  %v8036_v63 = vsel %vm752_vm1, %v2135_v3, %v2136_v55  ;;  %v2145_v41 = vrot.slane %v7884_v50, 1  ;;  %v2146_v17 = vrot.slane %v7887_v35, 1 }
 0x159   : > { %v2148_v2 = vrot.slane %v7891_v48, 1  ;;  %v2150_v1 = vrot.slane %v7895_v7, 1  ;;  %v2151_v10 = vrot.slane %v7898_v18, 1  ;;  %v2153_v22 = vrot.slane %v7902_v31, 1 }
 0x15a   : > { %v2155_v53 = vrot.slane %v7906_v32, 1  ;;  %v2156_v58 = vrot.slane %v7909_v19, 1  ;;  %v2158_v34 = vrot.slane %v7913_v52, 1  ;;  %v2160_v3 = vrot.slane %v7917_v30, 1 }
 0x15b   : > { %v2161_v50 = vrot.slane %v7920_v38, 1  ;;  %v2163_v35 = vrot.slane %v7924_v0, 1  ;;  %v2165_v48 = vrot.slane %v7928_v60, 1  ;;  %v2166_v7 = vrot.slane %v7931_v25, 1 }
 0x15c   : > { %v2168_v18 = vrot.slane %v7935_v24, 1  ;;  %v2139_v31 = vsel %vm752_vm1, %v2136_v55, %v2138_v13  ;;  %v2142_v32 = vsel %vm752_vm1, %v2140_v40, %v2141_v33  ;;  %v2170_v19 = vrot.slane %v7939_v59, 1 }
 0x15d   : > { %v2171_v52 = vrot.slane %v7942_v11, 1  ;;  %v2144_v30 = vsel %vm752_vm1, %v2141_v33, %v2143_v29  ;;  %v2147_v38 = vsel %vm752_vm1, %v2145_v41, %v2146_v17  ;;  %v2149_v0 = vsel %vm752_vm1, %v2146_v17, %v2148_v2 }
 0x15e   : > { %v2173_v60 = vrot.slane %v7946_v5, 1  ;;  %v2152_v25 = vsel %vm752_vm1, %v2150_v1, %v2151_v10  ;;  %v2154_v24 = vsel %vm752_vm1, %v2151_v10, %v2153_v22  ;;  %v2157_v55 = vsel %vm752_vm1, %v2155_v53, %v2156_v58 }
 0x15f   : > { %v2159_v40 = vsel %vm752_vm1, %v2156_v58, %v2158_v34  ;;  %v2162_v59 = vsel %vm752_vm1, %v2160_v3, %v2161_v50  ;;  %v2164_v11 = vsel %vm752_vm1, %v2161_v50, %v2163_v35  ;;  %v2167_v13 = vsel %vm752_vm1, %v2165_v48, %v2166_v7 }
 0x160   : > { %v2169_v33 = vsel %vm752_vm1, %v2166_v7, %v2168_v18  ;;  %v2172_v29 = vsel %vm752_vm1, %v2170_v19, %v2171_v52  ;;  %v2175_v5 = vrot.slane %v7950_v36, 1  ;;  %v2176_v41 = vrot.slane %v7953_v21, 1 }
 0x161   : > { %v2178_v17 = vrot.slane %v7957_v28, 1  ;;  %v2174_v2 = vsel %vm752_vm1, %v2171_v52, %v2173_v60  ;;  %v2180_v1 = vrot.slane %v7961_v23, 1  ;;  %v2181_v10 = vrot.slane %v7964_v8, 1 }
 0x162   : > { %v2183_v22 = vrot.slane %v7968_v12, 1  ;;  %v2185_v53 = vrot.slane %v7972_v42, 1  ;;  %v2186_v58 = vrot.slane %v7975_v61, 1  ;;  %v2188_v34 = vrot.slane %v7979_v51, 1 }
 0x163   : > { %v2190_v36 = vrot.slane %v7983_v14, 1  ;;  %v2191_v21 = vrot.slane %v7986_v45, 1  ;;  %v2193_v28 = vrot.slane %v7990_v47, 1  ;;  %v2195_v3 = vrot.slane %v7994_v39, 1 }
 0x164   : > { %v2196_v23 = vrot.slane %v7997_v43, 1  ;;  %v2198_v8 = vrot.slane %v8001_v56, 1  ;;  %v2200_v12 = vrot.slane %v8005_v4, 1  ;;  %v2201_v42 = vrot.slane %v8008_v46, 1 }
 0x165   : > { %v2203_v61 = vrot.slane %v8012_v27, 1  ;;  %v2177_v51 = vsel %vm752_vm1, %v2175_v5, %v2176_v41  ;;  %v2205_v14 = vrot.slane %v8016_v9, 1  ;;  %v2206_v45 = vrot.slane %v8019_v54, 1  ;;  %v10086_v5 = vld [vmem:[#allocation74_spill] sm:$0xff] }
 0x166   : > { %v2208_v47 = vrot.slane %v8023_v57, 1  ;;  %v2179_v39 = vsel %vm752_vm1, %v2176_v41, %v2178_v17  ;;  %v2182_v43 = vsel %vm752_vm1, %v2180_v1, %v2181_v10  ;;  %v2184_v56 = vsel %vm752_vm1, %v2181_v10, %v2183_v22  ;;  %v10088_v17 = vld [vmem:[#allocation75_spill] sm:$0xff]  ;;  %v10093_v22 = vld [vmem:[#allocation9_spill] sm:$0xff] }
 0x167   : > { %v2187_v4 = vsel %vm752_vm1, %v2185_v53, %v2186_v58  ;;  %v2189_v46 = vsel %vm752_vm1, %v2186_v58, %v2188_v34  ;;  %v2192_v27 = vsel %vm752_vm1, %v2190_v36, %v2191_v21  ;;  %v2194_v50 = vsel %vm752_vm1, %v2191_v21, %v2193_v28  ;;  %v10092_v10 = vld [vmem:[#allocation23_spill] sm:$0xff]  ;;  %v10094_v53 = vld [vmem:[#allocation48_spill] sm:$0xff] }
 0x168   : > { %v2197_v9 = vsel %vm752_vm1, %v2195_v3, %v2196_v23  ;;  %v2199_v54 = vsel %vm752_vm1, %v2196_v23, %v2198_v8  ;;  %v2202_v57 = vsel %vm752_vm1, %v2200_v12, %v2201_v42  ;;  %v2204_v35 = vsel %vm752_vm1, %v2201_v42, %v2203_v61  ;;  %v10096_v58 = vld [vmem:[#allocation11_spill] sm:$0xff]  ;;  %v10104_v28 = vld [vmem:[#allocation16_spill] sm:$0xff]  ;;  %v10106_v3 = vld [vmem:[#allocation18_spill] sm:$0xff] }
 0x169   : > { %v8106_v48 = vadd.f32 %v8028_v20, %v7695_v49  ;;  %v2207_v7 = vsel %vm752_vm1, %v2205_v14, %v2206_v45  ;;  %v2209_v18 = vsel %vm752_vm1, %v2206_v45, %v2208_v47  ;;  %v8112_v19 = vadd.f32 %v8031_v37, %v7698_v44  ;;  %v10087_v49 = vld [vmem:[#allocation32_spill] sm:$0xff]  ;;  %v4292_v45 = vld [vmem:[%s5433_s20 + $0x48] sm:$0xe] }
 0x16a   : > { %v8116_v52 = vadd.f32 %v8036_v63, %v7701_v6  ;;  %v8119_v60 = vadd.f32 %v2139_v31, %v7704_v16  ;;  %v8122_v41 = vadd.f32 %v2142_v32, %v10086_v5  ;;  %v8125_v20 = vadd.f32 %v2144_v30, %v10087_v49  ;;  %v10089_v44 = vld [vmem:[#allocation76_spill] sm:$0xff]  ;;  %v10091_v16 = vld [vmem:[#allocation7_spill] sm:$0xff] }
 0x16b   : > { %v8128_v1 = vadd.f32 %v2147_v38, %v10088_v17  ;;  %v8131_v37 = vadd.f32 %v2149_v0, %v10089_v44  ;;  %v10090_v63 = vld [vmem:[#allocation40_spill] sm:$0xff]  ;;  %v8137_v31 = vadd.f32 %v2154_v24, %v10091_v16  ;;  %v8140_v32 = vadd.f32 %v2157_v55, %v10092_v10  ;;  %v10100_v24 = vld [vmem:[#allocation13_spill] sm:$0xff]  ;;  %v10120_v17 = vld [vmem:[#allocation50_spill] sm:$0xff] }
 0x16c   : > { %v8134_v6 = vadd.f32 %v2152_v25, %v10090_v63  ;;  %v8143_v30 = vadd.f32 %v2159_v40, %v10093_v22  ;;  %v8146_v38 = vadd.f32 %v2162_v59, %v10094_v53  ;;  %v8149_v0 = vadd.f32 %v2164_v11, %v10096_v58  ;;  %v10098_v25 = vld [vmem:[#allocation25_spill] sm:$0xff]  ;;  %v10102_v55 = vld [vmem:[#allocation56_spill] sm:$0xff]  ;;  %v4289_v11 = vld [vmem:[%s5433_s20 + $0x24] sm:$0xe] }
 0x16d   : > { %v8152_v34 = vadd.f32 %v2167_v13, %v10098_v25  ;;  %v8155_v36 = vadd.f32 %v2169_v33, %v10100_v24  ;;  %v8158_v21 = vadd.f32 %v2172_v29, %v10102_v55  ;;  %v8161_v40 = vadd.f32 %v2174_v2, %v10104_v28  ;;  %v4288_v23 = vld [vmem:[%s5433_s20 + $0x18] sm:$0xe]  ;;  %v4290_v8 = vld [vmem:[%s5433_s20 + $0x30] sm:$0xe]  ;;  %v10108_v13 = vld [vmem:[#allocation34_spill] sm:$0xff] }
 0x16e   : > { %10095 = vst [vmem:[#allocation52_spill] sm:$0xff] %v8146_v38  ;;  %10097 = vst [vmem:[#allocation60_spill] sm:$0xff] %v8149_v0  ;;  %v8164_v59 = vadd.f32 %v2177_v51, %v10106_v3  ;;  %v8170_v12 = vadd.f32 %v2179_v39, %v10108_v13  ;;  %v10110_v33 = vld [vmem:[#allocation35_spill] sm:$0xff]  ;;  %v10112_v29 = vld [vmem:[#allocation36_spill] sm:$0xff] }
 0x16f   : > { %10099 = vst [vmem:[#allocation10_spill] sm:$0xff] %v8152_v34  ;;  %10101 = vst [vmem:[#allocation21_spill] sm:$0xff] %v8155_v36  ;;  %v8173_v42 = vadd.f32 %v2182_v43, %v10110_v33  ;;  %v8176_v61 = vadd.f32 %v2184_v56, %v10112_v29  ;;  %v10114_v2 = vld [vmem:[#allocation37_spill] sm:$0xff]  ;;  %v4293_v47 = vld [vmem:[%s5433_s20 + $0x54] sm:$0xe]  ;;  %v8191_v56 = vadd.f32 %v2194_v50, %v10120_v17  ;;  %v2294_v17 = vunpack.c.l.bf16 %v4292_v45 }
 0x170   : > { %10103 = vst [vmem:[#allocation27_spill] sm:$0xff] %v8158_v21  ;;  %10105 = vst [vmem:[#allocation46_spill] sm:$0xff] %v8161_v40  ;;  %v8179_v14 = vadd.f32 %v2187_v4, %v10114_v2  ;;  %v4291_v51 = vld [vmem:[%s5433_s20 + $0x3c] sm:$0xe]  ;;  %v10116_v5 = vld [vmem:[#allocation44_spill] sm:$0xff] }
 0x171   : > { %10107 = vst [vmem:[#allocation12_spill] sm:$0xff] %v8164_v59  ;;  %10109 = vst [vmem:[#allocation57_spill] sm:$0xff] %v8170_v12  ;;  %v8185_v49 = vadd.f32 %v2189_v46, %v10116_v5  ;;  %v10118_v39 = vld [vmem:[#allocation45_spill] sm:$0xff]  ;;  %v4295_v16 = vld [vmem:[%s5433_s20 + $0x6c] sm:$0xe]  ;;  %v2291_v5 = vunpack.c.l.bf16 %v4289_v11 }
 0x172   : > { %10111 = vst [vmem:[#allocation28_spill] sm:$0xff] %v8173_v42  ;;  %10113 = vst [vmem:[#allocation64_spill] sm:$0xff] %v8176_v61  ;;  %v8188_v43 = vadd.f32 %v2192_v27, %v10118_v39  ;;  %v10122_v44 = vld [vmem:[#allocation53_spill] sm:$0xff]  ;;  %v10124_v22 = vld [vmem:[#allocation68_spill] sm:$0xff] }
 0x173   : > { %10115 = vst [vmem:[#allocation15_spill] sm:$0xff] %v8179_v14  ;;  %10117 = vst [vmem:[#allocation65_spill] sm:$0xff] %v8185_v49  ;;  %v8194_v4 = vadd.f32 %v2197_v9, %v10122_v44  ;;  %v4294_v63 = vld [vmem:[%s5433_s20 + $0x60] sm:$0xe]  ;;  %v4296_v10 = vld [vmem:[%s5433_s20 + $0x78] sm:$0xe]  ;;  %v8200_v53 = vadd.f32 %v2199_v54, %v10124_v22  ;;  %v2290_v54 = vunpack.c.l.bf16 %v4288_v23  ;;  %v2295_v44 = vunpack.c.l.bf16 %v4293_v47 }
 0x174   : > { %10119 = vst [vmem:[#allocation29_spill] sm:$0xff] %v8188_v43  ;;  %10121 = vst [vmem:[#allocation17_spill] sm:$0xff] %v8191_v56  ;;  %v10126_v46 = vld [vmem:[#allocation22_spill] sm:$0xff]  ;;  %v10128_v25 = vld [vmem:[#allocation69_spill] sm:$0xff] }
 0x175   : > { %10123 = vst [vmem:[#allocation74_spill] sm:$0xff] %v8194_v4  ;;  %10125 = vst [vmem:[#allocation32_spill] sm:$0xff] %v8200_v53  ;;  %v8203_v58 = vadd.f32 %v2202_v57, %v10126_v46  ;;  %v8206_v27 = vadd.f32 %v2204_v35, %v10128_v25  ;;  %v10130_v24 = vld [vmem:[#allocation6_spill] sm:$0xff]  ;;  %v4298_v28 = vld [vmem:[%s5433_s20 + $0x90] sm:$0xe]  ;;  %v2292_v57 = vunpack.c.l.bf16 %v4290_v8  ;;  %v2293_v35 = vunpack.c.l.bf16 %v4291_v51 }
 0x176   : > { %v8209_v55 = vadd.f32 %v2207_v7, %v10130_v24  ;;  %v4297_v50 = vld [vmem:[%s5433_s20 + $0x84] sm:$0xe]  ;;  %v4299_v9 = vld [vmem:[%s5433_s20 + $0x9c] sm:$0xe]  ;;  %v10132_v3 = vld [vmem:[#allocation55_spill] sm:$0xff]  ;;  %v2296_v7 = vunpack.c.l.bf16 %v4294_v63  ;;  %v2298_v46 = vunpack.c.l.bf16 %v4296_v10  ;;  %v2300_v24 = vunpack.c.l.bf16 %v4298_v28 }
 0x177   : > { %10127 = vst [vmem:[#allocation75_spill] sm:$0xff] %v8203_v58  ;;  %10129 = vst [vmem:[#allocation76_spill] sm:$0xff] %v8206_v27  ;;  %v8215_v13 = vadd.f32 %v2209_v18, %v10132_v3  ;;  %v4300_v33 = vld [vmem:[%s5433_s20 + $0xa8] sm:$0xe]  ;;  %v4301_v29 = vld [vmem:[%s5433_s20 + $0xb4] sm:$0xe]  ;;  %v2297_v18 = vunpack.c.l.bf16 %v4295_v16  ;;  %v2299_v25 = vunpack.c.l.bf16 %v4297_v50  ;;  %v2301_v3 = vunpack.c.l.bf16 %v4299_v9 }
 0x178   : > { %10131 = vst [vmem:[#allocation40_spill] sm:$0xff] %v8209_v55  ;;  %v8220_v2 = vld [vmem:[%s5433_s20 + $0xc0] sm:$0xe]  ;;  %v8223_v39 = vld [vmem:[%s5433_s20 + $0xcc] sm:$0xe]  ;;  %v2303_v23 = vunpack.c.l.bf16 %v4301_v29  ;;  %v10135_v63 = vld [vmem:[#allocation20_spill] sm:$0xff] }
 0x179   : > { %10133 = vst [vmem:[#allocation7_spill] sm:$0xff] %v8215_v13  ;;  %v8228_v22 = vld [vmem:[%s9441_s2 + $0x8] ss:$0 sm:$0xff]  ;;  %v2302_v13 = vunpack.c.l.bf16 %v4300_v33  ;;  %v2304_v11 = vunpack.c.l.bf16 %v8220_v2  ;;  %v2305_v8 = vunpack.c.l.bf16 %v8223_v39  ;;  %v10134_v45 = vld [vmem:[#allocation61_spill] sm:$0xff]  ;;  %v10136_v55 = vunpack.c.l.bf16 %v10135_v63  ;;  %v10138_v28 = vld [vmem:[#allocation63_spill] sm:$0xff]  ;;  %s474_s2 = scalar_lea.vmem [#allocation2], %s473_s22 }
 0x17a   : > { %v2311_v51 = vmul.f32 %v8228_v22, %v2290_v54  ;;  %v2312_v47 = vmul.f32 %v10134_v45, %v8228_v22  ;;  %v8239_v16 = vmul.f32 %v8228_v22, %v2291_v5  ;;  %v10137_v10 = vld [vmem:[#allocation70_spill] sm:$0xff]  ;;  %v10139_v9 = vunpack.c.l.bf16 %v10138_v28  ;;  %v10141_v39 = vld [vmem:[#allocation33_spill] sm:$0xff]  ;;  %v10155_v14 = vld [vmem:[#allocation19_spill] sm:$0xff] }
 0x17b   : > { %v2313_v27 = vmul.f32 %v8228_v22, %v10136_v55  ;;  %v8243_v50 = vmul.f32 %v8228_v22, %v10137_v10  ;;  %v2317_v29 = vmul.f32 %v8228_v22, %v2292_v57  ;;  %v10140_v2 = vld [vmem:[#allocation66_spill] sm:$0xff]  ;;  %v10142_v45 = vunpack.c.l.bf16 %v10141_v39  ;;  %v10146_v57 = vld [vmem:[#allocation67_spill] sm:$0xff]  ;;  %v10161_v59 = vld [vmem:[#allocation72_spill] sm:$0xff] }
 0x17c   : > { %v2316_v33 = vmul.f32 %v8228_v22, %v10139_v9  ;;  %v2318_v54 = vmul.f32 %v10140_v2, %v8228_v22  ;;  %v2320_v5 = vmul.f32 %v8228_v22, %v2293_v35  ;;  %v10143_v63 = vld [vmem:[#allocation30_spill] sm:$0xff]  ;;  %v8263_v9 = vmul.f32 %v8228_v22, %v2294_v17  ;;  %v10168_v34 = vld [vmem:[#allocation31_spill] sm:$0xff] }
 0x17d   : > { %v2319_v55 = vmul.f32 %v8228_v22, %v10142_v45  ;;  %v8257_v58 = vmul.f32 %v8228_v22, %v10143_v63  ;;  %v10144_v10 = vld [vmem:[#allocation38_spill] sm:$0xff]  ;;  %v8267_v2 = vmul.f32 %v10146_v57, %v8228_v22  ;;  %v8275_v35 = vmul.f32 %v8228_v22, %v2295_v44  ;;  %v10149_v63 = vld [vmem:[#allocation71_spill] sm:$0xff] }
 0x17e   : > { %v10145_v53 = vunpack.c.l.bf16 %v10144_v10  ;;  %v10147_v39 = vld [vmem:[#allocation42_spill] sm:$0xff]  ;;  %v8279_v10 = vmul.f32 %v8228_v22, %v10149_v63  ;;  %v8287_v57 = vmul.f32 %v8228_v22, %v2296_v7  ;;  %v8299_v63 = vmul.f32 %v8228_v22, %v2297_v18 }
 0x17f   : > { %v10148_v4 = vunpack.c.l.bf16 %v10147_v39  ;;  %v10152_v39 = vld [vmem:[#allocation39_spill] sm:$0xff] }
 0x180   : > { %v2322_v28 = vmul.f32 %v8228_v22, %v10145_v53  ;;  %v10150_v53 = vld [vmem:[#allocation43_spill] sm:$0xff]  ;;  %v8291_v43 = vmul.f32 %v10152_v39, %v8228_v22  ;;  %v8311_v39 = vmul.f32 %v8228_v22, %v2298_v46 }
 0x181   : > { %v8272_v45 = vmul.f32 %v8228_v22, %v10148_v4  ;;  %v10151_v56 = vunpack.c.l.bf16 %v10150_v53  ;;  %v10153_v4 = vld [vmem:[#allocation26_spill] sm:$0xff]  ;;  %v8303_v53 = vmul.f32 %v8228_v22, %v10155_v14  ;;  %v8323_v14 = vmul.f32 %v8228_v22, %v2299_v25 }
 0x182   : > { %v10154_v49 = vunpack.c.l.bf16 %v10153_v4  ;;  %v10158_v4 = vld [vmem:[#allocation14_spill] sm:$0xff] }
 0x183   : > { %v8284_v17 = vmul.f32 %v8228_v22, %v10151_v56  ;;  %v10156_v56 = vld [vmem:[#allocation58_spill] sm:$0xff]  ;;  %v8315_v42 = vmul.f32 %v10158_v4, %v8228_v22  ;;  %v8335_v4 = vmul.f32 %v8228_v22, %v2300_v24 }
 0x184   : > { %v8296_v44 = vmul.f32 %v8228_v22, %v10154_v49  ;;  %v10157_v61 = vunpack.c.l.bf16 %v10156_v56  ;;  %v10159_v49 = vld [vmem:[#allocation59_spill] sm:$0xff]  ;;  %v8327_v56 = vmul.f32 %v8228_v22, %v10161_v59  ;;  %v8347_v59 = vmul.f32 %v8228_v22, %v2301_v3 }
 0x185   : > { %v10160_v12 = vunpack.c.l.bf16 %v10159_v49  ;;  %v10164_v49 = vld [vmem:[#allocation41_spill] sm:$0xff] }
 0x186   : > { %v8308_v7 = vmul.f32 %v8228_v22, %v10157_v61  ;;  %v10162_v61 = vld [vmem:[#allocation47_spill] sm:$0xff]  ;;  %v8339_v21 = vmul.f32 %v10164_v49, %v8228_v22  ;;  %v8359_v49 = vmul.f32 %v8228_v22, %v2302_v13  ;;  %v10180_v13 = vld [vmem:[#allocation8_spill] sm:$0xff] }
 0x187   : > { %v8320_v18 = vmul.f32 %v8228_v22, %v10160_v12  ;;  %v10163_v40 = vunpack.c.l.bf16 %v10162_v61  ;;  %v10165_v12 = vld [vmem:[#allocation49_spill] sm:$0xff]  ;;  %v8351_v61 = vmul.f32 %v8228_v22, %v10168_v34  ;;  %v8371_v34 = vmul.f32 %v8228_v22, %v2303_v23 }
 0x188   : > { %v10166_v36 = vunpack.c.l.bf16 %v10165_v12  ;;  %10173 = vst [vmem:[#allocation11_spill] sm:$0xff] %v8359_v49  ;;  %v10174_v12 = vld [vmem:[#allocation24_spill] sm:$0xff]  ;;  %v10181_v49 = vunpack.c.l.bf16 %v10180_v13  ;;  %v2413_v23 = vrot.slane %v8243_v50, 2  ;;  %v2422_v13 = vrot.slane %v2320_v5, 2 }
 0x189   : > { %v8332_v46 = vmul.f32 %v8228_v22, %v10163_v40  ;;  %10169 = vst [vmem:[#allocation9_spill] sm:$0xff] %v8351_v61  ;;  %v10170_v40 = vld [vmem:[#allocation54_spill] sm:$0xff]  ;;  %v8363_v38 = vmul.f32 %v10174_v12, %v8228_v22  ;;  %10179 = vst [vmem:[#allocation56_spill] sm:$0xff] %v8371_v34  ;;  %v8383_v12 = vmul.f32 %v8228_v22, %v2304_v11  ;;  %v2415_v34 = vrot.slane %v2316_v33, 2  ;;  %v10185_v33 = vld [vmem:[#allocation73_spill] sm:$0xff] }
 0x18a   : > { %v8344_v25 = vmul.f32 %v8228_v22, %v10166_v36  ;;  %v10171_v0 = vunpack.c.l.bf16 %v10170_v40  ;;  %v10176_v36 = vld [vmem:[#allocation51_spill] sm:$0xff]  ;;  %v8375_v40 = vmul.f32 %v8228_v22, %v7641_v62  ;;  %v8380_v61 = vmul.f32 %v8228_v22, %v10181_v49  ;;  %v10183_v62 = vld [vmem:[#allocation62_spill] sm:$0xff] }
 0x18b   : > { %10175 = vst [vmem:[#allocation25_spill] sm:$0xff] %v8363_v38  ;;  %v2418_v38 = vrot.slane %v2318_v54, 2  ;;  %v2423_v49 = vrot.slane %v8257_v58, 2  ;;  %v2425_v50 = vrot.slane %v2322_v28, 2  ;;  %v2428_v58 = vrot.slane %v8267_v2, 2 }
 0x18c   : > { %10167 = vst [vmem:[#allocation23_spill] sm:$0xff] %v8344_v25  ;;  %v8356_v24 = vmul.f32 %v8228_v22, %v10171_v0  ;;  %v10177_v25 = vunpack.c.l.bf16 %v10176_v36  ;;  %v2407_v0 = vrot.slane %v2311_v51, 2  ;;  %10182 = vst [vmem:[#allocation16_spill] sm:$0xff] %v8380_v61  ;;  %v2410_v36 = vrot.slane %v2313_v27, 2 }
 0x18d   : > { %v8389_v51 = vmul.f32 %v10183_v62, %v8228_v22  ;;  %v10184_v61 = vunpack.c.l.bf16 %v7833_v26  ;;  %v8398_v27 = vmul.f32 %v8228_v22, %v2305_v8  ;;  %v10186_v26 = vunpack.c.l.bf16 %v7839_v15 }
 0x18e   : > { %10172 = vst [vmem:[#allocation48_spill] sm:$0xff] %v8356_v24  ;;  %v8368_v3 = vmul.f32 %v8228_v22, %v10177_v25  ;;  %v2408_v24 = vrot.slane %v2312_v47, 2  ;;  %v2412_v25 = vrot.slane %v8239_v16, 2  ;;  %v2420_v47 = vrot.slane %v2319_v55, 2 }
 0x18f   : > { %v8395_v11 = vmul.f32 %v8228_v22, %v10184_v61  ;;  %v2427_v55 = vrot.slane %v8263_v9, 2  ;;  %v8411_v5 = vmul.f32 %v8228_v22, %v10186_v26  ;;  %v2416_v61 = vsel %vm1030_vm2, %v2413_v23, %v2415_v34 }
 0x190   : > { %10178 = vst [vmem:[#allocation13_spill] sm:$0xff] %v8368_v3  ;;  %v2417_v3 = vrot.slane %v2317_v29, 2  ;;  %v2409_v16 = vsel %vm1030_vm2, %v2407_v0, %v2408_v24  ;;  %v8403_v29 = vmul.f32 %v8228_v22, %v10185_v33  ;;  %v2411_v54 = vsel %vm1030_vm2, %v2408_v24, %v2410_v36 }
 0x191   : > { %v2414_v8 = vsel %vm1030_vm2, %v2412_v25, %v2413_v23  ;;  %v2421_v0 = vsel %vm1030_vm2, %v2418_v38, %v2420_v47  ;;  %v2424_v62 = vsel %vm1030_vm2, %v2422_v13, %v2423_v49  ;;  %v2430_v24 = vrot.slane %v8272_v45, 2 }
 0x192   : > { %v2419_v28 = vsel %vm1030_vm2, %v2417_v3, %v2418_v38  ;;  %v2519_v9 = vadd.f32 %v2409_v16, %v8106_v48  ;;  %v2426_v2 = vsel %vm1030_vm2, %v2423_v49, %v2425_v50  ;;  %v2432_v15 = vrot.slane %v8275_v35, 2  ;;  %v8427_v3 = vld [vmem:[%s10187_s3] ss:$0 sm:$0xff]  ;;  %s4094_s3 = sshll.u32 %s474_s2, 4  ;;  %s9206_s3 = int_to_ptr.vmem [resolvable:$true] %s4094_s3 }
 0x193   : > { %v2433_v22 = vrot.slane %v8279_v10, 2  ;;  %v2520_v36 = vadd.f32 %v2411_v54, %v8112_v19  ;;  %v2429_v38 = vsel %vm1030_vm2, %v2427_v55, %v2428_v58  ;;  %v2435_v34 = vrot.slane %v8284_v17, 2  ;;  %s5198_s18 = scalar_lea.vmem %s9206_s3, 16 }
 0x194   : > { %v2437_v45 = vrot.slane %v8287_v57, 2  ;;  %v2521_v48 = vadd.f32 %v2414_v8, %v8116_v52  ;;  %v2438_v25 = vrot.slane %v8291_v43, 2  ;;  %v2440_v35 = vrot.slane %v8296_v44, 2  ;;  %p5199_p11 = scmp.ne.s32.totalorder %s9206_s3, %s5198_s18 }
 0x195   : > { %v2442_v10 = vrot.slane %v8299_v63, 2  ;;  %v2522_v19 = vadd.f32 %v2416_v61, %v8119_v60  ;;  %v2443_v23 = vrot.slane %v8303_v53, 2  ;;  %v2445_v47 = vrot.slane %v8308_v7, 2 }
 0x196   : > { %v2523_v13 = vadd.f32 %v2419_v28, %v8122_v41  ;;  %v8441_v17 = vadd.f32 %v8427_v3, %v2519_v9  ;;  %v2431_v57 = vsel %vm1030_vm2, %v2428_v58, %v2430_v24  ;;  %v2434_v52 = vsel %vm1030_vm2, %v2432_v15, %v2433_v22  ;;  %p5200_p12 = pnand %p5199_p11, %p5378_p5 }
 0x197   : > { %v2524_v43 = vadd.f32 %v2421_v0, %v8125_v20  ;;  %v8447_v44 = vadd.f32 %v8427_v3, %v2520_v36  ;;  %v2436_v60 = vsel %vm1030_vm2, %v2433_v22, %v2435_v34  ;;  %v2447_v63 = vrot.slane %v8311_v39, 2 }
 0x198   : > { %v2448_v53 = vrot.slane %v8315_v42, 2  ;;  %v8453_v41 = vadd.f32 %v8427_v3, %v2521_v48  ;;  %v2439_v7 = vsel %vm1030_vm2, %v2437_v45, %v2438_v25  ;;  %v2441_v49 = vsel %vm1030_vm2, %v2438_v25, %v2440_v35  ;;  %v10190_v45 = vld [vmem:[#allocation60_spill] sm:$0xff]  ;;  %p5201_p13 = pneg %p5200_p12 }
 0x199   : > { %v2525_v16 = vadd.f32 %v2424_v62, %v8128_v1  ;;  %v8459_v20 = vadd.f32 %v8427_v3, %v2522_v19  ;;  %v8462_v50 = vsel %vm1030_vm2, %v2442_v10, %v2443_v23  ;;  %v8465_v33 = vsel %vm1030_vm2, %v2443_v23, %v2445_v47  ;;  %v10191_v19 = vld [vmem:[#allocation9_spill] sm:$0xff]  ;;  %v10192_v47 = vld [vmem:[#allocation48_spill] sm:$0xff] }
 0x19a   : > { %v8468_v42 = vadd.f32 %v8427_v3, %v2523_v13  ;;  %v4306_v39 = vmul.f32 -1.442695, %v8441_v17  ;;  %v2450_v54 = vrot.slane %v8320_v18, 2  ;;  %v2526_v55 = vadd.f32 %v2426_v2, %v8131_v37 }
 0x19b   : > { %v8474_v1 = vadd.f32 %v8427_v3, %v2524_v43  ;;  %v4307_v58 = vmul.f32 -1.442695, %v8447_v44  ;;  %v8478_v26 = vsel %vm1030_vm2, %v2447_v63, %v2448_v53  ;;  %v2452_v8 = vrot.slane %v8323_v14, 2 }
 0x19c   : > { %v2453_v61 = vrot.slane %v8327_v56, 2  ;;  %v4308_v28 = vmul.f32 -1.442695, %v8453_v41  ;;  %v2455_v0 = vrot.slane %v8332_v46, 2  ;;  %v2527_v18 = vadd.f32 %v2429_v38, %v8134_v6  ;;  %v10189_v38 = vld [vmem:[#allocation23_spill] sm:$0xff] }
 0x19d   : > { %v8486_v37 = vadd.f32 %v8427_v3, %v2525_v16  ;;  %v4309_v62 = vmul.f32 -1.442695, %v8459_v20  ;;  %v2457_v24 = vrot.slane %v8335_v4, 2  ;;  %v2528_v9 = vadd.f32 %v2431_v57, %v8137_v31  ;;  %v10188_v31 = vld [vmem:[#allocation52_spill] sm:$0xff] }
 0x19e   : > { %4930 = vpow2.f32 %v4306_v39  ;;  %v4310_v14 = vmul.f32 -1.442695, %v8468_v42  ;;  %v2529_v56 = vadd.f32 %v2434_v52, %v8140_v32  ;;  %v8494_v2 = vadd.f32 %v8427_v3, %v2526_v55 }
 0x19f   : > { %4932 = vpow2.f32 %v4307_v58  ;;  %v4311_v6 = vmul.f32 -1.442695, %v8474_v1  ;;  %v8498_v46 = vsel %vm1030_vm2, %v2448_v53, %v2450_v54  ;;  %v2458_v15 = vrot.slane %v8339_v21, 2  ;;  %v10194_v53 = vld [vmem:[#allocation25_spill] sm:$0xff] }
 0x1a0   : > { %v2530_v4 = vadd.f32 %v2436_v60, %v8143_v30  ;;  %4934 = vpow2.f32 %v4308_v28  ;;  %v2531_v22 = vadd.f32 %v2439_v7, %v10188_v31  ;;  %v8504_v36 = vadd.f32 %v8427_v3, %v2527_v18  ;;  %v10193_v60 = vld [vmem:[#allocation11_spill] sm:$0xff]  ;;  %v10195_v28 = vld [vmem:[#allocation13_spill] sm:$0xff] }
 0x1a1   : > { %4936 = vpow2.f32 %v4309_v62  ;;  %v4312_v32 = vmul.f32 -1.442695, %v8486_v37  ;;  %v2460_v34 = vrot.slane %v10189_v38, 2  ;;  %v2532_v48 = vadd.f32 %v2441_v49, %v10190_v45  ;;  %v10198_v38 = vld [vmem:[#allocation16_spill] sm:$0xff]  ;;  %v10199_v45 = vld [vmem:[#allocation21_spill] sm:$0xff] }
 0x1a2   : > { %v8510_v25 = vadd.f32 %v8427_v3, %v2528_v9  ;;  %4938 = vpow2.f32 %v4310_v14  ;;  %v2462_v21 = vrot.slane %v8347_v59, 2  ;;  %v8514_v30 = vadd.f32 %v8427_v3, %v2529_v56  ;;  %v10197_v14 = vld [vmem:[#allocation10_spill] sm:$0xff] }
 0x1a3   : > { %4940 = vpow2.f32 %v4311_v6  ;;  %v4313_v35 = vmul.f32 -1.442695, %v8494_v2  ;;  %v2454_v10 = vsel %vm1030_vm2, %v2452_v8, %v2453_v61  ;;  %v2463_v23 = vrot.slane %v10191_v19, 2 }
 0x1a4   : > { %v2465_v13 = vrot.slane %v10192_v47, 2  ;;  %v8521_v57 = vadd.f32 %v8427_v3, %v2530_v4  ;;  %v8524_v52 = vsel %vm1030_vm2, %v2453_v61, %v2455_v0  ;;  %v8527_v59 = vadd.f32 %v8427_v3, %v2531_v22  ;;  %v10200_v47 = vld [vmem:[#allocation27_spill] sm:$0xff] }
 0x1a5   : > { %4942 = vpow2.f32 %v4312_v32  ;;  %v4314_v43 = vmul.f32 -1.442695, %v8504_v36  ;;  %v2467_v63 = vrot.slane %v10193_v60, 2  ;;  %v2468_v7 = vrot.slane %v10194_v53, 2 }
 0x1a6   : > { %v8533_v49 = vadd.f32 %v8427_v3, %v2532_v48  ;;  %v4315_v16 = vmul.f32 -1.442695, %v8510_v25  ;;  %v8537_v39 = vsel %vm1030_vm2, %v2457_v24, %v2458_v15  ;;  %v8540_v54 = vsel %vm1030_vm2, %v2458_v15, %v2460_v34  ;;  %v10196_v24 = vld [vmem:[#allocation56_spill] sm:$0xff] }
 0x1a7   : > { %4944 = vpow2.f32 %v4313_v35  ;;  %v4316_v55 = vmul.f32 -1.442695, %v8514_v30  ;;  %v8544_v8 = vsel %vm1030_vm2, %v2462_v21, %v2463_v23  ;;  %v8547_v61 = vsel %vm1030_vm2, %v2463_v23, %v2465_v13 }
 0x1a8   : > { %v4931_v58 = vpop.eup %4930  ;;  %v2470_v0 = vrot.slane %v10195_v28, 2  ;;  %v4317_v18 = vmul.f32 -1.442695, %v8521_v57  ;;  %v2472_v9 = vrot.slane %v10196_v24, 2  ;;  %v2533_v56 = vadd.f32 %v8462_v50, %v10197_v14 }
 0x1a9   : > { %v4933_v62 = vpop.eup %4932  ;;  %4946 = vpow2.f32 %v4314_v43  ;;  %v4318_v6 = vmul.f32 -1.442695, %v8527_v59  ;;  %v8556_v4 = vsel %vm1030_vm2, %v2467_v63, %v2468_v7  ;;  %v2473_v31 = vrot.slane %v8375_v40, 2 }
 0x1aa   : > { %v4935_v15 = vpop.eup %4934  ;;  %4948 = vpow2.f32 %v4315_v16  ;;  %v4319_v22 = vmul.f32 -1.442695, %v8533_v49  ;;  %v2475_v34 = vrot.slane %v10198_v38, 2  ;;  %v2534_v48 = vadd.f32 %v8465_v33, %v10199_v45  ;;  %v10201_v16 = vld [vmem:[#allocation46_spill] sm:$0xff] }
 0x1ab   : > { %v4937_v32 = vpop.eup %4936  ;;  %4950 = vpow2.f32 %v4316_v55  ;;  %v2686_v50 = vadd.f32 1.0, %v4931_v58  ;;  %v8564_v35 = vsel %vm1030_vm2, %v2468_v7, %v2470_v0  ;;  %v2477_v19 = vrot.slane %v8383_v12, 2 }
 0x1ac   : > { %v4939_v21 = vpop.eup %4938  ;;  %4952 = vpow2.f32 %v4317_v18  ;;  %v2687_v23 = vadd.f32 1.0, %v4933_v62  ;;  %v2535_v13 = vadd.f32 %v8478_v26, %v10200_v47  ;;  %v8570_v43 = vadd.f32 %v8427_v3, %v2533_v56 }
 0x1ad   : > { %v4941_v40 = vpop.eup %4940  ;;  %4954 = vpow2.f32 %v4318_v6  ;;  %v2688_v60 = vadd.f32 1.0, %v4935_v15  ;;  %v2478_v33 = vrot.slane %v8389_v51, 2  ;;  %v2480_v63 = vrot.slane %v8395_v11, 2  ;;  %v10202_v11 = vld [vmem:[#allocation12_spill] sm:$0xff] }
 0x1ae   : > { %4956 = vpow2.f32 %v4319_v22  ;;  %v2689_v53 = vadd.f32 1.0, %v4937_v32  ;;  %v2536_v12 = vadd.f32 %v8498_v46, %v10201_v16  ;;  %v8577_v55 = vadd.f32 %v8427_v3, %v2534_v48 }
 0x1af   : > { %v4943_v7 = vpop.eup %4942  ;;  %v2690_v58 = vadd.f32 1.0, %v4939_v21  ;;  %4958 = vrcp.f32 %v2686_v50  ;;  %v8580_v26 = vsel %vm1030_vm2, %v2472_v9, %v2473_v31  ;;  %v2482_v28 = vrot.slane %v8398_v27, 2  ;;  %v10203_v27 = vld [vmem:[#allocation57_spill] sm:$0xff] }
 0x1b0   : > { %v2691_v0 = vadd.f32 1.0, %v4941_v40  ;;  %4960 = vrcp.f32 %v2687_v23  ;;  %v2537_v18 = vadd.f32 %v2454_v10, %v10202_v11  ;;  %v8585_v62 = vadd.f32 %v8427_v3, %v2535_v13  ;;  %v10205_v40 = vld [vmem:[#allocation64_spill] sm:$0xff] }
 0x1b1   : > { %v4945_v51 = vpop.eup %4944  ;;  %v4320_v46 = vmul.f32 -1.442695, %v8570_v43  ;;  %4962 = vrcp.f32 %v2688_v60  ;;  %v8589_v24 = vsel %vm1030_vm2, %v2473_v31, %v2475_v34  ;;  %v2483_v14 = vrot.slane %v8403_v29, 2  ;;  %v10204_v34 = vld [vmem:[#allocation28_spill] sm:$0xff] }
 0x1b2   : > { %v2692_v9 = vadd.f32 1.0, %v4943_v7  ;;  %4964 = vrcp.f32 %v2689_v53  ;;  %v2538_v6 = vadd.f32 %v8524_v52, %v10203_v27  ;;  %v8595_v15 = vadd.f32 %v8427_v3, %v2536_v12  ;;  %v10207_v12 = vld [vmem:[#allocation65_spill] sm:$0xff] }
 0x1b3   : > { %v4947_v56 = vpop.eup %4946  ;;  %v4321_v10 = vmul.f32 -1.442695, %v8577_v55  ;;  %4966 = vrcp.f32 %v2690_v58  ;;  %v8599_v32 = vsel %vm1030_vm2, %v2477_v19, %v2478_v33  ;;  %v2485_v31 = vrot.slane %v8411_v5, 2 }
 0x1b4   : > { %v4949_v22 = vpop.eup %4948  ;;  %v2693_v38 = vadd.f32 1.0, %v4945_v51  ;;  %4968 = vrcp.f32 %v2691_v0  ;;  %v2539_v45 = vadd.f32 %v8537_v39, %v10204_v34  ;;  %v8605_v52 = vadd.f32 %v8427_v3, %v2537_v18  ;;  %v10208_v51 = vld [vmem:[#allocation29_spill] sm:$0xff] }
 0x1b5   : > { %v4951_v29 = vpop.eup %4950  ;;  %4970 = vpow2.f32 %v4320_v46  ;;  %v4322_v48 = vmul.f32 -1.442695, %v8585_v62  ;;  %v8609_v21 = vsel %vm1030_vm2, %v2478_v33, %v2480_v63  ;;  %v8612_v19 = vsel %vm1030_vm2, %v2482_v28, %v2483_v14  ;;  %v10206_v33 = vld [vmem:[#allocation15_spill] sm:$0xff] }
 0x1b6   : > { %v4953_v50 = vpop.eup %4952  ;;  %v2694_v5 = vadd.f32 1.0, %v4947_v56  ;;  %4972 = vrcp.f32 %v2692_v9  ;;  %v2540_v47 = vadd.f32 %v8540_v54, %v10205_v40  ;;  %v8617_v39 = vadd.f32 %v8427_v3, %v2538_v6  ;;  %v10210_v40 = vld [vmem:[#allocation74_spill] sm:$0xff] }
 0x1b7   : > { %v4955_v23 = vpop.eup %4954  ;;  %4974 = vpow2.f32 %v4321_v10  ;;  %v4323_v13 = vmul.f32 -1.442695, %v8595_v15  ;;  %v8621_v53 = vsel %vm1030_vm2, %v2483_v14, %v2485_v31  ;;  %v2541_v63 = vadd.f32 %v8544_v8, %v10206_v33 }
 0x1b8   : > { %v4957_v60 = vpop.eup %4956  ;;  %v2695_v7 = vadd.f32 1.0, %v4949_v22  ;;  %4976 = vrcp.f32 %v2693_v38  ;;  %v2542_v58 = vadd.f32 %v8547_v61, %v10207_v12  ;;  %v8628_v54 = vadd.f32 %v8427_v3, %v2539_v45  ;;  %v10209_v38 = vld [vmem:[#allocation17_spill] sm:$0xff] }
 0x1b9   : > { %v4959_v16 = vpop.eup %4958  ;;  %4978 = vpow2.f32 %v4322_v48  ;;  %v4324_v28 = vmul.f32 -1.442695, %v8605_v52  ;;  %v2543_v11 = vadd.f32 %v8556_v4, %v10208_v51  ;;  %v2696_v18 = vadd.f32 1.0, %v4951_v29 }
 0x1ba   : > { %v4961_v0 = vpop.eup %4960  ;;  %4980 = vrcp.f32 %v2694_v5  ;;  %v8634_v8 = vmul.f32 %v4959_v16, %v8441_v17  ;;  %v8637_v14 = vadd.f32 %v8427_v3, %v2540_v47  ;;  %v4325_v61 = vmul.f32 -1.442695, %v8617_v39  ;;  %v10211_v16 = vld [vmem:[#allocation32_spill] sm:$0xff] }
 0x1bb   : > { %v4963_v46 = vpop.eup %4962  ;;  %4982 = vpow2.f32 %v4323_v13  ;;  %v8641_v9 = vmul.f32 %v4961_v0, %v8447_v44  ;;  %v8644_v27 = vadd.f32 %v8427_v3, %v2541_v63  ;;  %v2697_v4 = vadd.f32 1.0, %v4953_v50 }
 0x1bc   : > { %v4965_v56 = vpop.eup %4964  ;;  %4984 = vrcp.f32 %v2695_v7  ;;  %v8647_v6 = vmul.f32 %v4963_v46, %v8453_v41  ;;  %v4326_v10 = vmul.f32 -1.442695, %v8628_v54  ;;  %v2544_v29 = vadd.f32 %v8564_v35, %v10209_v38 }
 0x1bd   : > { %v4967_v17 = vpop.eup %4966  ;;  %4986 = vpow2.f32 %v4324_v28  ;;  %v8651_v22 = vmul.f32 %v4965_v56, %v8459_v20  ;;  %v2814_v44 = vadd.f32 %v8641_v9, %v8634_v8  ;;  %v8658_v34 = vadd.f32 %v8427_v3, %v2542_v58 }
 0x1be   : > { %v4969_v31 = vpop.eup %4968  ;;  %v2698_v45 = vadd.f32 1.0, %v4955_v23  ;;  %4988 = vrcp.f32 %v2696_v18  ;;  %v4327_v48 = vmul.f32 -1.442695, %v8637_v14  ;;  %v8662_v50 = vmul.f32 %v4967_v17, %v8468_v42 }
 0x1bf   : > { %v4971_v41 = vpop.eup %4970  ;;  %4990 = vpow2.f32 %v4325_v61  ;;  %v2815_v20 = vadd.f32 %v2814_v44, %v8647_v6  ;;  %v2545_v47 = vadd.f32 %v8580_v26, %v10210_v40  ;;  %v8668_v35 = vadd.f32 %v8427_v3, %v2543_v11  ;;  %v10212_v11 = vld [vmem:[#allocation75_spill] sm:$0xff] }
 0x1c0   : > { %v4973_v5 = vpop.eup %4972  ;;  %v2699_v13 = vadd.f32 1.0, %v4957_v60  ;;  %4992 = vrcp.f32 %v2697_v4  ;;  %v4328_v33 = vmul.f32 -1.442695, %v8644_v27  ;;  %v8672_v63 = vmul.f32 %v4969_v31, %v8474_v1 }
 0x1c1   : > { %v4975_v23 = vpop.eup %4974  ;;  %4994 = vpow2.f32 %v4326_v10  ;;  %v2816_v42 = vadd.f32 %v2815_v20, %v8651_v22  ;;  %v2546_v12 = vadd.f32 %v8589_v24, %v10211_v16  ;;  %v8678_v26 = vadd.f32 %v8427_v3, %v2544_v29  ;;  %v10213_v10 = vld [vmem:[#allocation76_spill] sm:$0xff] }
 0x1c2   : > { %v4977_v7 = vpop.eup %4976  ;;  %v2700_v58 = vadd.f32 1.0, %v4971_v41  ;;  %4996 = vrcp.f32 %v2698_v45  ;;  %v4329_v28 = vmul.f32 -1.442695, %v8658_v34  ;;  %v8682_v0 = vmul.f32 %v4973_v5, %v8486_v37 }
 0x1c3   : > { %v4979_v60 = vpop.eup %4978  ;;  %4998 = vpow2.f32 %v4327_v48  ;;  %v2817_v1 = vadd.f32 %v2816_v42, %v8662_v50  ;;  %v2547_v18 = vadd.f32 %v8599_v32, %v10212_v11  ;;  %v8688_v24 = vadd.f32 %v8427_v3, %v2545_v47  ;;  %v10214_v48 = vld [vmem:[#allocation40_spill] sm:$0xff] }
 0x1c4   : > { %v4981_v51 = vpop.eup %4980  ;;  %v2701_v46 = vadd.f32 1.0, %v4975_v23  ;;  %5000 = vrcp.f32 %v2699_v13  ;;  %v4330_v56 = vmul.f32 -1.442695, %v8668_v35  ;;  %v8692_v4 = vmul.f32 %v4977_v7, %v8494_v2 }
 0x1c5   : > { %v4983_v61 = vpop.eup %4982  ;;  %5002 = vpow2.f32 %v4328_v33  ;;  %v2818_v37 = vadd.f32 %v2817_v1, %v8672_v63  ;;  %v2548_v44 = vadd.f32 %v8609_v21, %v10213_v10  ;;  %v8698_v32 = vadd.f32 %v8427_v3, %v2546_v12  ;;  %v10215_v33 = vld [vmem:[#allocation7_spill] sm:$0xff] }
 0x1c6   : > { %v4985_v17 = vpop.eup %4984  ;;  %v2702_v31 = vadd.f32 1.0, %v4979_v60  ;;  %5004 = vrcp.f32 %v2700_v58  ;;  %v4331_v29 = vmul.f32 -1.442695, %v8678_v26  ;;  %v8702_v45 = vmul.f32 %v4981_v51, %v8504_v36 }
 0x1c7   : > { %v4987_v38 = vpop.eup %4986  ;;  %5006 = vpow2.f32 %v4329_v28  ;;  %v2819_v2 = vadd.f32 %v2818_v37, %v8682_v0  ;;  %v2549_v20 = vadd.f32 %v8612_v19, %v10214_v48  ;;  %v8708_v21 = vadd.f32 %v8427_v3, %v2547_v18 }
 0x1c8   : > { %v4989_v41 = vpop.eup %4988  ;;  %v2703_v5 = vadd.f32 1.0, %v4983_v61  ;;  %5008 = vrcp.f32 %v2701_v46  ;;  %v4332_v47 = vmul.f32 -1.442695, %v8688_v24  ;;  %v8712_v13 = vmul.f32 %v4985_v17, %v8510_v25 }
 0x1c9   : > { %v4991_v40 = vpop.eup %4990  ;;  %5010 = vpow2.f32 %v4330_v56  ;;  %v2820_v36 = vadd.f32 %v2819_v2, %v8692_v4  ;;  %v2550_v42 = vadd.f32 %v8621_v53, %v10215_v33  ;;  %v8718_v19 = vadd.f32 %v8427_v3, %v2548_v44 }
 0x1ca   : > { %v4993_v23 = vpop.eup %4992  ;;  %v2704_v7 = vadd.f32 1.0, %v4987_v38  ;;  %5012 = vrcp.f32 %v2702_v31  ;;  %v4333_v12 = vmul.f32 -1.442695, %v8698_v32  ;;  %v8722_v58 = vmul.f32 %v4989_v41, %v8514_v30 }
 0x1cb   : > { %v4995_v16 = vpop.eup %4994  ;;  %5014 = vpow2.f32 %v4331_v29  ;;  %v2821_v25 = vadd.f32 %v2820_v36, %v8702_v45  ;;  %v8726_v28 = vadd.f32 %v8427_v3, %v2549_v20  ;;  %v2705_v1 = vadd.f32 1.0, %v4991_v40 }
 0x1cc   : > { %v4997_v60 = vpop.eup %4996  ;;  %5016 = vrcp.f32 %v2703_v5  ;;  %v4334_v51 = vmul.f32 -1.442695, %v8708_v21  ;;  %v8730_v11 = vmul.f32 %v4993_v23, %v8521_v57  ;;  %v8734_v30 = vadd.f32 %v8427_v3, %v2550_v42 }
 0x1cd   : > { %v4999_v53 = vpop.eup %4998  ;;  %5018 = vpow2.f32 %v4332_v47  ;;  %v2822_v18 = vadd.f32 %v2821_v25, %v8712_v13  ;;  %v2706_v61 = vadd.f32 1.0, %v4995_v16  ;;  %v4335_v37 = vmul.f32 -1.442695, %v8718_v19 }
 0x1ce   : > { %v5001_v46 = vpop.eup %5000  ;;  %5020 = vrcp.f32 %v2704_v7  ;;  %v8738_v17 = vmul.f32 %v4997_v60, %v8527_v59  ;;  %v2707_v57 = vadd.f32 1.0, %v4999_v53  ;;  %v4336_v38 = vmul.f32 -1.442695, %v8726_v28 }
 0x1cf   : > { %v5003_v56 = vpop.eup %5002  ;;  %5022 = vpow2.f32 %v4333_v12  ;;  %v2823_v10 = vadd.f32 %v2822_v18, %v8722_v58  ;;  %v8743_v3 = vmul.f32 %v5001_v46, %v8533_v49  ;;  %v4337_v59 = vmul.f32 -1.442695, %v8734_v30 }
 0x1d0   : > { %v5005_v44 = vpop.eup %5004  ;;  %5024 = vrcp.f32 %v2705_v1  ;;  %v2708_v41 = vadd.f32 1.0, %v5003_v56 }
 0x1d1   : > { %v5007_v31 = vpop.eup %5006  ;;  %5026 = vpow2.f32 %v4334_v51  ;;  %v2824_v29 = vadd.f32 %v2823_v10, %v8730_v11  ;;  %v8748_v20 = vmul.f32 %v5005_v44, %v8570_v43 }
 0x1d2   : > { %v5009_v2 = vpop.eup %5008  ;;  %5028 = vrcp.f32 %v2706_v61  ;;  %v2709_v47 = vadd.f32 1.0, %v5007_v31 }
 0x1d3   : > { %v5011_v48 = vpop.eup %5010  ;;  %5030 = vpow2.f32 %v4335_v37  ;;  %v2825_v5 = vadd.f32 %v2824_v29, %v8738_v17  ;;  %v8752_v49 = vmul.f32 %v5009_v2, %v8577_v55 }
 0x1d4   : > { %v5013_v40 = vpop.eup %5012  ;;  %5032 = vrcp.f32 %v2707_v57  ;;  %v2710_v42 = vadd.f32 1.0, %v5011_v48 }
 0x1d5   : > { %v5015_v36 = vpop.eup %5014  ;;  %5034 = vpow2.f32 %v4336_v38  ;;  %v2826_v23 = vadd.f32 %v2825_v5, %v8743_v3  ;;  %v8756_v43 = vmul.f32 %v5013_v40, %v8585_v62 }
 0x1d6   : > { %v5017_v33 = vpop.eup %5016  ;;  %5036 = vrcp.f32 %v2708_v41  ;;  %v2711_v25 = vadd.f32 1.0, %v5015_v36 }
 0x1d7   : > { %v5019_v7 = vpop.eup %5018  ;;  %5038 = vpow2.f32 %v4337_v59  ;;  %v2827_v16 = vadd.f32 %v2826_v23, %v8748_v20  ;;  %v8760_v1 = vmul.f32 %v5017_v33, %v8595_v15 }
 0x1d8   : > { %v5021_v12 = vpop.eup %5020  ;;  %5040 = vrcp.f32 %v2709_v47  ;;  %v2712_v51 = vadd.f32 1.0, %v5019_v7 }
 0x1d9   : > { %v5023_v60 = vpop.eup %5022  ;;  %v2828_v55 = vadd.f32 %v2827_v16, %v8752_v49  ;;  %5042 = vrcp.f32 %v2710_v42  ;;  %v8764_v46 = vmul.f32 %v5021_v12, %v8605_v52 }
 0x1da   : > { %v5025_v53 = vpop.eup %5024  ;;  %v2713_v56 = vadd.f32 1.0, %v5023_v60  ;;  %5044 = vrcp.f32 %v2711_v25 }
 0x1db   : > { %v5027_v18 = vpop.eup %5026  ;;  %v2829_v62 = vadd.f32 %v2828_v55, %v8756_v43  ;;  %v8768_v10 = vmul.f32 %v5025_v53, %v8617_v39  ;;  %5046 = vrcp.f32 %v2712_v51 }
 0x1dc   : > { %v5029_v61 = vpop.eup %5028  ;;  %v2714_v57 = vadd.f32 1.0, %v5027_v18  ;;  %5048 = vrcp.f32 %v2713_v56 }
 0x1dd   : > { %v5031_v37 = vpop.eup %5030  ;;  %v2830_v15 = vadd.f32 %v2829_v62, %v8760_v1  ;;  %v8772_v38 = vmul.f32 %v5029_v61, %v8628_v54 }
 0x1de   : > { %v5033_v44 = vpop.eup %5032  ;;  %v2715_v2 = vadd.f32 1.0, %v5031_v37  ;;  %5050 = vrcp.f32 %v2714_v57 }
 0x1df   : > { %v5035_v31 = vpop.eup %5034  ;;  %v2831_v52 = vadd.f32 %v2830_v15, %v8764_v46  ;;  %v8776_v48 = vmul.f32 %v5033_v44, %v8637_v14 }
 0x1e0   : > { %v5037_v29 = vpop.eup %5036  ;;  %v2716_v5 = vadd.f32 1.0, %v5035_v31  ;;  %5052 = vrcp.f32 %v2715_v2 }
 0x1e1   : > { %v5039_v41 = vpop.eup %5038  ;;  %v2832_v39 = vadd.f32 %v2831_v52, %v8768_v10  ;;  %v8780_v40 = vmul.f32 %v5037_v29, %v8644_v27 }
 0x1e2   : > { %v5041_v59 = vpop.eup %5040  ;;  %v2717_v36 = vadd.f32 1.0, %v5039_v41  ;;  %5054 = vrcp.f32 %v2716_v5  ;;  %v4899_v5 = vld [vmem:[%s9252_s6 + $0x8] sm:$0xff]  }
 0x1e3   : > { %v2833_v54 = vadd.f32 %v2832_v39, %v8772_v38  ;;  %v5043_v47 = vpop.eup %5042  ;;  %v8784_v23 = vmul.f32 %v5041_v59, %v8658_v34  ;;  %v10216_v59 = vmov 0.0  }
 0x1e4   : > { %v5045_v14 = vpop.eup %5044  ;;  %v8788_v42 = vmul.f32 %v5043_v47, %v8668_v35  ;;  %5056 = vrcp.f32 %v2717_v36  ;;  %v4901_v47 = vld [vmem:[%s9252_s6 + $0x18] sm:$0xff]   ;;  %v4902_v36 = vld [vmem:[%s9252_s6 + $0x20] sm:$0xff]  }
 0x1e5   : > { %v2834_v33 = vadd.f32 %v2833_v54, %v8776_v48  ;;  %v5047_v16 = vpop.eup %5046  ;;  %v8792_v27 = vmul.f32 %v5045_v14, %v8678_v26  ;;  %v4900_v54 = vld [vmem:[%s9252_s6 + $0x10] sm:$0xff]  }
 0x1e6   : > { %v5049_v25 = vpop.eup %5048  ;;  %v8796_v34 = vmul.f32 %v5047_v16, %v8688_v24  ;;  %v4904_v14 = vld [vmem:[%s9252_s6 + $0x30] sm:$0xff]   ;;  %v2870_v16 = vld [vmem:[%s9251_s5] sm:$0x1] }
 0x1e7   : > { %v2835_v7 = vadd.f32 %v2834_v33, %v8780_v40  ;;  %v8800_v53 = vmul.f32 %v5049_v25, %v8698_v32  ;;  %v4903_v33 = vld [vmem:[%s9252_s6 + $0x28] sm:$0xff]  }
 0x1e8   : > { %v5051_v55 = vpop.eup %5050 }
 0x1e9   : > { %v2836_v12 = vadd.f32 %v2835_v7, %v8784_v23  ;;  %v8804_v18 = vmul.f32 %v5051_v55, %v8708_v21  ;;  %v4905_v7 = vld [vmem:[%s9252_s6 + $0x38] sm:$0xff]  }
 0x1ea   : > { %v5053_v51 = vpop.eup %5052 }
 0x1eb   : > { %v2837_v60 = vadd.f32 %v2836_v12, %v8788_v42  ;;  %v8808_v61 = vmul.f32 %v5053_v51, %v8718_v19 }
 0x1ec   : > { %v5055_v62 = vpop.eup %5054 }
 0x1ed   : > { %v2838_v35 = vadd.f32 %v2837_v60, %v8792_v27  ;;  %v8812_v37 = vmul.f32 %v5055_v62, %v8726_v28 }
 0x1ee   : > { %v5057_v56 = vpop.eup %5056 }
 0x1ef   : > { %v2839_v26 = vadd.f32 %v2838_v35, %v8796_v34  ;;  %v8816_v15 = vmul.f32 %v5057_v56, %v8734_v30  ;;  %v4898_v30 = vld [vmem:[%s9252_s6] sm:$0xff]  }
 0x1f0   : > { %4713 = vmatpush3.bf16.msra.mxu1 %v4898_v30  ;;  %v4917_v30 = vld [vmem:[%s9256_s10 + $0x18] sm:$0xff]  }
 0x1f1   : > { %v2840_v24 = vadd.f32 %v2839_v26, %v8800_v53  ;;  %4714 = vmatprep.subr.bf16.mxu1 %v10216_v59 }
 0x1f3   : > { %v2841_v32 = vadd.f32 %v2840_v24, %v8804_v18 }
 0x1f4   : > { %4715 = vmatpush3.bf16.msra.mxu1 %v4899_v5  ;;  %v4918_v5 = vld [vmem:[%s9256_s10 + $0x20] sm:$0xff]  }
 0x1f5   : > { %v2842_v21 = vadd.f32 %v2841_v32, %v8808_v61  ;;  %4716 = vmatprep.subr.bf16.mxu1 %v10216_v59 }
 0x1f7   : > { %v2843_v44 = vadd.f32 %v2842_v21, %v8812_v37  ;;  %v4906_v21 = vld [vmem:[%s9254_s8] sm:$0xff]  }
 0x1f8   : > { %4717 = vmatpush3.bf16.msra.mxu1 %v4900_v54  ;;  %4732 = vmatprep.subr.bf16.mxu0 %v4906_v21  ;;  %v4919_v54 = vld [vmem:[%s9256_s10 + $0x28] sm:$0xff]  }
 0x1f9   : > { %v2844_v57 = vadd.f32 %v2843_v44, %v8816_v15  ;;  %4718 = vmatprep.subr.bf16.mxu1 %v10216_v59  ;;  %v4907_v44 = vld [vmem:[%s9254_s8 + $0x8] sm:$0xff]  }
 0x1fb   : > { %v2845_v31 = vrot.slane %v2844_v57, 4 }
 0x1fc   : > { %4719 = vmatpush3.bf16.msra.mxu1 %v4901_v47  ;;  %v2983_v47 = vld [vmem:[%s9253_s7] sm:$0x1] }
 0x1fd   : > { %v2846_v19 = vadd.f32 %v2845_v31, %v2844_v57  ;;  %4720 = vmatprep.subr.bf16.mxu1 %v10216_v59  ;;  %v4908_v57 = vld [vmem:[%s9254_s8 + $0x10] sm:$0xff]   ;;  %v4909_v31 = vld [vmem:[%s9254_s8 + $0x18] sm:$0xff]  }
 0x1ff   : > { %v2847_v52 = vrot.slane %v2846_v19, 2 }
 0x200   : > { %4721 = vmatpush3.bf16.msra.mxu1 %v4902_v36 }
 0x201   : > { %v2848_v29 = vadd.f32 %v2847_v52, %v2846_v19  ;;  %4722 = vmatprep.subr.bf16.mxu1 %v10216_v59  ;;  %v4910_v19 = vld [vmem:[%s9254_s8 + $0x20] sm:$0xff]   ;;  %v4911_v52 = vld [vmem:[%s9254_s8 + $0x28] sm:$0xff]  }
 0x203   : > { %v2849_v2 = vrot.slane %v2848_v29, 1 }
 0x204   : > { %4723 = vmatpush3.bf16.msra.mxu1 %v4903_v33 }
 0x205   : > { %v2850_v41 = vadd.f32 %v2849_v2, %v2848_v29  ;;  %4724 = vmatprep.subr.bf16.mxu1 %v10216_v59  ;;  %v4912_v29 = vld [vmem:[%s9254_s8 + $0x30] sm:$0xff]   ;;  %v4913_v2 = vld [vmem:[%s9254_s8 + $0x38] sm:$0xff]  }
 0x207   : > { %v2852_v39 = vmul.f32 0.00390625, %v2850_v41  ;;  %v4914_v41 = vld [vmem:[%s9256_s10] sm:$0xff]  }
 0x208   : > { %4725 = vmatpush3.bf16.msra.mxu1 %v4904_v14 }
 0x209   : > { %v2853_v28 = vpack.c.bf16 %v2852_v39, %v2852_v39  ;;  %4726 = vmatprep.subr.bf16.mxu1 %v10216_v59  ;;  %v4915_v39 = vld [vmem:[%s9256_s10 + $0x8] sm:$0xff]  }
 0x20b   : > { %4709 = vmatmul.mubr.bf16.vlgmr.msra.gmra.mrb[0].mxu0 %v2853_v28  ;;  %v4916_v28 = vld [vmem:[%s9256_s10 + $0x10] sm:$0xff]  }
 0x20c   : > { %4727 = vmatpush3.bf16.msra.mxu1 %v4905_v7  ;;  %4733 = vmatpush3.bf16.msra.mxu0 %v4906_v21 }
 0x20d   : > { %4734 = vmatprep.subr.bf16.mxu0 %v4907_v44  ;;  %4780 = vmatprep.subr.bf16.mxu1 %v4914_v41 }
 0x210   : > { %4735 = vmatpush3.bf16.msra.mxu0 %v4907_v44 }
 0x211   : > { %4736 = vmatprep.subr.bf16.mxu0 %v4908_v57 }
 0x214   : > { %4737 = vmatpush3.bf16.msra.mxu0 %v4908_v57 }
 0x215   : > { %4738 = vmatprep.subr.bf16.mxu0 %v4909_v31 }
 0x218   : > { %4739 = vmatpush3.bf16.msra.mxu0 %v4909_v31 }
 0x219   : > { %4740 = vmatprep.subr.bf16.mxu0 %v4910_v19 }
 0x21c   : > { %4741 = vmatpush3.bf16.msra.mxu0 %v4910_v19 }
 0x21d   : > { %4742 = vmatprep.subr.bf16.mxu0 %v4911_v52 }
 0x220   : > { %4743 = vmatpush3.bf16.msra.mxu0 %v4911_v52 }
 0x221   : > { %4744 = vmatprep.subr.bf16.mxu0 %v4912_v29 }
 0x224   : > { %4745 = vmatpush3.bf16.msra.mxu0 %v4912_v29 }
 0x225   : > { %4746 = vmatprep.subr.bf16.mxu0 %v4913_v2 }
 0x228   : > { %4747 = vmatpush3.bf16.msra.mxu0 %v4913_v2 }
 0x229   : > { %4828 = vmatprep.subr.bf16.mxu0 %v10216_v59 }
 0x2de   : > { %v2953_v12 = vpop.f32.mrb[0].mxu0 }
 0x2df   : > { %v2954_v25 = vadd.f32 %v2953_v12, %v2870_v16  ;;  %v4710_v60 = vpop.f32.mrb[1].mxu0 }
 0x2e0   : > { %v2956_v55 = vpop.f32.mrb[2].mxu0 }
 0x2e1   : > { %v4346_v35 = vmul.f32 -1.442695, %v2954_v25  ;;  %v4711_v51 = vpop.f32.mrb[3].mxu0  ;;  %v3078_v55 = vlaneseq }
 0x2e3   : > { %5058 = vpow2.f32 %v4346_v35  ;;  %v3079_v35 = vshrl.u32 %v3078_v55, 7 }
 0x2e5   : > { %v3080_v51 = vsub.s32 0, %v3079_v35 }
 0x2ed   : > { %v5059_v26 = vpop.eup %5058 }
 0x2ee   : > { %v2962_v62 = vadd.f32 1.0, %v5059_v26 }
 0x2f0   : > { %5060 = vrcp.f32 %v2962_v62 }
 0x2fa   : > { %v5061_v24 = vpop.eup %5060 }
 0x2fb   : > { %v2965_v56 = vmul.f32 %v5061_v24, %v2954_v25 }
 0x2fd   : > { %v2966_v32 = vpack.c.bf16 %v2965_v56, %v2965_v56 }
 0x2ff   : > { %4729 = vmatmul.mubr.bf16.vlgmr.msra.gmra.mrb[0].mxu1 %v2966_v32 }
 0x300   : > { %4781 = vmatpush3.bf16.msra.mxu1 %v4914_v41 }
 0x301   : > { %4782 = vmatprep.subr.bf16.mxu1 %v4915_v39 }
 0x304   : > { %4783 = vmatpush3.bf16.msra.mxu1 %v4915_v39 }
 0x305   : > { %4784 = vmatprep.subr.bf16.mxu1 %v4916_v28 }
 0x308   : > { %4785 = vmatpush3.bf16.msra.mxu1 %v4916_v28 }
 0x309   : > { %4786 = vmatprep.subr.bf16.mxu1 %v4917_v30 }
 0x30c   : > { %4787 = vmatpush3.bf16.msra.mxu1 %v4917_v30 }
 0x30d   : > { %4788 = vmatprep.subr.bf16.mxu1 %v4918_v5 }
 0x310   : > { %4789 = vmatpush3.bf16.msra.mxu1 %v4918_v5 }
 0x311   : > { %4790 = vmatprep.subr.bf16.mxu1 %v4919_v54 }
 0x314   : > { %4791 = vmatpush3.bf16.msra.mxu1 %v4919_v54 }
 0x3d2   : > { %v3066_v36 = vpop.f32.mrb[0].mxu1 }
 0x3d3   : > { %v3067_v33 = vadd.f32 %v3066_v36, %v2983_v47  ;;  %v4730_v14 = vpop.f32.mrb[1].mxu1 }
 0x3d4   : > { %v3069_v7 = vpop.f32.mrb[2].mxu1 }
 0x3d5   : > { %v4355_v16 = vmul.f32 -1.442695, %v3067_v33  ;;  %v4731_v12 = vpop.f32.mrb[3].mxu1 }
 0x3d7   : > { %5062 = vpow2.f32 %v4355_v16 }
 0x3e1   : > { %v5063_v25 = vpop.eup %5062 }
 0x3e2   : > { %v3075_v60 = vadd.f32 1.0, %v5063_v25 }
 0x3e4   : > { %5064 = vrcp.f32 %v3075_v60 }
 0x3ee   : > { %v5065_v26 = vpop.eup %5064 }
 0x3ef   : > { %v3081_v62 = vrot.slane %v5065_v26, %v3080_v51 }
 0x3f1   : > { %v3082_v24 = vmul.f32 %v3081_v62, %v8634_v8  ;;  %v3083_v56 = vmul.f32 %v3081_v62, %v8641_v9  ;;  %v3084_v32 = vmul.f32 %v3081_v62, %v8647_v6  ;;  %v3085_v21 = vmul.f32 %v3081_v62, %v8651_v22 }
 0x3f2   : > { %v3086_v44 = vmul.f32 %v3081_v62, %v8662_v50  ;;  %v3087_v57 = vmul.f32 %v3081_v62, %v8672_v63  ;;  %v3088_v29 = vmul.f32 %v3081_v62, %v8682_v0  ;;  %v3089_v8 = vmul.f32 %v3081_v62, %v8692_v4 }
 0x3f3   : > { %v3114_v31 = vpack.c.bf16 %v3083_v56, %v3082_v24  ;;  %v3115_v19 = vpack.c.bf16 %v3085_v21, %v3084_v32  ;;  %v3090_v9 = vmul.f32 %v3081_v62, %v8702_v45  ;;  %v3091_v6 = vmul.f32 %v3081_v62, %v8712_v13 }
 0x3f4   : > { %v3116_v52 = vpack.c.bf16 %v3087_v57, %v3086_v44  ;;  %v3117_v2 = vpack.c.bf16 %v3089_v8, %v3088_v29  ;;  %v3092_v50 = vmul.f32 %v3081_v62, %v8722_v58  ;;  %v3093_v63 = vmul.f32 %v3081_v62, %v8730_v11 }
 0x3f5   : > { %4748 = vmatprep.mubr.bf16.mxu0 %v3114_v31  ;;  %v3118_v22 = vpack.c.bf16 %v3091_v6, %v3090_v9  ;;  %v3094_v41 = vmul.f32 %v3081_v62, %v8738_v17  ;;  %v3095_v39 = vmul.f32 %v3081_v62, %v8743_v3  ;;  %v3096_v4 = vmul.f32 %v3081_v62, %v8748_v20  ;;  %v4604_v31 = vld [vmem:[%s8945_s21 + $0x18] sm:$0xff]  }
 0x3f6   : > { %4749 = vmatmul.mubr.bf16.vlgmr.msra.gmra.mrb[4].mxu0 %v3115_v19  ;;  %v3119_v28 = vpack.c.bf16 %v3093_v63, %v3092_v50  ;;  %v3097_v45 = vmul.f32 %v3081_v62, %v8752_v49  ;;  %v3098_v13 = vmul.f32 %v3081_v62, %v8756_v43  ;;  %v3099_v30 = vmul.f32 %v3081_v62, %v8760_v1 }
 0x3f7   : > { %4752 = vmatprep.mubr.bf16.mxu0 %v3116_v52  ;;  %v3120_v0 = vpack.c.bf16 %v3095_v39, %v3094_v41  ;;  %v3100_v11 = vmul.f32 %v3081_v62, %v8764_v46  ;;  %v3101_v17 = vmul.f32 %v3081_v62, %v8768_v10  ;;  %v3102_v3 = vmul.f32 %v3081_v62, %v8772_v38  ;;  %v4603_v52 = vld [vmem:[%s8945_s21 + $0x10] sm:$0xff]  }
 0x3f8   : > { %v3121_v5 = vpack.c.bf16 %v3097_v45, %v3096_v4  ;;  %v3122_v58 = vpack.c.bf16 %v3099_v30, %v3098_v13  ;;  %v3103_v54 = vmul.f32 %v3081_v62, %v8776_v48  ;;  %v3104_v49 = vmul.f32 %v3081_v62, %v8780_v40 }
 0x3f9   : > { %v3123_v47 = vpack.c.bf16 %v3101_v17, %v3100_v11  ;;  %v3105_v43 = vmul.f32 %v3081_v62, %v8784_v23  ;;  %v3106_v1 = vmul.f32 %v3081_v62, %v8788_v42  ;;  %v3107_v36 = vmul.f32 %v3081_v62, %v8792_v27  ;;  %v4605_v11 = vld [vmem:[%s8945_s21 + $0x20] sm:$0xff]  }
 0x3fa   : > { %v3124_v20 = vpack.c.bf16 %v3103_v54, %v3102_v3  ;;  %v3108_v10 = vmul.f32 %v3081_v62, %v8796_v34  ;;  %v3109_v38 = vmul.f32 %v3081_v62, %v8800_v53  ;;  %v3110_v48 = vmul.f32 %v3081_v62, %v8804_v18  ;;  %v4920_v34 = vld [vmem:[%s9256_s10 + $0x30] sm:$0xff]   ;;  %v4921_v53 = vld [vmem:[%s9256_s10 + $0x38] sm:$0xff]   ;;  %v8950_v18 = vld [vmem:[%s9255_s9] ss:$0 sm:$0xff] }
 0x3fb   : > { %v3125_v33 = vpack.c.bf16 %v3105_v43, %v3104_v49  ;;  %v3126_v46 = vpack.c.bf16 %v3107_v36, %v3106_v1  ;;  %v3111_v14 = vmul.f32 %v3081_v62, %v8808_v61  ;;  %v3112_v23 = vmul.f32 %v3081_v62, %v8812_v37  ;;  %4792 = vmatprep.subr.bf16.mxu1 %v4920_v34  ;;  %v4602_v61 = vld [vmem:[%s8945_s21 + $0x8] sm:$0xff]   ;;  %v4516_v37 = vld [vmem:[%s8945_s21] sm:$0xff]  }
 0x3fc   : > { %v3127_v40 = vpack.c.bf16 %v3109_v38, %v3108_v10  ;;  %v3113_v42 = vmul.f32 %v3081_v62, %v8816_v15  ;;  %4793 = vmatpush3.bf16.msra.mxu1 %v4920_v34  ;;  %v4521_v12 = vunpack.c.l.bf16 %v4602_v61  ;;  %v4522_v60 = vunpack.c.h.bf16 %v4602_v61 }
 0x3fd   : > { %v3128_v7 = vpack.c.bf16 %v3111_v14, %v3110_v48  ;;  %4794 = vmatprep.subr.bf16.mxu1 %v4921_v53  ;;  %v4517_v35 = vunpack.c.l.bf16 %v4516_v37  ;;  %v4518_v26 = vunpack.c.h.bf16 %v4516_v37  ;;  %v4529_v6 = vunpack.c.l.bf16 %v4604_v31 }
 0x3fe   : > { %4753 = vmatmul.mubr.bf16.gmra.mrb[8].mxu0 %v3117_v2  ;;  %v3129_v27 = vpack.c.bf16 %v3113_v42, %v3112_v23  ;;  %v4525_v63 = vunpack.c.l.bf16 %v4603_v52  ;;  %v4526_v39 = vunpack.c.h.bf16 %v4603_v52  ;;  %v4533_v36 = vunpack.c.l.bf16 %v4605_v11  ;;  %v4608_v42 = vld [vmem:[%s8945_s21 + $0x38] sm:$0xff]  }
 0x3ff   : > { %4756 = vmatprep.mubr.bf16.mxu0 %v3118_v22  ;;  %v4530_v22 = vunpack.c.h.bf16 %v4604_v31 }
 0x400   : > { %4795 = vmatpush3.bf16.msra.mxu1 %v4921_v53 }
 0x406   : > { %4757 = vmatmul.mubr.bf16.gmra.mrb[12].mxu0 %v3119_v28 }
 0x407   : > { %4760 = vmatprep.mubr.bf16.mxu0 %v3120_v0 }
 0x40e   : > { %4761 = vmatmul.mubr.bf16.gmra.mrb[16].mxu0 %v3121_v5 }
 0x40f   : > { %4764 = vmatprep.mubr.bf16.mxu0 %v3122_v58  ;;  %v4606_v58 = vld [vmem:[%s8945_s21 + $0x28] sm:$0xff]  }
 0x410   : > { %v4538_v43 = vunpack.c.h.bf16 %v4606_v58 }
 0x416   : > { %4765 = vmatmul.mubr.bf16.gmra.mrb[20].mxu0 %v3123_v47 }
 0x417   : > { %4768 = vmatprep.mubr.bf16.mxu0 %v3124_v20  ;;  %v4537_v20 = vunpack.c.l.bf16 %v4606_v58 }
 0x41e   : > { %4769 = vmatmul.mubr.bf16.gmra.mrb[24].mxu0 %v3125_v33 }
 0x41f   : > { %4772 = vmatprep.mubr.bf16.mxu0 %v3126_v46  ;;  %v4534_v46 = vunpack.c.h.bf16 %v4605_v11 }
 0x426   : > { %4773 = vmatmul.mubr.bf16.gmra.mrb[28].mxu0 %v3127_v40 }
 0x427   : > { %4776 = vmatprep.mubr.bf16.mxu0 %v3128_v7 }
 0x42e   : > { %4777 = vmatmul.mubr.bf16.gmra.mrb[32].mxu0 %v3129_v27  ;;  %v4607_v27 = vld [vmem:[%s8945_s21 + $0x30] sm:$0xff]  }
 0x42f   : > { %4844 = vmatprep.mubr.msk.bf16.mxu0 %vm5263_vm0, %v10216_v59 }
 0x4c9   : > { %v4750_v15 = vpop.f32.mrb[4].mxu0 }
 0x4ca   : > { %v3244_v16 = vadd.f32 %v4750_v15, %v8950_v18  ;;  %v3235_v25 = vpop.f32.mrb[5].mxu0  ;;  %v4545_v15 = vunpack.c.l.bf16 %v4608_v42 }
 0x4cb   : > { %v3236_v55 = vadd.f32 %v8950_v18, %v3235_v25  ;;  %v4751_v51 = vpop.f32.mrb[6].mxu0 }
 0x4cc   : > { %v3247_v62 = vadd.f32 %v4751_v51, %v8950_v18  ;;  %v3238_v24 = vpop.f32.mrb[7].mxu0  ;;  %v3428_v32 = vadd.f32 %v4521_v12, %v3244_v16  ;;  %v4546_v12 = vunpack.c.h.bf16 %v4608_v42 }
 0x4cd   : > { %v3239_v56 = vadd.f32 %v8950_v18, %v3238_v24  ;;  %v3426_v44 = vadd.f32 %v4517_v35, %v3236_v55  ;;  %v4542_v35 = vunpack.c.h.bf16 %v4607_v27 }
 0x4ce   : > { %v3429_v21 = vadd.f32 %v4522_v60, %v3247_v62  ;;  %v4541_v60 = vunpack.c.l.bf16 %v4607_v27 }
 0x4cf   : > { %v3427_v57 = vadd.f32 %v4518_v26, %v3239_v56 }
 0x4d0   : > { %v3459_v19 = vpack.c.bf16 %v3429_v21, %v3428_v32 }
 0x4d1   : > { %v4754_v29 = vpop.f32.mrb[8].mxu0  ;;  %v3458_v8 = vpack.c.bf16 %v3427_v57, %v3426_v44  ;;  %v4610_v44 = vld [vmem:[%s8945_s21 + $0x48] sm:$0xff]   ;;  %v4609_v57 = vld [vmem:[%s8945_s21 + $0x40] sm:$0xff]  }
 0x4d2   : > { %v3260_v9 = vadd.f32 %v4754_v29, %v8950_v18  ;;  %v3251_v2 = vpop.f32.mrb[9].mxu0 }
 0x4d3   : > { %v3252_v50 = vadd.f32 %v8950_v18, %v3251_v2  ;;  %v4755_v41 = vpop.f32.mrb[10].mxu0  ;;  %4796 = vmatprep.mubr.bf16.mxu1 %v3458_v8  ;;  %v4553_v8 = vunpack.c.l.bf16 %v4610_v44 }
 0x4d4   : > { %v3263_v28 = vadd.f32 %v4755_v41, %v8950_v18  ;;  %v3254_v0 = vpop.f32.mrb[11].mxu0  ;;  %4797 = vmatmul.mubr.bf16.vlgmr.msra.gmra.mrb[4].mxu1 %v3459_v19  ;;  %v3432_v45 = vadd.f32 %v4529_v6, %v3260_v9  ;;  %v4554_v6 = vunpack.c.h.bf16 %v4610_v44 }
 0x4d5   : > { %v3255_v4 = vadd.f32 %v8950_v18, %v3254_v0  ;;  %v3430_v30 = vadd.f32 %v4525_v63, %v3252_v50  ;;  %v4550_v63 = vunpack.c.h.bf16 %v4609_v57 }
 0x4d6   : > { %v3433_v13 = vadd.f32 %v4530_v22, %v3263_v28  ;;  %v4549_v22 = vunpack.c.l.bf16 %v4609_v57 }
 0x4d7   : > { %v3431_v5 = vadd.f32 %v4526_v39, %v3255_v4 }
 0x4d8   : > { %v3461_v17 = vpack.c.bf16 %v3433_v13, %v3432_v45 }
 0x4d9   : > { %v4758_v3 = vpop.f32.mrb[12].mxu0  ;;  %v3460_v54 = vpack.c.bf16 %v3431_v5, %v3430_v30  ;;  %v4612_v30 = vld [vmem:[%s8945_s21 + $0x58] sm:$0xff]   ;;  %v4611_v5 = vld [vmem:[%s8945_s21 + $0x50] sm:$0xff]  }
 0x4da   : > { %v3276_v47 = vadd.f32 %v4758_v3, %v8950_v18  ;;  %v3267_v49 = vpop.f32.mrb[13].mxu0 }
 0x4db   : > { %v3268_v1 = vadd.f32 %v8950_v18, %v3267_v49  ;;  %v4759_v33 = vpop.f32.mrb[14].mxu0  ;;  %4800 = vmatprep.mubr.bf16.mxu1 %v3460_v54  ;;  %v4561_v54 = vunpack.c.l.bf16 %v4612_v30 }
 0x4dc   : > { %v3279_v10 = vadd.f32 %v4759_v33, %v8950_v18  ;;  %v3270_v38 = vpop.f32.mrb[15].mxu0  ;;  %4801 = vmatmul.mubr.bf16.gmra.mrb[8].mxu1 %v3461_v17  ;;  %v3436_v14 = vadd.f32 %v4537_v20, %v3276_v47  ;;  %v4562_v20 = vunpack.c.h.bf16 %v4612_v30  ;;  %v4922_v30 = vld [vmem:[%s9258_s12] sm:$0xff]  }
 0x4dd   : > { %v3271_v48 = vadd.f32 %v8950_v18, %v3270_v38  ;;  %v3434_v7 = vadd.f32 %v4533_v36, %v3268_v1  ;;  %v4558_v36 = vunpack.c.h.bf16 %v4611_v5  ;;  %4829 = vmatpush3.bf16.msra.mxu0 %v4922_v30 }
 0x4de   : > { %v3437_v40 = vadd.f32 %v4538_v43, %v3279_v10  ;;  %v4557_v43 = vunpack.c.l.bf16 %v4611_v5  ;;  %4830 = vmatprep.subr.bf16.mxu0 %v10216_v59  ;;  %v4923_v5 = vld [vmem:[%s9258_s12 + $0x8] sm:$0xff]  }
 0x4df   : > { %v3435_v23 = vadd.f32 %v4534_v46, %v3271_v48 }
 0x4e0   : > { %v3463_v34 = vpack.c.bf16 %v3437_v40, %v3436_v14 }
 0x4e1   : > { %v4762_v53 = vpop.f32.mrb[16].mxu0  ;;  %v3462_v61 = vpack.c.bf16 %v3435_v23, %v3434_v7  ;;  %v4614_v7 = vld [vmem:[%s8945_s21 + $0x68] sm:$0xff]   ;;  %v4613_v23 = vld [vmem:[%s8945_s21 + $0x60] sm:$0xff]   ;;  %4831 = vmatpush3.bf16.msra.mxu0 %v4923_v5 }
 0x4e2   : > { %v3292_v37 = vadd.f32 %v4762_v53, %v8950_v18  ;;  %v3283_v16 = vpop.f32.mrb[17].mxu0  ;;  %4832 = vmatprep.subr.bf16.mxu0 %v10216_v59 }
 0x4e3   : > { %v3284_v25 = vadd.f32 %v8950_v18, %v3283_v16  ;;  %v4763_v55 = vpop.f32.mrb[18].mxu0  ;;  %4804 = vmatprep.mubr.bf16.mxu1 %v3462_v61  ;;  %v4569_v61 = vunpack.c.l.bf16 %v4614_v7 }
 0x4e4   : > { %v3295_v51 = vadd.f32 %v4763_v55, %v8950_v18  ;;  %v3286_v26 = vpop.f32.mrb[19].mxu0  ;;  %4805 = vmatmul.mubr.bf16.gmra.mrb[12].mxu1 %v3463_v34  ;;  %v3440_v24 = vadd.f32 %v4545_v15, %v3292_v37  ;;  %v4570_v15 = vunpack.c.h.bf16 %v4614_v7 }
 0x4e5   : > { %v3287_v62 = vadd.f32 %v8950_v18, %v3286_v26  ;;  %v3438_v32 = vadd.f32 %v4541_v60, %v3284_v25  ;;  %v4566_v60 = vunpack.c.h.bf16 %v4613_v23 }
 0x4e6   : > { %v3441_v56 = vadd.f32 %v4546_v12, %v3295_v51  ;;  %v4565_v12 = vunpack.c.l.bf16 %v4613_v23 }
 0x4e7   : > { %v3439_v21 = vadd.f32 %v4542_v35, %v3287_v62 }
 0x4e8   : > { %v3465_v31 = vpack.c.bf16 %v3441_v56, %v3440_v24 }
 0x4e9   : > { %v4766_v19 = vpop.f32.mrb[20].mxu0  ;;  %v3464_v52 = vpack.c.bf16 %v3439_v21, %v3438_v32  ;;  %v4616_v32 = vld [vmem:[%s8945_s21 + $0x78] sm:$0xff]   ;;  %v4615_v21 = vld [vmem:[%s8945_s21 + $0x70] sm:$0xff]   ;;  %s4415_s21 = sshll.u32 %s5361_s17, 4  ;;  %s5264_s17 = smov [#allocation2]  }
 0x4ea   : > { %v3308_v29 = vadd.f32 %v4766_v19, %v8950_v18  ;;  %v3299_v9 = vpop.f32.mrb[21].mxu0  ;;  %s9204_s26 = scalar_lea.hbm %s9260_s14, %s4415_s21  ;;  %s5202_s0 = sshll.u32 %s5264_s17, 4  ;;  %s5203_s0 = int_to_ptr.vmem [resolvable:$false] %s5202_s0 }
 0x4eb   : > { %v3300_v2 = vadd.f32 %v8950_v18, %v3299_v9  ;;  %v4767_v50 = vpop.f32.mrb[22].mxu0  ;;  %4808 = vmatprep.mubr.bf16.mxu1 %v3464_v52  ;;  %v4577_v52 = vunpack.c.l.bf16 %v4616_v32  ;;  %s5204_s20 = scalar_lea.vmem %s5203_s0, 32  ;;  %p5205_p0 = scmp.lt.s32.totalorder %s9206_s3, %s5203_s0 }
 0x4ec   : > { %v3311_v41 = vadd.f32 %v4767_v50, %v8950_v18  ;;  %v3302_v39 = vpop.f32.mrb[23].mxu0  ;;  %4809 = vmatmul.mubr.bf16.gmra.mrb[16].mxu1 %v3465_v31  ;;  %v3444_v0 = vadd.f32 %v4553_v8, %v3308_v29  ;;  %v4578_v8 = vunpack.c.h.bf16 %v4616_v32  ;;  %p5206_p1 = scmp.lt.s32.totalorder %s5204_s20, %s5198_s18 }
 0x4ed   : > { %v3303_v28 = vadd.f32 %v8950_v18, %v3302_v39  ;;  %v3442_v45 = vadd.f32 %v4549_v22, %v3300_v2  ;;  %v4574_v22 = vunpack.c.h.bf16 %v4615_v21 }
 0x4ee   : > { %v3445_v4 = vadd.f32 %v4554_v6, %v3311_v41  ;;  %v4573_v6 = vunpack.c.l.bf16 %v4615_v21  ;;  %p5207_p2 = por %p5206_p1, %p5205_p0 }
 0x4ef   : > { %v3443_v13 = vadd.f32 %v4550_v63, %v3303_v28 }
 0x4f0   : > { %v3467_v58 = vpack.c.bf16 %v3445_v4, %v3444_v0  ;;  %p5208_p3 = pnand %p5207_p2, %p5201_p13 }
 0x4f1   : > { %v4770_v11 = vpop.f32.mrb[24].mxu0  ;;  %v3466_v17 = vpack.c.bf16 %v3443_v13, %v3442_v45 }
 0x4f2   : > { %v3324_v3 = vadd.f32 %v4770_v11, %v8950_v18  ;;  %v3315_v47 = vpop.f32.mrb[25].mxu0  ;;  %v4926_v11 = vld [vmem:[%s9258_s12 + $0x20] sm:$0xff]  }
 0x4f3   : > { %v3316_v49 = vadd.f32 %v8950_v18, %v3315_v47  ;;  %v4771_v1 = vpop.f32.mrb[26].mxu0  ;;  %4812 = vmatprep.mubr.bf16.mxu1 %v3466_v17  ;;  %v4927_v17 = vld [vmem:[%s9258_s12 + $0x28] sm:$0xff]   ;;  %v9034_v47 = vld [vmem:[%s9257_s11] ss:$0 sm:$0xff] }
 0x4f4   : > { %v3327_v33 = vadd.f32 %v4771_v1, %v8950_v18  ;;  %v3318_v46 = vpop.f32.mrb[27].mxu0  ;;  %4813 = vmatmul.mubr.bf16.gmra.mrb[20].mxu1 %v3467_v58  ;;  %v3448_v38 = vadd.f32 %v4561_v54, %v3324_v3  ;;  %v4925_v58 = vld [vmem:[%s9258_s12 + $0x18] sm:$0xff]   ;;  %v4928_v3 = vld [vmem:[%s9258_s12 + $0x30] sm:$0xff]  }
 0x4f5   : > { %v3319_v10 = vadd.f32 %v8950_v18, %v3318_v46  ;;  %v3446_v14 = vadd.f32 %v4557_v43, %v3316_v49  ;;  %v4929_v54 = vld [vmem:[%s9258_s12 + $0x38] sm:$0xff]  }
 0x4f6   : > { %v3449_v48 = vadd.f32 %v4562_v20, %v3327_v33 }
 0x4f7   : > { %v3447_v40 = vadd.f32 %v4558_v36, %v3319_v10 }
 0x4f8   : > { %v3469_v42 = vpack.c.bf16 %v3449_v48, %v3448_v38 }
 0x4f9   : > { %v4774_v27 = vpop.f32.mrb[28].mxu0  ;;  %v3468_v34 = vpack.c.bf16 %v3447_v40, %v3446_v14 }
 0x4fa   : > { %v3340_v53 = vadd.f32 %v4774_v27, %v8950_v18  ;;  %v3331_v37 = vpop.f32.mrb[29].mxu0 }
 0x4fb   : > { %v3332_v16 = vadd.f32 %v8950_v18, %v3331_v37  ;;  %v4775_v25 = vpop.f32.mrb[30].mxu0  ;;  %4816 = vmatprep.mubr.bf16.mxu1 %v3468_v34 }
 0x4fc   : > { %v3343_v55 = vadd.f32 %v4775_v25, %v8950_v18  ;;  %v3334_v35 = vpop.f32.mrb[31].mxu0  ;;  %4817 = vmatmul.mubr.bf16.gmra.mrb[24].mxu1 %v3469_v42  ;;  %v3452_v26 = vadd.f32 %v4569_v61, %v3340_v53 }
 0x4fd   : > { %v3335_v51 = vadd.f32 %v8950_v18, %v3334_v35  ;;  %v3450_v24 = vadd.f32 %v4565_v12, %v3332_v16 }
 0x4fe   : > { %v3453_v62 = vadd.f32 %v4570_v15, %v3343_v55 }
 0x4ff   : > { %v3451_v56 = vadd.f32 %v4566_v60, %v3335_v51 }
 0x500   : > { %v3471_v44 = vpack.c.bf16 %v3453_v62, %v3452_v26 }
 0x501   : > { %v4778_v57 = vpop.f32.mrb[32].mxu0  ;;  %v3470_v31 = vpack.c.bf16 %v3451_v56, %v3450_v24 }
 0x502   : > { %v3356_v19 = vadd.f32 %v4778_v57, %v8950_v18  ;;  %v3347_v29 = vpop.f32.mrb[33].mxu0 }
 0x503   : > { %v3348_v9 = vadd.f32 %v8950_v18, %v3347_v29  ;;  %v4779_v2 = vpop.f32.mrb[34].mxu0  ;;  %4820 = vmatprep.mubr.bf16.mxu1 %v3470_v31 }
 0x504   : > { %v3359_v50 = vadd.f32 %v4779_v2, %v8950_v18  ;;  %v3350_v63 = vpop.f32.mrb[35].mxu0  ;;  %4821 = vmatmul.mubr.bf16.gmra.mrb[28].mxu1 %v3471_v44  ;;  %v3456_v39 = vadd.f32 %v4577_v52, %v3356_v19 }
 0x505   : > { %v3351_v41 = vadd.f32 %v8950_v18, %v3350_v63  ;;  %v3454_v0 = vadd.f32 %v4573_v6, %v3348_v9  ;;  %v4924_v18 = vld [vmem:[%s9258_s12 + $0x10] sm:$0xff]  }
 0x506   : > { %v3457_v28 = vadd.f32 %v4578_v8, %v3359_v50  ;;  %4833 = vmatpush3.bf16.msra.mxu0 %v4924_v18 }
 0x507   : > { %v3455_v4 = vadd.f32 %v4574_v22, %v3351_v41  ;;  %4834 = vmatprep.subr.bf16.mxu0 %v10216_v59 }
 0x508   : > { %v3473_v45 = vpack.c.bf16 %v3457_v28, %v3456_v39 }
 0x509   : > { %v3472_v13 = vpack.c.bf16 %v3455_v4, %v3454_v0 }
 0x50a   : > { %4835 = vmatpush3.bf16.msra.mxu0 %v4925_v58 }
 0x50b   : > { %4824 = vmatprep.mubr.bf16.mxu1 %v3472_v13  ;;  %4836 = vmatprep.subr.bf16.mxu0 %v10216_v59 }
 0x50c   : > { %4825 = vmatmul.mubr.bf16.gmra.mrb[32].mxu1 %v3473_v45 }
 0x50e   : > { %4837 = vmatpush3.bf16.msra.mxu0 %v4926_v11 }
 0x50f   : > { %4838 = vmatprep.subr.bf16.mxu0 %v10216_v59 }
 0x512   : > { %4839 = vmatpush3.bf16.msra.mxu0 %v4927_v17 }
 0x513   : > { %4840 = vmatprep.subr.bf16.mxu0 %v10216_v59 }
 0x516   : > { %4841 = vmatpush3.bf16.msra.mxu0 %v4928_v3 }
 0x517   : > { %4842 = vmatprep.subr.bf16.mxu0 %v10216_v59 }
 0x51a   : > { %4843 = vmatpush3.bf16.msra.mxu0 %v4929_v54 }
 0x5a7   : > { %v4798_v20 = vpop.f32.mrb[4].mxu1 }
 0x5a8   : > { %v9037_v49 = vadd.f32 %v4798_v20, %v9034_v47  ;;  %v3579_v43 = vpop.f32.mrb[5].mxu1 }
 0x5a9   : > { %v9040_v1 = vadd.f32 %v9034_v47, %v3579_v43  ;;  %v4799_v36 = vpop.f32.mrb[6].mxu1 }
 0x5aa   : > { %v4376_v33 = vmul.f32 -1.442695, %v9037_v49  ;;  %v9044_v46 = vadd.f32 %v4799_v36, %v9034_v47  ;;  %v3582_v59 = vpop.f32.mrb[7].mxu1 }
 0x5ab   : > { %v4374_v10 = vmul.f32 -1.442695, %v9040_v1  ;;  %v9048_v38 = vadd.f32 %v9034_v47, %v3582_v59 }
 0x5ac   : > { %5066 = vpow2.f32 %v4376_v33  ;;  %v4377_v48 = vmul.f32 -1.442695, %v9044_v46 }
 0x5ad   : > { %5068 = vpow2.f32 %v4374_v10  ;;  %v4375_v14 = vmul.f32 -1.442695, %v9048_v38 }
 0x5ae   : > { %5070 = vpow2.f32 %v4377_v48 }
 0x5af   : > { %5072 = vpow2.f32 %v4375_v14  ;;  %v4802_v40 = vpop.f32.mrb[8].mxu1 }
 0x5b0   : > { %v9053_v7 = vadd.f32 %v4802_v40, %v9034_v47  ;;  %v3595_v23 = vpop.f32.mrb[9].mxu1 }
 0x5b1   : > { %v9056_v42 = vadd.f32 %v9034_v47, %v3595_v23  ;;  %v4803_v27 = vpop.f32.mrb[10].mxu1 }
 0x5b2   : > { %v4380_v34 = vmul.f32 -1.442695, %v9053_v7  ;;  %v9060_v53 = vadd.f32 %v4803_v27, %v9034_v47  ;;  %v3598_v61 = vpop.f32.mrb[11].mxu1 }
 0x5b3   : > { %v4378_v37 = vmul.f32 -1.442695, %v9056_v42  ;;  %v9064_v15 = vadd.f32 %v9034_v47, %v3598_v61 }
 0x5b4   : > { %5074 = vpow2.f32 %v4380_v34  ;;  %v4381_v16 = vmul.f32 -1.442695, %v9060_v53 }
 0x5b5   : > { %5076 = vpow2.f32 %v4378_v37  ;;  %v4379_v12 = vmul.f32 -1.442695, %v9064_v15 }
 0x5b6   : > { %v5067_v25 = vpop.eup %5066  ;;  %5078 = vpow2.f32 %v4381_v16 }
 0x5b7   : > { %v5069_v60 = vpop.eup %5068  ;;  %v3804_v55 = vadd.f32 1.0, %v5067_v25  ;;  %5080 = vpow2.f32 %v4379_v12  ;;  %v4806_v35 = vpop.f32.mrb[12].mxu1 }
 0x5b8   : > { %v5071_v51 = vpop.eup %5070  ;;  %v3802_v26 = vadd.f32 1.0, %v5069_v60  ;;  %v9069_v62 = vadd.f32 %v4806_v35, %v9034_v47  ;;  %v3611_v24 = vpop.f32.mrb[13].mxu1 }
 0x5b9   : > { %v5073_v56 = vpop.eup %5072  ;;  %5082 = vrcp.f32 %v3804_v55  ;;  %v3805_v32 = vadd.f32 1.0, %v5071_v51  ;;  %v9072_v21 = vadd.f32 %v9034_v47, %v3611_v24  ;;  %v4807_v44 = vpop.f32.mrb[14].mxu1 }
 0x5ba   : > { %5084 = vrcp.f32 %v3802_v26  ;;  %v3803_v57 = vadd.f32 1.0, %v5073_v56  ;;  %v4384_v31 = vmul.f32 -1.442695, %v9069_v62  ;;  %v9076_v19 = vadd.f32 %v4807_v44, %v9034_v47  ;;  %v3614_v52 = vpop.f32.mrb[15].mxu1 }
 0x5bb   : > { %5086 = vrcp.f32 %v3805_v32  ;;  %v4382_v29 = vmul.f32 -1.442695, %v9072_v21  ;;  %v9080_v8 = vadd.f32 %v9034_v47, %v3614_v52 }
 0x5bc   : > { %5088 = vrcp.f32 %v3803_v57  ;;  %v4385_v9 = vmul.f32 -1.442695, %v9076_v19 }
 0x5bd   : > { %5090 = vpow2.f32 %v4384_v31  ;;  %v4383_v6 = vmul.f32 -1.442695, %v9080_v8 }
 0x5be   : > { %v5075_v2 = vpop.eup %5074  ;;  %5092 = vpow2.f32 %v4382_v29 }
 0x5bf   : > { %v5077_v22 = vpop.eup %5076  ;;  %v3808_v50 = vadd.f32 1.0, %v5075_v2  ;;  %5094 = vpow2.f32 %v4385_v9  ;;  %v4810_v63 = vpop.f32.mrb[16].mxu1 }
 0x5c0   : > { %v5079_v41 = vpop.eup %5078  ;;  %v3806_v39 = vadd.f32 1.0, %v5077_v22  ;;  %5096 = vpow2.f32 %v4383_v6  ;;  %v9085_v28 = vadd.f32 %v4810_v63, %v9034_v47  ;;  %v3627_v0 = vpop.f32.mrb[17].mxu1 }
 0x5c1   : > { %v5081_v4 = vpop.eup %5080  ;;  %5098 = vrcp.f32 %v3808_v50  ;;  %v3809_v45 = vadd.f32 1.0, %v5079_v41  ;;  %v9088_v13 = vadd.f32 %v9034_v47, %v3627_v0  ;;  %v4811_v30 = vpop.f32.mrb[18].mxu1 }
 0x5c2   : > { %5100 = vrcp.f32 %v3806_v39  ;;  %v3807_v5 = vadd.f32 1.0, %v5081_v4  ;;  %v4388_v18 = vmul.f32 -1.442695, %v9085_v28  ;;  %v9092_v58 = vadd.f32 %v4811_v30, %v9034_v47  ;;  %v3630_v11 = vpop.f32.mrb[19].mxu1 }
 0x5c3   : > { %v5083_v17 = vpop.eup %5082  ;;  %5102 = vrcp.f32 %v3809_v45  ;;  %v4386_v3 = vmul.f32 -1.442695, %v9088_v13  ;;  %v9096_v54 = vadd.f32 %v9034_v47, %v3630_v11 }
 0x5c4   : > { %v5085_v20 = vpop.eup %5084  ;;  %5104 = vrcp.f32 %v3807_v5  ;;  %v4389_v43 = vmul.f32 -1.442695, %v9092_v58  ;;  %v3900_v27 = vmul.f32 %v5083_v17, %v9037_v49 }
 0x5c5   : > { %v5087_v36 = vpop.eup %5086  ;;  %5106 = vpow2.f32 %v4388_v18  ;;  %v4387_v33 = vmul.f32 -1.442695, %v9096_v54  ;;  %v3898_v48 = vmul.f32 %v5085_v20, %v9040_v1 }
 0x5c6   : > { %v5089_v59 = vpop.eup %5088  ;;  %5108 = vpow2.f32 %v4386_v3  ;;  %v3901_v12 = vmul.f32 %v5087_v36, %v9044_v46 }
 0x5c7   : > { %v5091_v10 = vpop.eup %5090  ;;  %v3899_v14 = vmul.f32 %v5089_v59, %v9048_v38  ;;  %5110 = vpow2.f32 %v4389_v43  ;;  %v4814_v40 = vpop.f32.mrb[20].mxu1 }
 0x5c8   : > { %v5093_v23 = vpop.eup %5092  ;;  %v3812_v34 = vadd.f32 1.0, %v5091_v10  ;;  %5112 = vpow2.f32 %v4387_v33  ;;  %v9104_v61 = vadd.f32 %v4814_v40, %v9034_v47  ;;  %v3643_v37 = vpop.f32.mrb[21].mxu1 }
 0x5c9   : > { %v5095_v16 = vpop.eup %5094  ;;  %v3930_v25 = vadd.f32 %v3899_v14, %v3898_v48  ;;  %v3810_v60 = vadd.f32 1.0, %v5093_v23  ;;  %v9108_v1 = vadd.f32 %v9034_v47, %v3643_v37  ;;  %v4815_v38 = vpop.f32.mrb[22].mxu1 }
 0x5ca   : > { %v5097_v55 = vpop.eup %5096  ;;  %5114 = vrcp.f32 %v3812_v34  ;;  %v3813_v35 = vadd.f32 1.0, %v5095_v16  ;;  %v4392_v49 = vmul.f32 -1.442695, %v9104_v61  ;;  %v9112_v51 = vadd.f32 %v4815_v38, %v9034_v47  ;;  %v3646_v26 = vpop.f32.mrb[23].mxu1 }
 0x5cb   : > { %v5099_v24 = vpop.eup %5098  ;;  %v3931_v56 = vadd.f32 %v3930_v25, %v3900_v27  ;;  %5116 = vrcp.f32 %v3810_v60  ;;  %v3811_v32 = vadd.f32 1.0, %v5097_v55  ;;  %v4390_v46 = vmul.f32 -1.442695, %v9108_v1 }
 0x5cc   : > { %v5101_v44 = vpop.eup %5100  ;;  %5118 = vrcp.f32 %v3813_v35  ;;  %v4393_v57 = vmul.f32 -1.442695, %v9112_v51  ;;  %v9117_v31 = vadd.f32 %v9034_v47, %v3646_v26  ;;  %v3904_v50 = vmul.f32 %v5099_v24, %v9053_v7 }
 0x5cd   : > { %v5103_v52 = vpop.eup %5102  ;;  %v3902_v29 = vmul.f32 %v5101_v44, %v9056_v42  ;;  %v3932_v9 = vadd.f32 %v3931_v56, %v3901_v12  ;;  %5120 = vrcp.f32 %v3811_v32 }
 0x5ce   : > { %v5105_v6 = vpop.eup %5104  ;;  %5122 = vpow2.f32 %v4392_v49  ;;  %v4391_v2 = vmul.f32 -1.442695, %v9117_v31  ;;  %v3905_v4 = vmul.f32 %v5103_v52, %v9060_v53 }
 0x5cf   : > { %v5107_v22 = vpop.eup %5106  ;;  %v3933_v63 = vadd.f32 %v3932_v9, %v3902_v29  ;;  %v3903_v41 = vmul.f32 %v5105_v6, %v9064_v15  ;;  %5124 = vpow2.f32 %v4390_v46  ;;  %v4818_v39 = vpop.f32.mrb[24].mxu1 }
 0x5d0   : > { %v5109_v0 = vpop.eup %5108  ;;  %v3816_v45 = vadd.f32 1.0, %v5107_v22  ;;  %5126 = vpow2.f32 %v4393_v57  ;;  %v9125_v42 = vadd.f32 %v4818_v39, %v9034_v47  ;;  %v3659_v30 = vpop.f32.mrb[25].mxu1 }
 0x5d1   : > { %v5111_v5 = vpop.eup %5110  ;;  %v3934_v18 = vadd.f32 %v3933_v63, %v3903_v41  ;;  %v3814_v11 = vadd.f32 1.0, %v5109_v0  ;;  %5128 = vpow2.f32 %v4391_v2  ;;  %v9128_v7 = vadd.f32 %v9034_v47, %v3659_v30  ;;  %v4819_v17 = vpop.f32.mrb[26].mxu1 }
 0x5d2   : > { %v5113_v15 = vpop.eup %5112  ;;  %5130 = vrcp.f32 %v3816_v45  ;;  %v3817_v3 = vadd.f32 1.0, %v5111_v5  ;;  %v4396_v20 = vmul.f32 -1.442695, %v9125_v42  ;;  %v9132_v53 = vadd.f32 %v4819_v17, %v9034_v47  ;;  %v3662_v43 = vpop.f32.mrb[27].mxu1 }
 0x5d3   : > { %v3935_v36 = vadd.f32 %v3934_v18, %v3904_v50  ;;  %5132 = vrcp.f32 %v3814_v11  ;;  %v3815_v33 = vadd.f32 1.0, %v5113_v15  ;;  %v4394_v59 = vmul.f32 -1.442695, %v9128_v7 }
 0x5d4   : > { %v5115_v10 = vpop.eup %5114  ;;  %5134 = vrcp.f32 %v3817_v3  ;;  %v4397_v48 = vmul.f32 -1.442695, %v9132_v53  ;;  %v9137_v14 = vadd.f32 %v9034_v47, %v3662_v43 }
 0x5d5   : > { %v5117_v40 = vpop.eup %5116  ;;  %v3936_v23 = vadd.f32 %v3935_v36, %v3905_v4  ;;  %5136 = vrcp.f32 %v3815_v33  ;;  %v3908_v26 = vmul.f32 %v5115_v10, %v9069_v62 }
 0x5d6   : > { %v5119_v27 = vpop.eup %5118  ;;  %v3906_v34 = vmul.f32 %v5117_v40, %v9072_v21  ;;  %5138 = vpow2.f32 %v4396_v20  ;;  %v4395_v37 = vmul.f32 -1.442695, %v9137_v14 }
 0x5d7   : > { %v5121_v16 = vpop.eup %5120  ;;  %5140 = vpow2.f32 %v4394_v59  ;;  %v4822_v12 = vpop.f32.mrb[28].mxu1  ;;  %v3909_v46 = vmul.f32 %v5119_v27, %v9076_v19 }
 0x5d8   : > { %v5123_v25 = vpop.eup %5122  ;;  %v3937_v60 = vadd.f32 %v3936_v23, %v3906_v34  ;;  %v3907_v38 = vmul.f32 %v5121_v16, %v9080_v8  ;;  %5142 = vpow2.f32 %v4397_v48  ;;  %v9143_v55 = vadd.f32 %v4822_v12, %v9034_v47  ;;  %v3675_v35 = vpop.f32.mrb[29].mxu1 }
 0x5d9   : > { %v5125_v49 = vpop.eup %5124  ;;  %v3820_v24 = vadd.f32 1.0, %v5123_v25  ;;  %5144 = vpow2.f32 %v4395_v37  ;;  %v9147_v21 = vadd.f32 %v9034_v47, %v3675_v35  ;;  %v4823_v56 = vpop.f32.mrb[30].mxu1 }
 0x5da   : > { %v5127_v32 = vpop.eup %5126  ;;  %v3938_v44 = vadd.f32 %v3937_v60, %v3907_v38  ;;  %v3818_v57 = vadd.f32 1.0, %v5125_v49  ;;  %v9151_v8 = vadd.f32 %v4823_v56, %v9034_v47  ;;  %v3678_v52 = vpop.f32.mrb[31].mxu1  ;;  %v4400_v62 = vmul.f32 -1.442695, %v9143_v55 }
 0x5db   : > { %v5129_v29 = vpop.eup %5128  ;;  %5146 = vrcp.f32 %v3820_v24  ;;  %v3821_v9 = vadd.f32 1.0, %v5127_v32  ;;  %v9155_v6 = vadd.f32 %v9034_v47, %v3678_v52  ;;  %v4398_v19 = vmul.f32 -1.442695, %v9147_v21 }
 0x5dc   : > { %v5131_v2 = vpop.eup %5130  ;;  %v3939_v22 = vadd.f32 %v3938_v44, %v3908_v26  ;;  %5148 = vrcp.f32 %v3818_v57  ;;  %v3819_v50 = vadd.f32 1.0, %v5129_v29  ;;  %v4401_v41 = vmul.f32 -1.442695, %v9151_v8 }
 0x5dd   : > { %v5133_v63 = vpop.eup %5132  ;;  %5150 = vrcp.f32 %v3821_v9  ;;  %v4399_v45 = vmul.f32 -1.442695, %v9155_v6  ;;  %v3912_v5 = vmul.f32 %v5131_v2, %v9085_v28 }
 0x5de   : > { %v5135_v39 = vpop.eup %5134  ;;  %v3910_v0 = vmul.f32 %v5133_v63, %v9088_v13  ;;  %v3940_v4 = vadd.f32 %v3939_v22, %v3909_v46  ;;  %5152 = vrcp.f32 %v3819_v50 }
 0x5df   : > { %v5137_v30 = vpop.eup %5136  ;;  %5154 = vpow2.f32 %v4400_v62  ;;  %v4826_v18 = vpop.f32.mrb[32].mxu1  ;;  %v3913_v13 = vmul.f32 %v5135_v39, %v9092_v58 }
 0x5e0   : > { %v5139_v11 = vpop.eup %5138  ;;  %v3941_v17 = vadd.f32 %v3940_v4, %v3910_v0  ;;  %v3911_v15 = vmul.f32 %v5137_v30, %v9096_v54  ;;  %5156 = vpow2.f32 %v4398_v19  ;;  %v9164_v3 = vadd.f32 %v4826_v18, %v9034_v47  ;;  %v3691_v20 = vpop.f32.mrb[33].mxu1 }
 0x5e1   : > { %v5141_v43 = vpop.eup %5140  ;;  %v3824_v36 = vadd.f32 1.0, %v5139_v11  ;;  %5158 = vpow2.f32 %v4401_v41  ;;  %v9168_v33 = vadd.f32 %v9034_v47, %v3691_v20  ;;  %v4827_v28 = vpop.f32.mrb[34].mxu1 }
 0x5e2   : > { %v5143_v59 = vpop.eup %5142  ;;  %v3942_v10 = vadd.f32 %v3941_v17, %v3911_v15  ;;  %v3822_v48 = vadd.f32 1.0, %v5141_v43  ;;  %5160 = vpow2.f32 %v4399_v45  ;;  %v4404_v54 = vmul.f32 -1.442695, %v9164_v3  ;;  %v3694_v40 = vpop.f32.mrb[35].mxu1 }
 0x5e3   : > { %v5145_v23 = vpop.eup %5144  ;;  %5162 = vrcp.f32 %v3824_v36  ;;  %v3825_v27 = vadd.f32 1.0, %v5143_v59  ;;  %v4402_v34 = vmul.f32 -1.442695, %v9168_v33  ;;  %v9173_v58 = vadd.f32 %v4827_v28, %v9034_v47 }
 0x5e4   : > { %v3943_v37 = vadd.f32 %v3942_v10, %v3912_v5  ;;  %5164 = vrcp.f32 %v3822_v48  ;;  %v3823_v16 = vadd.f32 1.0, %v5145_v23  ;;  %v9176_v12 = vadd.f32 %v9034_v47, %v3694_v40 }
 0x5e5   : > { %v5147_v25 = vpop.eup %5146  ;;  %5166 = vrcp.f32 %v3825_v27  ;;  %v4405_v60 = vmul.f32 -1.442695, %v9173_v58 }
 0x5e6   : > { %v5149_v38 = vpop.eup %5148  ;;  %v3944_v35 = vadd.f32 %v3943_v37, %v3913_v13  ;;  %5168 = vrcp.f32 %v3823_v16  ;;  %v4403_v49 = vmul.f32 -1.442695, %v9176_v12  ;;  %v3916_v29 = vmul.f32 %v5147_v25, %v9104_v61 }
 0x5e7   : > { %v5151_v26 = vpop.eup %5150  ;;  %v3914_v24 = vmul.f32 %v5149_v38, %v9108_v1  ;;  %5170 = vpow2.f32 %v4404_v54 }
 0x5e8   : > { %v5153_v56 = vpop.eup %5152  ;;  %5172 = vpow2.f32 %v4402_v34  ;;  %v3917_v22 = vmul.f32 %v5151_v26, %v9112_v51 }
 0x5e9   : > { %v5155_v32 = vpop.eup %5154  ;;  %v3945_v46 = vadd.f32 %v3944_v35, %v3914_v24  ;;  %v3915_v47 = vmul.f32 %v5153_v56, %v9117_v31  ;;  %5174 = vpow2.f32 %v4405_v60 }
 0x5ea   : > { %v5157_v44 = vpop.eup %5156  ;;  %v3828_v57 = vadd.f32 1.0, %v5155_v32  ;;  %5176 = vpow2.f32 %v4403_v49 }
 0x5eb   : > { %v5159_v52 = vpop.eup %5158  ;;  %v3946_v9 = vadd.f32 %v3945_v46, %v3915_v47  ;;  %v3826_v62 = vadd.f32 1.0, %v5157_v44 }
 0x5ec   : > { %v5161_v2 = vpop.eup %5160  ;;  %v3829_v19 = vadd.f32 1.0, %v5159_v52 }
 0x5ed   : > { %v5163_v1 = vpop.eup %5162  ;;  %v3947_v50 = vadd.f32 %v3946_v9, %v3916_v29  ;;  %5178 = vrcp.f32 %v3826_v62  ;;  %v3827_v63 = vadd.f32 1.0, %v5161_v2 }
 0x5ee   : > { %v5165_v41 = vpop.eup %5164  ;;  %5180 = vrcp.f32 %v3828_v57  ;;  %v3920_v11 = vmul.f32 %v5163_v1, %v9125_v42 }
 0x5ef   : > { %v5167_v31 = vpop.eup %5166  ;;  %v3918_v39 = vmul.f32 %v5165_v41, %v9128_v7  ;;  %v3948_v0 = vadd.f32 %v3947_v50, %v3917_v22  ;;  %5182 = vrcp.f32 %v3827_v63 }
 0x5f0   : > { %v5169_v4 = vpop.eup %5168  ;;  %5184 = vrcp.f32 %v3829_v19  ;;  %v3921_v43 = vmul.f32 %v5167_v31, %v9132_v53 }
 0x5f1   : > { %v5171_v45 = vpop.eup %5170  ;;  %v3949_v61 = vadd.f32 %v3948_v0, %v3918_v39  ;;  %v3919_v30 = vmul.f32 %v5169_v4, %v9137_v14 }
 0x5f2   : > { %v5173_v5 = vpop.eup %5172  ;;  %v3832_v51 = vadd.f32 1.0, %v5171_v45 }
 0x5f3   : > { %v5175_v18 = vpop.eup %5174  ;;  %v3950_v17 = vadd.f32 %v3949_v61, %v3919_v30  ;;  %v3830_v15 = vadd.f32 1.0, %v5173_v5 }
 0x5f4   : > { %v5177_v20 = vpop.eup %5176  ;;  %v3833_v7 = vadd.f32 1.0, %v5175_v18 }
 0x5f5   : > { %v3951_v13 = vadd.f32 %v3950_v17, %v3920_v11  ;;  %5186 = vrcp.f32 %v3830_v15  ;;  %v3831_v36 = vadd.f32 1.0, %v5177_v20 }
 0x5f6   : > { %5188 = vrcp.f32 %v3832_v51 }
 0x5f7   : > { %v5179_v28 = vpop.eup %5178  ;;  %v3952_v59 = vadd.f32 %v3951_v13, %v3921_v43  ;;  %5190 = vrcp.f32 %v3831_v36 }
 0x5f8   : > { %v5181_v14 = vpop.eup %5180  ;;  %v3922_v10 = vmul.f32 %v5179_v28, %v9147_v21  ;;  %5192 = vrcp.f32 %v3833_v7 }
 0x5f9   : > { %v5183_v48 = vpop.eup %5182  ;;  %v3924_v23 = vmul.f32 %v5181_v14, %v9143_v55 }
 0x5fa   : > { %v3953_v54 = vadd.f32 %v3952_v59, %v3922_v10  ;;  %v3923_v42 = vmul.f32 %v5183_v48, %v9155_v6  ;;  %v5185_v40 = vpop.eup %5184 }
 0x5fb   : > { %v3925_v27 = vmul.f32 %v5185_v40, %v9151_v8 }
 0x5fc   : > { %v3954_v53 = vadd.f32 %v3953_v54, %v3923_v42 }
 0x5fe   : > { %v3955_v34 = vadd.f32 %v3954_v53, %v3924_v23 }
 0x5ff   : > { %v5187_v37 = vpop.eup %5186 }
 0x600   : > { %v5189_v16 = vpop.eup %5188  ;;  %v3926_v25 = vmul.f32 %v5187_v37, %v9168_v33  ;;  %v3956_v60 = vadd.f32 %v3955_v34, %v3925_v27 }
 0x601   : > { %v5191_v38 = vpop.eup %5190  ;;  %v3928_v26 = vmul.f32 %v5189_v16, %v9164_v3  ;;  %v3985_v3 = vld [vmem:[%s9259_s13] sm:$0x1] }
 0x602   : > { %v3957_v35 = vadd.f32 %v3956_v60, %v3926_v25  ;;  %v3927_v21 = vmul.f32 %v5191_v38, %v9176_v12  ;;  %v5193_v49 = vpop.eup %5192 }
 0x603   : > { %v3929_v24 = vmul.f32 %v5193_v49, %v9173_v58 }
 0x604   : > { %v3958_v6 = vadd.f32 %v3957_v35, %v3927_v21 }
 0x606   : > { %v3959_v55 = vadd.f32 %v3958_v6, %v3928_v26 }
 0x608   : > { %v3960_v56 = vadd.f32 %v3959_v55, %v3929_v24 }
 0x60a   : > { %v3961_v32 = vrot.slane %v3960_v56, 4 }
 0x60c   : > { %v3962_v8 = vadd.f32 %v3961_v32, %v3960_v56 }
 0x60e   : > { %v3963_v46 = vrot.slane %v3962_v8, 2 }
 0x610   : > { %v3964_v47 = vadd.f32 %v3963_v46, %v3962_v8 }
 0x612   : > { %v3965_v44 = vrot.slane %v3964_v47, 1 }
 0x614   : > { %v3966_v33 = vadd.f32 %v3965_v44, %v3964_v47 }
 0x616   : > { %v3967_v57 = vmul.f32 0.00390625, %v3966_v33 }
 0x618   : > { %v3968_v52 = vpack.c.bf16 %v3967_v57, %v3967_v57 }
 0x61a   : > { %4845 = vmatmul.mubr.bf16.vlgmr.msra.gmra.mrb[36].mxu0 %v3968_v52 }
 0x6ed   : > { %v4068_v12 = vpop.f32.mrb[36].mxu0 }
 0x6ee   : > { %v4069_v29 = vadd.f32 %v4068_v12, %v3985_v3  ;;  %v4846_v58 = vpop.f32.mrb[37].mxu0 }
 0x6ef   : > { %v4071_v9 = vpop.f32.mrb[38].mxu0 }
 0x6f0   : > { %v4414_v62 = vmul.f32 -1.442695, %v4069_v29  ;;  %v4847_v2 = vpop.f32.mrb[39].mxu0 }
 0x6f2   : > { %5194 = vpow2.f32 %v4414_v62 }
 0x6fc   : > { %v5195_v22 = vpop.eup %5194 }
 0x6fd   : > { %v4077_v1 = vadd.f32 1.0, %v5195_v22 }
 0x6ff   : > { %5196 = vrcp.f32 %v4077_v1 }
 0x709   : > { %v5197_v50 = vpop.eup %5196 }
 0x70a   : > { %4080 = vst [vmem:[%s474_s2] sm:$0x1] %v5197_v50 }
 0x70b   : > { %5211 = shalt.err (!%p5208_p3)
}
 0x70c   : > { %s5212_s22 = scalar_lea.hbm %s9204_s26, 16  ;;  %s5216_s27 = scalar_lea.hbm %s9260_s14, 32 }
 0x70d   : > { %p5213_p4 = scmp.ne.s32.totalorder %s9204_s26, %s5212_s22  ;;  %p5217_p9 = scmp.lt.u32.totalorder %s9204_s26, %s9260_s14 }
 0x70e   : > { %p5218_p10 = scmp.lt.u32.totalorder %s5216_s27, %s5212_s22  ;;  %p5220_p12 = scmp.lt.u32.totalorder %s5212_s22, %s9204_s26 }
 0x70f   : > { %p5214_p7 = pnand %p5213_p4, %p5378_p5 }
 0x710   : > { %p5219_p11 = por %p5218_p10, %p5217_p9 }
 0x711   : > { %p5215_p8 = pneg %p5214_p7 }
 0x712   : > { %p5221_p13 = por %p5220_p12, %p5219_p11 }
 0x714   : > { %p5222_p0 = pnand %p5221_p13, %p5215_p8 }
 0x716   : > { %5225 = shalt.err (!%p5222_p0)
}
 0x717   : > { %4849 = dma.vmem_to_hbm [thread:$0]  (%p5378_p5), %s9206_s3, 16, %s9204_s26, %s4082_s28  }
 0x718 PF: > { %p4855_p1 = scmp.ge.s32.totalorder %s5260_s16, 2  ;;  %s4106_s18 = sand.u32 1, %s5248_s29  }
 0x719   : > { %s4107_s0 = scalar_lea.sflag [#allocation3], %s4106_s18 }
 0x71a   : > { %p4852_p2 = pnand %p4855_p1, %p5382_p6 }
 0x71c   : > { %5243 = dma.done.wait (!%p4852_p2), %s4107_s0, 16  }
 0x71d   : > { %5245 = vsyncadd (!%p4852_p2), %s4107_s0, 4294967280  ;;  %s10217_s20 = sld [smem:[#allocation5_spill]]  ;;  %p24_p3 = scmp.ge.s32.totalorder %s5365_s19, 4  }
 0x71e   : > { %s10218_s29 = smov %s5252_s30  ;;  %s10219_s30 = smov %s5256_s15 }
 0x71f   : > { %s10221_s16 = smov %s5365_s19  ;;  %26 = sbr.rel (!%p24_p3) target bundleno = 7 (0x7), region = 116 }
 0x723   : > { %s10220_s15 = smov %s10217_s20 }
 0x726   :  { %4111 = vsyncpa [#allocation3], 1 }
 0x727   :  { %4113 = vsyncpa [#allocation3 + $0x1], 1 }

</bundles_post_ra>
